<compile_context>
chip_gen: v7x
topology: tpu7x:2x2x1
jax: 0.10.0
libtpu: 0.0.40
codegen_flags: <defaults>
</compile_context>

<pallas_src>
from functools import partial

import jax
import jax.numpy as jnp
from jax.experimental import pallas as pl
from jax.experimental.pallas import tpu as pltpu

LANE = 128      # lane-dense channel width used throughout (zero padded)
ROWS = 104      # 10x10 feature-map rows per parity block, padded to 13*8
K1 = 8 * 8 * 4  # conv1 patch length (kh, kw, cin) = 256


def _shift_rows(x, s):
    """rows shifted up by s: out[i] = x[i + s] (wrap rows are never read)."""
    if s == 0:
        return x
    return jnp.concatenate([x[s:], x[:s]], axis=0)


# ---------------------------------------------------------------------------
# Pallas kernel 1: fused conv1 -> conv2 -> conv3 (one batch item per grid step)
# ---------------------------------------------------------------------------
def _conv_tower_kernel(p_ref, w1_ref, w2_ref, w3_ref, o_ref):
    # conv1: (416,256) bf16 @ (256,128) bf16, f32 acc, ReLU.  Rows are the four
    # (h%2, w%2) parity blocks of the 20x20 output, each 104 rows (r = h2*10+w2).
    a1 = jnp.maximum(
        jnp.dot(p_ref[...], w1_ref[...], preferred_element_type=jnp.float32),
        0.0)                                                     # (416, 128) f32

    # conv2: 4x4 stride 2 on the 20x20 map -> 9x9.  Input row (2*oh+kh, 2*ow+kw)
    # lives in parity block (kh%2, kw%2) at row (oh + kh//2)*10 + (ow + kw//2),
    # i.e. the valid output row (oh*10+ow) plus a static shift s = (kh//2)*10+kw//2.
    acc2 = jnp.zeros((ROWS, LANE), jnp.float32)
    for kh in range(4):
        for kw in range(4):
            pp = (kh % 2) * 2 + (kw % 2)
            s = (kh // 2) * 10 + (kw // 2)
            blk = a1[pp * ROWS:(pp + 1) * ROWS, :]               # aligned slice
            lhs = _shift_rows(blk, s).astype(jnp.bfloat16)
            acc2 = acc2 + jnp.dot(lhs, w2_ref[kh * 4 + kw],
                                  preferred_element_type=jnp.float32)
    a2 = jnp.maximum(acc2, 0.0)           # valid rows: oh*10+ow, oh,ow in 0..8

    # conv3: 3x3 stride 1 on the 9x9 map -> 7x7; shift s = kh*10 + kw.
    acc3 = jnp.zeros((ROWS, LANE), jnp.float32)
    for kh in range(3):
        for kw in range(3):
            s = kh * 10 + kw
            lhs = _shift_rows(a2, s).astype(jnp.bfloat16)
            acc3 = acc3 + jnp.dot(lhs, w3_ref[kh * 3 + kw],
                                  preferred_element_type=jnp.float32)
    # valid rows: oh*10+ow, oh,ow in 0..6; valid lanes: 0..63
    o_ref[...] = jnp.maximum(acc3, 0.0).astype(o_ref.dtype)


def conv_tower(patches, w1p, w2s, w3s):
    """patches: (B, 4*ROWS, 256) bf16 parity-ordered conv1 patches."""
    B = patches.shape[0]
    return pl.pallas_call(
        _conv_tower_kernel,
        out_shape=jax.ShapeDtypeStruct((B, ROWS, LANE), jnp.bfloat16),
        grid_spec=pltpu.PrefetchScalarGridSpec(
            num_scalar_prefetch=0,
            grid=(B,),
            in_specs=[
                pl.BlockSpec((None, 4 * ROWS, K1), lambda b: (b, 0, 0)),
                pl.BlockSpec((K1, LANE), lambda b: (0, 0)),          # resident
                pl.BlockSpec((16, LANE, LANE), lambda b: (0, 0, 0)),  # resident
                pl.BlockSpec((9, LANE, LANE), lambda b: (0, 0, 0)),   # resident
            ],
            out_specs=pl.BlockSpec((None, ROWS, LANE), lambda b: (b, 0, 0)),
        ),
        compiler_params=pltpu.CompilerParams(
            dimension_semantics=("parallel",)),   # one batch item per TC on v7x
    )(patches, w1p, w2s, w3s)


# ---------------------------------------------------------------------------
# Pallas kernel 2: fused fc1(+bias,+ReLU) -> fc2(+bias); hidden stays in VMEM
# ---------------------------------------------------------------------------
def _fc_fused_kernel(x_ref, w1_ref, b1_ref, w2_ref, b2_ref, o_ref):
    h = jnp.dot(x_ref[...], w1_ref[...], preferred_element_type=jnp.float32)
    h = jnp.maximum(h + b1_ref[...], 0.0).astype(jnp.bfloat16)
    y = jnp.dot(h, w2_ref[...], preferred_element_type=jnp.float32)
    o_ref[...] = y + b2_ref[...]


def fc_head(x, w1, b1, w2p, b2p):
    B, K = x.shape
    H = w1.shape[1]
    Npad = w2p.shape[1]
    return pl.pallas_call(
        _fc_fused_kernel,
        out_shape=jax.ShapeDtypeStruct((B, Npad), jnp.float32),
        grid_spec=pltpu.PrefetchScalarGridSpec(
            num_scalar_prefetch=0,
            grid=(1,),
            in_specs=[
                pl.BlockSpec((B, K), lambda i: (0, 0)),
                pl.BlockSpec((K, H), lambda i: (0, 0)),
                pl.BlockSpec((1, H), lambda i: (0, 0)),
                pl.BlockSpec((H, Npad), lambda i: (0, 0)),
                pl.BlockSpec((1, Npad), lambda i: (0, 0)),
            ],
            out_specs=pl.BlockSpec((B, Npad), lambda i: (0, 0)),
        ),
        compiler_params=pltpu.CompilerParams(
            dimension_semantics=("arbitrary",)),
    )(x, w1, b1, w2p, b2p)


# ---------------------------------------------------------------------------
# XLA glue: conv1 im2col with parity-grouped, 104-row-padded rows
# ---------------------------------------------------------------------------
def _conv1_patches(x_bf16):
    """(B,84,84,4) bf16 -> (B, 4*ROWS, 256) bf16; patch cols in (kh,kw,c) order,
    rows ordered (ph, pw, h2, w2) where conv1 output (h,w) = (2*h2+ph, 2*w2+pw)."""
    B = x_bf16.shape[0]
    taps = []
    for kh in range(8):
        for kw in range(8):
            taps.append(x_bf16[:, kh:kh + 4 * 20:4, kw:kw + 4 * 20:4, :])
    p = jnp.stack(taps, axis=3).reshape(B, 20, 20, K1)           # (B,20,20,256)
    p = p.reshape(B, 10, 2, 10, 2, K1).transpose(0, 2, 4, 1, 3, 5)
    p = p.reshape(B, 4, 100, K1)
    p = jnp.pad(p, ((0, 0), (0, 0), (0, ROWS - 100), (0, 0)))
    return p.reshape(B, 4 * ROWS, K1)


def conv_w_to_mat(w_oihw):
    """(Cout, Cin, KH, KW) -> (KH*KW*Cin, Cout), matching the im2col col order."""
    Cout, Cin, KH, KW = w_oihw.shape
    return jnp.transpose(w_oihw, (2, 3, 1, 0)).reshape(KH * KW * Cin, Cout)


# ---------------------------------------------------------------------------
# Parameters (deterministic, synthetic — shapes from DQN.__init__)
# ---------------------------------------------------------------------------
def init_params(key, in_channels=4, num_actions=4):
    ks = jax.random.split(key, 7)

    def kaiming(k, shape, fan_out):
        return jax.random.normal(k, shape, jnp.float32) * jnp.sqrt(2.0 / fan_out)

    p = {}
    p["conv1_w"] = kaiming(ks[0], (32, in_channels, 8, 8), 32 * 8 * 8)
    p["conv2_w"] = kaiming(ks[1], (64, 32, 4, 4), 64 * 4 * 4)
    p["conv3_w"] = kaiming(ks[2], (64, 64, 3, 3), 64 * 3 * 3)
    p["fc1_w"] = kaiming(ks[3], (512, 64 * 7 * 7), 512)     # (out, in) like nn.Linear
    p["fc1_b"] = 0.01 * jax.random.normal(ks[4], (512,), jnp.float32)
    p["fc2_w"] = kaiming(ks[5], (num_actions, 512), num_actions)
    p["fc2_b"] = 0.01 * jax.random.normal(ks[6], (num_actions,), jnp.float32)
    return p


def prepare_params(params):
    """One-time layout work: transpose/reorder/pad/scale/cast the weights."""
    def pad_last(w, n=LANE):
        return jnp.pad(w, [(0, 0)] * (w.ndim - 1) + [(0, n - w.shape[-1])])

    prep = {}
    # conv1 -> (256, 128) bf16, 1/255 input scale folded in, 96 zero out-lanes.
    w1 = conv_w_to_mat(params["conv1_w"]) * (1.0 / 255.0)
    prep["w1"] = pad_last(w1).astype(jnp.bfloat16)

    # conv2 -> (16, 128, 128): [tap=kh*4+kw, cin 32->128, cout 64->128] (zeros).
    w2 = jnp.transpose(params["conv2_w"], (2, 3, 1, 0)).reshape(16, 32, 64)
    prep["w2"] = jnp.pad(w2, ((0, 0), (0, 96), (0, 64))).astype(jnp.bfloat16)

    # conv3 -> (9, 128, 128): [tap=kh*3+kw, cin 64->128, cout 64->128] (zeros).
    w3 = jnp.transpose(params["conv3_w"], (2, 3, 1, 0)).reshape(9, 64, 64)
    prep["w3"] = jnp.pad(w3, ((0, 0), (0, 64), (0, 64))).astype(jnp.bfloat16)

    # fc1: torch flattens NCHW (index c*49 + hw); we flatten NHWC (hw*64 + c),
    # so permute fc1_w's input dim once and store as (K, N) bf16.
    w = params["fc1_w"].reshape(512, 64, 49)
    w = jnp.transpose(w, (2, 1, 0)).reshape(49 * 64, 512)
    prep["fc1_w"] = w.astype(jnp.bfloat16)                       # (3136, 512)
    prep["fc1_b"] = params["fc1_b"].reshape(1, 512).astype(jnp.float32)

    # fc2: (A, 512) -> (512, A) -> pad to (512, 128); bias padded to 128 lanes.
    w = params["fc2_w"].T
    prep["fc2_w"] = pad_last(w).astype(jnp.bfloat16)
    b2 = jnp.zeros((1, LANE), jnp.float32).at[0, :w.shape[1]].set(params["fc2_b"])
    prep["fc2_b"] = b2
    return prep


# ---------------------------------------------------------------------------
# Forward pass (mirrors DQN.forward)
# ---------------------------------------------------------------------------
def dqn_forward(prep, x_nhwc_u8, *, num_actions=4):
    # x.permute(0,3,1,2).float()/255.0 : layout kept NHWC internally, the /255
    # scale is folded into conv1's weights; u8 -> bf16 is exact for 0..255.
    B = x_nhwc_u8.shape[0]
    x = x_nhwc_u8.astype(jnp.bfloat16)

    # conv1/conv2/conv3 (all ReLU, bias-free per the module) in one kernel.
    patches = _conv1_patches(x)                                  # (B, 416, 256)
    a3 = conv_tower(patches, prep["w1"], prep["w2"], prep["w3"])  # (B, 104, 128)

    # Extract the 7x7x64 valid region and flatten NHWC; fc1_w's rows were
    # permuted at init so this equals torch's NCHW flatten.
    feat = a3[:, :70, :64].reshape(B, 7, 10, 64)[:, :, :7, :].reshape(B, 7 * 7 * 64)

    # fused fc1(+ReLU) + fc2; output is 128-lane padded, slice the real actions.
    q = fc_head(feat, prep["fc1_w"], prep["fc1_b"], prep["fc2_w"], prep["fc2_b"])
    return q[:, :num_actions]                                    # (B, A) f32


if __name__ == "__main__":
    key = jax.random.PRNGKey(0)
    k_param, k_input = jax.random.split(key)

    params = init_params(k_param, in_channels=4, num_actions=4)
    prep = prepare_params(params)

    # Atari-style frames: NHWC uint8 in [0, 255]. Spatial 84x84 is required by
    # the module's hardcoded 64*7*7 flatten dimension; batch kept small.
    x = jax.random.randint(k_input, (2, 84, 84, 4), 0, 256, dtype=jnp.int32)
    x = x.astype(jnp.uint8)

    fwd = jax.jit(partial(dqn_forward, num_actions=4))
    q_values = jax.block_until_ready(fwd(prep, x))
    assert q_values.shape == (2, 4), q_values.shape
    assert q_values.dtype == jnp.float32
    print("KERNEL_OK")
</pallas_src>

<mosaic_0001>
module attributes {stable_mosaic.version = 11 : i64} {
  func.func @_conv_tower_kernel(%arg0: i32, %arg1: memref<1x416x256xbf16, #tpu.memory_space<vmem>>, %arg2: memref<256x128xbf16, #tpu.memory_space<vmem>>, %arg3: memref<16x128x128xbf16, #tpu.memory_space<vmem>>, %arg4: memref<9x128x128xbf16, #tpu.memory_space<vmem>>, %arg5: memref<1x104x128xbf16, #tpu.memory_space<vmem>>) attributes {dimension_semantics = [#tpu.dimension_semantics<parallel>], iteration_bounds = array<i64: 2>, scalar_prefetch = 0 : i64, scratch_operands = 0 : i64, tpu.core_type = #tpu.core_type<tc>, window_params = [{transform_indices = @transform_0, window_bounds = array<i64: 1, 416, 256>}, {pipeline_mode = #tpu.pipeline_mode<synchronous>, transform_indices = @transform_1, window_bounds = array<i64: 256, 128>}, {pipeline_mode = #tpu.pipeline_mode<synchronous>, transform_indices = @transform_2, window_bounds = array<i64: 16, 128, 128>}, {pipeline_mode = #tpu.pipeline_mode<synchronous>, transform_indices = @transform_3, window_bounds = array<i64: 9, 128, 128>}, {transform_indices = @transform_4, window_bounds = array<i64: 1, 104, 128>}]} {
    %c0 = arith.constant 0 : index
    %c0_0 = arith.constant 0 : index
    %c0_1 = arith.constant 0 : index
    %0 = vector.load %arg1[%c0, %c0_0, %c0_1] : memref<1x416x256xbf16, #tpu.memory_space<vmem>>, vector<1x416x256xbf16>
    %1 = vector.shape_cast %0 : vector<1x416x256xbf16> to vector<416x256xbf16>
    %c0_2 = arith.constant 0 : index
    %c0_3 = arith.constant 0 : index
    %2 = vector.load %arg2[%c0_2, %c0_3] : memref<256x128xbf16, #tpu.memory_space<vmem>>, vector<256x128xbf16>
    %cst = arith.constant dense<0.000000e+00> : vector<416x128xf32>
    %3 = tpu.matmul %1, %2, %cst {dimension_numbers = #tpu.dot_dimension_numbers<[1], [0], [0], [1], [0, 0, 1, 1], [], []>} : vector<416x256xbf16>, vector<256x128xbf16>, vector<416x128xf32> -> vector<416x128xf32>
    %cst_4 = arith.constant 0.000000e+00 : f32
    %4 = vector.broadcast %cst_4 : f32 to vector<416x128xf32>
    %5 = arith.maximumf %3, %4 : vector<416x128xf32>
    %cst_5 = arith.constant 0.000000e+00 : f32
    %6 = vector.broadcast %cst_5 : f32 to vector<104x128xf32>
    %7 = vector.extract_strided_slice %5 {offsets = [0, 0], sizes = [104, 128], strides = [1, 1]} : vector<416x128xf32> to vector<104x128xf32>
    %8 = arith.truncf %7 : vector<104x128xf32> to vector<104x128xbf16>
    %c0_6 = arith.constant 0 : index
    %c0_7 = arith.constant 0 : index
    %c0_8 = arith.constant 0 : index
    %9 = vector.load %arg3[%c0_6, %c0_7, %c0_8] : memref<16x128x128xbf16, #tpu.memory_space<vmem>>, vector<1x128x128xbf16>
    %10 = vector.shape_cast %9 : vector<1x128x128xbf16> to vector<128x128xbf16>
    %cst_9 = arith.constant dense<0.000000e+00> : vector<104x128xf32>
    %11 = tpu.matmul %8, %10, %cst_9 {dimension_numbers = #tpu.dot_dimension_numbers<[1], [0], [0], [1], [0, 0, 1, 1], [], []>} : vector<104x128xbf16>, vector<128x128xbf16>, vector<104x128xf32> -> vector<104x128xf32>
    %12 = arith.addf %6, %11 : vector<104x128xf32>
    %13 = vector.extract_strided_slice %5 {offsets = [104, 0], sizes = [104, 128], strides = [1, 1]} : vector<416x128xf32> to vector<104x128xf32>
    %14 = arith.truncf %13 : vector<104x128xf32> to vector<104x128xbf16>
    %c1 = arith.constant 1 : index
    %c0_10 = arith.constant 0 : index
    %c0_11 = arith.constant 0 : index
    %15 = vector.load %arg3[%c1, %c0_10, %c0_11] : memref<16x128x128xbf16, #tpu.memory_space<vmem>>, vector<1x128x128xbf16>
    %16 = vector.shape_cast %15 : vector<1x128x128xbf16> to vector<128x128xbf16>
    %cst_12 = arith.constant dense<0.000000e+00> : vector<104x128xf32>
    %17 = tpu.matmul %14, %16, %cst_12 {dimension_numbers = #tpu.dot_dimension_numbers<[1], [0], [0], [1], [0, 0, 1, 1], [], []>} : vector<104x128xbf16>, vector<128x128xbf16>, vector<104x128xf32> -> vector<104x128xf32>
    %18 = arith.addf %12, %17 : vector<104x128xf32>
    %19 = vector.extract_strided_slice %5 {offsets = [0, 0], sizes = [104, 128], strides = [1, 1]} : vector<416x128xf32> to vector<104x128xf32>
    %20 = vector.extract_strided_slice %19 {offsets = [1, 0], sizes = [103, 128], strides = [1, 1]} : vector<104x128xf32> to vector<103x128xf32>
    %21 = vector.extract_strided_slice %19 {offsets = [0, 0], sizes = [1, 128], strides = [1, 1]} : vector<104x128xf32> to vector<1x128xf32>
    %22 = tpu.concatenate %20, %21 in 0 : vector<103x128xf32>, vector<1x128xf32> -> vector<104x128xf32>
    %23 = arith.truncf %22 : vector<104x128xf32> to vector<104x128xbf16>
    %c2 = arith.constant 2 : index
    %c0_13 = arith.constant 0 : index
    %c0_14 = arith.constant 0 : index
    %24 = vector.load %arg3[%c2, %c0_13, %c0_14] : memref<16x128x128xbf16, #tpu.memory_space<vmem>>, vector<1x128x128xbf16>
    %25 = vector.shape_cast %24 : vector<1x128x128xbf16> to vector<128x128xbf16>
    %cst_15 = arith.constant dense<0.000000e+00> : vector<104x128xf32>
    %26 = tpu.matmul %23, %25, %cst_15 {dimension_numbers = #tpu.dot_dimension_numbers<[1], [0], [0], [1], [0, 0, 1, 1], [], []>} : vector<104x128xbf16>, vector<128x128xbf16>, vector<104x128xf32> -> vector<104x128xf32>
    %27 = arith.addf %18, %26 : vector<104x128xf32>
    %28 = vector.extract_strided_slice %5 {offsets = [104, 0], sizes = [104, 128], strides = [1, 1]} : vector<416x128xf32> to vector<104x128xf32>
    %29 = vector.extract_strided_slice %28 {offsets = [1, 0], sizes = [103, 128], strides = [1, 1]} : vector<104x128xf32> to vector<103x128xf32>
    %30 = vector.extract_strided_slice %28 {offsets = [0, 0], sizes = [1, 128], strides = [1, 1]} : vector<104x128xf32> to vector<1x128xf32>
    %31 = tpu.concatenate %29, %30 in 0 : vector<103x128xf32>, vector<1x128xf32> -> vector<104x128xf32>
    %32 = arith.truncf %31 : vector<104x128xf32> to vector<104x128xbf16>
    %c3 = arith.constant 3 : index
    %c0_16 = arith.constant 0 : index
    %c0_17 = arith.constant 0 : index
    %33 = vector.load %arg3[%c3, %c0_16, %c0_17] : memref<16x128x128xbf16, #tpu.memory_space<vmem>>, vector<1x128x128xbf16>
    %34 = vector.shape_cast %33 : vector<1x128x128xbf16> to vector<128x128xbf16>
    %cst_18 = arith.constant dense<0.000000e+00> : vector<104x128xf32>
    %35 = tpu.matmul %32, %34, %cst_18 {dimension_numbers = #tpu.dot_dimension_numbers<[1], [0], [0], [1], [0, 0, 1, 1], [], []>} : vector<104x128xbf16>, vector<128x128xbf16>, vector<104x128xf32> -> vector<104x128xf32>
    %36 = arith.addf %27, %35 : vector<104x128xf32>
    %37 = vector.extract_strided_slice %5 {offsets = [208, 0], sizes = [104, 128], strides = [1, 1]} : vector<416x128xf32> to vector<104x128xf32>
    %38 = arith.truncf %37 : vector<104x128xf32> to vector<104x128xbf16>
    %c4 = arith.constant 4 : index
    %c0_19 = arith.constant 0 : index
    %c0_20 = arith.constant 0 : index
    %39 = vector.load %arg3[%c4, %c0_19, %c0_20] : memref<16x128x128xbf16, #tpu.memory_space<vmem>>, vector<1x128x128xbf16>
    %40 = vector.shape_cast %39 : vector<1x128x128xbf16> to vector<128x128xbf16>
    %cst_21 = arith.constant dense<0.000000e+00> : vector<104x128xf32>
    %41 = tpu.matmul %38, %40, %cst_21 {dimension_numbers = #tpu.dot_dimension_numbers<[1], [0], [0], [1], [0, 0, 1, 1], [], []>} : vector<104x128xbf16>, vector<128x128xbf16>, vector<104x128xf32> -> vector<104x128xf32>
    %42 = arith.addf %36, %41 : vector<104x128xf32>
    %43 = vector.extract_strided_slice %5 {offsets = [312, 0], sizes = [104, 128], strides = [1, 1]} : vector<416x128xf32> to vector<104x128xf32>
    %44 = arith.truncf %43 : vector<104x128xf32> to vector<104x128xbf16>
    %c5 = arith.constant 5 : index
    %c0_22 = arith.constant 0 : index
    %c0_23 = arith.constant 0 : index
    %45 = vector.load %arg3[%c5, %c0_22, %c0_23] : memref<16x128x128xbf16, #tpu.memory_space<vmem>>, vector<1x128x128xbf16>
    %46 = vector.shape_cast %45 : vector<1x128x128xbf16> to vector<128x128xbf16>
    %cst_24 = arith.constant dense<0.000000e+00> : vector<104x128xf32>
    %47 = tpu.matmul %44, %46, %cst_24 {dimension_numbers = #tpu.dot_dimension_numbers<[1], [0], [0], [1], [0, 0, 1, 1], [], []>} : vector<104x128xbf16>, vector<128x128xbf16>, vector<104x128xf32> -> vector<104x128xf32>
    %48 = arith.addf %42, %47 : vector<104x128xf32>
    %49 = vector.extract_strided_slice %5 {offsets = [208, 0], sizes = [104, 128], strides = [1, 1]} : vector<416x128xf32> to vector<104x128xf32>
    %50 = vector.extract_strided_slice %49 {offsets = [1, 0], sizes = [103, 128], strides = [1, 1]} : vector<104x128xf32> to vector<103x128xf32>
    %51 = vector.extract_strided_slice %49 {offsets = [0, 0], sizes = [1, 128], strides = [1, 1]} : vector<104x128xf32> to vector<1x128xf32>
    %52 = tpu.concatenate %50, %51 in 0 : vector<103x128xf32>, vector<1x128xf32> -> vector<104x128xf32>
    %53 = arith.truncf %52 : vector<104x128xf32> to vector<104x128xbf16>
    %c6 = arith.constant 6 : index
    %c0_25 = arith.constant 0 : index
    %c0_26 = arith.constant 0 : index
    %54 = vector.load %arg3[%c6, %c0_25, %c0_26] : memref<16x128x128xbf16, #tpu.memory_space<vmem>>, vector<1x128x128xbf16>
    %55 = vector.shape_cast %54 : vector<1x128x128xbf16> to vector<128x128xbf16>
    %cst_27 = arith.constant dense<0.000000e+00> : vector<104x128xf32>
    %56 = tpu.matmul %53, %55, %cst_27 {dimension_numbers = #tpu.dot_dimension_numbers<[1], [0], [0], [1], [0, 0, 1, 1], [], []>} : vector<104x128xbf16>, vector<128x128xbf16>, vector<104x128xf32> -> vector<104x128xf32>
    %57 = arith.addf %48, %56 : vector<104x128xf32>
    %58 = vector.extract_strided_slice %5 {offsets = [312, 0], sizes = [104, 128], strides = [1, 1]} : vector<416x128xf32> to vector<104x128xf32>
    %59 = vector.extract_strided_slice %58 {offsets = [1, 0], sizes = [103, 128], strides = [1, 1]} : vector<104x128xf32> to vector<103x128xf32>
    %60 = vector.extract_strided_slice %58 {offsets = [0, 0], sizes = [1, 128], strides = [1, 1]} : vector<104x128xf32> to vector<1x128xf32>
    %61 = tpu.concatenate %59, %60 in 0 : vector<103x128xf32>, vector<1x128xf32> -> vector<104x128xf32>
    %62 = arith.truncf %61 : vector<104x128xf32> to vector<104x128xbf16>
    %c7 = arith.constant 7 : index
    %c0_28 = arith.constant 0 : index
    %c0_29 = arith.constant 0 : index
    %63 = vector.load %arg3[%c7, %c0_28, %c0_29] : memref<16x128x128xbf16, #tpu.memory_space<vmem>>, vector<1x128x128xbf16>
    %64 = vector.shape_cast %63 : vector<1x128x128xbf16> to vector<128x128xbf16>
    %cst_30 = arith.constant dense<0.000000e+00> : vector<104x128xf32>
    %65 = tpu.matmul %62, %64, %cst_30 {dimension_numbers = #tpu.dot_dimension_numbers<[1], [0], [0], [1], [0, 0, 1, 1], [], []>} : vector<104x128xbf16>, vector<128x128xbf16>, vector<104x128xf32> -> vector<104x128xf32>
    %66 = arith.addf %57, %65 : vector<104x128xf32>
    %67 = vector.extract_strided_slice %5 {offsets = [0, 0], sizes = [104, 128], strides = [1, 1]} : vector<416x128xf32> to vector<104x128xf32>
    %68 = vector.extract_strided_slice %67 {offsets = [10, 0], sizes = [94, 128], strides = [1, 1]} : vector<104x128xf32> to vector<94x128xf32>
    %69 = vector.extract_strided_slice %67 {offsets = [0, 0], sizes = [10, 128], strides = [1, 1]} : vector<104x128xf32> to vector<10x128xf32>
    %70 = tpu.concatenate %68, %69 in 0 : vector<94x128xf32>, vector<10x128xf32> -> vector<104x128xf32>
    %71 = arith.truncf %70 : vector<104x128xf32> to vector<104x128xbf16>
    %c8 = arith.constant 8 : index
    %c0_31 = arith.constant 0 : index
    %c0_32 = arith.constant 0 : index
    %72 = vector.load %arg3[%c8, %c0_31, %c0_32] : memref<16x128x128xbf16, #tpu.memory_space<vmem>>, vector<1x128x128xbf16>
    %73 = vector.shape_cast %72 : vector<1x128x128xbf16> to vector<128x128xbf16>
    %cst_33 = arith.constant dense<0.000000e+00> : vector<104x128xf32>
    %74 = tpu.matmul %71, %73, %cst_33 {dimension_numbers = #tpu.dot_dimension_numbers<[1], [0], [0], [1], [0, 0, 1, 1], [], []>} : vector<104x128xbf16>, vector<128x128xbf16>, vector<104x128xf32> -> vector<104x128xf32>
    %75 = arith.addf %66, %74 : vector<104x128xf32>
    %76 = vector.extract_strided_slice %5 {offsets = [104, 0], sizes = [104, 128], strides = [1, 1]} : vector<416x128xf32> to vector<104x128xf32>
    %77 = vector.extract_strided_slice %76 {offsets = [10, 0], sizes = [94, 128], strides = [1, 1]} : vector<104x128xf32> to vector<94x128xf32>
    %78 = vector.extract_strided_slice %76 {offsets = [0, 0], sizes = [10, 128], strides = [1, 1]} : vector<104x128xf32> to vector<10x128xf32>
    %79 = tpu.concatenate %77, %78 in 0 : vector<94x128xf32>, vector<10x128xf32> -> vector<104x128xf32>
    %80 = arith.truncf %79 : vector<104x128xf32> to vector<104x128xbf16>
    %c9 = arith.constant 9 : index
    %c0_34 = arith.constant 0 : index
    %c0_35 = arith.constant 0 : index
    %81 = vector.load %arg3[%c9, %c0_34, %c0_35] : memref<16x128x128xbf16, #tpu.memory_space<vmem>>, vector<1x128x128xbf16>
    %82 = vector.shape_cast %81 : vector<1x128x128xbf16> to vector<128x128xbf16>
    %cst_36 = arith.constant dense<0.000000e+00> : vector<104x128xf32>
    %83 = tpu.matmul %80, %82, %cst_36 {dimension_numbers = #tpu.dot_dimension_numbers<[1], [0], [0], [1], [0, 0, 1, 1], [], []>} : vector<104x128xbf16>, vector<128x128xbf16>, vector<104x128xf32> -> vector<104x128xf32>
    %84 = arith.addf %75, %83 : vector<104x128xf32>
    %85 = vector.extract_strided_slice %5 {offsets = [0, 0], sizes = [104, 128], strides = [1, 1]} : vector<416x128xf32> to vector<104x128xf32>
    %86 = vector.extract_strided_slice %85 {offsets = [11, 0], sizes = [93, 128], strides = [1, 1]} : vector<104x128xf32> to vector<93x128xf32>
    %87 = vector.extract_strided_slice %85 {offsets = [0, 0], sizes = [11, 128], strides = [1, 1]} : vector<104x128xf32> to vector<11x128xf32>
    %88 = tpu.concatenate %86, %87 in 0 : vector<93x128xf32>, vector<11x128xf32> -> vector<104x128xf32>
    %89 = arith.truncf %88 : vector<104x128xf32> to vector<104x128xbf16>
    %c10 = arith.constant 10 : index
    %c0_37 = arith.constant 0 : index
    %c0_38 = arith.constant 0 : index
    %90 = vector.load %arg3[%c10, %c0_37, %c0_38] : memref<16x128x128xbf16, #tpu.memory_space<vmem>>, vector<1x128x128xbf16>
    %91 = vector.shape_cast %90 : vector<1x128x128xbf16> to vector<128x128xbf16>
    %cst_39 = arith.constant dense<0.000000e+00> : vector<104x128xf32>
    %92 = tpu.matmul %89, %91, %cst_39 {dimension_numbers = #tpu.dot_dimension_numbers<[1], [0], [0], [1], [0, 0, 1, 1], [], []>} : vector<104x128xbf16>, vector<128x128xbf16>, vector<104x128xf32> -> vector<104x128xf32>
    %93 = arith.addf %84, %92 : vector<104x128xf32>
    %94 = vector.extract_strided_slice %5 {offsets = [104, 0], sizes = [104, 128], strides = [1, 1]} : vector<416x128xf32> to vector<104x128xf32>
    %95 = vector.extract_strided_slice %94 {offsets = [11, 0], sizes = [93, 128], strides = [1, 1]} : vector<104x128xf32> to vector<93x128xf32>
    %96 = vector.extract_strided_slice %94 {offsets = [0, 0], sizes = [11, 128], strides = [1, 1]} : vector<104x128xf32> to vector<11x128xf32>
    %97 = tpu.concatenate %95, %96 in 0 : vector<93x128xf32>, vector<11x128xf32> -> vector<104x128xf32>
    %98 = arith.truncf %97 : vector<104x128xf32> to vector<104x128xbf16>
    %c11 = arith.constant 11 : index
    %c0_40 = arith.constant 0 : index
    %c0_41 = arith.constant 0 : index
    %99 = vector.load %arg3[%c11, %c0_40, %c0_41] : memref<16x128x128xbf16, #tpu.memory_space<vmem>>, vector<1x128x128xbf16>
    %100 = vector.shape_cast %99 : vector<1x128x128xbf16> to vector<128x128xbf16>
    %cst_42 = arith.constant dense<0.000000e+00> : vector<104x128xf32>
    %101 = tpu.matmul %98, %100, %cst_42 {dimension_numbers = #tpu.dot_dimension_numbers<[1], [0], [0], [1], [0, 0, 1, 1], [], []>} : vector<104x128xbf16>, vector<128x128xbf16>, vector<104x128xf32> -> vector<104x128xf32>
    %102 = arith.addf %93, %101 : vector<104x128xf32>
    %103 = vector.extract_strided_slice %5 {offsets = [208, 0], sizes = [104, 128], strides = [1, 1]} : vector<416x128xf32> to vector<104x128xf32>
    %104 = vector.extract_strided_slice %103 {offsets = [10, 0], sizes = [94, 128], strides = [1, 1]} : vector<104x128xf32> to vector<94x128xf32>
    %105 = vector.extract_strided_slice %103 {offsets = [0, 0], sizes = [10, 128], strides = [1, 1]} : vector<104x128xf32> to vector<10x128xf32>
    %106 = tpu.concatenate %104, %105 in 0 : vector<94x128xf32>, vector<10x128xf32> -> vector<104x128xf32>
    %107 = arith.truncf %106 : vector<104x128xf32> to vector<104x128xbf16>
    %c12 = arith.constant 12 : index
    %c0_43 = arith.constant 0 : index
    %c0_44 = arith.constant 0 : index
    %108 = vector.load %arg3[%c12, %c0_43, %c0_44] : memref<16x128x128xbf16, #tpu.memory_space<vmem>>, vector<1x128x128xbf16>
    %109 = vector.shape_cast %108 : vector<1x128x128xbf16> to vector<128x128xbf16>
    %cst_45 = arith.constant dense<0.000000e+00> : vector<104x128xf32>
    %110 = tpu.matmul %107, %109, %cst_45 {dimension_numbers = #tpu.dot_dimension_numbers<[1], [0], [0], [1], [0, 0, 1, 1], [], []>} : vector<104x128xbf16>, vector<128x128xbf16>, vector<104x128xf32> -> vector<104x128xf32>
    %111 = arith.addf %102, %110 : vector<104x128xf32>
    %112 = vector.extract_strided_slice %5 {offsets = [312, 0], sizes = [104, 128], strides = [1, 1]} : vector<416x128xf32> to vector<104x128xf32>
    %113 = vector.extract_strided_slice %112 {offsets = [10, 0], sizes = [94, 128], strides = [1, 1]} : vector<104x128xf32> to vector<94x128xf32>
    %114 = vector.extract_strided_slice %112 {offsets = [0, 0], sizes = [10, 128], strides = [1, 1]} : vector<104x128xf32> to vector<10x128xf32>
    %115 = tpu.concatenate %113, %114 in 0 : vector<94x128xf32>, vector<10x128xf32> -> vector<104x128xf32>
    %116 = arith.truncf %115 : vector<104x128xf32> to vector<104x128xbf16>
    %c13 = arith.constant 13 : index
    %c0_46 = arith.constant 0 : index
    %c0_47 = arith.constant 0 : index
    %117 = vector.load %arg3[%c13, %c0_46, %c0_47] : memref<16x128x128xbf16, #tpu.memory_space<vmem>>, vector<1x128x128xbf16>
    %118 = vector.shape_cast %117 : vector<1x128x128xbf16> to vector<128x128xbf16>
    %cst_48 = arith.constant dense<0.000000e+00> : vector<104x128xf32>
    %119 = tpu.matmul %116, %118, %cst_48 {dimension_numbers = #tpu.dot_dimension_numbers<[1], [0], [0], [1], [0, 0, 1, 1], [], []>} : vector<104x128xbf16>, vector<128x128xbf16>, vector<104x128xf32> -> vector<104x128xf32>
    %120 = arith.addf %111, %119 : vector<104x128xf32>
    %121 = vector.extract_strided_slice %5 {offsets = [208, 0], sizes = [104, 128], strides = [1, 1]} : vector<416x128xf32> to vector<104x128xf32>
    %122 = vector.extract_strided_slice %121 {offsets = [11, 0], sizes = [93, 128], strides = [1, 1]} : vector<104x128xf32> to vector<93x128xf32>
    %123 = vector.extract_strided_slice %121 {offsets = [0, 0], sizes = [11, 128], strides = [1, 1]} : vector<104x128xf32> to vector<11x128xf32>
    %124 = tpu.concatenate %122, %123 in 0 : vector<93x128xf32>, vector<11x128xf32> -> vector<104x128xf32>
    %125 = arith.truncf %124 : vector<104x128xf32> to vector<104x128xbf16>
    %c14 = arith.constant 14 : index
    %c0_49 = arith.constant 0 : index
    %c0_50 = arith.constant 0 : index
    %126 = vector.load %arg3[%c14, %c0_49, %c0_50] : memref<16x128x128xbf16, #tpu.memory_space<vmem>>, vector<1x128x128xbf16>
    %127 = vector.shape_cast %126 : vector<1x128x128xbf16> to vector<128x128xbf16>
    %cst_51 = arith.constant dense<0.000000e+00> : vector<104x128xf32>
    %128 = tpu.matmul %125, %127, %cst_51 {dimension_numbers = #tpu.dot_dimension_numbers<[1], [0], [0], [1], [0, 0, 1, 1], [], []>} : vector<104x128xbf16>, vector<128x128xbf16>, vector<104x128xf32> -> vector<104x128xf32>
    %129 = arith.addf %120, %128 : vector<104x128xf32>
    %130 = vector.extract_strided_slice %5 {offsets = [312, 0], sizes = [104, 128], strides = [1, 1]} : vector<416x128xf32> to vector<104x128xf32>
    %131 = vector.extract_strided_slice %130 {offsets = [11, 0], sizes = [93, 128], strides = [1, 1]} : vector<104x128xf32> to vector<93x128xf32>
    %132 = vector.extract_strided_slice %130 {offsets = [0, 0], sizes = [11, 128], strides = [1, 1]} : vector<104x128xf32> to vector<11x128xf32>
    %133 = tpu.concatenate %131, %132 in 0 : vector<93x128xf32>, vector<11x128xf32> -> vector<104x128xf32>
    %134 = arith.truncf %133 : vector<104x128xf32> to vector<104x128xbf16>
    %c15 = arith.constant 15 : index
    %c0_52 = arith.constant 0 : index
    %c0_53 = arith.constant 0 : index
    %135 = vector.load %arg3[%c15, %c0_52, %c0_53] : memref<16x128x128xbf16, #tpu.memory_space<vmem>>, vector<1x128x128xbf16>
    %136 = vector.shape_cast %135 : vector<1x128x128xbf16> to vector<128x128xbf16>
    %cst_54 = arith.constant dense<0.000000e+00> : vector<104x128xf32>
    %137 = tpu.matmul %134, %136, %cst_54 {dimension_numbers = #tpu.dot_dimension_numbers<[1], [0], [0], [1], [0, 0, 1, 1], [], []>} : vector<104x128xbf16>, vector<128x128xbf16>, vector<104x128xf32> -> vector<104x128xf32>
    %138 = arith.addf %129, %137 : vector<104x128xf32>
    %cst_55 = arith.constant 0.000000e+00 : f32
    %139 = vector.broadcast %cst_55 : f32 to vector<104x128xf32>
    %140 = arith.maximumf %138, %139 : vector<104x128xf32>
    %cst_56 = arith.constant 0.000000e+00 : f32
    %141 = vector.broadcast %cst_56 : f32 to vector<104x128xf32>
    %142 = arith.truncf %140 : vector<104x128xf32> to vector<104x128xbf16>
    %c0_57 = arith.constant 0 : index
    %c0_58 = arith.constant 0 : index
    %c0_59 = arith.constant 0 : index
    %143 = vector.load %arg4[%c0_57, %c0_58, %c0_59] : memref<9x128x128xbf16, #tpu.memory_space<vmem>>, vector<1x128x128xbf16>
    %144 = vector.shape_cast %143 : vector<1x128x128xbf16> to vector<128x128xbf16>
    %cst_60 = arith.constant dense<0.000000e+00> : vector<104x128xf32>
    %145 = tpu.matmul %142, %144, %cst_60 {dimension_numbers = #tpu.dot_dimension_numbers<[1], [0], [0], [1], [0, 0, 1, 1], [], []>} : vector<104x128xbf16>, vector<128x128xbf16>, vector<104x128xf32> -> vector<104x128xf32>
    %146 = arith.addf %141, %145 : vector<104x128xf32>
    %147 = vector.extract_strided_slice %140 {offsets = [1, 0], sizes = [103, 128], strides = [1, 1]} : vector<104x128xf32> to vector<103x128xf32>
    %148 = vector.extract_strided_slice %140 {offsets = [0, 0], sizes = [1, 128], strides = [1, 1]} : vector<104x128xf32> to vector<1x128xf32>
    %149 = tpu.concatenate %147, %148 in 0 : vector<103x128xf32>, vector<1x128xf32> -> vector<104x128xf32>
    %150 = arith.truncf %149 : vector<104x128xf32> to vector<104x128xbf16>
    %c1_61 = arith.constant 1 : index
    %c0_62 = arith.constant 0 : index
    %c0_63 = arith.constant 0 : index
    %151 = vector.load %arg4[%c1_61, %c0_62, %c0_63] : memref<9x128x128xbf16, #tpu.memory_space<vmem>>, vector<1x128x128xbf16>
    %152 = vector.shape_cast %151 : vector<1x128x128xbf16> to vector<128x128xbf16>
    %cst_64 = arith.constant dense<0.000000e+00> : vector<104x128xf32>
    %153 = tpu.matmul %150, %152, %cst_64 {dimension_numbers = #tpu.dot_dimension_numbers<[1], [0], [0], [1], [0, 0, 1, 1], [], []>} : vector<104x128xbf16>, vector<128x128xbf16>, vector<104x128xf32> -> vector<104x128xf32>
    %154 = arith.addf %146, %153 : vector<104x128xf32>
    %155 = vector.extract_strided_slice %140 {offsets = [2, 0], sizes = [102, 128], strides = [1, 1]} : vector<104x128xf32> to vector<102x128xf32>
    %156 = vector.extract_strided_slice %140 {offsets = [0, 0], sizes = [2, 128], strides = [1, 1]} : vector<104x128xf32> to vector<2x128xf32>
    %157 = tpu.concatenate %155, %156 in 0 : vector<102x128xf32>, vector<2x128xf32> -> vector<104x128xf32>
    %158 = arith.truncf %157 : vector<104x128xf32> to vector<104x128xbf16>
    %c2_65 = arith.constant 2 : index
    %c0_66 = arith.constant 0 : index
    %c0_67 = arith.constant 0 : index
    %159 = vector.load %arg4[%c2_65, %c0_66, %c0_67] : memref<9x128x128xbf16, #tpu.memory_space<vmem>>, vector<1x128x128xbf16>
    %160 = vector.shape_cast %159 : vector<1x128x128xbf16> to vector<128x128xbf16>
    %cst_68 = arith.constant dense<0.000000e+00> : vector<104x128xf32>
    %161 = tpu.matmul %158, %160, %cst_68 {dimension_numbers = #tpu.dot_dimension_numbers<[1], [0], [0], [1], [0, 0, 1, 1], [], []>} : vector<104x128xbf16>, vector<128x128xbf16>, vector<104x128xf32> -> vector<104x128xf32>
    %162 = arith.addf %154, %161 : vector<104x128xf32>
    %163 = vector.extract_strided_slice %140 {offsets = [10, 0], sizes = [94, 128], strides = [1, 1]} : vector<104x128xf32> to vector<94x128xf32>
    %164 = vector.extract_strided_slice %140 {offsets = [0, 0], sizes = [10, 128], strides = [1, 1]} : vector<104x128xf32> to vector<10x128xf32>
    %165 = tpu.concatenate %163, %164 in 0 : vector<94x128xf32>, vector<10x128xf32> -> vector<104x128xf32>
    %166 = arith.truncf %165 : vector<104x128xf32> to vector<104x128xbf16>
    %c3_69 = arith.constant 3 : index
    %c0_70 = arith.constant 0 : index
    %c0_71 = arith.constant 0 : index
    %167 = vector.load %arg4[%c3_69, %c0_70, %c0_71] : memref<9x128x128xbf16, #tpu.memory_space<vmem>>, vector<1x128x128xbf16>
    %168 = vector.shape_cast %167 : vector<1x128x128xbf16> to vector<128x128xbf16>
    %cst_72 = arith.constant dense<0.000000e+00> : vector<104x128xf32>
    %169 = tpu.matmul %166, %168, %cst_72 {dimension_numbers = #tpu.dot_dimension_numbers<[1], [0], [0], [1], [0, 0, 1, 1], [], []>} : vector<104x128xbf16>, vector<128x128xbf16>, vector<104x128xf32> -> vector<104x128xf32>
    %170 = arith.addf %162, %169 : vector<104x128xf32>
    %171 = vector.extract_strided_slice %140 {offsets = [11, 0], sizes = [93, 128], strides = [1, 1]} : vector<104x128xf32> to vector<93x128xf32>
    %172 = vector.extract_strided_slice %140 {offsets = [0, 0], sizes = [11, 128], strides = [1, 1]} : vector<104x128xf32> to vector<11x128xf32>
    %173 = tpu.concatenate %171, %172 in 0 : vector<93x128xf32>, vector<11x128xf32> -> vector<104x128xf32>
    %174 = arith.truncf %173 : vector<104x128xf32> to vector<104x128xbf16>
    %c4_73 = arith.constant 4 : index
    %c0_74 = arith.constant 0 : index
    %c0_75 = arith.constant 0 : index
    %175 = vector.load %arg4[%c4_73, %c0_74, %c0_75] : memref<9x128x128xbf16, #tpu.memory_space<vmem>>, vector<1x128x128xbf16>
    %176 = vector.shape_cast %175 : vector<1x128x128xbf16> to vector<128x128xbf16>
    %cst_76 = arith.constant dense<0.000000e+00> : vector<104x128xf32>
    %177 = tpu.matmul %174, %176, %cst_76 {dimension_numbers = #tpu.dot_dimension_numbers<[1], [0], [0], [1], [0, 0, 1, 1], [], []>} : vector<104x128xbf16>, vector<128x128xbf16>, vector<104x128xf32> -> vector<104x128xf32>
    %178 = arith.addf %170, %177 : vector<104x128xf32>
    %179 = vector.extract_strided_slice %140 {offsets = [12, 0], sizes = [92, 128], strides = [1, 1]} : vector<104x128xf32> to vector<92x128xf32>
    %180 = vector.extract_strided_slice %140 {offsets = [0, 0], sizes = [12, 128], strides = [1, 1]} : vector<104x128xf32> to vector<12x128xf32>
    %181 = tpu.concatenate %179, %180 in 0 : vector<92x128xf32>, vector<12x128xf32> -> vector<104x128xf32>
    %182 = arith.truncf %181 : vector<104x128xf32> to vector<104x128xbf16>
    %c5_77 = arith.constant 5 : index
    %c0_78 = arith.constant 0 : index
    %c0_79 = arith.constant 0 : index
    %183 = vector.load %arg4[%c5_77, %c0_78, %c0_79] : memref<9x128x128xbf16, #tpu.memory_space<vmem>>, vector<1x128x128xbf16>
    %184 = vector.shape_cast %183 : vector<1x128x128xbf16> to vector<128x128xbf16>
    %cst_80 = arith.constant dense<0.000000e+00> : vector<104x128xf32>
    %185 = tpu.matmul %182, %184, %cst_80 {dimension_numbers = #tpu.dot_dimension_numbers<[1], [0], [0], [1], [0, 0, 1, 1], [], []>} : vector<104x128xbf16>, vector<128x128xbf16>, vector<104x128xf32> -> vector<104x128xf32>
    %186 = arith.addf %178, %185 : vector<104x128xf32>
    %187 = vector.extract_strided_slice %140 {offsets = [20, 0], sizes = [84, 128], strides = [1, 1]} : vector<104x128xf32> to vector<84x128xf32>
    %188 = vector.extract_strided_slice %140 {offsets = [0, 0], sizes = [20, 128], strides = [1, 1]} : vector<104x128xf32> to vector<20x128xf32>
    %189 = tpu.concatenate %187, %188 in 0 : vector<84x128xf32>, vector<20x128xf32> -> vector<104x128xf32>
    %190 = arith.truncf %189 : vector<104x128xf32> to vector<104x128xbf16>
    %c6_81 = arith.constant 6 : index
    %c0_82 = arith.constant 0 : index
    %c0_83 = arith.constant 0 : index
    %191 = vector.load %arg4[%c6_81, %c0_82, %c0_83] : memref<9x128x128xbf16, #tpu.memory_space<vmem>>, vector<1x128x128xbf16>
    %192 = vector.shape_cast %191 : vector<1x128x128xbf16> to vector<128x128xbf16>
    %cst_84 = arith.constant dense<0.000000e+00> : vector<104x128xf32>
    %193 = tpu.matmul %190, %192, %cst_84 {dimension_numbers = #tpu.dot_dimension_numbers<[1], [0], [0], [1], [0, 0, 1, 1], [], []>} : vector<104x128xbf16>, vector<128x128xbf16>, vector<104x128xf32> -> vector<104x128xf32>
    %194 = arith.addf %186, %193 : vector<104x128xf32>
    %195 = vector.extract_strided_slice %140 {offsets = [21, 0], sizes = [83, 128], strides = [1, 1]} : vector<104x128xf32> to vector<83x128xf32>
    %196 = vector.extract_strided_slice %140 {offsets = [0, 0], sizes = [21, 128], strides = [1, 1]} : vector<104x128xf32> to vector<21x128xf32>
    %197 = tpu.concatenate %195, %196 in 0 : vector<83x128xf32>, vector<21x128xf32> -> vector<104x128xf32>
    %198 = arith.truncf %197 : vector<104x128xf32> to vector<104x128xbf16>
    %c7_85 = arith.constant 7 : index
    %c0_86 = arith.constant 0 : index
    %c0_87 = arith.constant 0 : index
    %199 = vector.load %arg4[%c7_85, %c0_86, %c0_87] : memref<9x128x128xbf16, #tpu.memory_space<vmem>>, vector<1x128x128xbf16>
    %200 = vector.shape_cast %199 : vector<1x128x128xbf16> to vector<128x128xbf16>
    %cst_88 = arith.constant dense<0.000000e+00> : vector<104x128xf32>
    %201 = tpu.matmul %198, %200, %cst_88 {dimension_numbers = #tpu.dot_dimension_numbers<[1], [0], [0], [1], [0, 0, 1, 1], [], []>} : vector<104x128xbf16>, vector<128x128xbf16>, vector<104x128xf32> -> vector<104x128xf32>
    %202 = arith.addf %194, %201 : vector<104x128xf32>
    %203 = vector.extract_strided_slice %140 {offsets = [22, 0], sizes = [82, 128], strides = [1, 1]} : vector<104x128xf32> to vector<82x128xf32>
    %204 = vector.extract_strided_slice %140 {offsets = [0, 0], sizes = [22, 128], strides = [1, 1]} : vector<104x128xf32> to vector<22x128xf32>
    %205 = tpu.concatenate %203, %204 in 0 : vector<82x128xf32>, vector<22x128xf32> -> vector<104x128xf32>
    %206 = arith.truncf %205 : vector<104x128xf32> to vector<104x128xbf16>
    %c8_89 = arith.constant 8 : index
    %c0_90 = arith.constant 0 : index
    %c0_91 = arith.constant 0 : index
    %207 = vector.load %arg4[%c8_89, %c0_90, %c0_91] : memref<9x128x128xbf16, #tpu.memory_space<vmem>>, vector<1x128x128xbf16>
    %208 = vector.shape_cast %207 : vector<1x128x128xbf16> to vector<128x128xbf16>
    %cst_92 = arith.constant dense<0.000000e+00> : vector<104x128xf32>
    %209 = tpu.matmul %206, %208, %cst_92 {dimension_numbers = #tpu.dot_dimension_numbers<[1], [0], [0], [1], [0, 0, 1, 1], [], []>} : vector<104x128xbf16>, vector<128x128xbf16>, vector<104x128xf32> -> vector<104x128xf32>
    %210 = arith.addf %202, %209 : vector<104x128xf32>
    %cst_93 = arith.constant 0.000000e+00 : f32
    %211 = vector.broadcast %cst_93 : f32 to vector<104x128xf32>
    %212 = arith.maximumf %210, %211 : vector<104x128xf32>
    %213 = arith.truncf %212 : vector<104x128xf32> to vector<104x128xbf16>
    %c0_94 = arith.constant 0 : index
    %c0_95 = arith.constant 0 : index
    %c0_96 = arith.constant 0 : index
    %214 = vector.load %arg5[%c0_94, %c0_95, %c0_96] : memref<1x104x128xbf16, #tpu.memory_space<vmem>>, vector<1x104x128xbf16>
    %215 = vector.shape_cast %214 : vector<1x104x128xbf16> to vector<104x128xbf16>
    %216 = vector.shape_cast %213 : vector<104x128xbf16> to vector<1x104x128xbf16>
    tpu.vector_store %arg5[%c0_94, %c0_95, %c0_96], %216 {strides = array<i32>} : memref<1x104x128xbf16, #tpu.memory_space<vmem>>, vector<1x104x128xbf16>,
    return
  }
  func.func @transform_0(%arg0: i32) -> (i32, i32, i32) {
    %c0_i32 = arith.constant 0 : i32
    %c0_i32_0 = arith.constant 0 : i32
    %c0_i32_1 = arith.constant 0 : i32
    return %arg0, %c0_i32, %c0_i32_0 : i32, i32, i32
  }
  func.func @transform_1(%arg0: i32) -> (i32, i32) {
    %c0_i32 = arith.constant 0 : i32
    %c0_i32_0 = arith.constant 0 : i32
    %c0_i32_1 = arith.constant 0 : i32
    return %c0_i32, %c0_i32_0 : i32, i32
  }
  func.func @transform_2(%arg0: i32) -> (i32, i32, i32) {
    %c0_i32 = arith.constant 0 : i32
    %c0_i32_0 = arith.constant 0 : i32
    %c0_i32_1 = arith.constant 0 : i32
    %c0_i32_2 = arith.constant 0 : i32
    return %c0_i32, %c0_i32_0, %c0_i32_1 : i32, i32, i32
  }
  func.func @transform_3(%arg0: i32) -> (i32, i32, i32) {
    %c0_i32 = arith.constant 0 : i32
    %c0_i32_0 = arith.constant 0 : i32
    %c0_i32_1 = arith.constant 0 : i32
    %c0_i32_2 = arith.constant 0 : i32
    return %c0_i32, %c0_i32_0, %c0_i32_1 : i32, i32, i32
  }
  func.func @transform_4(%arg0: i32) -> (i32, i32, i32) {
    %c0_i32 = arith.constant 0 : i32
    %c0_i32_0 = arith.constant 0 : i32
    %c0_i32_1 = arith.constant 0 : i32
    return %arg0, %c0_i32, %c0_i32_0 : i32, i32, i32
  }
}

module attributes {stable_mosaic.version = 11 : i64} {
  func.func @_fc_fused_kernel(%arg0: i32, %arg1: memref<2x3136xbf16, #tpu.memory_space<vmem>>, %arg2: memref<3136x512xbf16, #tpu.memory_space<vmem>>, %arg3: memref<1x512xf32, #tpu.memory_space<vmem>>, %arg4: memref<512x128xbf16, #tpu.memory_space<vmem>>, %arg5: memref<1x128xf32, #tpu.memory_space<vmem>>, %arg6: memref<2x128xf32, #tpu.memory_space<vmem>>) attributes {dimension_semantics = [#tpu.dimension_semantics<arbitrary>], iteration_bounds = array<i64: 1>, scalar_prefetch = 0 : i64, scratch_operands = 0 : i64, tpu.core_type = #tpu.core_type<tc>, window_params = [{pipeline_mode = #tpu.pipeline_mode<synchronous>, transform_indices = @transform_0, window_bounds = array<i64: 2, 3136>}, {pipeline_mode = #tpu.pipeline_mode<synchronous>, transform_indices = @transform_1, window_bounds = array<i64: 3136, 512>}, {pipeline_mode = #tpu.pipeline_mode<synchronous>, transform_indices = @transform_2, window_bounds = array<i64: 1, 512>}, {pipeline_mode = #tpu.pipeline_mode<synchronous>, transform_indices = @transform_3, window_bounds = array<i64: 512, 128>}, {pipeline_mode = #tpu.pipeline_mode<synchronous>, transform_indices = @transform_4, window_bounds = array<i64: 1, 128>}, {pipeline_mode = #tpu.pipeline_mode<synchronous>, transform_indices = @transform_5, window_bounds = array<i64: 2, 128>}]} {
    %c0 = arith.constant 0 : index
    %c0_0 = arith.constant 0 : index
    %0 = vector.load %arg1[%c0, %c0_0] : memref<2x3136xbf16, #tpu.memory_space<vmem>>, vector<2x3136xbf16>
    %c0_1 = arith.constant 0 : index
    %c0_2 = arith.constant 0 : index
    %1 = vector.load %arg2[%c0_1, %c0_2] : memref<3136x512xbf16, #tpu.memory_space<vmem>>, vector<3136x512xbf16>
    %cst = arith.constant dense<0.000000e+00> : vector<2x512xf32>
    %2 = tpu.matmul %0, %1, %cst {dimension_numbers = #tpu.dot_dimension_numbers<[1], [0], [0], [1], [0, 0, 1, 1], [], []>} : vector<2x3136xbf16>, vector<3136x512xbf16>, vector<2x512xf32> -> vector<2x512xf32>
    %c0_3 = arith.constant 0 : index
    %c0_4 = arith.constant 0 : index
    %3 = vector.load %arg3[%c0_3, %c0_4] : memref<1x512xf32, #tpu.memory_space<vmem>>, vector<1x512xf32>
    %4 = vector.broadcast %3 : vector<1x512xf32> to vector<2x512xf32>
    %5 = arith.addf %2, %4 : vector<2x512xf32>
    %cst_5 = arith.constant 0.000000e+00 : f32
    %6 = vector.broadcast %cst_5 : f32 to vector<2x512xf32>
    %7 = arith.maximumf %5, %6 : vector<2x512xf32>
    %8 = arith.truncf %7 : vector<2x512xf32> to vector<2x512xbf16>
    %c0_6 = arith.constant 0 : index
    %c0_7 = arith.constant 0 : index
    %9 = vector.load %arg4[%c0_6, %c0_7] : memref<512x128xbf16, #tpu.memory_space<vmem>>, vector<512x128xbf16>
    %cst_8 = arith.constant dense<0.000000e+00> : vector<2x128xf32>
    %10 = tpu.matmul %8, %9, %cst_8 {dimension_numbers = #tpu.dot_dimension_numbers<[1], [0], [0], [1], [0, 0, 1, 1], [], []>} : vector<2x512xbf16>, vector<512x128xbf16>, vector<2x128xf32> -> vector<2x128xf32>
    %c0_9 = arith.constant 0 : index
    %c0_10 = arith.constant 0 : index
    %11 = vector.load %arg5[%c0_9, %c0_10] : memref<1x128xf32, #tpu.memory_space<vmem>>, vector<1x128xf32>
    %12 = vector.broadcast %11 : vector<1x128xf32> to vector<2x128xf32>
    %13 = arith.addf %10, %12 : vector<2x128xf32>
    %c0_11 = arith.constant 0 : index
    %c0_12 = arith.constant 0 : index
    %14 = vector.load %arg6[%c0_11, %c0_12] : memref<2x128xf32, #tpu.memory_space<vmem>>, vector<2x128xf32>
    tpu.vector_store %arg6[%c0_11, %c0_12], %13 {strides = array<i32>} : memref<2x128xf32, #tpu.memory_space<vmem>>, vector<2x128xf32>,
    return
  }
  func.func @transform_0(%arg0: i32) -> (i32, i32) {
    %c0_i32 = arith.constant 0 : i32
    %c0_i32_0 = arith.constant 0 : i32
    %c0_i32_1 = arith.constant 0 : i32
    return %c0_i32, %c0_i32_0 : i32, i32
  }
  func.func @transform_1(%arg0: i32) -> (i32, i32) {
    %c0_i32 = arith.constant 0 : i32
    %c0_i32_0 = arith.constant 0 : i32
    %c0_i32_1 = arith.constant 0 : i32
    return %c0_i32, %c0_i32_0 : i32, i32
  }
  func.func @transform_2(%arg0: i32) -> (i32, i32) {
    %c0_i32 = arith.constant 0 : i32
    %c0_i32_0 = arith.constant 0 : i32
    %c0_i32_1 = arith.constant 0 : i32
    return %c0_i32, %c0_i32_0 : i32, i32
  }
  func.func @transform_3(%arg0: i32) -> (i32, i32) {
    %c0_i32 = arith.constant 0 : i32
    %c0_i32_0 = arith.constant 0 : i32
    %c0_i32_1 = arith.constant 0 : i32
    return %c0_i32, %c0_i32_0 : i32, i32
  }
  func.func @transform_4(%arg0: i32) -> (i32, i32) {
    %c0_i32 = arith.constant 0 : i32
    %c0_i32_0 = arith.constant 0 : i32
    %c0_i32_1 = arith.constant 0 : i32
    return %c0_i32, %c0_i32_0 : i32, i32
  }
  func.func @transform_5(%arg0: i32) -> (i32, i32) {
    %c0_i32 = arith.constant 0 : i32
    %c0_i32_0 = arith.constant 0 : i32
    %c0_i32_1 = arith.constant 0 : i32
    return %c0_i32, %c0_i32_0 : i32, i32
  }
}

</mosaic_0001>

<bundles_post_ra>
// kernel: dqn_forward.2
= control target key start
LH: loop header
LB: loop body
LE: loop exit
PB: predicated region body
PF: predicated region fallthrough
CT: control target
= control target key end

     0   :  { %s9323_s15 = smov 0   ;;  %s12433_s0 = inlined_call_operand.vmem [shape: bf16[2,416,256], index: 0, kind: input, shape index: {}]   ;;  %s12434_s1 = inlined_call_operand.vmem [shape: bf16[256,128], index: 1, kind: input, shape index: {}]   ;;  %s12435_s2 = inlined_call_operand.vmem [shape: bf16[16,128,128], index: 2, kind: input, shape index: {}]   ;;  %s12436_s3 = inlined_call_operand.vmem [shape: bf16[9,128,128], index: 3, kind: input, shape index: {}]   ;;  %s12437_s4 = inlined_call_operand.vmem [shape: bf16[2,104,128], index: 4, kind: output, shape index: {}]  }
   0x1 LB: > { %s6141_s16 = sadd.s32 4294967295, %s9293_s15   ;;  %p6145_p0 = scmp.ge.s32.totalorder %s9293_s15, 1  ;;  %s9293_s15 = sphi %s9323_s15, %s14_s15  }
   0x2   : > { %p162_p1 = scmp.lt.s32.totalorder %s9293_s15, 3 }
   0x4   : > { %p163_p2 = pnand %p6145_p0, %p162_p1 }
   0x6   : > { %166 = sbr.rel (%p163_p2) target bundleno = 2017 (0x7e1), region = 36 }
   0xd   : > { %v8993_v0 = vld [vmem:[%s12434_s1] sm:$0xff]   ;;  %v9295_v1 = vmov 0   ;;  %v8994_v2 = vld [vmem:[%s12434_s1 + $0x8] sm:$0xff]   ;;  %p188_p3 = scmp.lt.s32.totalorder %s6141_s16, 1  ;;  %v8995_v3 = vld [vmem:[%s12434_s1 + $0x10] sm:$0xff]   ;;  %v12461_v37 = vmov 0.0  }
   0xe   : > { %639 = vmatprep.subr.bf16.mxu0 %v9295_v1  ;;  %v8996_v4 = vld [vmem:[%s12434_s1 + $0x18] sm:$0xff]   ;;  %v8997_v5 = vld [vmem:[%s12434_s1 + $0x20] sm:$0xff]   ;;  %v8998_v7 = vld [vmem:[%s12434_s1 + $0x28] sm:$0xff]   ;;  %8322 = vmatprep.subr.bf16.mxu1 %v12461_v37  ;;  %vm9297_vm0 = vmmov 0   ;;  %vm1264_vm1 = vcmask 1046528   ;;  %vm2502_vm2 = vcmask 1045504  }
   0xf   : > { %640 = vmatpush1.bf16.msra.mxu0 %v8993_v0  ;;  %s12949_s16 = smov (!%p188_p3, %s6141_s16), 1  ;;  %v8999_v8 = vld [vmem:[%s12434_s1 + $0x30] sm:$0xff]   ;;  %v9000_v9 = vld [vmem:[%s12434_s1 + $0x38] sm:$0xff]   ;;  %v9001_v10 = vld [vmem:[%s12434_s1 + $0x40] sm:$0xff]   ;;  %7294 = vmatprep.mubr.msk.bf16.mxu1 %vm9297_vm0, %v12461_v37  ;;  %vm2929_vm3 = vcmask 1044480   ;;  %vm5192_vm4 = vcmask 1043456  }
  0x10   : > { %641 = vmatprep.subr.bf16.mxu0 %v9295_v1  ;;  %s8980_s25 = smul.u32 416, %s12949_s16  ;;  %v9002_v11 = vld [vmem:[%s12434_s1 + $0x48] sm:$0xff]   ;;  %v9003_v12 = vld [vmem:[%s12434_s1 + $0x50] sm:$0xff]   ;;  %v9004_v13 = vld [vmem:[%s12434_s1 + $0x58] sm:$0xff]   ;;  %vm5579_vm5 = vcmask 1042432   ;;  %vm5793_vm6 = vcmask 1041408  }
  0x11   : > { %v9005_v14 = vld [vmem:[%s12434_s1 + $0x60] sm:$0xff]   ;;  %v9006_v15 = vld [vmem:[%s12434_s1 + $0x68] sm:$0xff]   ;;  %v9007_v16 = vld [vmem:[%s12434_s1 + $0x70] sm:$0xff]   ;;  %s8981_s22 = smul.u32 52, %s12949_s16 }
  0x12   : > { %s9352_s30 = scalar_lea.vmem %s12433_s0, %s8980_s25  ;;  %v9008_v17 = vld [vmem:[%s12434_s1 + $0x78] sm:$0xff]   ;;  %v9409_v36 = vld [vmem:[%s12435_s2] sm:$0xff]   ;;  %v9424_v44 = vld [vmem:[%s12435_s2 + $0x8] sm:$0xff]  }
  0x13   : > { %642 = vmatpush1.bf16.msra.mxu0 %v8994_v2  ;;  %v9011_v6 = vld [vmem:[%s9352_s30 + $0x4] ss:$8 sps:$4 sm:$0xff]   ;;  %v9009_v18 = vld [vmem:[%s9352_s30] ss:$8 sps:$4 sm:$0xff]   ;;  %v9012_v19 = vld [vmem:[%s9352_s30 + $0x14] ss:$8 sps:$4 sm:$0xff]   ;;  %8330 = vmatpush3.bf16.msra.mxu1 %v9409_v36  ;;  %s12420_s25 = scalar_lea.vmem %s12437_s4, %s8981_s22 }
  0x14   : > { %643 = vmatprep.subr.bf16.mxu0 %v9295_v1  ;;  %671 = vmatprep.mubr.bf16.mxu0 %v9011_v6  ;;  %v9014_v20 = vld [vmem:[%s9352_s30 + $0x10] ss:$8 sps:$4 sm:$0xff]   ;;  %v9015_v21 = vld [vmem:[%s9352_s30 + $0x24] ss:$8 sps:$4 sm:$0xff]   ;;  %v9017_v22 = vld [vmem:[%s9352_s30 + $0x20] ss:$8 sps:$4 sm:$0xff]  }
  0x15   : > { %v9018_v23 = vld [vmem:[%s9352_s30 + $0x34] ss:$8 sps:$4 sm:$0xff]   ;;  %v9020_v24 = vld [vmem:[%s9352_s30 + $0x30] ss:$8 sps:$4 sm:$0xff]   ;;  %v9021_v25 = vld [vmem:[%s9352_s30 + $0x44] ss:$8 sps:$4 sm:$0xff]   ;;  %8323 = vmatprep.subr.bf16.mxu1 %v12461_v37 }
  0x16   : > { %v9023_v26 = vld [vmem:[%s9352_s30 + $0x40] ss:$8 sps:$4 sm:$0xff]   ;;  %v9024_v27 = vld [vmem:[%s9352_s30 + $0x54] ss:$8 sps:$4 sm:$0xff]   ;;  %v9026_v28 = vld [vmem:[%s9352_s30 + $0x50] ss:$8 sps:$4 sm:$0xff]  }
  0x17   : > { %644 = vmatpush1.bf16.msra.mxu0 %v8995_v3  ;;  %v9027_v29 = vld [vmem:[%s9352_s30 + $0x64] ss:$8 sps:$4 sm:$0xff]   ;;  %v9029_v30 = vld [vmem:[%s9352_s30 + $0x60] ss:$8 sps:$4 sm:$0xff]   ;;  %v9030_v31 = vld [vmem:[%s9352_s30 + $0x74] ss:$8 sps:$4 sm:$0xff]   ;;  %8331 = vmatpush3.bf16.msra.mxu1 %v9424_v44 }
  0x18   : > { %645 = vmatprep.subr.bf16.mxu0 %v9295_v1  ;;  %v9032_v32 = vld [vmem:[%s9352_s30 + $0x70] ss:$8 sps:$4 sm:$0xff]   ;;  %v9033_v33 = vld [vmem:[%s9352_s30 + $0x84] ss:$8 sps:$4 sm:$0xff]   ;;  %v9035_v34 = vld [vmem:[%s9352_s30 + $0x80] ss:$8 sps:$4 sm:$0xff]   ;;  %8324 = vmatprep.subr.bf16.mxu1 %v12461_v37 }
  0x19   : > { %v9036_v35 = vld [vmem:[%s9352_s30 + $0x94] ss:$8 sps:$4 sm:$0xff]   ;;  %v9038_v38 = vld [vmem:[%s9352_s30 + $0x90] ss:$8 sps:$4 sm:$0xff]   ;;  %v9039_v39 = vld [vmem:[%s9352_s30 + $0xa4] ss:$8 sps:$4 sm:$0xff]  }
  0x1a   : > { %v9041_v40 = vld [vmem:[%s9352_s30 + $0xa0] ss:$8 sps:$4 sm:$0xff]   ;;  %v9042_v41 = vld [vmem:[%s9352_s30 + $0xb4] ss:$8 sps:$4 sm:$0xff]   ;;  %v9044_v42 = vld [vmem:[%s9352_s30 + $0xb0] ss:$8 sps:$4 sm:$0xff]  }
  0x1b   : > { %646 = vmatpush1.bf16.msra.mxu0 %v8996_v4  ;;  %v9045_v43 = vld [vmem:[%s9352_s30 + $0xc4] ss:$8 sps:$4 sm:$0xff]   ;;  %v9431_v45 = vld [vmem:[%s12435_s2 + $0x10] sm:$0xff]   ;;  %v9047_v46 = vld [vmem:[%s9352_s30 + $0xc0] ss:$8 sps:$4 sm:$0xff]  }
  0x1c   : > { %647 = vmatprep.subr.bf16.mxu0 %v9295_v1  ;;  %v9048_v47 = vld [vmem:[%s9352_s30 + $0xd4] ss:$8 sps:$4 sm:$0xff]   ;;  %8332 = vmatpush3.bf16.msra.mxu1 %v9431_v45  ;;  %v9447_v49 = vld [vmem:[%s12435_s2 + $0x20] sm:$0xff]   ;;  %v9050_v50 = vld [vmem:[%s9352_s30 + $0xd0] ss:$8 sps:$4 sm:$0xff]  }
  0x1d   : > { %8325 = vmatprep.subr.bf16.mxu1 %v12461_v37  ;;  %v9440_v48 = vld [vmem:[%s12435_s2 + $0x18] sm:$0xff]   ;;  %v9051_v51 = vld [vmem:[%s9352_s30 + $0xe4] ss:$8 sps:$4 sm:$0xff]   ;;  %v9463_v53 = vld [vmem:[%s12435_s2 + $0x30] sm:$0xff]  }
  0x1e   : > { %v9456_v52 = vld [vmem:[%s12435_s2 + $0x28] sm:$0xff]   ;;  %v9054_v55 = vld [vmem:[%s9352_s30 + $0xf4] ss:$8 sps:$4 sm:$0xff]   ;;  %v9095_v57 = vld [vmem:[%s12435_s2 + $0x40] sm:$0xff]  }
  0x1f   : > { %648 = vmatpush1.bf16.msra.mxu0 %v8997_v5  ;;  %v9053_v54 = vld [vmem:[%s9352_s30 + $0xe0] ss:$8 sps:$4 sm:$0xff]   ;;  %v9472_v56 = vld [vmem:[%s12435_s2 + $0x38] sm:$0xff]   ;;  %v9057_v60 = vld [vmem:[%s9352_s30 + $0x104] ss:$8 sps:$4 sm:$0xff]  }
  0x20   : > { %649 = vmatprep.subr.bf16.mxu0 %v9295_v1  ;;  %8333 = vmatpush3.bf16.msra.mxu1 %v9440_v48  ;;  %v9056_v58 = vld [vmem:[%s9352_s30 + $0xf0] ss:$8 sps:$4 sm:$0xff]   ;;  %v9097_v59 = vld [vmem:[%s12435_s2 + $0x48] sm:$0xff]   ;;  %v9060_v0 = vld [vmem:[%s9352_s30 + $0x114] ss:$8 sps:$4 sm:$0xff]  }
  0x21   : > { %8326 = vmatprep.subr.bf16.mxu1 %v12461_v37  ;;  %v9099_v61 = vld [vmem:[%s12435_s2 + $0x50] sm:$0xff]   ;;  %v9059_v62 = vld [vmem:[%s9352_s30 + $0x100] ss:$8 sps:$4 sm:$0xff]   ;;  %v9101_v63 = vld [vmem:[%s12435_s2 + $0x58] sm:$0xff]  }
  0x22   : > { %v9105_v2 = vld [vmem:[%s12435_s2 + $0x68] sm:$0xff]   ;;  %v9062_v3 = vld [vmem:[%s9352_s30 + $0x110] ss:$8 sps:$4 sm:$0xff]  }
  0x23   : > { %650 = vmatpush1.bf16.msra.mxu0 %v8998_v7  ;;  %v9063_v4 = vld [vmem:[%s9352_s30 + $0x124] ss:$8 sps:$4 sm:$0xff]   ;;  %v9107_v5 = vld [vmem:[%s12435_s2 + $0x70] sm:$0xff]   ;;  %v9065_v6 = vld [vmem:[%s9352_s30 + $0x120] ss:$8 sps:$4 sm:$0xff]  }
  0x24   : > { %651 = vmatprep.subr.bf16.mxu0 %v9295_v1  ;;  %8334 = vmatpush3.bf16.msra.mxu1 %v9447_v49  ;;  %v9109_v7 = vld [vmem:[%s12435_s2 + $0x78] sm:$0xff]  }
  0x25   : > { %8327 = vmatprep.subr.bf16.mxu1 %v12461_v37 }
  0x27   : > { %652 = vmatpush1.bf16.msra.mxu0 %v8999_v8  ;;  %v9066_v8 = vld [vmem:[%s9352_s30 + $0x134] ss:$8 sps:$4 sm:$0xff]  }
  0x28   : > { %653 = vmatprep.subr.bf16.mxu0 %v9295_v1  ;;  %8335 = vmatpush3.bf16.msra.mxu1 %v9456_v52 }
  0x29   : > { %8328 = vmatprep.subr.bf16.mxu1 %v12461_v37 }
  0x2b   : > { %654 = vmatpush1.bf16.msra.mxu0 %v9000_v9  ;;  %v9068_v9 = vld [vmem:[%s9352_s30 + $0x130] ss:$8 sps:$4 sm:$0xff]  }
  0x2c   : > { %655 = vmatprep.subr.bf16.mxu0 %v9295_v1  ;;  %8336 = vmatpush3.bf16.msra.mxu1 %v9463_v53 }
  0x2d   : > { %8329 = vmatprep.subr.bf16.mxu1 %v12461_v37 }
  0x2f   : > { %656 = vmatpush1.bf16.msra.mxu0 %v9001_v10  ;;  %v9069_v10 = vld [vmem:[%s9352_s30 + $0x144] ss:$8 sps:$4 sm:$0xff]  }
  0x30   : > { %657 = vmatprep.subr.bf16.mxu0 %v9295_v1  ;;  %8337 = vmatpush3.bf16.msra.mxu1 %v9472_v56 }
  0x31   : > { %7310 = vmatprep.subr.bf16.mxu1 %v12461_v37 }
  0x33   : > { %658 = vmatpush1.bf16.msra.mxu0 %v9002_v11  ;;  %v9071_v11 = vld [vmem:[%s9352_s30 + $0x140] ss:$8 sps:$4 sm:$0xff]  }
  0x34   : > { %659 = vmatprep.subr.bf16.mxu0 %v9295_v1 }
  0x37   : > { %660 = vmatpush1.bf16.msra.mxu0 %v9003_v12  ;;  %v9072_v12 = vld [vmem:[%s9352_s30 + $0x154] ss:$8 sps:$4 sm:$0xff]  }
  0x38   : > { %661 = vmatprep.subr.bf16.mxu0 %v9295_v1 }
  0x3b   : > { %662 = vmatpush1.bf16.msra.mxu0 %v9004_v13  ;;  %v9074_v13 = vld [vmem:[%s9352_s30 + $0x150] ss:$8 sps:$4 sm:$0xff]  }
  0x3c   : > { %663 = vmatprep.subr.bf16.mxu0 %v9295_v1 }
  0x3f   : > { %664 = vmatpush1.bf16.msra.mxu0 %v9005_v14  ;;  %v9075_v14 = vld [vmem:[%s9352_s30 + $0x164] ss:$8 sps:$4 sm:$0xff]  }
  0x40   : > { %665 = vmatprep.subr.bf16.mxu0 %v9295_v1 }
  0x43   : > { %666 = vmatpush1.bf16.msra.mxu0 %v9006_v15  ;;  %v9077_v15 = vld [vmem:[%s9352_s30 + $0x160] ss:$8 sps:$4 sm:$0xff]  }
  0x44   : > { %667 = vmatprep.subr.bf16.mxu0 %v9295_v1 }
  0x47   : > { %668 = vmatpush1.bf16.msra.mxu0 %v9007_v16  ;;  %v9078_v16 = vld [vmem:[%s9352_s30 + $0x174] ss:$8 sps:$4 sm:$0xff]  }
  0x48   : > { %669 = vmatprep.subr.bf16.mxu0 %v9295_v1  ;;  %v9103_v1 = vld [vmem:[%s12435_s2 + $0x60] sm:$0xff]  }
  0x4b   : > { %670 = vmatpush1.bf16.msra.mxu0 %v9008_v17  ;;  %v9080_v17 = vld [vmem:[%s9352_s30 + $0x170] ss:$8 sps:$4 sm:$0xff]  }
  0x4c   : > { %7222 = vmatprep.subr.bf16.mxu0 %v12461_v37 }
  0x4e   : > { %672 = vmatmul.mubr.bf16.vlgmr.msra.gmra.mrb[0].mxu0 %v9009_v18  ;;  %v9081_v18 = vld [vmem:[%s9352_s30 + $0x184] ss:$8 sps:$4 sm:$0xff]  }
  0x4f   : > { %679 = vmatprep.mubr.bf16.mxu0 %v9012_v19  ;;  %7223 = vmatpush3.bf16.msra.mxu0 %v9095_v57  ;;  %v9083_v19 = vld [vmem:[%s9352_s30 + $0x180] ss:$8 sps:$4 sm:$0xff]  }
  0x50   : > { %7224 = vmatprep.subr.bf16.mxu0 %v12461_v37 }
  0x53   : > { %7225 = vmatpush3.bf16.msra.mxu0 %v9097_v59 }
  0x54   : > { %7226 = vmatprep.subr.bf16.mxu0 %v12461_v37 }
  0x56   : > { %680 = vmatmul.mubr.bf16.gmra.mrb[4].mxu0 %v9014_v20  ;;  %v9086_v20 = vld [vmem:[%s9352_s30 + $0x194] ss:$8 sps:$4 sm:$0xff]  }
  0x57   : > { %687 = vmatprep.mubr.bf16.mxu0 %v9015_v21  ;;  %7227 = vmatpush3.bf16.msra.mxu0 %v9099_v61  ;;  %v9088_v21 = vld [vmem:[%s9352_s30 + $0x190] ss:$8 sps:$4 sm:$0xff]  }
  0x58   : > { %7228 = vmatprep.subr.bf16.mxu0 %v12461_v37 }
  0x5b   : > { %7229 = vmatpush3.bf16.msra.mxu0 %v9101_v63 }
  0x5c   : > { %7230 = vmatprep.subr.bf16.mxu0 %v12461_v37 }
  0x5e   : > { %688 = vmatmul.mubr.bf16.gmra.mrb[8].mxu0 %v9017_v22 }
  0x5f   : > { %695 = vmatprep.mubr.bf16.mxu0 %v9018_v23  ;;  %7231 = vmatpush3.bf16.msra.mxu0 %v9103_v1 }
  0x60   : > { %7232 = vmatprep.subr.bf16.mxu0 %v12461_v37 }
  0x63   : > { %7233 = vmatpush3.bf16.msra.mxu0 %v9105_v2 }
  0x64   : > { %7234 = vmatprep.subr.bf16.mxu0 %v12461_v37 }
  0x66   : > { %696 = vmatmul.mubr.bf16.gmra.mrb[12].mxu0 %v9020_v24 }
  0x67   : > { %703 = vmatprep.mubr.bf16.mxu0 %v9021_v25  ;;  %7235 = vmatpush3.bf16.msra.mxu0 %v9107_v5 }
  0x68   : > { %7236 = vmatprep.subr.bf16.mxu0 %v12461_v37 }
  0x6b   : > { %7237 = vmatpush3.bf16.msra.mxu0 %v9109_v7 }
  0x6c   : > { %7266 = vmatprep.subr.bf16.mxu0 %v12461_v37 }
  0x6e   : > { %704 = vmatmul.mubr.bf16.gmra.mrb[16].mxu0 %v9023_v26 }
  0x6f   : > { %711 = vmatprep.mubr.bf16.mxu0 %v9024_v27 }
  0x76   : > { %712 = vmatmul.mubr.bf16.gmra.mrb[20].mxu0 %v9026_v28 }
  0x77   : > { %719 = vmatprep.mubr.bf16.mxu0 %v9027_v29 }
  0x7e   : > { %720 = vmatmul.mubr.bf16.gmra.mrb[24].mxu0 %v9029_v30 }
  0x7f   : > { %727 = vmatprep.mubr.bf16.mxu0 %v9030_v31 }
  0x86   : > { %728 = vmatmul.mubr.bf16.gmra.mrb[28].mxu0 %v9032_v32 }
  0x87   : > { %735 = vmatprep.mubr.bf16.mxu0 %v9033_v33 }
  0x8e   : > { %736 = vmatmul.mubr.bf16.gmra.mrb[32].mxu0 %v9035_v34 }
  0x8f   : > { %743 = vmatprep.mubr.bf16.mxu0 %v9036_v35 }
  0x96   : > { %744 = vmatmul.mubr.bf16.gmra.mrb[36].mxu0 %v9038_v38 }
  0x97   : > { %751 = vmatprep.mubr.bf16.mxu0 %v9039_v39 }
  0x9e   : > { %752 = vmatmul.mubr.bf16.gmra.mrb[40].mxu0 %v9041_v40 }
  0x9f   : > { %759 = vmatprep.mubr.bf16.mxu0 %v9042_v41 }
  0xa6   : > { %760 = vmatmul.mubr.bf16.gmra.mrb[44].mxu0 %v9044_v42 }
  0xa7   : > { %767 = vmatprep.mubr.bf16.mxu0 %v9045_v43 }
  0xae   : > { %768 = vmatmul.mubr.bf16.gmra.mrb[48].mxu0 %v9047_v46 }
  0xaf   : > { %775 = vmatprep.mubr.bf16.mxu0 %v9048_v47 }
  0xb6   : > { %776 = vmatmul.mubr.bf16.gmra.mrb[52].mxu0 %v9050_v50 }
  0xb7   : > { %783 = vmatprep.mubr.bf16.mxu0 %v9051_v51 }
  0xbe   : > { %784 = vmatmul.mubr.bf16.gmra.mrb[56].mxu0 %v9053_v54 }
  0xbf   : > { %791 = vmatprep.mubr.bf16.mxu0 %v9054_v55 }
  0xc6   : > { %792 = vmatmul.mubr.bf16.gmra.mrb[60].mxu0 %v9056_v58 }
  0xc7   : > { %799 = vmatprep.mubr.bf16.mxu0 %v9057_v60 }
  0xce   : > { %800 = vmatmul.mubr.bf16.gmra.mrb[64].mxu0 %v9059_v62 }
  0xcf   : > { %807 = vmatprep.mubr.bf16.mxu0 %v9060_v0 }
  0xd6   : > { %808 = vmatmul.mubr.bf16.gmra.mrb[68].mxu0 %v9062_v3 }
  0xd7   : > { %815 = vmatprep.mubr.bf16.mxu0 %v9063_v4 }
  0xde   : > { %816 = vmatmul.mubr.bf16.gmra.mrb[72].mxu0 %v9065_v6 }
  0xdf   : > { %823 = vmatprep.mubr.bf16.mxu0 %v9066_v8 }
  0xe6   : > { %824 = vmatmul.mubr.bf16.gmra.mrb[76].mxu0 %v9068_v9 }
  0xe7   : > { %831 = vmatprep.mubr.bf16.mxu0 %v9069_v10 }
  0xee   : > { %832 = vmatmul.mubr.bf16.gmra.mrb[80].mxu0 %v9071_v11 }
  0xef   : > { %839 = vmatprep.mubr.bf16.mxu0 %v9072_v12 }
  0xf6   : > { %840 = vmatmul.mubr.bf16.gmra.mrb[84].mxu0 %v9074_v13 }
  0xf7   : > { %847 = vmatprep.mubr.bf16.mxu0 %v9075_v14 }
  0xfe   : > { %848 = vmatmul.mubr.bf16.gmra.mrb[88].mxu0 %v9077_v15 }
  0xff   : > { %855 = vmatprep.mubr.bf16.mxu0 %v9078_v16 }
 0x106   : > { %856 = vmatmul.mubr.bf16.gmra.mrb[92].mxu0 %v9080_v17 }
 0x107   : > { %863 = vmatprep.mubr.bf16.mxu0 %v9081_v18 }
 0x10e   : > { %864 = vmatmul.mubr.bf16.gmra.mrb[96].mxu0 %v9083_v19 }
 0x10f   : > { %871 = vmatprep.mubr.bf16.mxu0 %v9086_v20 }
 0x116   : > { %872 = vmatmul.mubr.bf16.gmra.mrb[100].mxu0 %v9088_v21 }
 0x117   : > { %7238 = vmatprep.mubr.msk.bf16.mxu0 %vm9297_vm0, %v12461_v37 }
 0x121   : > { %v673_v22 = vpop.f32.mrb[0].mxu0 }
 0x122   : > { %v9533_v23 = vmax.f32 %v673_v22, 0.0  ;;  %v675_v24 = vpop.f32.mrb[1].mxu0 }
 0x123   : > { %v676_v25 = vpop.f32.mrb[2].mxu0 }
 0x124   : > { %v9535_v26 = vmax.f32 %v676_v25, 0.0  ;;  %v678_v27 = vpop.f32.mrb[3].mxu0  ;;  %v12440_v28 = vrot.slane %v9533_v23, 1  ;;  %v12439_v29 = vrot.slane %v9533_v23, 2  ;;  %v12438_v30 = vrot.slane %v9533_v23, 3 }
 0x126   : > { %v1266_v32 = vrot.slane %v9535_v26, 1  ;;  %v2503_v33 = vrot.slane %v9535_v26, 2  ;;  %v2930_v34 = vrot.slane %v9535_v26, 3 }
 0x128   : > { %v9548_v35 = vsel %vm1264_vm1, %v12440_v28, %v1266_v32  ;;  %v9553_v38 = vsel %vm2502_vm2, %v12439_v29, %v2503_v33  ;;  %v9558_v39 = vsel %vm2929_vm3, %v12438_v30, %v2930_v34  ;;  %v9108_v28 = vld [vmem:[%s12435_s2 + $0xb0] sm:$0xff]  }
 0x129   : > { %12571 = vst [vmem:[#allocation2_spill] sm:$0xff] %v9553_v38  ;;  %12572 = vst [vmem:[#allocation3_spill] sm:$0xff] %v9558_v39  ;;  %v681_v40 = vpop.f32.mrb[4].mxu0 }
 0x12a   : > { %v9560_v41 = vmax.f32 %v681_v40, 0.0  ;;  %v683_v42 = vpop.f32.mrb[5].mxu0 }
 0x12b   : > { %v684_v43 = vpop.f32.mrb[6].mxu0 }
 0x12c   : > { %v1268_v46 = vrot.slane %v9560_v41, 1  ;;  %v2504_v47 = vrot.slane %v9560_v41, 2  ;;  %v2931_v50 = vrot.slane %v9560_v41, 3  ;;  %v9565_v51 = vmax.f32 %v684_v43, 0.0  ;;  %v686_v54 = vpop.f32.mrb[7].mxu0 }
 0x12e   : > { %v1270_v55 = vrot.slane %v9565_v51, 1  ;;  %v2506_v57 = vrot.slane %v9565_v51, 2  ;;  %v2933_v58 = vrot.slane %v9565_v51, 3  ;;  %v9571_v59 = vsel %vm1264_vm1, %v1266_v32, %v1268_v46 }
 0x12f   : > { %v9578_v62 = vsel %vm2502_vm2, %v2503_v33, %v2504_v47  ;;  %v9581_v63 = vsel %vm2929_vm3, %v2930_v34, %v2931_v50  ;;  %v9100_v33 = vld [vmem:[%s12435_s2 + $0x90] sm:$0xff]  }
 0x130   : > { %12573 = vst [vmem:[#allocation4_spill] sm:$0xff] %v9581_v63  ;;  %v9584_v0 = vsel %vm1264_vm1, %v1268_v46, %v1270_v55  ;;  %v9587_v1 = vsel %vm2502_vm2, %v2504_v47, %v2506_v57  ;;  %v9590_v2 = vsel %vm2929_vm3, %v2931_v50, %v2933_v58 }
 0x131   : > { %12574 = vst [vmem:[#allocation5_spill] sm:$0xff] %v9590_v2  ;;  %v689_v3 = vpop.f32.mrb[8].mxu0 }
 0x132   : > { %v9596_v6 = vmax.f32 %v689_v3, 0.0  ;;  %v691_v7 = vpop.f32.mrb[9].mxu0 }
 0x133   : > { %v692_v8 = vpop.f32.mrb[10].mxu0 }
 0x134   : > { %v1272_v9 = vrot.slane %v9596_v6, 1  ;;  %v2508_v10 = vrot.slane %v9596_v6, 2  ;;  %v2935_v11 = vrot.slane %v9596_v6, 3  ;;  %v9601_v12 = vmax.f32 %v692_v8, 0.0  ;;  %v694_v13 = vpop.f32.mrb[11].mxu0 }
 0x136   : > { %v1274_v14 = vrot.slane %v9601_v12, 1  ;;  %v2510_v15 = vrot.slane %v9601_v12, 2  ;;  %v2937_v16 = vrot.slane %v9601_v12, 3  ;;  %v9607_v17 = vsel %vm1264_vm1, %v1270_v55, %v1272_v9  ;;  %v9096_v55 = vld [vmem:[%s12435_s2 + $0x80] sm:$0xff]  }
 0x137   : > { %v9614_v20 = vsel %vm2502_vm2, %v2506_v57, %v2508_v10  ;;  %v9617_v21 = vsel %vm2929_vm3, %v2933_v58, %v2935_v11 }
 0x138   : > { %12575 = vst [vmem:[#allocation6_spill] sm:$0xff] %v9617_v21  ;;  %v9620_v22 = vsel %vm1264_vm1, %v1272_v9, %v1274_v14  ;;  %v9623_v24 = vsel %vm2502_vm2, %v2508_v10, %v2510_v15  ;;  %v9626_v25 = vsel %vm2929_vm3, %v2935_v11, %v2937_v16 }
 0x139   : > { %12576 = vst [vmem:[#allocation7_spill] sm:$0xff] %v9626_v25  ;;  %v697_v27 = vpop.f32.mrb[12].mxu0 }
 0x13a   : > { %v886_v34 = vmax.f32 %v697_v27, 0.0  ;;  %v699_v40 = vpop.f32.mrb[13].mxu0 }
 0x13b   : > { %v700_v42 = vpop.f32.mrb[14].mxu0 }
 0x13c   : > { %v1276_v43 = vrot.slane %v886_v34, 1  ;;  %v2512_v46 = vrot.slane %v886_v34, 2  ;;  %v2939_v47 = vrot.slane %v886_v34, 3  ;;  %v887_v50 = vmax.f32 %v700_v42, 0.0  ;;  %v702_v54 = vpop.f32.mrb[15].mxu0 }
 0x13e   : > { %v1278_v57 = vrot.slane %v887_v50, 1  ;;  %v2514_v58 = vrot.slane %v887_v50, 2  ;;  %v2941_v3 = vrot.slane %v887_v50, 3  ;;  %v935_v7 = vpack.c.bf16 %v887_v50, %v886_v34 }
 0x13f   : > { %v9636_v8 = vsel %vm1264_vm1, %v1274_v14, %v1276_v43  ;;  %v9639_v9 = vsel %vm2502_vm2, %v2510_v15, %v2512_v46  ;;  %v9642_v10 = vsel %vm2929_vm3, %v2937_v16, %v2939_v47  ;;  %v9098_v15 = vld [vmem:[%s12435_s2 + $0x88] sm:$0xff]  }
 0x140   : > { %12577 = vst [vmem:[#allocation8_spill] sm:$0xff] %v9639_v9  ;;  %12578 = vst [vmem:[#allocation9_spill] sm:$0xff] %v9642_v10  ;;  %7295 = vmatmul.mubr.bf16.vlgmr.msra.gmra.mrb[0].mxu1 %v935_v7  ;;  %v9647_v13 = vsel %vm1264_vm1, %v1276_v43, %v1278_v57  ;;  %v9650_v27 = vsel %vm2502_vm2, %v2512_v46, %v2514_v58  ;;  %v9653_v34 = vsel %vm2929_vm3, %v2939_v47, %v2941_v3 }
 0x141   : > { %12579 = vst [vmem:[#allocation10_spill] sm:$0xff] %v9653_v34  ;;  %7311 = vmatpush3.bf16.msra.mxu1 %v9096_v55  ;;  %v705_v14 = vpop.f32.mrb[16].mxu0  ;;  %7298 = vmatprep.mubr.msk.bf16.mxu1 %vm9297_vm0, %v12461_v37 }
 0x142   : > { %v888_v42 = vmax.f32 %v705_v14, 0.0  ;;  %v707_v43 = vpop.f32.mrb[17].mxu0  ;;  %7312 = vmatprep.subr.bf16.mxu1 %v12461_v37 }
 0x143   : > { %v708_v46 = vpop.f32.mrb[18].mxu0 }
 0x144   : > { %v1280_v47 = vrot.slane %v888_v42, 1  ;;  %v2516_v50 = vrot.slane %v888_v42, 2  ;;  %v2943_v54 = vrot.slane %v888_v42, 3  ;;  %v889_v55 = vmax.f32 %v708_v46, 0.0  ;;  %v710_v7 = vpop.f32.mrb[19].mxu0 }
 0x145   : > { %7313 = vmatpush3.bf16.msra.mxu1 %v9098_v15  ;;  %v9104_v15 = vld [vmem:[%s12435_s2 + $0xa0] sm:$0xff]  }
 0x146   : > { %v1282_v5 = vrot.slane %v889_v55, 1  ;;  %v2518_v16 = vrot.slane %v889_v55, 2  ;;  %v2945_v32 = vrot.slane %v889_v55, 3  ;;  %7314 = vmatprep.subr.bf16.mxu1 %v12461_v37  ;;  %v936_v14 = vpack.c.bf16 %v889_v55, %v888_v42 }
 0x147   : > { %v9670_v43 = vsel %vm1264_vm1, %v1278_v57, %v1280_v47  ;;  %v9673_v40 = vsel %vm2502_vm2, %v2514_v58, %v2516_v50  ;;  %v9676_v46 = vsel %vm2929_vm3, %v2941_v3, %v2943_v54  ;;  %v9102_v58 = vld [vmem:[%s12435_s2 + $0x98] sm:$0xff]  }
 0x148   : > { %12580 = vst [vmem:[#allocation11_spill] sm:$0xff] %v9673_v40  ;;  %12581 = vst [vmem:[#allocation12_spill] sm:$0xff] %v9676_v46  ;;  %7299 = vmatmul.mubr.bf16.gmra.mrb[4].mxu1 %v936_v14  ;;  %v9681_v7 = vsel %vm1264_vm1, %v1280_v47, %v1282_v5  ;;  %v9684_v4 = vsel %vm2502_vm2, %v2516_v50, %v2518_v16  ;;  %v9687_v42 = vsel %vm2929_vm3, %v2943_v54, %v2945_v32 }
 0x149   : > { %12582 = vst [vmem:[#allocation13_spill] sm:$0xff] %v9684_v4  ;;  %12583 = vst [vmem:[#allocation14_spill] sm:$0xff] %v9687_v42  ;;  %7315 = vmatpush3.bf16.msra.mxu1 %v9100_v33  ;;  %v713_v57 = vpop.f32.mrb[20].mxu0  ;;  %7302 = vmatprep.mubr.msk.bf16.mxu1 %vm9297_vm0, %v12461_v37 }
 0x14a   : > { %v890_v50 = vmax.f32 %v713_v57, 0.0  ;;  %v715_v55 = vpop.f32.mrb[21].mxu0  ;;  %7316 = vmatprep.subr.bf16.mxu1 %v12461_v37 }
 0x14b   : > { %v716_v54 = vpop.f32.mrb[22].mxu0 }
 0x14c   : > { %v1284_v33 = vrot.slane %v890_v50, 1  ;;  %v2520_v14 = vrot.slane %v890_v50, 2  ;;  %v2947_v19 = vrot.slane %v890_v50, 3  ;;  %v891_v61 = vmax.f32 %v716_v54, 0.0  ;;  %v718_v31 = vpop.f32.mrb[23].mxu0 }
 0x14d   : > { %7317 = vmatpush3.bf16.msra.mxu1 %v9102_v58 }
 0x14e   : > { %v1286_v11 = vrot.slane %v891_v61, 1  ;;  %v2522_v3 = vrot.slane %v891_v61, 2  ;;  %v2949_v18 = vrot.slane %v891_v61, 3  ;;  %7318 = vmatprep.subr.bf16.mxu1 %v12461_v37  ;;  %v937_v57 = vpack.c.bf16 %v891_v61, %v890_v50 }
 0x14f   : > { %v9704_v55 = vsel %vm1264_vm1, %v1282_v5, %v1284_v33  ;;  %v9707_v47 = vsel %vm2502_vm2, %v2518_v16, %v2520_v14  ;;  %v9710_v54 = vsel %vm2929_vm3, %v2945_v32, %v2947_v19  ;;  %v9106_v32 = vld [vmem:[%s12435_s2 + $0xa8] sm:$0xff]   ;;  %v12588_v50 = vrot.slane %v9533_v23, 1 }
 0x150   : > { %12584 = vst [vmem:[#allocation15_spill] sm:$0xff] %v9707_v47  ;;  %12585 = vst [vmem:[#allocation16_spill] sm:$0xff] %v9710_v54  ;;  %7303 = vmatmul.mubr.bf16.gmra.mrb[8].mxu1 %v937_v57  ;;  %v9715_v58 = vsel %vm1264_vm1, %v1284_v33, %v1286_v11  ;;  %v9718_v60 = vsel %vm2502_vm2, %v2520_v14, %v2522_v3  ;;  %v9721_v61 = vsel %vm2929_vm3, %v2947_v19, %v2949_v18 }
 0x151   : > { %12586 = vst [vmem:[#allocation17_spill] sm:$0xff] %v9718_v60  ;;  %12587 = vst [vmem:[#allocation18_spill] sm:$0xff] %v9721_v61  ;;  %7319 = vmatpush3.bf16.msra.mxu1 %v9104_v15  ;;  %v721_v5 = vpop.f32.mrb[24].mxu0  ;;  %7306 = vmatprep.mubr.msk.bf16.mxu1 %vm9297_vm0, %v12461_v37 }
 0x152   : > { %v892_v33 = vmax.f32 %v721_v5, 0.0  ;;  %v723_v14 = vpop.f32.mrb[25].mxu0  ;;  %7320 = vmatprep.subr.bf16.mxu1 %v12461_v37 }
 0x153   : > { %v724_v19 = vpop.f32.mrb[26].mxu0  ;;  %v12593_v14 = vrot.slane %v9533_v23, 3 }
 0x154   : > { %v1288_v15 = vrot.slane %v892_v33, 1  ;;  %v2524_v57 = vrot.slane %v892_v33, 2  ;;  %v2951_v31 = vrot.slane %v892_v33, 3  ;;  %v726_v30 = vpop.f32.mrb[27].mxu0  ;;  %v938_v29 = vpack.c.bf16 %v892_v33, %v892_v33 }
 0x155   : > { %7321 = vmatpush3.bf16.msra.mxu1 %v9106_v32  ;;  %v9736_v39 = vmax.f32 %v724_v19, 0.0  ;;  %v12590_v33 = vrot.slane %v9533_v23, 2 }
 0x156   : > { %7322 = vmatprep.subr.bf16.mxu1 %v12461_v37  ;;  %v9740_v5 = vsel %vm1264_vm1, %v1286_v11, %v1288_v15  ;;  %v9747_v30 = vsel %vm1264_vm1, %v1288_v15, %v12588_v50  ;;  %v9750_v32 = vsel %vm2502_vm2, %v2522_v3, %v2524_v57  ;;  %v9760_v16 = vsel %vm2929_vm3, %v2949_v18, %v2951_v31  ;;  %v9110_v15 = vld [vmem:[%s12435_s2 + $0xb8] sm:$0xff]  }
 0x157   : > { %12589 = vst [vmem:[#allocation19_spill] sm:$0xff] %v9750_v32  ;;  %v9755_v19 = vsel %vm2502_vm2, %v2524_v57, %v12590_v33  ;;  %12592 = vst [vmem:[#allocation21_spill] sm:$0xff] %v9760_v16  ;;  %v9765_v50 = vsel %vm2929_vm3, %v2951_v31, %v12593_v14  ;;  %v12448_v33 = vrot.slane %v9736_v39, 1  ;;  %v12446_v31 = vrot.slane %v9736_v39, 2 }
 0x158   : > { %12591 = vst [vmem:[#allocation20_spill] sm:$0xff] %v9755_v19  ;;  %7307 = vmatmul.mubr.bf16.gmra.mrb[12].mxu1 %v938_v29  ;;  %12594 = vst [vmem:[#allocation22_spill] sm:$0xff] %v9765_v50 }
 0x159   : > { %7323 = vmatpush3.bf16.msra.mxu1 %v9108_v28  ;;  %v729_v3 = vpop.f32.mrb[28].mxu0  ;;  %7326 = vmatprep.mubr.msk.bf16.mxu1 %vm9297_vm0, %v12461_v37  ;;  %v12447_v28 = vrot.slane %v9736_v39, 3 }
 0x15a   : > { %v894_v57 = vmax.f32 %v729_v3, 0.0  ;;  %v731_v18 = vpop.f32.mrb[29].mxu0  ;;  %7324 = vmatprep.subr.bf16.mxu1 %v12461_v37  ;;  %v9111_v3 = vld [vmem:[%s12435_s2 + $0xc0] sm:$0xff]  }
 0x15b   : > { %v732_v14 = vpop.f32.mrb[30].mxu0 }
 0x15c   : > { %v955_v11 = vpack.c.bf16 %v894_v57, %v9736_v39  ;;  %v1492_v54 = vrot.slane %v894_v57, 1  ;;  %v2716_v61 = vrot.slane %v894_v57, 2  ;;  %v3143_v46 = vrot.slane %v894_v57, 3  ;;  %v734_v42 = vpop.f32.mrb[31].mxu0 }
 0x15d   : > { %v895_v10 = vmax.f32 %v732_v14, 0.0  ;;  %7325 = vmatpush3.bf16.msra.mxu1 %v9110_v15  ;;  %v12597_v14 = vpack.c.bf16 %v9571_v59, %v9548_v35 }
 0x15e   : > { %7239 = vmatmul.mubr.bf16.vlgmr.msra.gmra.mrb[104].mxu0 %v955_v11  ;;  %7354 = vmatprep.subr.bf16.mxu1 %v12461_v37  ;;  %v9786_v18 = vsel %vm1264_vm1, %v12448_v33, %v1492_v54  ;;  %v9791_v29 = vsel %vm2502_vm2, %v12446_v31, %v2716_v61  ;;  %v9796_v42 = vsel %vm2929_vm3, %v12447_v28, %v3143_v46  ;;  %v9112_v28 = vld [vmem:[%s12435_s2 + $0xc8] sm:$0xff]  }
 0x15f   : > { %12595 = vst [vmem:[#allocation23_spill] sm:$0xff] %v9791_v29  ;;  %12596 = vst [vmem:[#allocation24_spill] sm:$0xff] %v9796_v42  ;;  %v1494_v15 = vrot.slane %v895_v10, 1  ;;  %v2717_v57 = vrot.slane %v895_v10, 2  ;;  %v3144_v11 = vrot.slane %v895_v10, 3  ;;  %7242 = vmatprep.mubr.msk.bf16.mxu0 %vm9297_vm0, %v12461_v37  ;;  %7267 = vmatpush3.bf16.msra.mxu0 %v9409_v36 }
 0x160   : > { %7327 = vmatmul.mubr.bf16.vlgmr.msra.gmra.mrb[16].mxu1 %v12597_v14  ;;  %7268 = vmatprep.subr.bf16.mxu0 %v12461_v37 }
 0x161   : > { %7355 = vmatpush3.bf16.msra.mxu1 %v9111_v3  ;;  %v737_v31 = vpop.f32.mrb[32].mxu0  ;;  %7330 = vmatprep.mubr.msk.bf16.mxu1 %vm9297_vm0, %v12461_v37  ;;  %v9811_v33 = vsel %vm1264_vm1, %v1492_v54, %v1494_v15  ;;  %v9814_v36 = vsel %vm2502_vm2, %v2716_v61, %v2717_v57  ;;  %v9817_v35 = vsel %vm2929_vm3, %v3143_v46, %v3144_v11  ;;  %v9113_v46 = vld [vmem:[%s12435_s2 + $0xd0] sm:$0xff]  }
 0x162   : > { %12598 = vst [vmem:[#allocation25_spill] sm:$0xff] %v9814_v36  ;;  %12599 = vst [vmem:[#allocation26_spill] sm:$0xff] %v9817_v35  ;;  %v896_v59 = vmax.f32 %v737_v31, 0.0  ;;  %v739_v14 = vpop.f32.mrb[33].mxu0  ;;  %7356 = vmatprep.subr.bf16.mxu1 %v12461_v37 }
 0x163   : > { %v740_v42 = vpop.f32.mrb[34].mxu0  ;;  %7269 = vmatpush3.bf16.msra.mxu0 %v9424_v44 }
 0x164   : > { %v1496_v16 = vrot.slane %v896_v59, 1  ;;  %v2719_v50 = vrot.slane %v896_v59, 2  ;;  %v3146_v54 = vrot.slane %v896_v59, 3  ;;  %v956_v34 = vpack.c.bf16 %v896_v59, %v895_v10  ;;  %v742_v21 = vpop.f32.mrb[35].mxu0  ;;  %7270 = vmatprep.subr.bf16.mxu0 %v12461_v37 }
 0x165   : > { %v897_v61 = vmax.f32 %v740_v42, 0.0  ;;  %7357 = vmatpush3.bf16.msra.mxu1 %v9112_v28  ;;  %v12602_v28 = vpack.c.bf16 %v9607_v17, %v9584_v0 }
 0x166   : > { %7243 = vmatmul.mubr.bf16.gmra.mrb[108].mxu0 %v956_v34  ;;  %7358 = vmatprep.subr.bf16.mxu1 %v12461_v37  ;;  %v9829_v31 = vsel %vm1264_vm1, %v1494_v15, %v1496_v16  ;;  %v9832_v44 = vsel %vm2502_vm2, %v2717_v57, %v2719_v50  ;;  %v9835_v10 = vsel %vm2929_vm3, %v3144_v11, %v3146_v54 }
 0x167   : > { %12600 = vst [vmem:[#allocation27_spill] sm:$0xff] %v9832_v44  ;;  %12601 = vst [vmem:[#allocation28_spill] sm:$0xff] %v9835_v10  ;;  %v1498_v21 = vrot.slane %v897_v61, 1  ;;  %v2721_v59 = vrot.slane %v897_v61, 2  ;;  %v3148_v42 = vrot.slane %v897_v61, 3  ;;  %7246 = vmatprep.mubr.msk.bf16.mxu0 %vm9297_vm0, %v12461_v37  ;;  %7271 = vmatpush3.bf16.msra.mxu0 %v9431_v45  ;;  %v9114_v45 = vld [vmem:[%s12435_s2 + $0xd8] sm:$0xff]  }
 0x168   : > { %7331 = vmatmul.mubr.bf16.gmra.mrb[20].mxu1 %v12602_v28  ;;  %7272 = vmatprep.subr.bf16.mxu0 %v12461_v37 }
 0x169   : > { %v745_v57 = vpop.f32.mrb[36].mxu0  ;;  %7359 = vmatpush3.bf16.msra.mxu1 %v9113_v46  ;;  %7334 = vmatprep.mubr.msk.bf16.mxu1 %vm9297_vm0, %v12461_v37  ;;  %v9854_v11 = vsel %vm1264_vm1, %v1496_v16, %v1498_v21  ;;  %v9857_v0 = vsel %vm2502_vm2, %v2719_v50, %v2721_v59  ;;  %v9860_v17 = vsel %vm2929_vm3, %v3146_v54, %v3148_v42  ;;  %v9115_v54 = vld [vmem:[%s12435_s2 + $0xe0] sm:$0xff]  }
 0x16a   : > { %12603 = vst [vmem:[#allocation29_spill] sm:$0xff] %v9857_v0  ;;  %12604 = vst [vmem:[#allocation30_spill] sm:$0xff] %v9860_v17  ;;  %v898_v14 = vmax.f32 %v745_v57, 0.0  ;;  %v747_v28 = vpop.f32.mrb[37].mxu0  ;;  %7360 = vmatprep.subr.bf16.mxu1 %v12461_v37 }
 0x16b   : > { %v748_v15 = vpop.f32.mrb[38].mxu0  ;;  %7273 = vmatpush3.bf16.msra.mxu0 %v9440_v48 }
 0x16c   : > { %v1500_v34 = vrot.slane %v898_v14, 1  ;;  %v2723_v3 = vrot.slane %v898_v14, 2  ;;  %v3150_v16 = vrot.slane %v898_v14, 3  ;;  %v957_v35 = vpack.c.bf16 %v898_v14, %v897_v61  ;;  %v750_v10 = vpop.f32.mrb[39].mxu0  ;;  %7274 = vmatprep.subr.bf16.mxu0 %v12461_v37 }
 0x16d   : > { %v899_v50 = vmax.f32 %v748_v15, 0.0  ;;  %7361 = vmatpush3.bf16.msra.mxu1 %v9114_v45 }
 0x16e   : > { %7247 = vmatmul.mubr.bf16.gmra.mrb[112].mxu0 %v957_v35  ;;  %7362 = vmatprep.subr.bf16.mxu1 %v12461_v37  ;;  %v9872_v57 = vsel %vm1264_vm1, %v1498_v21, %v1500_v34  ;;  %v9875_v48 = vsel %vm2502_vm2, %v2721_v59, %v2723_v3  ;;  %v9878_v61 = vsel %vm2929_vm3, %v3148_v42, %v3150_v16 }
 0x16f   : > { %12605 = vst [vmem:[#allocation31_spill] sm:$0xff] %v9875_v48  ;;  %12606 = vst [vmem:[#allocation32_spill] sm:$0xff] %v9878_v61  ;;  %v1502_v10 = vrot.slane %v899_v50, 1  ;;  %v2725_v14 = vrot.slane %v899_v50, 2  ;;  %v3152_v15 = vrot.slane %v899_v50, 3  ;;  %7250 = vmatprep.mubr.msk.bf16.mxu0 %vm9297_vm0, %v12461_v37  ;;  %7275 = vmatpush3.bf16.msra.mxu0 %v9447_v49  ;;  %v12607_v21 = vpack.c.bf16 %v9636_v8, %v9620_v22  ;;  %v9116_v49 = vld [vmem:[%s12435_s2 + $0xe8] sm:$0xff]  }
 0x170   : > { %7276 = vmatprep.subr.bf16.mxu0 %v12461_v37 }
 0x171   : > { %7335 = vmatmul.mubr.bf16.gmra.mrb[24].mxu1 %v12607_v21  ;;  %v753_v42 = vpop.f32.mrb[40].mxu0  ;;  %v9897_v45 = vsel %vm1264_vm1, %v1500_v34, %v1502_v10  ;;  %v9900_v22 = vsel %vm2502_vm2, %v2723_v3, %v2725_v14  ;;  %v9903_v8 = vsel %vm2929_vm3, %v3150_v16, %v3152_v15  ;;  %v9117_v16 = vld [vmem:[%s12435_s2 + $0xf0] sm:$0xff]  }
 0x172   : > { %7338 = vmatprep.mubr.msk.bf16.mxu1 %vm9297_vm0, %v12461_v37  ;;  %7363 = vmatpush3.bf16.msra.mxu1 %v9115_v54  ;;  %12608 = vst [vmem:[#allocation33_spill] sm:$0xff] %v9900_v22  ;;  %12609 = vst [vmem:[#allocation34_spill] sm:$0xff] %v9903_v8  ;;  %v900_v28 = vmax.f32 %v753_v42, 0.0  ;;  %v755_v21 = vpop.f32.mrb[41].mxu0 }
 0x173   : > { %7364 = vmatprep.subr.bf16.mxu1 %v12461_v37  ;;  %v756_v59 = vpop.f32.mrb[42].mxu0  ;;  %7277 = vmatpush3.bf16.msra.mxu0 %v9456_v52 }
 0x174   : > { %v1504_v35 = vrot.slane %v900_v28, 1  ;;  %v2727_v46 = vrot.slane %v900_v28, 2  ;;  %v3154_v34 = vrot.slane %v900_v28, 3  ;;  %v958_v17 = vpack.c.bf16 %v900_v28, %v899_v50  ;;  %v758_v61 = vpop.f32.mrb[43].mxu0  ;;  %7278 = vmatprep.subr.bf16.mxu0 %v12461_v37 }
 0x175   : > { %v901_v3 = vmax.f32 %v756_v59, 0.0 }
 0x176   : > { %7365 = vmatpush3.bf16.msra.mxu1 %v9116_v49  ;;  %7251 = vmatmul.mubr.bf16.gmra.mrb[116].mxu0 %v958_v17  ;;  %v9915_v42 = vsel %vm1264_vm1, %v1502_v10, %v1504_v35  ;;  %v9918_v52 = vsel %vm2502_vm2, %v2725_v14, %v2727_v46  ;;  %v9921_v50 = vsel %vm2929_vm3, %v3152_v15, %v3154_v34 }
 0x177   : > { %7366 = vmatprep.subr.bf16.mxu1 %v12461_v37  ;;  %12610 = vst [vmem:[#allocation35_spill] sm:$0xff] %v9918_v52  ;;  %12611 = vst [vmem:[#allocation36_spill] sm:$0xff] %v9921_v50  ;;  %v1506_v61 = vrot.slane %v901_v3, 1  ;;  %v2729_v28 = vrot.slane %v901_v3, 2  ;;  %v3156_v59 = vrot.slane %v901_v3, 3  ;;  %7254 = vmatprep.mubr.msk.bf16.mxu0 %vm9297_vm0, %v12461_v37  ;;  %v12612_v10 = vpack.c.bf16 %v9670_v43, %v9647_v13 }
 0x178   : > { %7279 = vmatpush3.bf16.msra.mxu0 %v9463_v53  ;;  %v9118_v53 = vld [vmem:[%s12435_s2 + $0xf8] sm:$0xff]  }
 0x179   : > { %7339 = vmatmul.mubr.bf16.gmra.mrb[0].mxu1 %v12612_v10  ;;  %7280 = vmatprep.subr.bf16.mxu0 %v12461_v37  ;;  %v761_v15 = vpop.f32.mrb[44].mxu0  ;;  %v9940_v49 = vsel %vm1264_vm1, %v1504_v35, %v1506_v61  ;;  %v9943_v13 = vsel %vm2502_vm2, %v2727_v46, %v2729_v28  ;;  %v9946_v43 = vsel %vm2929_vm3, %v3154_v34, %v3156_v59 }
 0x17a   : > { %7342 = vmatprep.mubr.msk.bf16.mxu1 %vm9297_vm0, %v12461_v37  ;;  %7367 = vmatpush3.bf16.msra.mxu1 %v9117_v16  ;;  %12613 = vst [vmem:[#allocation37_spill] sm:$0xff] %v9943_v13  ;;  %12614 = vst [vmem:[#allocation38_spill] sm:$0xff] %v9946_v43  ;;  %v902_v21 = vmax.f32 %v761_v15, 0.0  ;;  %v763_v10 = vpop.f32.mrb[45].mxu0 }
 0x17b   : > { %7368 = vmatprep.subr.bf16.mxu1 %v12461_v37  ;;  %v764_v14 = vpop.f32.mrb[46].mxu0 }
 0x17c   : > { %7281 = vmatpush3.bf16.msra.mxu0 %v9472_v56  ;;  %v1508_v17 = vrot.slane %v902_v21, 1  ;;  %v2731_v54 = vrot.slane %v902_v21, 2  ;;  %v3158_v35 = vrot.slane %v902_v21, 3  ;;  %v959_v8 = vpack.c.bf16 %v902_v21, %v901_v3  ;;  %v766_v50 = vpop.f32.mrb[47].mxu0 }
 0x17d   : > { %7926 = vmatprep.subr.bf16.mxu0 %v12461_v37  ;;  %v903_v46 = vmax.f32 %v764_v14, 0.0  ;;  %v12617_v50 = vpack.c.bf16 %v9704_v55, %v9681_v7  ;;  %v12629_v7 = vrot.slane %v9736_v39, 3 }
 0x17e   : > { %7369 = vmatpush3.bf16.msra.mxu1 %v9118_v53  ;;  %7255 = vmatmul.mubr.bf16.gmra.mrb[120].mxu0 %v959_v8  ;;  %v9955_v34 = vsel %vm1264_vm1, %v1506_v61, %v1508_v17  ;;  %v9958_v15 = vsel %vm2502_vm2, %v2729_v28, %v2731_v54  ;;  %v9961_v56 = vsel %vm2929_vm3, %v3156_v59, %v3158_v35 }
 0x17f   : > { %7398 = vmatprep.subr.bf16.mxu1 %v12461_v37  ;;  %12615 = vst [vmem:[#allocation39_spill] sm:$0xff] %v9958_v15  ;;  %12616 = vst [vmem:[#allocation40_spill] sm:$0xff] %v9961_v56  ;;  %v1510_v10 = vrot.slane %v903_v46, 1  ;;  %v2733_v16 = vrot.slane %v903_v46, 2  ;;  %v3160_v3 = vrot.slane %v903_v46, 3  ;;  %7258 = vmatprep.mubr.msk.bf16.mxu0 %vm9297_vm0, %v12461_v37 }
 0x181   : > { %7343 = vmatmul.mubr.bf16.gmra.mrb[4].mxu1 %v12617_v50  ;;  %v769_v28 = vpop.f32.mrb[48].mxu0  ;;  %v9975_v59 = vsel %vm1264_vm1, %v1508_v17, %v1510_v10  ;;  %v9978_v14 = vsel %vm2502_vm2, %v2731_v54, %v2733_v16  ;;  %v9981_v53 = vsel %vm2929_vm3, %v3158_v35, %v3160_v3 }
 0x182   : > { %7346 = vmatprep.mubr.msk.bf16.mxu1 %vm9297_vm0, %v12461_v37  ;;  %12618 = vst [vmem:[#allocation41_spill] sm:$0xff] %v9978_v14  ;;  %12619 = vst [vmem:[#allocation42_spill] sm:$0xff] %v9981_v53  ;;  %v904_v21 = vmax.f32 %v769_v28, 0.0  ;;  %v771_v8 = vpop.f32.mrb[49].mxu0  ;;  %v12622_v28 = vpack.c.bf16 %v9740_v5, %v9715_v58 }
 0x183   : > { %v772_v55 = vpop.f32.mrb[50].mxu0 }
 0x184   : > { %v1512_v50 = vrot.slane %v904_v21, 1  ;;  %v905_v61 = vmax.f32 %v772_v55, 0.0  ;;  %v774_v43 = vpop.f32.mrb[51].mxu0  ;;  %v2735_v56 = vrot.slane %v904_v21, 2  ;;  %v3162_v37 = vrot.slane %v904_v21, 3 }
 0x185   : > { %v960_v25 = vpack.c.bf16 %v904_v21, %v903_v46  ;;  %v12623_v43 = vmov 0.0   ;;  %v12626_v21 = vrot.slane %v9736_v39, 2 }
 0x186   : > { %v1514_v17 = vrot.slane %v905_v61, 1  ;;  %v2737_v63 = vrot.slane %v905_v61, 2  ;;  %v3164_v2 = vrot.slane %v905_v61, 3  ;;  %v9986_v54 = vsel %vm1264_vm1, %v1510_v10, %v1512_v50 }
 0x187   : > { %7259 = vmatmul.mubr.bf16.gmra.mrb[124].mxu0 %v960_v25  ;;  %v9989_v35 = vsel %vm2502_vm2, %v2733_v16, %v2735_v56  ;;  %v9992_v8 = vsel %vm2929_vm3, %v3160_v3, %v3162_v37  ;;  %v12624_v25 = vrot.slane %v9736_v39, 1  ;;  %v961_v58 = vpack.c.bf16 %v905_v61, %v905_v61 }
 0x188   : > { %12620 = vst [vmem:[#allocation43_spill] sm:$0xff] %v9989_v35  ;;  %12621 = vst [vmem:[#allocation44_spill] sm:$0xff] %v9992_v8  ;;  %7262 = vmatprep.mubr.msk.bf16.mxu0 %vm9297_vm0, %v12623_v43  ;;  %v10000_v46 = vsel %vm1264_vm1, %v1512_v50, %v1514_v17  ;;  %v10014_v5 = vsel %vm2502_vm2, %v2735_v56, %v2737_v63  ;;  %v10019_v55 = vsel %vm2502_vm2, %v2737_v63, %v12626_v21 }
 0x189   : > { %7347 = vmatmul.mubr.bf16.gmra.mrb[8].mxu1 %v12622_v28  ;;  %v10005_v10 = vsel %vm1264_vm1, %v1514_v17, %v12624_v25  ;;  %v777_v3 = vpop.f32.mrb[52].mxu0  ;;  %12625 = vst [vmem:[#allocation45_spill] sm:$0xff] %v10014_v5  ;;  %12627 = vst [vmem:[#allocation46_spill] sm:$0xff] %v10019_v55  ;;  %v10028_v16 = vsel %vm2929_vm3, %v3162_v37, %v3164_v2  ;;  %v10033_v29 = vsel %vm2929_vm3, %v3164_v2, %v12629_v7 }
 0x18a   : > { %7350 = vmatprep.mubr.msk.bf16.mxu1 %vm9297_vm0, %v12623_v43  ;;  %v10021_v50 = vmax.f32 %v777_v3, 0.0  ;;  %v779_v17 = vpop.f32.mrb[53].mxu0  ;;  %12628 = vst [vmem:[#allocation47_spill] sm:$0xff] %v10028_v16  ;;  %12630 = vst [vmem:[#allocation48_spill] sm:$0xff] %v10033_v29  ;;  %v1311_v37 = vpack.c.bf16 %v9747_v30, %v9747_v30  ;;  %v12633_v8 = vpack.c.bf16 %v9535_v26, %v9533_v23 }
 0x18b   : > { %v780_v56 = vpop.f32.mrb[54].mxu0  ;;  %v12636_v55 = vpack.c.bf16 %v9811_v33, %v9786_v18  ;;  %v9120_v33 = vld [vmem:[%s12435_s2 + $0x108] sm:$0xff]  }
 0x18c   : > { %v12466_v63 = vrot.slane %v10021_v50, 1  ;;  %v12468_v3 = vrot.slane %v10021_v50, 2  ;;  %v12470_v21 = vrot.slane %v10021_v50, 3  ;;  %v10038_v17 = vmax.f32 %v780_v56, 0.0  ;;  %v782_v28 = vpop.f32.mrb[55].mxu0 }
 0x18e   : > { %v2064_v2 = vrot.slane %v10038_v17, 1  ;;  %v3356_v7 = vrot.slane %v10038_v17, 2  ;;  %v3782_v25 = vrot.slane %v10038_v17, 3  ;;  %v12676_v44 = vpack.c.bf16 %v10038_v17, %v10021_v50 }
 0x18f   : > { %7263 = vmatmul.mubr.bf16.gmra.mrb[128].mxu0 %v961_v58 }
 0x190   : > { %7282 = vmatprep.mubr.msk.bf16.mxu0 %vm9297_vm0, %v12623_v43  ;;  %v10054_v30 = vsel %vm1264_vm1, %v12466_v63, %v2064_v2  ;;  %v10059_v28 = vsel %vm2502_vm2, %v12468_v3, %v3356_v7  ;;  %v10064_v56 = vsel %vm2929_vm3, %v12470_v21, %v3782_v25  ;;  %v9119_v21 = vld [vmem:[%s12435_s2 + $0x100] sm:$0xff]  }
 0x191   : > { %7351 = vmatmul.mubr.bf16.gmra.mrb[12].mxu1 %v1311_v37  ;;  %12631 = vst [vmem:[#allocation49_spill] sm:$0xff] %v10059_v28  ;;  %12632 = vst [vmem:[#allocation50_spill] sm:$0xff] %v10064_v56  ;;  %v785_v58 = vpop.f32.mrb[56].mxu0 }
 0x192   : > { %7370 = vmatprep.mubr.msk.bf16.mxu1 %vm9297_vm0, %v12623_v43  ;;  %v10068_v37 = vmax.f32 %v785_v58, 0.0  ;;  %v787_v61 = vpop.f32.mrb[57].mxu0 }
 0x193   : > { %v788_v39 = vpop.f32.mrb[58].mxu0 }
 0x194   : > { %v2066_v63 = vrot.slane %v10068_v37, 1  ;;  %v3357_v16 = vrot.slane %v10068_v37, 2  ;;  %v3783_v3 = vrot.slane %v10068_v37, 3  ;;  %v10073_v28 = vmax.f32 %v788_v39, 0.0  ;;  %v790_v29 = vpop.f32.mrb[59].mxu0 }
 0x196   : > { %v2068_v56 = vrot.slane %v10073_v28, 1  ;;  %v3359_v58 = vrot.slane %v10073_v28, 2  ;;  %v3785_v61 = vrot.slane %v10073_v28, 3  ;;  %v10087_v39 = vsel %vm1264_vm1, %v2064_v2, %v2066_v63 }
 0x197   : > { %7283 = vmatmul.mubr.bf16.vlgmr.msra.gmra.mrb[104].mxu0 %v12633_v8  ;;  %v10090_v29 = vsel %vm2502_vm2, %v3356_v7, %v3357_v16  ;;  %v10093_v5 = vsel %vm2929_vm3, %v3782_v25, %v3783_v3 }
 0x198   : > { %12634 = vst [vmem:[#allocation51_spill] sm:$0xff] %v10090_v29  ;;  %12635 = vst [vmem:[#allocation52_spill] sm:$0xff] %v10093_v5  ;;  %7286 = vmatprep.mubr.msk.bf16.mxu0 %vm9297_vm0, %v12623_v43  ;;  %v10103_v26 = vsel %vm1264_vm1, %v2066_v63, %v2068_v56  ;;  %v10106_v8 = vsel %vm2502_vm2, %v3357_v16, %v3359_v58  ;;  %v10116_v25 = vsel %vm2929_vm3, %v3783_v3, %v3785_v61  ;;  %v9121_v3 = vld [vmem:[%s12435_s2 + $0x110] sm:$0xff]  }
 0x199   : > { %7371 = vmatmul.mubr.bf16.vlgmr.msra.gmra.mrb[16].mxu1 %v12636_v55  ;;  %12637 = vst [vmem:[#allocation53_spill] sm:$0xff] %v10106_v8  ;;  %v793_v18 = vpop.f32.mrb[60].mxu0  ;;  %12638 = vst [vmem:[#allocation54_spill] sm:$0xff] %v10116_v25  ;;  %v12642_v29 = vpack.c.bf16 %v9854_v11, %v9829_v31  ;;  %v9122_v31 = vld [vmem:[%s12435_s2 + $0x118] sm:$0xff]  }
 0x19a   : > { %7399 = vmatpush3.bf16.msra.mxu1 %v9119_v21  ;;  %7374 = vmatprep.mubr.msk.bf16.mxu1 %vm9297_vm0, %v12623_v43  ;;  %v10119_v63 = vmax.f32 %v793_v18, 0.0  ;;  %v795_v16 = vpop.f32.mrb[61].mxu0 }
 0x19b   : > { %7400 = vmatprep.subr.bf16.mxu1 %v12623_v43  ;;  %v796_v2 = vpop.f32.mrb[62].mxu0 }
 0x19c   : > { %v2070_v7 = vrot.slane %v10119_v63, 1  ;;  %v3361_v23 = vrot.slane %v10119_v63, 2  ;;  %v3787_v53 = vrot.slane %v10119_v63, 3  ;;  %v10126_v14 = vmax.f32 %v796_v2, 0.0  ;;  %v798_v55 = vpop.f32.mrb[63].mxu0 }
 0x19d   : > { %v12639_v2 = vpack.c.bf16 %v9565_v51, %v9560_v41 }
 0x19e   : > { %7401 = vmatpush3.bf16.msra.mxu1 %v9120_v33  ;;  %v2072_v18 = vrot.slane %v10126_v14, 1  ;;  %v3363_v16 = vrot.slane %v10126_v14, 2  ;;  %v3789_v21 = vrot.slane %v10126_v14, 3  ;;  %v10141_v33 = vsel %vm1264_vm1, %v2068_v56, %v2070_v7 }
 0x19f   : > { %7402 = vmatprep.subr.bf16.mxu1 %v12623_v43  ;;  %7287 = vmatmul.mubr.bf16.gmra.mrb[108].mxu0 %v12639_v2  ;;  %v10144_v55 = vsel %vm2502_vm2, %v3359_v58, %v3361_v23  ;;  %v10147_v25 = vsel %vm2929_vm3, %v3785_v61, %v3787_v53 }
 0x1a0   : > { %12640 = vst [vmem:[#allocation55_spill] sm:$0xff] %v10144_v55  ;;  %12641 = vst [vmem:[#allocation56_spill] sm:$0xff] %v10147_v25  ;;  %7290 = vmatprep.mubr.msk.bf16.mxu0 %vm9297_vm0, %v12623_v43  ;;  %v10157_v51 = vsel %vm1264_vm1, %v2070_v7, %v2072_v18  ;;  %v10160_v56 = vsel %vm2502_vm2, %v3361_v23, %v3363_v16  ;;  %v10170_v61 = vsel %vm2929_vm3, %v3787_v53, %v3789_v21  ;;  %v9123_v53 = vld [vmem:[%s12435_s2 + $0x120] sm:$0xff]  }
 0x1a1   : > { %7375 = vmatmul.mubr.bf16.gmra.mrb[20].mxu1 %v12642_v29  ;;  %12643 = vst [vmem:[#allocation57_spill] sm:$0xff] %v10160_v56  ;;  %v801_v11 = vpop.f32.mrb[64].mxu0  ;;  %12644 = vst [vmem:[#allocation58_spill] sm:$0xff] %v10170_v61  ;;  %v12648_v55 = vpack.c.bf16 %v9897_v45, %v9872_v57  ;;  %v9124_v57 = vld [vmem:[%s12435_s2 + $0x128] sm:$0xff]  }
 0x1a2   : > { %7403 = vmatpush3.bf16.msra.mxu1 %v9121_v3  ;;  %7378 = vmatprep.mubr.msk.bf16.mxu1 %vm9297_vm0, %v12623_v43  ;;  %v10173_v29 = vmax.f32 %v801_v11, 0.0  ;;  %v803_v23 = vpop.f32.mrb[65].mxu0 }
 0x1a3   : > { %7404 = vmatprep.subr.bf16.mxu1 %v12623_v43  ;;  %v804_v3 = vpop.f32.mrb[66].mxu0 }
 0x1a4   : > { %v2074_v2 = vrot.slane %v10173_v29, 1  ;;  %v3365_v41 = vrot.slane %v10173_v29, 2  ;;  %v3791_v5 = vrot.slane %v10173_v29, 3  ;;  %v10180_v8 = vmax.f32 %v804_v3, 0.0  ;;  %v806_v58 = vpop.f32.mrb[67].mxu0 }
 0x1a5   : > { %v12645_v3 = vpack.c.bf16 %v9601_v12, %v9596_v6 }
 0x1a6   : > { %7405 = vmatpush3.bf16.msra.mxu1 %v9122_v31  ;;  %v2076_v11 = vrot.slane %v10180_v8, 1  ;;  %v3367_v23 = vrot.slane %v10180_v8, 2  ;;  %v3793_v7 = vrot.slane %v10180_v8, 3  ;;  %v10195_v31 = vsel %vm1264_vm1, %v2072_v18, %v2074_v2 }
 0x1a7   : > { %7406 = vmatprep.subr.bf16.mxu1 %v12623_v43  ;;  %7291 = vmatmul.mubr.bf16.gmra.mrb[112].mxu0 %v12645_v3  ;;  %v10198_v58 = vsel %vm2502_vm2, %v3363_v16, %v3365_v41  ;;  %v10201_v61 = vsel %vm2929_vm3, %v3789_v21, %v3791_v5 }
 0x1a8   : > { %12646 = vst [vmem:[#allocation59_spill] sm:$0xff] %v10198_v58  ;;  %12647 = vst [vmem:[#allocation60_spill] sm:$0xff] %v10201_v61  ;;  %v10209_v56 = vsel %vm1264_vm1, %v2074_v2, %v2076_v11  ;;  %v10212_v6 = vsel %vm2502_vm2, %v3365_v41, %v3367_v23  ;;  %v10215_v12 = vsel %vm2929_vm3, %v3791_v5, %v3793_v7  ;;  %7942 = vmatprep.mubr.msk.bf16.mxu0 %vm9297_vm0, %v12623_v43 }
 0x1a9   : > { %7379 = vmatmul.mubr.bf16.gmra.mrb[24].mxu1 %v12648_v55  ;;  %12649 = vst [vmem:[#allocation61_spill] sm:$0xff] %v10212_v6  ;;  %12650 = vst [vmem:[#allocation62_spill] sm:$0xff] %v10215_v12  ;;  %v809_v45 = vpop.f32.mrb[68].mxu0  ;;  %v12653_v12 = vpack.c.bf16 %v9940_v49, %v9915_v42  ;;  %v9126_v42 = vld [vmem:[%s12435_s2 + $0x138] sm:$0xff]  }
 0x1aa   : > { %7382 = vmatprep.mubr.msk.bf16.mxu1 %vm9297_vm0, %v12623_v43  ;;  %7407 = vmatpush3.bf16.msra.mxu1 %v9123_v53  ;;  %v10227_v16 = vmax.f32 %v809_v45, 0.0  ;;  %v811_v5 = vpop.f32.mrb[69].mxu0  ;;  %v9125_v45 = vld [vmem:[%s12435_s2 + $0x130] sm:$0xff]  }
 0x1ab   : > { %7408 = vmatprep.subr.bf16.mxu1 %v12623_v43  ;;  %v812_v55 = vpop.f32.mrb[70].mxu0 }
 0x1ac   : > { %v2078_v41 = vrot.slane %v10227_v16, 1  ;;  %v3369_v2 = vrot.slane %v10227_v16, 2  ;;  %v3795_v53 = vrot.slane %v10227_v16, 3  ;;  %v10234_v3 = vmax.f32 %v812_v55, 0.0  ;;  %v814_v21 = vpop.f32.mrb[71].mxu0 }
 0x1ae   : > { %7409 = vmatpush3.bf16.msra.mxu1 %v9124_v57  ;;  %v2080_v5 = vrot.slane %v10234_v3, 1  ;;  %v3371_v18 = vrot.slane %v10234_v3, 2  ;;  %v3797_v25 = vrot.slane %v10234_v3, 3  ;;  %v10246_v55 = vsel %vm1264_vm1, %v2076_v11, %v2078_v41 }
 0x1af   : > { %7410 = vmatprep.subr.bf16.mxu1 %v12623_v43  ;;  %v10249_v57 = vsel %vm2502_vm2, %v3367_v23, %v3369_v2  ;;  %v10252_v21 = vsel %vm2929_vm3, %v3793_v7, %v3795_v53 }
 0x1b0   : > { %12651 = vst [vmem:[#allocation63_spill] sm:$0xff] %v10249_v57  ;;  %12652 = vst [vmem:[#allocation64_spill] sm:$0xff] %v10252_v21  ;;  %v10260_v6 = vsel %vm1264_vm1, %v2078_v41, %v2080_v5  ;;  %v10263_v61 = vsel %vm2502_vm2, %v3369_v2, %v3371_v18  ;;  %v10266_v11 = vsel %vm2929_vm3, %v3795_v53, %v3797_v25 }
 0x1b1   : > { %7383 = vmatmul.mubr.bf16.gmra.mrb[0].mxu1 %v12653_v12  ;;  %12654 = vst [vmem:[#allocation65_spill] sm:$0xff] %v10263_v61  ;;  %12655 = vst [vmem:[#allocation66_spill] sm:$0xff] %v10266_v11  ;;  %v817_v7 = vpop.f32.mrb[72].mxu0 }
 0x1b2   : > { %7386 = vmatprep.mubr.msk.bf16.mxu1 %vm9297_vm0, %v12623_v43  ;;  %7411 = vmatpush3.bf16.msra.mxu1 %v9125_v45  ;;  %v10277_v12 = vmax.f32 %v817_v7, 0.0  ;;  %v819_v41 = vpop.f32.mrb[73].mxu0 }
 0x1b3   : > { %7412 = vmatprep.subr.bf16.mxu1 %v12623_v43  ;;  %v820_v2 = vpop.f32.mrb[74].mxu0 }
 0x1b4   : > { %v2082_v53 = vrot.slane %v10277_v12, 1  ;;  %v3373_v45 = vrot.slane %v10277_v12, 2  ;;  %v3799_v58 = vrot.slane %v10277_v12, 3  ;;  %v10283_v35 = vmax.f32 %v820_v2, 0.0  ;;  %v822_v13 = vpop.f32.mrb[75].mxu0 }
 0x1b6   : > { %7413 = vmatpush3.bf16.msra.mxu1 %v9126_v42  ;;  %v2084_v49 = vrot.slane %v10283_v35, 1  ;;  %v3375_v23 = vrot.slane %v10283_v35, 2  ;;  %v3801_v7 = vrot.slane %v10283_v35, 3  ;;  %v10292_v21 = vsel %vm1264_vm1, %v2080_v5, %v2082_v53 }
 0x1b7   : > { %7442 = vmatprep.subr.bf16.mxu1 %v12623_v43  ;;  %v10295_v11 = vsel %vm2502_vm2, %v3371_v18, %v3373_v45  ;;  %v10298_v13 = vsel %vm2929_vm3, %v3797_v25, %v3799_v58  ;;  %v12658_v42 = vpack.c.bf16 %v9975_v59, %v9955_v34 }
 0x1b8   : > { %12656 = vst [vmem:[#allocation67_spill] sm:$0xff] %v10295_v11  ;;  %12657 = vst [vmem:[#allocation68_spill] sm:$0xff] %v10298_v13  ;;  %v10306_v57 = vsel %vm1264_vm1, %v2082_v53, %v2084_v49  ;;  %v10309_v41 = vsel %vm2502_vm2, %v3373_v45, %v3375_v23  ;;  %v10312_v5 = vsel %vm2929_vm3, %v3799_v58, %v3801_v7  ;;  %v12663_v13 = vrot.slane %v10021_v50, 2 }
 0x1b9   : > { %7387 = vmatmul.mubr.bf16.gmra.mrb[4].mxu1 %v12658_v42  ;;  %12659 = vst [vmem:[#allocation69_spill] sm:$0xff] %v10309_v41  ;;  %12660 = vst [vmem:[#allocation70_spill] sm:$0xff] %v10312_v5  ;;  %v825_v25 = vpop.f32.mrb[76].mxu0 }
 0x1ba   : > { %7390 = vmatprep.mubr.msk.bf16.mxu1 %vm9297_vm0, %v12623_v43  ;;  %v10320_v18 = vmax.f32 %v825_v25, 0.0  ;;  %v827_v53 = vpop.f32.mrb[77].mxu0  ;;  %v12661_v25 = vrot.slane %v10021_v50, 1 }
 0x1bb   : > { %v828_v42 = vpop.f32.mrb[78].mxu0 }
 0x1bc   : > { %v2086_v45 = vrot.slane %v10320_v18, 1  ;;  %v3377_v2 = vrot.slane %v10320_v18, 2  ;;  %v3803_v58 = vrot.slane %v10320_v18, 3  ;;  %v830_v61 = vpop.f32.mrb[79].mxu0  ;;  %v10325_v15 = vmax.f32 %v828_v42, 0.0 }
 0x1be   : > { %v10328_v22 = vsel %vm1264_vm1, %v2084_v49, %v2086_v45  ;;  %v10335_v53 = vsel %vm1264_vm1, %v2086_v45, %v12661_v25  ;;  %v10338_v59 = vsel %vm2502_vm2, %v3375_v23, %v3377_v2  ;;  %v10343_v61 = vsel %vm2502_vm2, %v3377_v2, %v12663_v13 }
 0x1bf   : > { %12662 = vst [vmem:[#allocation71_spill] sm:$0xff] %v10338_v59  ;;  %12664 = vst [vmem:[#allocation72_spill] sm:$0xff] %v10343_v61  ;;  %v12665_v49 = vpack.c.bf16 %v10000_v46, %v9986_v54  ;;  %v10351_v34 = vsel %vm2929_vm3, %v3801_v7, %v3803_v58  ;;  %v12667_v45 = vrot.slane %v10021_v50, 3  ;;  %v12501_v54 = vrot.slane %v10325_v15, 1 }
 0x1c0   : > { %12666 = vst [vmem:[#allocation73_spill] sm:$0xff] %v10351_v34  ;;  %v12503_v25 = vrot.slane %v10325_v15, 3  ;;  %v1537_v46 = vpack.c.bf16 %v10005_v10, %v10005_v10 }
 0x1c1   : > { %7391 = vmatmul.mubr.bf16.gmra.mrb[8].mxu1 %v12665_v49  ;;  %v10356_v23 = vsel %vm2929_vm3, %v3803_v58, %v12667_v45  ;;  %v833_v13 = vpop.f32.mrb[80].mxu0 }
 0x1c2   : > { %12668 = vst [vmem:[#allocation74_spill] sm:$0xff] %v10356_v23  ;;  %7394 = vmatprep.mubr.msk.bf16.mxu1 %vm9297_vm0, %v12623_v43  ;;  %v10365_v7 = vmax.f32 %v833_v13, 0.0  ;;  %v835_v49 = vpop.f32.mrb[81].mxu0 }
 0x1c3   : > { %v836_v42 = vpop.f32.mrb[82].mxu0  ;;  %v12669_v49 = vrot.slane %v10325_v15, 2 }
 0x1c4   : > { %v2290_v45 = vrot.slane %v10365_v7, 1  ;;  %v3569_v5 = vrot.slane %v10365_v7, 2  ;;  %v3995_v59 = vrot.slane %v10365_v7, 3  ;;  %v838_v2 = vpop.f32.mrb[83].mxu0  ;;  %v10372_v34 = vmax.f32 %v836_v42, 0.0 }
 0x1c6   : > { %v10379_v13 = vsel %vm1264_vm1, %v12501_v54, %v2290_v45  ;;  %v10384_v58 = vsel %vm2502_vm2, %v12669_v49, %v3569_v5  ;;  %v10389_v23 = vsel %vm2929_vm3, %v12503_v25, %v3995_v59  ;;  %v2292_v42 = vrot.slane %v10372_v34, 1 }
 0x1c7   : > { %12670 = vst [vmem:[#allocation75_spill] sm:$0xff] %v10384_v58  ;;  %12671 = vst [vmem:[#allocation76_spill] sm:$0xff] %v10389_v23  ;;  %v3570_v2 = vrot.slane %v10372_v34, 2  ;;  %v3996_v10 = vrot.slane %v10372_v34, 3 }
 0x1c8   : > { %v10397_v61 = vsel %vm1264_vm1, %v2290_v45, %v2292_v42 }
 0x1c9   : > { %7395 = vmatmul.mubr.bf16.gmra.mrb[12].mxu1 %v1537_v46  ;;  %v841_v54 = vpop.f32.mrb[84].mxu0  ;;  %v10400_v49 = vsel %vm2502_vm2, %v3569_v5, %v3570_v2  ;;  %v10403_v25 = vsel %vm2929_vm3, %v3995_v59, %v3996_v10  ;;  %v9127_v59 = vld [vmem:[%s12435_s2 + $0x140] sm:$0xff]  }
 0x1ca   : > { %7414 = vmatprep.mubr.msk.bf16.mxu1 %vm9297_vm0, %v12623_v43  ;;  %12672 = vst [vmem:[#allocation77_spill] sm:$0xff] %v10400_v49  ;;  %12673 = vst [vmem:[#allocation78_spill] sm:$0xff] %v10403_v25  ;;  %v10405_v23 = vmax.f32 %v841_v54, 0.0  ;;  %v843_v58 = vpop.f32.mrb[85].mxu0 }
 0x1cb   : > { %v844_v46 = vpop.f32.mrb[86].mxu0 }
 0x1cc   : > { %v2294_v41 = vrot.slane %v10405_v23, 1  ;;  %v3572_v52 = vrot.slane %v10405_v23, 2  ;;  %v3998_v45 = vrot.slane %v10405_v23, 3  ;;  %v10412_v0 = vmax.f32 %v844_v46, 0.0  ;;  %v846_v5 = vpop.f32.mrb[87].mxu0 }
 0x1ce   : > { %v2296_v58 = vrot.slane %v10412_v0, 1  ;;  %v3574_v11 = vrot.slane %v10412_v0, 2  ;;  %v4000_v48 = vrot.slane %v10412_v0, 3  ;;  %v10423_v36 = vsel %vm1264_vm1, %v2292_v42, %v2294_v41 }
 0x1cf   : > { %v10426_v46 = vsel %vm2502_vm2, %v3570_v2, %v3572_v52  ;;  %v10429_v5 = vsel %vm2929_vm3, %v3996_v10, %v3998_v45 }
 0x1d0   : > { %12674 = vst [vmem:[#allocation79_spill] sm:$0xff] %v10426_v46  ;;  %12675 = vst [vmem:[#allocation80_spill] sm:$0xff] %v10429_v5  ;;  %v10435_v54 = vsel %vm1264_vm1, %v2294_v41, %v2296_v58  ;;  %v10440_v32 = vsel %vm2502_vm2, %v3572_v52, %v3574_v11  ;;  %v10452_v41 = vsel %vm2929_vm3, %v3998_v45, %v4000_v48  ;;  %v9129_v45 = vld [vmem:[%s12435_s2 + $0x150] sm:$0xff]  }
 0x1d1   : > { %7415 = vmatmul.mubr.bf16.vlgmr.msra.gmra.mrb[16].mxu1 %v12676_v44  ;;  %12677 = vst [vmem:[#allocation81_spill] sm:$0xff] %v10440_v32  ;;  %v9128_v44 = vld [vmem:[%s12435_s2 + $0x148] sm:$0xff]   ;;  %v849_v50 = vpop.f32.mrb[88].mxu0  ;;  %12678 = vst [vmem:[#allocation82_spill] sm:$0xff] %v10452_v41 }
 0x1d2   : > { %7443 = vmatpush3.bf16.msra.mxu1 %v9127_v59  ;;  %7418 = vmatprep.mubr.msk.bf16.mxu1 %vm9297_vm0, %v12623_v43  ;;  %v10455_v52 = vmax.f32 %v849_v50, 0.0  ;;  %v851_v2 = vpop.f32.mrb[89].mxu0  ;;  %v12681_v50 = vpack.c.bf16 %v10073_v28, %v10068_v37 }
 0x1d3   : > { %7444 = vmatprep.subr.bf16.mxu1 %v12623_v43  ;;  %v852_v10 = vpop.f32.mrb[90].mxu0 }
 0x1d4   : > { %v2298_v59 = vrot.slane %v10455_v52, 1  ;;  %v3576_v42 = vrot.slane %v10455_v52, 2  ;;  %v4002_v38 = vrot.slane %v10455_v52, 3  ;;  %v10460_v25 = vmax.f32 %v852_v10, 0.0  ;;  %v854_v5 = vpop.f32.mrb[91].mxu0 }
 0x1d6   : > { %7445 = vmatpush3.bf16.msra.mxu1 %v9128_v44  ;;  %v2300_v2 = vrot.slane %v10460_v25, 1  ;;  %v3578_v17 = vrot.slane %v10460_v25, 2  ;;  %v4004_v49 = vrot.slane %v10460_v25, 3  ;;  %v10472_v10 = vsel %vm1264_vm1, %v2296_v58, %v2298_v59 }
 0x1d7   : > { %7446 = vmatprep.subr.bf16.mxu1 %v12623_v43  ;;  %v10475_v5 = vsel %vm2502_vm2, %v3574_v11, %v3576_v42  ;;  %v10478_v44 = vsel %vm2929_vm3, %v4000_v48, %v4002_v38  ;;  %v9130_v48 = vld [vmem:[%s12435_s2 + $0x158] sm:$0xff]  }
 0x1d8   : > { %12679 = vst [vmem:[#allocation83_spill] sm:$0xff] %v10475_v5  ;;  %12680 = vst [vmem:[#allocation84_spill] sm:$0xff] %v10478_v44  ;;  %v10484_v46 = vsel %vm1264_vm1, %v2298_v59, %v2300_v2  ;;  %v10489_v47 = vsel %vm2502_vm2, %v3576_v42, %v3578_v17  ;;  %v10501_v58 = vsel %vm2929_vm3, %v4002_v38, %v4004_v49  ;;  %v9131_v38 = vld [vmem:[%s12435_s2 + $0x160] sm:$0xff]  }
 0x1d9   : > { %7419 = vmatmul.mubr.bf16.gmra.mrb[20].mxu1 %v12681_v50  ;;  %12682 = vst [vmem:[#allocation85_spill] sm:$0xff] %v10489_v47  ;;  %v857_v28 = vpop.f32.mrb[92].mxu0  ;;  %12683 = vst [vmem:[#allocation86_spill] sm:$0xff] %v10501_v58 }
 0x1da   : > { %7447 = vmatpush3.bf16.msra.mxu1 %v9129_v45  ;;  %7422 = vmatprep.mubr.msk.bf16.mxu1 %vm9297_vm0, %v12623_v43  ;;  %v10504_v42 = vmax.f32 %v857_v28, 0.0  ;;  %v859_v59 = vpop.f32.mrb[93].mxu0  ;;  %v12686_v28 = vpack.c.bf16 %v10126_v14, %v10119_v63  ;;  %v9132_v14 = vld [vmem:[%s12435_s2 + $0x168] sm:$0xff]  }
 0x1db   : > { %7448 = vmatprep.subr.bf16.mxu1 %v12623_v43  ;;  %v860_v45 = vpop.f32.mrb[94].mxu0 }
 0x1dc   : > { %v2302_v50 = vrot.slane %v10504_v42, 1  ;;  %v3580_v11 = vrot.slane %v10504_v42, 2  ;;  %v4006_v19 = vrot.slane %v10504_v42, 3  ;;  %v10509_v41 = vmax.f32 %v860_v45, 0.0  ;;  %v862_v44 = vpop.f32.mrb[95].mxu0 }
 0x1de   : > { %7449 = vmatpush3.bf16.msra.mxu1 %v9130_v48  ;;  %v2304_v59 = vrot.slane %v10509_v41, 1  ;;  %v3582_v37 = vrot.slane %v10509_v41, 2  ;;  %v4008_v32 = vrot.slane %v10509_v41, 3  ;;  %v10521_v45 = vsel %vm1264_vm1, %v2300_v2, %v2302_v50 }
 0x1df   : > { %7450 = vmatprep.subr.bf16.mxu1 %v12623_v43  ;;  %v10524_v44 = vsel %vm2502_vm2, %v3578_v17, %v3580_v11  ;;  %v10527_v48 = vsel %vm2929_vm3, %v4004_v49, %v4006_v19 }
 0x1e0   : > { %12684 = vst [vmem:[#allocation87_spill] sm:$0xff] %v10524_v44  ;;  %12685 = vst [vmem:[#allocation88_spill] sm:$0xff] %v10527_v48  ;;  %v10533_v5 = vsel %vm1264_vm1, %v2302_v50, %v2304_v59  ;;  %v10538_v40 = vsel %vm2502_vm2, %v3580_v11, %v3582_v37  ;;  %v10550_v2 = vsel %vm2929_vm3, %v4006_v19, %v4008_v32  ;;  %v9133_v19 = vld [vmem:[%s12435_s2 + $0x170] sm:$0xff]  }
 0x1e1   : > { %7423 = vmatmul.mubr.bf16.gmra.mrb[24].mxu1 %v12686_v28  ;;  %12687 = vst [vmem:[#allocation89_spill] sm:$0xff] %v10538_v40  ;;  %v865_v63 = vpop.f32.mrb[96].mxu0  ;;  %12688 = vst [vmem:[#allocation90_spill] sm:$0xff] %v10550_v2 }
 0x1e2   : > { %7426 = vmatprep.mubr.msk.bf16.mxu1 %vm9297_vm0, %v12623_v43  ;;  %7451 = vmatpush3.bf16.msra.mxu1 %v9131_v38  ;;  %v10553_v11 = vmax.f32 %v865_v63, 0.0  ;;  %v867_v50 = vpop.f32.mrb[97].mxu0  ;;  %v12691_v63 = vpack.c.bf16 %v10180_v8, %v10173_v29  ;;  %v9134_v8 = vld [vmem:[%s12435_s2 + $0x178] sm:$0xff]  }
 0x1e3   : > { %7452 = vmatprep.subr.bf16.mxu1 %v12623_v43  ;;  %v868_v28 = vpop.f32.mrb[98].mxu0 }
 0x1e4   : > { %v2306_v17 = vrot.slane %v10553_v11, 1  ;;  %v3584_v38 = vrot.slane %v10553_v11, 2  ;;  %v4010_v60 = vrot.slane %v10553_v11, 3  ;;  %v10558_v58 = vmax.f32 %v868_v28, 0.0  ;;  %v870_v48 = vpop.f32.mrb[99].mxu0 }
 0x1e6   : > { %7453 = vmatpush3.bf16.msra.mxu1 %v9132_v14  ;;  %v2308_v50 = vrot.slane %v10558_v58, 1  ;;  %v3586_v49 = vrot.slane %v10558_v58, 2  ;;  %v4012_v47 = vrot.slane %v10558_v58, 3  ;;  %v10570_v28 = vsel %vm1264_vm1, %v2304_v59, %v2306_v17 }
 0x1e7   : > { %7454 = vmatprep.subr.bf16.mxu1 %v12623_v43  ;;  %v10573_v48 = vsel %vm2502_vm2, %v3582_v37, %v3584_v38  ;;  %v10576_v14 = vsel %vm2929_vm3, %v4008_v32, %v4010_v60 }
 0x1e8   : > { %12689 = vst [vmem:[#allocation91_spill] sm:$0xff] %v10573_v48  ;;  %12690 = vst [vmem:[#allocation92_spill] sm:$0xff] %v10576_v14  ;;  %v10582_v44 = vsel %vm1264_vm1, %v2306_v17, %v2308_v50  ;;  %v10587_v9 = vsel %vm2502_vm2, %v3584_v38, %v3586_v49  ;;  %v10599_v59 = vsel %vm2929_vm3, %v4010_v60, %v4012_v47 }
 0x1e9   : > { %7427 = vmatmul.mubr.bf16.gmra.mrb[0].mxu1 %v12691_v63  ;;  %v873_v32 = vpop.f32.mrb[100].mxu0 }
 0x1ea   : > { %7430 = vmatprep.mubr.msk.bf16.mxu1 %vm9297_vm0, %v12623_v43  ;;  %7455 = vmatpush3.bf16.msra.mxu1 %v9133_v19  ;;  %v10601_v17 = vmax.f32 %v873_v32, 0.0  ;;  %v875_v38 = vpop.f32.mrb[101].mxu0 }
 0x1eb   : > { %7456 = vmatprep.subr.bf16.mxu1 %v12623_v43  ;;  %v876_v63 = vpop.f32.mrb[102].mxu0 }
 0x1ec   : > { %v2310_v37 = vrot.slane %v10601_v17, 1  ;;  %v3588_v19 = vrot.slane %v10601_v17, 2  ;;  %v10606_v4 = vmax.f32 %v876_v63, 0.0  ;;  %v878_v2 = vpop.f32.mrb[103].mxu0  ;;  %v4014_v14 = vrot.slane %v10601_v17, 3 }
 0x1ed   : > { %v1882_v60 = vpack.c.bf16 %v10601_v17, %v10558_v58  ;;  %v12692_v58 = vpack.c.bf16 %v10234_v3, %v10227_v16  ;;  %v12693_v17 = vrot.slane %v10325_v15, 1  ;;  %v12694_v16 = vrot.slane %v10325_v15, 2 }
 0x1ee   : > { %7457 = vmatpush3.bf16.msra.mxu1 %v9134_v8  ;;  %v2312_v32 = vrot.slane %v10606_v4, 1  ;;  %v3590_v38 = vrot.slane %v10606_v4, 2  ;;  %v4016_v29 = vrot.slane %v10606_v4, 3  ;;  %v10616_v40 = vsel %vm1264_vm1, %v2308_v50, %v2310_v37 }
 0x1ef   : > { %7486 = vmatprep.subr.bf16.mxu1 %v12623_v43  ;;  %v10619_v63 = vsel %vm2502_vm2, %v3586_v49, %v3588_v19  ;;  %v10622_v2 = vsel %vm2929_vm3, %v4012_v47, %v4014_v14 }
 0x1f0   : > { %v10628_v8 = vsel %vm1264_vm1, %v2310_v37, %v2312_v32  ;;  %v10633_v48 = vsel %vm1264_vm1, %v2312_v32, %v12693_v17  ;;  %v10638_v49 = vsel %vm2502_vm2, %v3588_v19, %v3590_v38  ;;  %v10647_v3 = vsel %vm2502_vm2, %v3590_v38, %v12694_v16 }
 0x1f1   : > { %7431 = vmatmul.mubr.bf16.gmra.mrb[4].mxu1 %v12692_v58  ;;  %v2334_v47 = vpack.c.bf16 %v10628_v8, %v10616_v40  ;;  %v4039_v37 = vpack.c.bf16 %v10622_v2, %v10599_v59  ;;  %v3614_v32 = vpack.c.bf16 %v10647_v3, %v10638_v49  ;;  %v10654_v19 = vsel %vm2929_vm3, %v4014_v14, %v4016_v29  ;;  %v9135_v14 = vld [vmem:[%s12435_s2 + $0x180] sm:$0xff]   ;;  %v9160_v40 = vld [vmem:[%s12435_s2 + $0x248] sm:$0xff]  }
 0x1f2   : > { %7434 = vmatprep.mubr.msk.bf16.mxu1 %vm9297_vm0, %v12623_v43  ;;  %v12695_v58 = vrot.slane %v10325_v15, 3  ;;  %v12696_v38 = vpack.c.bf16 %v10283_v35, %v10277_v12  ;;  %v1710_v16 = vpack.c.bf16 %v10320_v18, %v10320_v18  ;;  %v9136_v35 = vld [vmem:[%s12435_s2 + $0x188] sm:$0xff]   ;;  %v9137_v12 = vld [vmem:[%s12435_s2 + $0x190] sm:$0xff]   ;;  %v9138_v18 = vld [vmem:[%s12435_s2 + $0x198] sm:$0xff]  }
 0x1f3   : > { %v9164_v8 = vld [vmem:[%s12435_s2 + $0x268] sm:$0xff]   ;;  %v9207_v49 = vld [vmem:[%s12435_s2 + $0x3c0] sm:$0xff]  }
 0x1f4   : > { %v10659_v17 = vsel %vm2929_vm3, %v4016_v29, %v12695_v58  ;;  %v12697_v29 = vpack.c.bf16 %v10365_v7, %v10325_v15  ;;  %v12698_v15 = vpack.c.bf16 %v10405_v23, %v10372_v34  ;;  %v9139_v7 = vld [vmem:[%s12435_s2 + $0x1a0] sm:$0xff]   ;;  %v12699_v34 = vpack.c.bf16 %v10455_v52, %v10412_v0  ;;  %v9140_v23 = vld [vmem:[%s12435_s2 + $0x1a8] sm:$0xff]   ;;  %v9141_v58 = vld [vmem:[%s12435_s2 + $0x1b0] sm:$0xff]  }
 0x1f5   : > { %v4040_v50 = vpack.c.bf16 %v10659_v17, %v10654_v19  ;;  %v12700_v0 = vpack.c.bf16 %v10504_v42, %v10460_v25  ;;  %v9142_v52 = vld [vmem:[%s12435_s2 + $0x1b8] sm:$0xff]   ;;  %v1883_v25 = vpack.c.bf16 %v10606_v4, %v10606_v4  ;;  %v9143_v42 = vld [vmem:[%s12435_s2 + $0x1c0] sm:$0xff]   ;;  %v9144_v4 = vld [vmem:[%s12435_s2 + $0x1c8] sm:$0xff]  }
 0x1f6   : > { %v12817_v3 = vld [vmem:[#allocation54_spill] sm:$0xff]  ;;  %v9220_v2 = vld [vmem:[%s12436_s3 + $0x68] sm:$0xff]  }
 0x1f7   : > { %v9219_v59 = vld [vmem:[%s12436_s3 + $0x60] sm:$0xff]  }
 0x1f9   : > { %7435 = vmatmul.mubr.bf16.gmra.mrb[8].mxu1 %v12696_v38  ;;  %v12701_v38 = vpack.c.bf16 %v10553_v11, %v10509_v41  ;;  %v12702_v41 = vpack.c.bf16 %v10087_v39, %v10054_v30  ;;  %v9145_v11 = vld [vmem:[%s12435_s2 + $0x1d0] sm:$0xff]   ;;  %v12703_v30 = vpack.c.bf16 %v10141_v33, %v10103_v26  ;;  %v9146_v39 = vld [vmem:[%s12435_s2 + $0x1d8] sm:$0xff]   ;;  %v9147_v26 = vld [vmem:[%s12435_s2 + $0x1e0] sm:$0xff]   ;;  %v12704_v33 = vpack.c.bf16 %v10195_v31, %v10157_v51 }
 0x1fa   : > { %7438 = vmatprep.mubr.msk.bf16.mxu1 %vm9297_vm0, %v12623_v43  ;;  %v9149_v51 = vld [vmem:[%s12435_s2 + $0x1f0] sm:$0xff]   ;;  %v12705_v31 = vpack.c.bf16 %v10246_v55, %v10209_v56  ;;  %v12706_v56 = vpack.c.bf16 %v10292_v21, %v10260_v6 }
 0x201   : > { %7439 = vmatmul.mubr.bf16.gmra.mrb[12].mxu1 %v1710_v16 }
 0x202   : > { %7458 = vmatprep.mubr.msk.bf16.mxu1 %vm9297_vm0, %v12623_v43 }
 0x209   : > { %7459 = vmatmul.mubr.bf16.vlgmr.msra.gmra.mrb[16].mxu1 %v12697_v29 }
 0x20a   : > { %7487 = vmatpush3.bf16.msra.mxu1 %v9135_v14  ;;  %7462 = vmatprep.mubr.msk.bf16.mxu1 %vm9297_vm0, %v12623_v43 }
 0x20b   : > { %7488 = vmatprep.subr.bf16.mxu1 %v12623_v43 }
 0x20e   : > { %7489 = vmatpush3.bf16.msra.mxu1 %v9136_v35 }
 0x20f   : > { %7490 = vmatprep.subr.bf16.mxu1 %v12623_v43 }
 0x211   : > { %7463 = vmatmul.mubr.bf16.gmra.mrb[20].mxu1 %v12698_v15 }
 0x212   : > { %7491 = vmatpush3.bf16.msra.mxu1 %v9137_v12  ;;  %7466 = vmatprep.mubr.msk.bf16.mxu1 %vm9297_vm0, %v12623_v43  ;;  %v9148_v12 = vld [vmem:[%s12435_s2 + $0x1e8] sm:$0xff]  }
 0x213   : > { %7492 = vmatprep.subr.bf16.mxu1 %v12623_v43 }
 0x216   : > { %7493 = vmatpush3.bf16.msra.mxu1 %v9138_v18 }
 0x217   : > { %7494 = vmatprep.subr.bf16.mxu1 %v12623_v43 }
 0x219   : > { %7467 = vmatmul.mubr.bf16.gmra.mrb[24].mxu1 %v12699_v34  ;;  %v9150_v34 = vld [vmem:[%s12435_s2 + $0x1f8] sm:$0xff]  }
 0x21a   : > { %7470 = vmatprep.mubr.msk.bf16.mxu1 %vm9297_vm0, %v12623_v43  ;;  %7495 = vmatpush3.bf16.msra.mxu1 %v9139_v7 }
 0x21b   : > { %7496 = vmatprep.subr.bf16.mxu1 %v12623_v43 }
 0x21e   : > { %7497 = vmatpush3.bf16.msra.mxu1 %v9140_v23 }
 0x21f   : > { %7498 = vmatprep.subr.bf16.mxu1 %v12623_v43 }
 0x221   : > { %7471 = vmatmul.mubr.bf16.gmra.mrb[0].mxu1 %v12700_v0 }
 0x222   : > { %7474 = vmatprep.mubr.msk.bf16.mxu1 %vm9297_vm0, %v12623_v43  ;;  %7499 = vmatpush3.bf16.msra.mxu1 %v9141_v58 }
 0x223   : > { %7500 = vmatprep.subr.bf16.mxu1 %v12623_v43 }
 0x226   : > { %7501 = vmatpush3.bf16.msra.mxu1 %v9142_v52 }
 0x227   : > { %7530 = vmatprep.subr.bf16.mxu1 %v12623_v43 }
 0x229   : > { %7475 = vmatmul.mubr.bf16.gmra.mrb[4].mxu1 %v12701_v38 }
 0x22a   : > { %7478 = vmatprep.mubr.msk.bf16.mxu1 %vm9297_vm0, %v12623_v43 }
 0x231   : > { %7479 = vmatmul.mubr.bf16.gmra.mrb[8].mxu1 %v1882_v60 }
 0x232   : > { %7482 = vmatprep.mubr.msk.bf16.mxu1 %vm9297_vm0, %v12623_v43 }
 0x239   : > { %7483 = vmatmul.mubr.bf16.gmra.mrb[12].mxu1 %v1883_v25 }
 0x23a   : > { %7502 = vmatprep.mubr.msk.bf16.mxu1 %vm9297_vm0, %v12623_v43 }
 0x241   : > { %7503 = vmatmul.mubr.bf16.vlgmr.msra.gmra.mrb[16].mxu1 %v12702_v41  ;;  %v12707_v41 = vpack.c.bf16 %v10328_v22, %v10306_v57 }
 0x242   : > { %7531 = vmatpush3.bf16.msra.mxu1 %v9143_v42  ;;  %7506 = vmatprep.mubr.msk.bf16.mxu1 %vm9297_vm0, %v12623_v43 }
 0x243   : > { %7532 = vmatprep.subr.bf16.mxu1 %v12623_v43 }
 0x246   : > { %7533 = vmatpush3.bf16.msra.mxu1 %v9144_v4 }
 0x247   : > { %7534 = vmatprep.subr.bf16.mxu1 %v12623_v43 }
 0x249   : > { %7507 = vmatmul.mubr.bf16.gmra.mrb[20].mxu1 %v12703_v30  ;;  %v10759_v60 = vpop.f32.mrb[116].mxu0  ;;  %v2109_v30 = vpack.c.bf16 %v10335_v53, %v10335_v53  ;;  %v9152_v53 = vld [vmem:[%s12435_s2 + $0x208] sm:$0xff]  }
 0x24a   : > { %7535 = vmatpush3.bf16.msra.mxu1 %v9145_v11  ;;  %7510 = vmatprep.mubr.msk.bf16.mxu1 %vm9297_vm0, %v12623_v43  ;;  %v7252_v16 = vpop.f32.mrb[117].mxu0 }
 0x24b   : > { %7536 = vmatprep.subr.bf16.mxu1 %v12623_v43  ;;  %v10762_v14 = vpop.f32.mrb[118].mxu0 }
 0x24c   : > { %v7253_v29 = vpop.f32.mrb[119].mxu0 }
 0x24d   : > { %v9151_v29 = vld [vmem:[%s12435_s2 + $0x200] sm:$0xff]  }
 0x24e   : > { %7537 = vmatpush3.bf16.msra.mxu1 %v9146_v39 }
 0x24f   : > { %7538 = vmatprep.subr.bf16.mxu1 %v12623_v43 }
 0x251   : > { %7511 = vmatmul.mubr.bf16.gmra.mrb[24].mxu1 %v12704_v33  ;;  %v10773_v35 = vpop.f32.mrb[120].mxu0 }
 0x252   : > { %7514 = vmatprep.mubr.msk.bf16.mxu1 %vm9297_vm0, %v12623_v43  ;;  %7539 = vmatpush3.bf16.msra.mxu1 %v9147_v26  ;;  %v7256_v15 = vpop.f32.mrb[121].mxu0  ;;  %v12708_v26 = vpack.c.bf16 %v10397_v61, %v10379_v13  ;;  %v9153_v61 = vld [vmem:[%s12435_s2 + $0x210] sm:$0xff]   ;;  %v12709_v13 = vpack.c.bf16 %v10435_v54, %v10423_v36  ;;  %v12710_v36 = vpack.c.bf16 %v10484_v46, %v10472_v10  ;;  %v9156_v54 = vld [vmem:[%s12435_s2 + $0x228] sm:$0xff]   ;;  %v9158_v10 = vld [vmem:[%s12435_s2 + $0x238] sm:$0xff]  }
 0x253   : > { %7540 = vmatprep.subr.bf16.mxu1 %v12623_v43  ;;  %v10779_v18 = vpop.f32.mrb[122].mxu0  ;;  %v12711_v46 = vpack.c.bf16 %v10533_v5, %v10521_v45  ;;  %v2335_v5 = vpack.c.bf16 %v10633_v48, %v10633_v48  ;;  %v9159_v45 = vld [vmem:[%s12435_s2 + $0x240] sm:$0xff]  }
 0x254   : > { %v7257_v7 = vpop.f32.mrb[123].mxu0  ;;  %v9163_v48 = vld [vmem:[%s12435_s2 + $0x260] sm:$0xff]  }
 0x256   : > { %7541 = vmatpush3.bf16.msra.mxu1 %v9148_v12 }
 0x257   : > { %7542 = vmatprep.subr.bf16.mxu1 %v12623_v43 }
 0x259   : > { %7515 = vmatmul.mubr.bf16.gmra.mrb[0].mxu1 %v12705_v31  ;;  %v9155_v31 = vld [vmem:[%s12435_s2 + $0x220] sm:$0xff]  }
 0x25a   : > { %7518 = vmatprep.mubr.msk.bf16.mxu1 %vm9297_vm0, %v12623_v43  ;;  %7543 = vmatpush3.bf16.msra.mxu1 %v9149_v51  ;;  %v10793_v23 = vpop.f32.mrb[124].mxu0  ;;  %v9154_v51 = vld [vmem:[%s12435_s2 + $0x218] sm:$0xff]  }
 0x25b   : > { %7544 = vmatprep.subr.bf16.mxu1 %v12623_v43  ;;  %v7260_v58 = vpop.f32.mrb[125].mxu0 }
 0x25c   : > { %v10796_v0 = vpop.f32.mrb[126].mxu0  ;;  %v12712_v58 = vpack.c.bf16 %v10582_v44, %v10570_v28  ;;  %v12713_v44 = vpack.c.bf16 %v9587_v1, %v9578_v62  ;;  %v9161_v28 = vld [vmem:[%s12435_s2 + $0x250] sm:$0xff]   ;;  %v12714_v62 = vpack.c.bf16 %v9623_v24, %v9614_v20  ;;  %v9162_v1 = vld [vmem:[%s12435_s2 + $0x258] sm:$0xff]  }
 0x25d   : > { %v7261_v52 = vpop.f32.mrb[127].mxu0  ;;  %v12715_v20 = vld [vmem:[#allocation8_spill] sm:$0xff] }
 0x25e   : > { %7545 = vmatpush3.bf16.msra.mxu1 %v9150_v34  ;;  %v9157_v34 = vld [vmem:[%s12435_s2 + $0x230] sm:$0xff]   ;;  %v12716_v24 = vpack.c.bf16 %v9650_v27, %v12715_v20  ;;  %v12717_v52 = vld [vmem:[#allocation13_spill] sm:$0xff]  ;;  %v12718_v27 = vld [vmem:[#allocation11_spill] sm:$0xff] }
 0x25f   : > { %7574 = vmatprep.subr.bf16.mxu1 %v12623_v43  ;;  %v12742_v20 = vld [vmem:[#allocation46_spill] sm:$0xff] }
 0x261   : > { %7519 = vmatmul.mubr.bf16.gmra.mrb[4].mxu1 %v12706_v56  ;;  %v12719_v56 = vpack.c.bf16 %v12717_v52, %v12718_v27  ;;  %v9175_v27 = vld [vmem:[%s12435_s2 + $0x2c0] sm:$0xff]  }
 0x262   : > { %7522 = vmatprep.mubr.msk.bf16.mxu1 %vm9297_vm0, %v12623_v43  ;;  %v10804_v55 = vpop.f32.mrb[128].mxu0 }
 0x263   : > { %v7264_v38 = vpop.f32.mrb[129].mxu0 }
 0x264   : > { %v1112_v25 = vpop.f32.mrb[130].mxu0  ;;  %v9166_v38 = vld [vmem:[%s12435_s2 + $0x278] sm:$0xff]  }
 0x265   : > { %v7265_v42 = vpop.f32.mrb[131].mxu0  ;;  %v12720_v25 = vld [vmem:[#allocation17_spill] sm:$0xff] }
 0x266   : > { %v12721_v42 = vld [vmem:[#allocation15_spill] sm:$0xff] }
 0x269   : > { %7523 = vmatmul.mubr.bf16.gmra.mrb[8].mxu1 %v12707_v41  ;;  %v12722_v41 = vpack.c.bf16 %v12720_v25, %v12721_v42  ;;  %v9176_v42 = vld [vmem:[%s12435_s2 + $0x2c8] sm:$0xff]  }
 0x26a   : > { %7526 = vmatprep.mubr.msk.bf16.mxu1 %vm9297_vm0, %v12623_v43  ;;  %v10811_v4 = vpop.f32.mrb[104].mxu0 }
 0x26b   : > { %v7284_v11 = vpop.f32.mrb[105].mxu0 }
 0x26c   : > { %v10813_v6 = vpop.f32.mrb[106].mxu0  ;;  %v12723_v11 = vld [vmem:[#allocation20_spill] sm:$0xff] }
 0x26d   : > { %v7285_v21 = vpop.f32.mrb[107].mxu0 }
 0x26e   : > { %v12724_v21 = vld [vmem:[#allocation19_spill] sm:$0xff] }
 0x271   : > { %7527 = vmatmul.mubr.bf16.gmra.mrb[12].mxu1 %v2109_v30  ;;  %v12725_v30 = vpack.c.bf16 %v12723_v11, %v12724_v21  ;;  %v12749_v11 = vld [vmem:[#allocation7_spill] sm:$0xff]  ;;  %v12750_v21 = vld [vmem:[#allocation6_spill] sm:$0xff] }
 0x272   : > { %7546 = vmatprep.mubr.msk.bf16.mxu1 %vm9297_vm0, %v12623_v43  ;;  %v10819_v39 = vpop.f32.mrb[108].mxu0 }
 0x273   : > { %v7288_v22 = vpop.f32.mrb[109].mxu0 }
 0x274   : > { %v10821_v57 = vpop.f32.mrb[110].mxu0  ;;  %v12726_v22 = vld [vmem:[#allocation2_spill] sm:$0xff] }
 0x275   : > { %v7289_v16 = vpop.f32.mrb[111].mxu0 }
 0x276   : > { %v2549_v16 = vpack.c.bf16 %v12726_v22, %v12726_v22  ;;  %v9178_v22 = vld [vmem:[%s12435_s2 + $0x2d8] sm:$0xff]  }
 0x279   : > { %7547 = vmatmul.mubr.bf16.vlgmr.msra.gmra.mrb[16].mxu1 %v12708_v26  ;;  %v12727_v26 = vld [vmem:[#allocation27_spill] sm:$0xff] }
 0x27a   : > { %7575 = vmatpush3.bf16.msra.mxu1 %v9151_v29  ;;  %7550 = vmatprep.mubr.msk.bf16.mxu1 %vm9297_vm0, %v12623_v43  ;;  %v10834_v33 = vpop.f32.mrb[112].mxu0  ;;  %v9167_v29 = vld [vmem:[%s12435_s2 + $0x280] sm:$0xff]  }
 0x27b   : > { %7576 = vmatprep.subr.bf16.mxu1 %v12623_v43  ;;  %v7292_v12 = vpop.f32.mrb[113].mxu0 }
 0x27c   : > { %v10837_v15 = vpop.f32.mrb[114].mxu0 }
 0x27d   : > { %v7293_v7 = vpop.f32.mrb[115].mxu0 }
 0x27e   : > { %7577 = vmatpush3.bf16.msra.mxu1 %v9152_v53  ;;  %v12728_v53 = vld [vmem:[#allocation25_spill] sm:$0xff]  ;;  %v9168_v7 = vld [vmem:[%s12435_s2 + $0x288] sm:$0xff]  }
 0x27f   : > { %7578 = vmatprep.subr.bf16.mxu1 %v12623_v43  ;;  %v12729_v12 = vpack.c.bf16 %v12727_v26, %v12728_v53  ;;  %v12753_v26 = vld [vmem:[#allocation9_spill] sm:$0xff] }
 0x281   : > { %7551 = vmatmul.mubr.bf16.gmra.mrb[20].mxu1 %v12709_v13  ;;  %v12730_v13 = vld [vmem:[#allocation31_spill] sm:$0xff] }
 0x282   : > { %7579 = vmatpush3.bf16.msra.mxu1 %v9153_v61  ;;  %7554 = vmatprep.mubr.msk.bf16.mxu1 %vm9297_vm0, %v12623_v43  ;;  %v9169_v61 = vld [vmem:[%s12435_s2 + $0x290] sm:$0xff]  }
 0x283   : > { %7580 = vmatprep.subr.bf16.mxu1 %v12623_v43 }
 0x286   : > { %7581 = vmatpush3.bf16.msra.mxu1 %v9154_v51  ;;  %v12731_v51 = vld [vmem:[#allocation29_spill] sm:$0xff] }
 0x287   : > { %7582 = vmatprep.subr.bf16.mxu1 %v12623_v43 }
 0x289   : > { %7555 = vmatmul.mubr.bf16.gmra.mrb[24].mxu1 %v12710_v36  ;;  %v9170_v36 = vld [vmem:[%s12435_s2 + $0x298] sm:$0xff]  }
 0x28a   : > { %7558 = vmatprep.mubr.msk.bf16.mxu1 %vm9297_vm0, %v12623_v43  ;;  %7583 = vmatpush3.bf16.msra.mxu1 %v9155_v31  ;;  %v12732_v31 = vpack.c.bf16 %v12730_v13, %v12731_v51  ;;  %v12756_v13 = vld [vmem:[#allocation12_spill] sm:$0xff] }
 0x28b   : > { %7584 = vmatprep.subr.bf16.mxu1 %v12623_v43 }
 0x28e   : > { %7585 = vmatpush3.bf16.msra.mxu1 %v9156_v54  ;;  %v9171_v54 = vld [vmem:[%s12435_s2 + $0x2a0] sm:$0xff]  }
 0x28f   : > { %7586 = vmatprep.subr.bf16.mxu1 %v12623_v43 }
 0x291   : > { %7559 = vmatmul.mubr.bf16.gmra.mrb[0].mxu1 %v12711_v46  ;;  %v12734_v46 = vld [vmem:[#allocation33_spill] sm:$0xff] }
 0x292   : > { %7562 = vmatprep.mubr.msk.bf16.mxu1 %vm9297_vm0, %v12623_v43  ;;  %7587 = vmatpush3.bf16.msra.mxu1 %v9157_v34  ;;  %v12733_v34 = vld [vmem:[#allocation35_spill] sm:$0xff] }
 0x293   : > { %7588 = vmatprep.subr.bf16.mxu1 %v12623_v43 }
 0x296   : > { %7589 = vmatpush3.bf16.msra.mxu1 %v9158_v10  ;;  %v12735_v10 = vpack.c.bf16 %v12733_v34, %v12734_v46  ;;  %v12761_v46 = vld [vmem:[#allocation22_spill] sm:$0xff] }
 0x297   : > { %7618 = vmatprep.subr.bf16.mxu1 %v12623_v43 }
 0x299   : > { %7563 = vmatmul.mubr.bf16.gmra.mrb[4].mxu1 %v12712_v58  ;;  %v9172_v58 = vld [vmem:[%s12435_s2 + $0x2a8] sm:$0xff]  }
 0x29a   : > { %7566 = vmatprep.mubr.msk.bf16.mxu1 %vm9297_vm0, %v12623_v43 }
 0x2a1   : > { %7567 = vmatmul.mubr.bf16.gmra.mrb[8].mxu1 %v2334_v47  ;;  %v9165_v47 = vld [vmem:[%s12435_s2 + $0x270] sm:$0xff]  }
 0x2a2   : > { %7570 = vmatprep.mubr.msk.bf16.mxu1 %vm9297_vm0, %v12623_v43 }
 0x2a9   : > { %7571 = vmatmul.mubr.bf16.gmra.mrb[12].mxu1 %v2335_v5  ;;  %v9173_v5 = vld [vmem:[%s12435_s2 + $0x2b0] sm:$0xff]  }
 0x2aa   : > { %7590 = vmatprep.mubr.msk.bf16.mxu1 %vm9297_vm0, %v12623_v43 }
 0x2b1   : > { %7591 = vmatmul.mubr.bf16.vlgmr.msra.gmra.mrb[16].mxu1 %v12713_v44  ;;  %v12737_v44 = vld [vmem:[#allocation37_spill] sm:$0xff] }
 0x2b2   : > { %7619 = vmatpush3.bf16.msra.mxu1 %v9159_v45  ;;  %7594 = vmatprep.mubr.msk.bf16.mxu1 %vm9297_vm0, %v12623_v43  ;;  %v12736_v45 = vld [vmem:[#allocation39_spill] sm:$0xff] }
 0x2b3   : > { %7620 = vmatprep.subr.bf16.mxu1 %v12623_v43 }
 0x2b6   : > { %7621 = vmatpush3.bf16.msra.mxu1 %v9160_v40  ;;  %v12738_v40 = vpack.c.bf16 %v12736_v45, %v12737_v44  ;;  %v9183_v44 = vld [vmem:[%s12435_s2 + $0x300] sm:$0xff]  }
 0x2b7   : > { %7622 = vmatprep.subr.bf16.mxu1 %v12623_v43 }
 0x2b9   : > { %7595 = vmatmul.mubr.bf16.gmra.mrb[20].mxu1 %v12714_v62  ;;  %v12739_v62 = vld [vmem:[#allocation43_spill] sm:$0xff] }
 0x2ba   : > { %7623 = vmatpush3.bf16.msra.mxu1 %v9161_v28  ;;  %7598 = vmatprep.mubr.msk.bf16.mxu1 %vm9297_vm0, %v12623_v43  ;;  %v9174_v28 = vld [vmem:[%s12435_s2 + $0x2b8] sm:$0xff]  }
 0x2bb   : > { %7624 = vmatprep.subr.bf16.mxu1 %v12623_v43 }
 0x2be   : > { %7625 = vmatpush3.bf16.msra.mxu1 %v9162_v1  ;;  %v12740_v1 = vld [vmem:[#allocation41_spill] sm:$0xff] }
 0x2bf   : > { %7626 = vmatprep.subr.bf16.mxu1 %v12623_v43 }
 0x2c1   : > { %7599 = vmatmul.mubr.bf16.gmra.mrb[24].mxu1 %v12716_v24  ;;  %v12743_v24 = vld [vmem:[#allocation45_spill] sm:$0xff] }
 0x2c2   : > { %7602 = vmatprep.mubr.msk.bf16.mxu1 %vm9297_vm0, %v12623_v43  ;;  %7627 = vmatpush3.bf16.msra.mxu1 %v9163_v48  ;;  %v12741_v48 = vpack.c.bf16 %v12739_v62, %v12740_v1  ;;  %v9184_v1 = vld [vmem:[%s12435_s2 + $0x308] sm:$0xff]  }
 0x2c3   : > { %7628 = vmatprep.subr.bf16.mxu1 %v12623_v43 }
 0x2c6   : > { %7629 = vmatpush3.bf16.msra.mxu1 %v9164_v8  ;;  %v12744_v8 = vpack.c.bf16 %v12742_v20, %v12743_v24  ;;  %v12768_v20 = vld [vmem:[#allocation32_spill] sm:$0xff]  ;;  %v12769_v24 = vld [vmem:[#allocation30_spill] sm:$0xff] }
 0x2c7   : > { %7630 = vmatprep.subr.bf16.mxu1 %v12623_v43 }
 0x2c9   : > { %7603 = vmatmul.mubr.bf16.gmra.mrb[0].mxu1 %v12719_v56  ;;  %v12746_v56 = vld [vmem:[#allocation5_spill] sm:$0xff] }
 0x2ca   : > { %7606 = vmatprep.mubr.msk.bf16.mxu1 %vm9297_vm0, %v12623_v43  ;;  %7631 = vmatpush3.bf16.msra.mxu1 %v9165_v47  ;;  %v12745_v47 = vld [vmem:[#allocation23_spill] sm:$0xff] }
 0x2cb   : > { %7632 = vmatprep.subr.bf16.mxu1 %v12623_v43  ;;  %v2762_v52 = vpack.c.bf16 %v12745_v47, %v12745_v47  ;;  %v9186_v47 = vld [vmem:[%s12435_s2 + $0x318] sm:$0xff]  }
 0x2ce   : > { %7633 = vmatpush3.bf16.msra.mxu1 %v9166_v38  ;;  %v12747_v38 = vld [vmem:[#allocation4_spill] sm:$0xff] }
 0x2cf   : > { %7662 = vmatprep.subr.bf16.mxu1 %v12623_v43  ;;  %v12748_v25 = vpack.c.bf16 %v12746_v56, %v12747_v38  ;;  %v12772_v56 = vld [vmem:[#allocation34_spill] sm:$0xff] }
 0x2d1   : > { %7607 = vmatmul.mubr.bf16.gmra.mrb[4].mxu1 %v12722_v41  ;;  %v9177_v41 = vld [vmem:[%s12435_s2 + $0x2d0] sm:$0xff]  }
 0x2d2   : > { %7610 = vmatprep.mubr.msk.bf16.mxu1 %vm9297_vm0, %v12623_v43 }
 0x2d9   : > { %7611 = vmatmul.mubr.bf16.gmra.mrb[8].mxu1 %v12725_v30  ;;  %v12751_v30 = vpack.c.bf16 %v12749_v11, %v12750_v21  ;;  %v12775_v11 = vld [vmem:[#allocation38_spill] sm:$0xff] }
 0x2da   : > { %7614 = vmatprep.mubr.msk.bf16.mxu1 %vm9297_vm0, %v12623_v43 }
 0x2e1   : > { %7615 = vmatmul.mubr.bf16.gmra.mrb[12].mxu1 %v2549_v16  ;;  %v9179_v16 = vld [vmem:[%s12435_s2 + $0x2e0] sm:$0xff]  }
 0x2e2   : > { %7634 = vmatprep.mubr.msk.bf16.mxu1 %vm9297_vm0, %v12623_v43 }
 0x2e9   : > { %7635 = vmatmul.mubr.bf16.vlgmr.msra.gmra.mrb[16].mxu1 %v12729_v12  ;;  %v9180_v12 = vld [vmem:[%s12435_s2 + $0x2e8] sm:$0xff]  }
 0x2ea   : > { %7663 = vmatpush3.bf16.msra.mxu1 %v9167_v29  ;;  %7638 = vmatprep.mubr.msk.bf16.mxu1 %vm9297_vm0, %v12623_v43  ;;  %v12752_v29 = vld [vmem:[#allocation10_spill] sm:$0xff] }
 0x2eb   : > { %7664 = vmatprep.subr.bf16.mxu1 %v12623_v43  ;;  %v12754_v53 = vpack.c.bf16 %v12752_v29, %v12753_v26  ;;  %v12780_v26 = vld [vmem:[#allocation48_spill] sm:$0xff] }
 0x2ee   : > { %7665 = vmatpush3.bf16.msra.mxu1 %v9168_v7  ;;  %v9181_v7 = vld [vmem:[%s12435_s2 + $0x2f0] sm:$0xff]  }
 0x2ef   : > { %7666 = vmatprep.subr.bf16.mxu1 %v12623_v43 }
 0x2f1   : > { %7639 = vmatmul.mubr.bf16.gmra.mrb[20].mxu1 %v12732_v31  ;;  %v9182_v31 = vld [vmem:[%s12435_s2 + $0x2f8] sm:$0xff]  }
 0x2f2   : > { %7667 = vmatpush3.bf16.msra.mxu1 %v9169_v61  ;;  %7642 = vmatprep.mubr.msk.bf16.mxu1 %vm9297_vm0, %v12623_v43  ;;  %v12755_v61 = vld [vmem:[#allocation14_spill] sm:$0xff] }
 0x2f3   : > { %7668 = vmatprep.subr.bf16.mxu1 %v12623_v43  ;;  %v12757_v51 = vpack.c.bf16 %v12755_v61, %v12756_v13  ;;  %v9191_v13 = vld [vmem:[%s12435_s2 + $0x340] sm:$0xff]  }
 0x2f6   : > { %7669 = vmatpush3.bf16.msra.mxu1 %v9170_v36  ;;  %v12758_v36 = vld [vmem:[#allocation18_spill] sm:$0xff] }
 0x2f7   : > { %7670 = vmatprep.subr.bf16.mxu1 %v12623_v43 }
 0x2f9   : > { %7643 = vmatmul.mubr.bf16.gmra.mrb[24].mxu1 %v12735_v10  ;;  %v12762_v10 = vld [vmem:[#allocation21_spill] sm:$0xff] }
 0x2fa   : > { %7646 = vmatprep.mubr.msk.bf16.mxu1 %vm9297_vm0, %v12623_v43  ;;  %7671 = vmatpush3.bf16.msra.mxu1 %v9171_v54  ;;  %v12759_v54 = vld [vmem:[#allocation16_spill] sm:$0xff] }
 0x2fb   : > { %7672 = vmatprep.subr.bf16.mxu1 %v12623_v43  ;;  %v12760_v34 = vpack.c.bf16 %v12758_v36, %v12759_v54  ;;  %v9192_v54 = vld [vmem:[%s12435_s2 + $0x348] sm:$0xff]  }
 0x2fe   : > { %7673 = vmatpush3.bf16.msra.mxu1 %v9172_v58  ;;  %v12763_v58 = vpack.c.bf16 %v12761_v46, %v12762_v10  ;;  %v12787_v46 = vld [vmem:[#allocation57_spill] sm:$0xff]  ;;  %v12788_v10 = vld [vmem:[#allocation55_spill] sm:$0xff] }
 0x2ff   : > { %7674 = vmatprep.subr.bf16.mxu1 %v12623_v43 }
 0x301   : > { %7647 = vmatmul.mubr.bf16.gmra.mrb[0].mxu1 %v12738_v40  ;;  %v12765_v40 = vld [vmem:[#allocation28_spill] sm:$0xff] }
 0x302   : > { %7650 = vmatprep.mubr.msk.bf16.mxu1 %vm9297_vm0, %v12623_v43  ;;  %7675 = vmatpush3.bf16.msra.mxu1 %v9173_v5  ;;  %v12764_v5 = vld [vmem:[#allocation3_spill] sm:$0xff] }
 0x303   : > { %7676 = vmatprep.subr.bf16.mxu1 %v12623_v43  ;;  %v2976_v45 = vpack.c.bf16 %v12764_v5, %v12764_v5  ;;  %v9194_v5 = vld [vmem:[%s12435_s2 + $0x358] sm:$0xff]  }
 0x306   : > { %7677 = vmatpush3.bf16.msra.mxu1 %v9174_v28  ;;  %v12766_v28 = vld [vmem:[#allocation26_spill] sm:$0xff] }
 0x307   : > { %7706 = vmatprep.subr.bf16.mxu1 %v12623_v43  ;;  %v12767_v62 = vpack.c.bf16 %v12765_v40, %v12766_v28  ;;  %v12791_v40 = vld [vmem:[#allocation59_spill] sm:$0xff] }
 0x309   : > { %7651 = vmatmul.mubr.bf16.gmra.mrb[4].mxu1 %v12741_v48  ;;  %v9185_v48 = vld [vmem:[%s12435_s2 + $0x310] sm:$0xff]  }
 0x30a   : > { %7654 = vmatprep.mubr.msk.bf16.mxu1 %vm9297_vm0, %v12623_v43 }
 0x311   : > { %7655 = vmatmul.mubr.bf16.gmra.mrb[8].mxu1 %v12744_v8  ;;  %v12770_v8 = vpack.c.bf16 %v12768_v20, %v12769_v24  ;;  %v12794_v20 = vld [vmem:[#allocation63_spill] sm:$0xff] }
 0x312   : > { %7658 = vmatprep.mubr.msk.bf16.mxu1 %vm9297_vm0, %v12623_v43 }
 0x319   : > { %7659 = vmatmul.mubr.bf16.gmra.mrb[12].mxu1 %v2762_v52  ;;  %v9187_v52 = vld [vmem:[%s12435_s2 + $0x320] sm:$0xff]  }
 0x31a   : > { %7678 = vmatprep.mubr.msk.bf16.mxu1 %vm9297_vm0, %v12623_v43 }
 0x321   : > { %7679 = vmatmul.mubr.bf16.vlgmr.msra.gmra.mrb[16].mxu1 %v12748_v25  ;;  %v9188_v25 = vld [vmem:[%s12435_s2 + $0x328] sm:$0xff]  }
 0x322   : > { %7707 = vmatpush3.bf16.msra.mxu1 %v9175_v27  ;;  %7682 = vmatprep.mubr.msk.bf16.mxu1 %vm9297_vm0, %v12623_v43  ;;  %v12771_v27 = vld [vmem:[#allocation36_spill] sm:$0xff] }
 0x323   : > { %7708 = vmatprep.subr.bf16.mxu1 %v12623_v43  ;;  %v12773_v38 = vpack.c.bf16 %v12771_v27, %v12772_v56  ;;  %v12799_v56 = vld [vmem:[#allocation72_spill] sm:$0xff] }
 0x326   : > { %7709 = vmatpush3.bf16.msra.mxu1 %v9176_v42  ;;  %v9189_v42 = vld [vmem:[%s12435_s2 + $0x330] sm:$0xff]  }
 0x327   : > { %7710 = vmatprep.subr.bf16.mxu1 %v12623_v43 }
 0x329   : > { %7683 = vmatmul.mubr.bf16.gmra.mrb[20].mxu1 %v12751_v30  ;;  %v9190_v30 = vld [vmem:[%s12435_s2 + $0x338] sm:$0xff]  }
 0x32a   : > { %7711 = vmatpush3.bf16.msra.mxu1 %v9177_v41  ;;  %7686 = vmatprep.mubr.msk.bf16.mxu1 %vm9297_vm0, %v12623_v43  ;;  %v12774_v41 = vld [vmem:[#allocation40_spill] sm:$0xff] }
 0x32b   : > { %7712 = vmatprep.subr.bf16.mxu1 %v12623_v43  ;;  %v12776_v21 = vpack.c.bf16 %v12774_v41, %v12775_v11  ;;  %v9199_v11 = vld [vmem:[%s12435_s2 + $0x380] sm:$0xff]  }
 0x32e   : > { %7713 = vmatpush3.bf16.msra.mxu1 %v9178_v22  ;;  %v12777_v22 = vld [vmem:[#allocation44_spill] sm:$0xff] }
 0x32f   : > { %7714 = vmatprep.subr.bf16.mxu1 %v12623_v43 }
 0x331   : > { %7687 = vmatmul.mubr.bf16.gmra.mrb[24].mxu1 %v12754_v53  ;;  %v12781_v53 = vld [vmem:[#allocation47_spill] sm:$0xff] }
 0x332   : > { %7690 = vmatprep.mubr.msk.bf16.mxu1 %vm9297_vm0, %v12623_v43  ;;  %7715 = vmatpush3.bf16.msra.mxu1 %v9179_v16  ;;  %v12778_v16 = vld [vmem:[#allocation42_spill] sm:$0xff] }
 0x333   : > { %7716 = vmatprep.subr.bf16.mxu1 %v12623_v43  ;;  %v12779_v29 = vpack.c.bf16 %v12777_v22, %v12778_v16  ;;  %v9200_v16 = vld [vmem:[%s12435_s2 + $0x388] sm:$0xff]  }
 0x336   : > { %7717 = vmatpush3.bf16.msra.mxu1 %v9180_v12  ;;  %v12782_v12 = vpack.c.bf16 %v12780_v26, %v12781_v53  ;;  %v12806_v26 = vld [vmem:[#allocation83_spill] sm:$0xff]  ;;  %v12807_v53 = vld [vmem:[#allocation81_spill] sm:$0xff] }
 0x337   : > { %7718 = vmatprep.subr.bf16.mxu1 %v12623_v43 }
 0x339   : > { %7691 = vmatmul.mubr.bf16.gmra.mrb[0].mxu1 %v12757_v51  ;;  %v12784_v51 = vld [vmem:[#allocation53_spill] sm:$0xff] }
 0x33a   : > { %7694 = vmatprep.mubr.msk.bf16.mxu1 %vm9297_vm0, %v12623_v43  ;;  %7719 = vmatpush3.bf16.msra.mxu1 %v9181_v7  ;;  %v12783_v7 = vld [vmem:[#allocation24_spill] sm:$0xff] }
 0x33b   : > { %7720 = vmatprep.subr.bf16.mxu1 %v12623_v43  ;;  %v3189_v61 = vpack.c.bf16 %v12783_v7, %v12783_v7  ;;  %v9202_v7 = vld [vmem:[%s12435_s2 + $0x398] sm:$0xff]  }
 0x33e   : > { %7721 = vmatpush3.bf16.msra.mxu1 %v9182_v31  ;;  %v12785_v31 = vld [vmem:[#allocation51_spill] sm:$0xff] }
 0x33f   : > { %7750 = vmatprep.subr.bf16.mxu1 %v12623_v43  ;;  %v12786_v36 = vpack.c.bf16 %v12784_v51, %v12785_v31  ;;  %v12810_v51 = vld [vmem:[#allocation85_spill] sm:$0xff] }
 0x341   : > { %7695 = vmatmul.mubr.bf16.gmra.mrb[4].mxu1 %v12760_v34  ;;  %v9193_v34 = vld [vmem:[%s12435_s2 + $0x350] sm:$0xff]  }
 0x342   : > { %7698 = vmatprep.mubr.msk.bf16.mxu1 %vm9297_vm0, %v12623_v43 }
 0x349   : > { %7699 = vmatmul.mubr.bf16.gmra.mrb[8].mxu1 %v12763_v58  ;;  %v12789_v58 = vpack.c.bf16 %v12787_v46, %v12788_v10  ;;  %v12813_v46 = vld [vmem:[#allocation89_spill] sm:$0xff] }
 0x34a   : > { %7702 = vmatprep.mubr.msk.bf16.mxu1 %vm9297_vm0, %v12623_v43 }
 0x351   : > { %7703 = vmatmul.mubr.bf16.gmra.mrb[12].mxu1 %v2976_v45  ;;  %v9195_v45 = vld [vmem:[%s12435_s2 + $0x360] sm:$0xff]  }
 0x352   : > { %7722 = vmatprep.mubr.msk.bf16.mxu1 %vm9297_vm0, %v12623_v43 }
 0x359   : > { %7723 = vmatmul.mubr.bf16.vlgmr.msra.gmra.mrb[16].mxu1 %v12767_v62  ;;  %v9196_v62 = vld [vmem:[%s12435_s2 + $0x368] sm:$0xff]  }
 0x35a   : > { %7751 = vmatpush3.bf16.msra.mxu1 %v9183_v44  ;;  %7726 = vmatprep.mubr.msk.bf16.mxu1 %vm9297_vm0, %v12623_v43  ;;  %v12790_v44 = vld [vmem:[#allocation61_spill] sm:$0xff] }
 0x35b   : > { %7752 = vmatprep.subr.bf16.mxu1 %v12623_v43  ;;  %v12792_v28 = vpack.c.bf16 %v12790_v44, %v12791_v40  ;;  %v9216_v44 = vld [vmem:[%s12436_s3 + $0x48] sm:$0xff]  }
 0x35c   : > { %v12816_v40 = vld [vmem:[#allocation75_spill] sm:$0xff] }
 0x35e   : > { %7753 = vmatpush3.bf16.msra.mxu1 %v9184_v1  ;;  %v9197_v1 = vld [vmem:[%s12435_s2 + $0x370] sm:$0xff]  }
 0x35f   : > { %7754 = vmatprep.subr.bf16.mxu1 %v12623_v43 }
 0x361   : > { %7727 = vmatmul.mubr.bf16.gmra.mrb[20].mxu1 %v12770_v8  ;;  %v9198_v8 = vld [vmem:[%s12435_s2 + $0x378] sm:$0xff]  }
 0x362   : > { %7755 = vmatpush3.bf16.msra.mxu1 %v9185_v48  ;;  %7730 = vmatprep.mubr.msk.bf16.mxu1 %vm9297_vm0, %v12623_v43  ;;  %v12793_v48 = vld [vmem:[#allocation65_spill] sm:$0xff] }
 0x363   : > { %7756 = vmatprep.subr.bf16.mxu1 %v12623_v43  ;;  %v12795_v24 = vpack.c.bf16 %v12793_v48, %v12794_v20  ;;  %v9209_v48 = vld [vmem:[%s12435_s2 + $0x3d0] sm:$0xff]   ;;  %v12820_v20 = vld [vmem:[#allocation58_spill] sm:$0xff] }
 0x366   : > { %7757 = vmatpush3.bf16.msra.mxu1 %v9186_v47  ;;  %v12796_v47 = vld [vmem:[#allocation69_spill] sm:$0xff] }
 0x367   : > { %7758 = vmatprep.subr.bf16.mxu1 %v12623_v43 }
 0x369   : > { %7731 = vmatmul.mubr.bf16.gmra.mrb[24].mxu1 %v12773_v38  ;;  %v12800_v38 = vld [vmem:[#allocation71_spill] sm:$0xff] }
 0x36a   : > { %7734 = vmatprep.mubr.msk.bf16.mxu1 %vm9297_vm0, %v12623_v43  ;;  %7759 = vmatpush3.bf16.msra.mxu1 %v9187_v52  ;;  %v12797_v52 = vld [vmem:[#allocation67_spill] sm:$0xff] }
 0x36b   : > { %7760 = vmatprep.subr.bf16.mxu1 %v12623_v43  ;;  %v12798_v27 = vpack.c.bf16 %v12796_v47, %v12797_v52  ;;  %v9210_v47 = vld [vmem:[%s12435_s2 + $0x3d8] sm:$0xff]   ;;  %v9211_v52 = vld [vmem:[%s12435_s2 + $0x3e0] sm:$0xff]  }
 0x36e   : > { %7761 = vmatpush3.bf16.msra.mxu1 %v9188_v25  ;;  %v12801_v25 = vpack.c.bf16 %v12799_v56, %v12800_v38  ;;  %v12824_v56 = vld [vmem:[#allocation60_spill] sm:$0xff] }
 0x36f   : > { %7762 = vmatprep.subr.bf16.mxu1 %v12623_v43 }
 0x371   : > { %7735 = vmatmul.mubr.bf16.gmra.mrb[0].mxu1 %v12776_v21  ;;  %v12803_v21 = vld [vmem:[#allocation79_spill] sm:$0xff] }
 0x372   : > { %7738 = vmatprep.mubr.msk.bf16.mxu1 %vm9297_vm0, %v12623_v43  ;;  %7763 = vmatpush3.bf16.msra.mxu1 %v9189_v42  ;;  %v12802_v42 = vld [vmem:[#allocation49_spill] sm:$0xff] }
 0x373   : > { %7764 = vmatprep.subr.bf16.mxu1 %v12623_v43  ;;  %v3402_v41 = vpack.c.bf16 %v12802_v42, %v12802_v42  ;;  %v9213_v42 = vld [vmem:[%s12435_s2 + $0x3f0] sm:$0xff]  }
 0x376   : > { %7765 = vmatpush3.bf16.msra.mxu1 %v9190_v30  ;;  %v12804_v30 = vld [vmem:[#allocation77_spill] sm:$0xff] }
 0x377   : > { %7794 = vmatprep.subr.bf16.mxu1 %v12623_v43  ;;  %v12805_v22 = vpack.c.bf16 %v12803_v21, %v12804_v30  ;;  %v9214_v30 = vld [vmem:[%s12435_s2 + $0x3f8] sm:$0xff]  }
 0x379   : > { %7739 = vmatmul.mubr.bf16.gmra.mrb[4].mxu1 %v12779_v29  ;;  %v9201_v29 = vld [vmem:[%s12435_s2 + $0x390] sm:$0xff]  }
 0x37a   : > { %7742 = vmatprep.mubr.msk.bf16.mxu1 %vm9297_vm0, %v12623_v43 }
 0x381   : > { %7743 = vmatmul.mubr.bf16.gmra.mrb[8].mxu1 %v12782_v12  ;;  %v12808_v12 = vpack.c.bf16 %v12806_v26, %v12807_v53  ;;  %v12832_v26 = vld [vmem:[#allocation74_spill] sm:$0xff]  ;;  %v12833_v53 = vld [vmem:[#allocation73_spill] sm:$0xff] }
 0x382   : > { %7746 = vmatprep.mubr.msk.bf16.mxu1 %vm9297_vm0, %v12623_v43 }
 0x389   : > { %7747 = vmatmul.mubr.bf16.gmra.mrb[12].mxu1 %v3189_v61  ;;  %v9203_v61 = vld [vmem:[%s12435_s2 + $0x3a0] sm:$0xff]  }
 0x38a   : > { %7766 = vmatprep.mubr.msk.bf16.mxu1 %vm9297_vm0, %v12623_v43 }
 0x391   : > { %7767 = vmatmul.mubr.bf16.vlgmr.msra.gmra.mrb[16].mxu1 %v12786_v36  ;;  %v9204_v36 = vld [vmem:[%s12435_s2 + $0x3a8] sm:$0xff]  }
 0x392   : > { %7795 = vmatpush3.bf16.msra.mxu1 %v9191_v13  ;;  %7770 = vmatprep.mubr.msk.bf16.mxu1 %vm9297_vm0, %v12623_v43  ;;  %v12809_v13 = vld [vmem:[#allocation87_spill] sm:$0xff] }
 0x393   : > { %7796 = vmatprep.subr.bf16.mxu1 %v12623_v43  ;;  %v12811_v31 = vpack.c.bf16 %v12809_v13, %v12810_v51  ;;  %v12836_v13 = vld [vmem:[#allocation80_spill] sm:$0xff]  ;;  %v12837_v51 = vld [vmem:[#allocation78_spill] sm:$0xff] }
 0x396   : > { %7797 = vmatpush3.bf16.msra.mxu1 %v9192_v54  ;;  %v9205_v54 = vld [vmem:[%s12435_s2 + $0x3b0] sm:$0xff]  }
 0x397   : > { %7798 = vmatprep.subr.bf16.mxu1 %v12623_v43 }
 0x399   : > { %7771 = vmatmul.mubr.bf16.gmra.mrb[20].mxu1 %v12789_v58  ;;  %v9206_v58 = vld [vmem:[%s12435_s2 + $0x3b8] sm:$0xff]  }
 0x39a   : > { %7799 = vmatpush3.bf16.msra.mxu1 %v9193_v34  ;;  %7774 = vmatprep.mubr.msk.bf16.mxu1 %vm9297_vm0, %v12623_v43  ;;  %v12812_v34 = vld [vmem:[#allocation91_spill] sm:$0xff] }
 0x39b   : > { %7800 = vmatprep.subr.bf16.mxu1 %v12623_v43  ;;  %v12814_v10 = vpack.c.bf16 %v12812_v34, %v12813_v46  ;;  %v12842_v46 = vld [vmem:[#allocation88_spill] sm:$0xff] }
 0x39e   : > { %7801 = vmatpush3.bf16.msra.mxu1 %v9194_v5  ;;  %v12815_v5 = vpack.c.bf16 %v10619_v63, %v10587_v9  ;;  %v9217_v9 = vld [vmem:[%s12436_s3 + $0x50] sm:$0xff]   ;;  %v9218_v63 = vld [vmem:[%s12436_s3 + $0x58] sm:$0xff]  }
 0x39f   : > { %7802 = vmatprep.subr.bf16.mxu1 %v12623_v43 }
 0x3a1   : > { %7775 = vmatmul.mubr.bf16.gmra.mrb[24].mxu1 %v12792_v28  ;;  %v3615_v28 = vpack.c.bf16 %v12816_v40, %v12816_v40 }
 0x3a2   : > { %7778 = vmatprep.mubr.msk.bf16.mxu1 %vm9297_vm0, %v12623_v43  ;;  %7803 = vmatpush3.bf16.msra.mxu1 %v9195_v45  ;;  %v9215_v45 = vld [vmem:[%s12436_s3 + $0x40] sm:$0xff]  }
 0x3a3   : > { %7804 = vmatprep.subr.bf16.mxu1 %v12623_v43  ;;  %7927 = vmatpush3.bf16.msra.mxu0 %v9215_v45 }
 0x3a4   : > { %7928 = vmatprep.subr.bf16.mxu0 %v12623_v43 }
 0x3a6   : > { %7805 = vmatpush3.bf16.msra.mxu1 %v9196_v62 }
 0x3a7   : > { %7806 = vmatprep.subr.bf16.mxu1 %v12623_v43  ;;  %7929 = vmatpush3.bf16.msra.mxu0 %v9216_v44 }
 0x3a8   : > { %7930 = vmatprep.subr.bf16.mxu0 %v12623_v43 }
 0x3a9   : > { %7779 = vmatmul.mubr.bf16.gmra.mrb[0].mxu1 %v12795_v24  ;;  %v12821_v24 = vld [vmem:[#allocation56_spill] sm:$0xff] }
 0x3aa   : > { %7782 = vmatprep.mubr.msk.bf16.mxu1 %vm9297_vm0, %v12623_v43  ;;  %7807 = vmatpush3.bf16.msra.mxu1 %v9197_v1  ;;  %v9208_v1 = vld [vmem:[%s12435_s2 + $0x3c8] sm:$0xff]  }
 0x3ab   : > { %7808 = vmatprep.subr.bf16.mxu1 %v12623_v43  ;;  %7931 = vmatpush3.bf16.msra.mxu0 %v9217_v9 }
 0x3ac   : > { %7932 = vmatprep.subr.bf16.mxu0 %v12623_v43 }
 0x3ae   : > { %7809 = vmatpush3.bf16.msra.mxu1 %v9198_v8  ;;  %v12822_v8 = vpack.c.bf16 %v12820_v20, %v12821_v24 }
 0x3af   : > { %7838 = vmatprep.subr.bf16.mxu1 %v12623_v43  ;;  %7933 = vmatpush3.bf16.msra.mxu0 %v9218_v63 }
 0x3b0   : > { %7934 = vmatprep.subr.bf16.mxu0 %v12623_v43 }
 0x3b1   : > { %7783 = vmatmul.mubr.bf16.gmra.mrb[4].mxu1 %v12798_v27  ;;  %v12823_v27 = vld [vmem:[#allocation62_spill] sm:$0xff] }
 0x3b2   : > { %7786 = vmatprep.mubr.msk.bf16.mxu1 %vm9297_vm0, %v12623_v43  ;;  %v12825_v38 = vpack.c.bf16 %v12823_v27, %v12824_v56 }
 0x3b3   : > { %7935 = vmatpush3.bf16.msra.mxu0 %v9219_v59 }
 0x3b4   : > { %7936 = vmatprep.subr.bf16.mxu0 %v12623_v43 }
 0x3b7   : > { %7937 = vmatpush3.bf16.msra.mxu0 %v9220_v2 }
 0x3b8   : > { %7938 = vmatprep.subr.bf16.mxu0 %v12623_v43 }
 0x3b9   : > { %7787 = vmatmul.mubr.bf16.gmra.mrb[8].mxu1 %v12801_v25  ;;  %v9212_v25 = vld [vmem:[%s12435_s2 + $0x3e8] sm:$0xff]  }
 0x3ba   : > { %7790 = vmatprep.mubr.msk.bf16.mxu1 %vm9297_vm0, %v12623_v43 }
 0x3c1   : > { %7791 = vmatmul.mubr.bf16.gmra.mrb[12].mxu1 %v3402_v41  ;;  %v12826_v41 = vld [vmem:[#allocation66_spill] sm:$0xff] }
 0x3c2   : > { %7810 = vmatprep.mubr.msk.bf16.mxu1 %vm9297_vm0, %v12623_v43 }
 0x3c9   : > { %7811 = vmatmul.mubr.bf16.vlgmr.msra.gmra.mrb[16].mxu1 %v12805_v22  ;;  %v12829_v22 = vld [vmem:[#allocation70_spill] sm:$0xff] }
 0x3ca   : > { %7839 = vmatpush3.bf16.msra.mxu1 %v9199_v11  ;;  %7814 = vmatprep.mubr.msk.bf16.mxu1 %vm9297_vm0, %v12623_v43  ;;  %v12827_v11 = vld [vmem:[#allocation64_spill] sm:$0xff] }
 0x3cb   : > { %7840 = vmatprep.subr.bf16.mxu1 %v12623_v43  ;;  %v12828_v21 = vpack.c.bf16 %v12826_v41, %v12827_v11 }
 0x3ce   : > { %7841 = vmatpush3.bf16.msra.mxu1 %v9200_v16  ;;  %v12830_v16 = vld [vmem:[#allocation68_spill] sm:$0xff] }
 0x3cf   : > { %7842 = vmatprep.subr.bf16.mxu1 %v12623_v43 }
 0x3d1   : > { %7815 = vmatmul.mubr.bf16.gmra.mrb[20].mxu1 %v12808_v12  ;;  %v12834_v12 = vpack.c.bf16 %v12832_v26, %v12833_v53 }
 0x3d2   : > { %7843 = vmatpush3.bf16.msra.mxu1 %v9201_v29  ;;  %7818 = vmatprep.mubr.msk.bf16.mxu1 %vm9297_vm0, %v12623_v43  ;;  %v12831_v29 = vpack.c.bf16 %v12829_v22, %v12830_v16 }
 0x3d3   : > { %7844 = vmatprep.subr.bf16.mxu1 %v12623_v43 }
 0x3d6   : > { %7845 = vmatpush3.bf16.msra.mxu1 %v9202_v7  ;;  %v12835_v7 = vld [vmem:[#allocation50_spill] sm:$0xff] }
 0x3d7   : > { %7846 = vmatprep.subr.bf16.mxu1 %v12623_v43 }
 0x3d9   : > { %7819 = vmatmul.mubr.bf16.gmra.mrb[24].mxu1 %v12811_v31  ;;  %v12838_v31 = vpack.c.bf16 %v12836_v13, %v12837_v51 }
 0x3da   : > { %7822 = vmatprep.mubr.msk.bf16.mxu1 %vm9297_vm0, %v12623_v43  ;;  %7847 = vmatpush3.bf16.msra.mxu1 %v9203_v61  ;;  %v3828_v61 = vpack.c.bf16 %v12835_v7, %v12835_v7 }
 0x3db   : > { %7848 = vmatprep.subr.bf16.mxu1 %v12623_v43 }
 0x3de   : > { %7849 = vmatpush3.bf16.msra.mxu1 %v9204_v36  ;;  %v12839_v36 = vld [vmem:[#allocation84_spill] sm:$0xff] }
 0x3df   : > { %7850 = vmatprep.subr.bf16.mxu1 %v12623_v43 }
 0x3e1   : > { %7823 = vmatmul.mubr.bf16.gmra.mrb[0].mxu1 %v12814_v10  ;;  %v12843_v10 = vld [vmem:[#allocation86_spill] sm:$0xff] }
 0x3e2   : > { %7826 = vmatprep.mubr.msk.bf16.mxu1 %vm9297_vm0, %v12623_v43  ;;  %7851 = vmatpush3.bf16.msra.mxu1 %v9205_v54  ;;  %v12840_v54 = vld [vmem:[#allocation82_spill] sm:$0xff] }
 0x3e3   : > { %7852 = vmatprep.subr.bf16.mxu1 %v12623_v43  ;;  %v12841_v34 = vpack.c.bf16 %v12839_v36, %v12840_v54 }
 0x3e6   : > { %7853 = vmatpush3.bf16.msra.mxu1 %v9206_v58  ;;  %v12844_v58 = vpack.c.bf16 %v12842_v46, %v12843_v10 }
 0x3e7   : > { %7882 = vmatprep.subr.bf16.mxu1 %v12623_v43 }
 0x3e9   : > { %7827 = vmatmul.mubr.bf16.gmra.mrb[4].mxu1 %v12815_v5  ;;  %v12845_v5 = vld [vmem:[#allocation92_spill] sm:$0xff] }
 0x3ea   : > { %7830 = vmatprep.mubr.msk.bf16.mxu1 %vm9297_vm0, %v12623_v43 }
 0x3f1   : > { %7831 = vmatmul.mubr.bf16.gmra.mrb[8].mxu1 %v3614_v32  ;;  %v12818_v32 = vld [vmem:[#allocation52_spill] sm:$0xff] }
 0x3f2   : > { %7834 = vmatprep.mubr.msk.bf16.mxu1 %vm9297_vm0, %v12623_v43  ;;  %v12819_v62 = vpack.c.bf16 %v12817_v3, %v12818_v32 }
 0x3f9   : > { %7835 = vmatmul.mubr.bf16.gmra.mrb[12].mxu1 %v3615_v28 }
 0x3fa   : > { %7854 = vmatprep.mubr.msk.bf16.mxu1 %vm9297_vm0, %v12623_v43 }
 0x401   : > { %7855 = vmatmul.mubr.bf16.vlgmr.msra.gmra.mrb[16].mxu1 %v12819_v62 }
 0x402   : > { %7883 = vmatpush3.bf16.msra.mxu1 %v9207_v49  ;;  %7858 = vmatprep.mubr.msk.bf16.mxu1 %vm9297_vm0, %v12623_v43 }
 0x403   : > { %7884 = vmatprep.subr.bf16.mxu1 %v12623_v43 }
 0x406   : > { %7885 = vmatpush3.bf16.msra.mxu1 %v9208_v1 }
 0x407   : > { %7886 = vmatprep.subr.bf16.mxu1 %v12623_v43 }
 0x409   : > { %7859 = vmatmul.mubr.bf16.gmra.mrb[20].mxu1 %v12822_v8 }
 0x40a   : > { %7887 = vmatpush3.bf16.msra.mxu1 %v9209_v48  ;;  %7862 = vmatprep.mubr.msk.bf16.mxu1 %vm9297_vm0, %v12623_v43 }
 0x40b   : > { %7888 = vmatprep.subr.bf16.mxu1 %v12623_v43 }
 0x40e   : > { %7889 = vmatpush3.bf16.msra.mxu1 %v9210_v47 }
 0x40f   : > { %7890 = vmatprep.subr.bf16.mxu1 %v12623_v43 }
 0x411   : > { %7863 = vmatmul.mubr.bf16.gmra.mrb[24].mxu1 %v12825_v38 }
 0x412   : > { %7866 = vmatprep.mubr.msk.bf16.mxu1 %vm9297_vm0, %v12623_v43  ;;  %7891 = vmatpush3.bf16.msra.mxu1 %v9211_v52 }
 0x413   : > { %7892 = vmatprep.subr.bf16.mxu1 %v12623_v43 }
 0x416   : > { %7893 = vmatpush3.bf16.msra.mxu1 %v9212_v25 }
 0x417   : > { %7894 = vmatprep.subr.bf16.mxu1 %v12623_v43 }
 0x419   : > { %7867 = vmatmul.mubr.bf16.gmra.mrb[0].mxu1 %v12828_v21 }
 0x41a   : > { %7870 = vmatprep.mubr.msk.bf16.mxu1 %vm9297_vm0, %v12623_v43  ;;  %7895 = vmatpush3.bf16.msra.mxu1 %v9213_v42 }
 0x41b   : > { %7896 = vmatprep.subr.bf16.mxu1 %v12623_v43 }
 0x41e   : > { %7897 = vmatpush3.bf16.msra.mxu1 %v9214_v30 }
 0x41f   : > { %8338 = vmatprep.subr.bf16.mxu1 %v12623_v43 }
 0x421   : > { %7871 = vmatmul.mubr.bf16.gmra.mrb[4].mxu1 %v12831_v29 }
 0x422   : > { %7874 = vmatprep.mubr.msk.bf16.mxu1 %vm9297_vm0, %v12623_v43 }
 0x429   : > { %7875 = vmatmul.mubr.bf16.gmra.mrb[8].mxu1 %v12834_v12 }
 0x42a   : > { %7878 = vmatprep.mubr.msk.bf16.mxu1 %vm9297_vm0, %v12623_v43 }
 0x431   : > { %7879 = vmatmul.mubr.bf16.gmra.mrb[12].mxu1 %v3828_v61 }
 0x432   : > { %7898 = vmatprep.mubr.msk.bf16.mxu1 %vm9297_vm0, %v12623_v43 }
 0x439   : > { %7899 = vmatmul.mubr.bf16.vlgmr.msra.gmra.mrb[16].mxu1 %v12838_v31 }
 0x43a   : > { %7902 = vmatprep.mubr.msk.bf16.mxu1 %vm9297_vm0, %v12623_v43  ;;  %8346 = vmatpush3.bf16.msra.mxu1 %v9215_v45  ;;  %v12846_v45 = vld [vmem:[#allocation90_spill] sm:$0xff] }
 0x43b   : > { %8339 = vmatprep.subr.bf16.mxu1 %v12623_v43 }
 0x43e   : > { %8347 = vmatpush3.bf16.msra.mxu1 %v9216_v44  ;;  %v12847_v44 = vpack.c.bf16 %v12845_v5, %v12846_v45 }
 0x43f   : > { %8340 = vmatprep.subr.bf16.mxu1 %v12623_v43 }
 0x441   : > { %7903 = vmatmul.mubr.bf16.gmra.mrb[20].mxu1 %v12841_v34  ;;  %v9223_v34 = vld [vmem:[%s12436_s3] sm:$0xff]  }
 0x442   : > { %7906 = vmatprep.mubr.msk.bf16.mxu1 %vm9297_vm0, %v12623_v43  ;;  %8348 = vmatpush3.bf16.msra.mxu1 %v9217_v9  ;;  %v12848_v9 = vld [vmem:[#allocation76_spill] sm:$0xff] }
 0x443   : > { %8341 = vmatprep.subr.bf16.mxu1 %v12623_v43 }
 0x446   : > { %8349 = vmatpush3.bf16.msra.mxu1 %v9218_v63  ;;  %v4041_v63 = vpack.c.bf16 %v12848_v9, %v12848_v9 }
 0x447   : > { %8342 = vmatprep.subr.bf16.mxu1 %v12623_v43 }
 0x449   : > { %7907 = vmatmul.mubr.bf16.gmra.mrb[24].mxu1 %v12844_v58 }
 0x44a   : > { %7910 = vmatprep.mubr.msk.bf16.mxu1 %vm9297_vm0, %v12623_v43  ;;  %8350 = vmatpush3.bf16.msra.mxu1 %v9219_v59 }
 0x44b   : > { %8343 = vmatprep.subr.bf16.mxu1 %v12623_v43 }
 0x44e   : > { %8351 = vmatpush3.bf16.msra.mxu1 %v9220_v2 }
 0x44f   : > { %8344 = vmatprep.subr.bf16.mxu1 %v12623_v43 }
 0x451   : > { %7911 = vmatmul.mubr.bf16.gmra.mrb[0].mxu1 %v12847_v44 }
 0x452   : > { %7914 = vmatprep.mubr.msk.bf16.mxu1 %vm9297_vm0, %v12623_v43 }
 0x459   : > { %7915 = vmatmul.mubr.bf16.gmra.mrb[4].mxu1 %v4039_v37  ;;  %v9222_v37 = vld [vmem:[%s12436_s3 + $0x78] sm:$0xff]  }
 0x45a   : > { %7918 = vmatprep.mubr.msk.bf16.mxu1 %vm9297_vm0, %v12623_v43 }
 0x461   : > { %7919 = vmatmul.mubr.bf16.gmra.mrb[8].mxu1 %v4040_v50  ;;  %v9221_v50 = vld [vmem:[%s12436_s3 + $0x70] sm:$0xff]  }
 0x462   : > { %7922 = vmatprep.mubr.msk.bf16.mxu1 %vm9297_vm0, %v12623_v43  ;;  %7939 = vmatpush3.bf16.msra.mxu0 %v9221_v50 }
 0x463   : > { %8352 = vmatpush3.bf16.msra.mxu1 %v9221_v50  ;;  %7940 = vmatprep.subr.bf16.mxu0 %v12623_v43 }
 0x464   : > { %8345 = vmatprep.subr.bf16.mxu1 %v12623_v43 }
 0x466   : > { %7941 = vmatpush3.bf16.msra.mxu0 %v9222_v37 }
 0x467   : > { %8353 = vmatpush3.bf16.msra.mxu1 %v9222_v37  ;;  %7970 = vmatprep.subr.bf16.mxu0 %v12623_v43 }
 0x469   : > { %7923 = vmatmul.mubr.bf16.gmra.mrb[12].mxu1 %v4041_v63 }
 0x46a   : > { %7966 = vmatprep.mubr.msk.bf16.mxu1 %vm9297_vm0, %v12623_v43 }
 0x50c   : > { %v4141_v19 = vpop.f32.mrb[16].mxu1 }
 0x50d   : > { %v8354_v17 = vadd.f32 %v4141_v19, %v10811_v4  ;;  %v7900_v40 = vpop.f32.mrb[17].mxu1 }
 0x50e   : > { %v4144_v28 = vpop.f32.mrb[18].mxu1 }
 0x50f   : > { %v11429_v49 = vmax.f32 %v8354_v17, 0.0  ;;  %v8355_v3 = vadd.f32 %v4144_v28, %v10813_v6  ;;  %v7901_v32 = vpop.f32.mrb[19].mxu1 }
 0x511   : > { %v11432_v62 = vmax.f32 %v8355_v3, 0.0  ;;  %v12540_v1 = vrot.slane %v11429_v49, 1  ;;  %v12539_v48 = vrot.slane %v11429_v49, 2  ;;  %v12538_v20 = vrot.slane %v11429_v49, 3 }
 0x512   : > { %v12537_v4 = vrot.slane %v11429_v49, 4  ;;  %v12536_v24 = vrot.slane %v11429_v49, 5  ;;  %v12535_v25 = vrot.slane %v11429_v49, 6 }
 0x513   : > { %v4258_v8 = vrot.slane %v11432_v62, 1  ;;  %v4594_v47 = vrot.slane %v11432_v62, 2  ;;  %v4979_v52 = vrot.slane %v11432_v62, 3  ;;  %v5193_v56 = vrot.slane %v11432_v62, 4 }
 0x514   : > { %v4149_v27 = vpop.f32.mrb[20].mxu1  ;;  %v5613_v38 = vrot.slane %v11432_v62, 5  ;;  %v12534_v42 = vrot.slane %v11432_v62, 6 }
 0x515   : > { %v8356_v41 = vadd.f32 %v4149_v27, %v10819_v39  ;;  %v7904_v11 = vpop.f32.mrb[21].mxu1  ;;  %v4259_v21 = vsel %vm1264_vm1, %v12540_v1, %v4258_v8  ;;  %v11455_v30 = vsel %vm2502_vm2, %v12539_v48, %v4594_v47  ;;  %v11460_v22 = vsel %vm2929_vm3, %v12538_v20, %v4979_v52 }
 0x516   : > { %v4152_v16 = vpop.f32.mrb[22].mxu1  ;;  %v11465_v39 = vsel %vm5192_vm4, %v12537_v4, %v5193_v56  ;;  %v11470_v29 = vsel %vm5579_vm5, %v12536_v24, %v5613_v38  ;;  %v11480_v7 = vsel %vm5793_vm6, %v12535_v25, %v12534_v42  ;;  %v9229_v24 = vld [vmem:[%s12436_s3 + $0x30] sm:$0xff]  }
 0x517   : > { %12849 = vst [vmem:[#allocation8_spill] sm:$0xff] %v11470_v29  ;;  %v11472_v26 = vmax.f32 %v8356_v41, 0.0  ;;  %v8357_v53 = vadd.f32 %v4152_v16, %v10821_v57  ;;  %v7905_v12 = vpop.f32.mrb[23].mxu1 }
 0x519   : > { %v11482_v61 = vmax.f32 %v8357_v53, 0.0  ;;  %v4260_v13 = vrot.slane %v11472_v26, 1  ;;  %v4596_v51 = vrot.slane %v11472_v26, 2  ;;  %v4980_v31 = vrot.slane %v11472_v26, 3 }
 0x51a   : > { %v5194_v36 = vrot.slane %v11472_v26, 4  ;;  %v5580_v57 = vrot.slane %v11472_v26, 5 }
 0x51b   : > { %v4261_v54 = vsel %vm1264_vm1, %v4258_v8, %v4260_v13  ;;  %v4262_v46 = vrot.slane %v11482_v61, 1  ;;  %v11497_v58 = vsel %vm2502_vm2, %v4594_v47, %v4596_v51  ;;  %v4598_v9 = vrot.slane %v11482_v61, 2  ;;  %v9224_v47 = vld [vmem:[%s12436_s3 + $0x8] sm:$0xff]  }
 0x51c   : > { %v4157_v5 = vpop.f32.mrb[24].mxu1  ;;  %v4297_v45 = vpack.c.bf16 %v4261_v54, %v4259_v21  ;;  %v11503_v63 = vsel %vm2929_vm3, %v4979_v52, %v4980_v31  ;;  %v4982_v37 = vrot.slane %v11482_v61, 3  ;;  %v11509_v19 = vsel %vm5192_vm4, %v5193_v56, %v5194_v36  ;;  %v9227_v52 = vld [vmem:[%s12436_s3 + $0x20] sm:$0xff]  }
 0x51d   : > { %v8358_v59 = vadd.f32 %v4157_v5, %v10834_v33  ;;  %v7908_v2 = vpop.f32.mrb[25].mxu1  ;;  %v4263_v50 = vsel %vm1264_vm1, %v4260_v13, %v4262_v46  ;;  %12850 = vst [vmem:[#allocation13_spill] sm:$0xff] %v11509_v19  ;;  %v11512_v40 = vsel %vm2502_vm2, %v4596_v51, %v4598_v9  ;;  %v5196_v28 = vrot.slane %v11482_v61, 4 }
 0x51e   : > { %v4160_v17 = vpop.f32.mrb[26].mxu1  ;;  %7943 = vmatmul.mubr.bf16.vlgmr.msra.gmra.mrb[132].mxu0 %v4297_v45  ;;  %v5581_v3 = vrot.slane %v11482_v61, 5  ;;  %v11527_v27 = vsel %vm2929_vm3, %v4980_v31, %v4982_v37  ;;  %v11539_v11 = vsel %vm5579_vm5, %v5613_v38, %v5580_v57  ;;  %v9225_v38 = vld [vmem:[%s12436_s3 + $0x10] sm:$0xff]   ;;  %v5795_v19 = vrot.slane %v11482_v61, 6 }
 0x51f   : > { %v11516_v32 = vmax.f32 %v8358_v59, 0.0  ;;  %v8359_v33 = vadd.f32 %v4160_v17, %v10837_v15  ;;  %7971 = vmatpush3.bf16.msra.mxu0 %v9223_v34  ;;  %v7909_v8 = vpop.f32.mrb[27].mxu1  ;;  %7946 = vmatprep.mubr.msk.bf16.mxu0 %vm9297_vm0, %v12623_v43  ;;  %v11533_v56 = vsel %vm5192_vm4, %v5194_v36, %v5196_v28  ;;  %12852 = vst [vmem:[#allocation17_spill] sm:$0xff] %v11539_v11 }
 0x520   : > { %7972 = vmatprep.subr.bf16.mxu0 %v12623_v43  ;;  %v11536_v41 = vsel %vm5579_vm5, %v5580_v57, %v5581_v3 }
 0x521   : > { %12851 = vst [vmem:[#allocation11_spill] sm:$0xff] %v11536_v41  ;;  %v11541_v21 = vmax.f32 %v8359_v33, 0.0  ;;  %v4264_v16 = vrot.slane %v11516_v32, 1  ;;  %v4600_v53 = vrot.slane %v11516_v32, 2  ;;  %v4984_v12 = vrot.slane %v11516_v32, 3 }
 0x522   : > { %v5198_v51 = vrot.slane %v11516_v32, 4  ;;  %v5583_v31 = vrot.slane %v11516_v32, 5 }
 0x523   : > { %7973 = vmatpush3.bf16.msra.mxu0 %v9224_v47  ;;  %v4265_v36 = vsel %vm1264_vm1, %v4262_v46, %v4264_v16  ;;  %v4266_v57 = vrot.slane %v11541_v21, 1  ;;  %v11558_v34 = vsel %vm2502_vm2, %v4598_v9, %v4600_v53  ;;  %v4602_v46 = vrot.slane %v11541_v21, 2 }
 0x524   : > { %v4165_v5 = vpop.f32.mrb[0].mxu1  ;;  %v4298_v45 = vpack.c.bf16 %v4265_v36, %v4263_v50  ;;  %7974 = vmatprep.subr.bf16.mxu0 %v12623_v43  ;;  %v11565_v2 = vsel %vm2929_vm3, %v4982_v37, %v4984_v12  ;;  %v4986_v9 = vrot.slane %v11541_v21, 3  ;;  %v11571_v47 = vsel %vm5192_vm4, %v5196_v28, %v5198_v51  ;;  %v9226_v28 = vld [vmem:[%s12436_s3 + $0x18] sm:$0xff]  }
 0x525   : > { %v8360_v17 = vadd.f32 %v4165_v5, %v10759_v60  ;;  %v7912_v33 = vpop.f32.mrb[1].mxu1  ;;  %v4267_v8 = vsel %vm1264_vm1, %v4264_v16, %v4266_v57  ;;  %12853 = vst [vmem:[#allocation15_spill] sm:$0xff] %v11571_v47  ;;  %v11574_v36 = vsel %vm2502_vm2, %v4600_v53, %v4602_v46  ;;  %v5200_v13 = vrot.slane %v11541_v21, 4 }
 0x526   : > { %v4168_v50 = vpop.f32.mrb[2].mxu1  ;;  %7947 = vmatmul.mubr.bf16.gmra.mrb[136].mxu0 %v4298_v45  ;;  %v11580_v60 = vsel %vm5579_vm5, %v5581_v3, %v5583_v31  ;;  %v11593_v45 = vsel %vm2929_vm3, %v4984_v12, %v4986_v9  ;;  %v12869_v47 = vrot.slane %v11429_v49, 2 }
 0x527   : > { %12854 = vst [vmem:[#allocation20_spill] sm:$0xff] %v11580_v60  ;;  %v11582_v5 = vmax.f32 %v8360_v17, 0.0  ;;  %v8361_v16 = vadd.f32 %v4168_v50, %v10762_v14  ;;  %v7913_v33 = vpop.f32.mrb[3].mxu1  ;;  %7975 = vmatpush3.bf16.msra.mxu0 %v9225_v38  ;;  %7950 = vmatprep.mubr.msk.bf16.mxu0 %vm9297_vm0, %v12623_v43  ;;  %v11599_v3 = vsel %vm5192_vm4, %v5198_v51, %v5200_v13  ;;  %v5585_v17 = vrot.slane %v11541_v21, 5 }
 0x528   : > { %7976 = vmatprep.subr.bf16.mxu0 %v12623_v43  ;;  %12855 = vst [vmem:[#allocation19_spill] sm:$0xff] %v11599_v3 }
 0x529   : > { %v11604_v50 = vmax.f32 %v8361_v16, 0.0  ;;  %v4268_v33 = vrot.slane %v11582_v5, 1  ;;  %v4604_v12 = vrot.slane %v11582_v5, 2  ;;  %v4988_v37 = vrot.slane %v11582_v5, 3 }
 0x52a   : > { %v5202_v14 = vrot.slane %v11582_v5, 4  ;;  %v11613_v51 = vsel %vm5579_vm5, %v5583_v31, %v5585_v17  ;;  %v5587_v38 = vrot.slane %v11582_v5, 5 }
 0x52b   : > { %12856 = vst [vmem:[#allocation2_spill] sm:$0xff] %v11613_v51  ;;  %v4269_v53 = vsel %vm1264_vm1, %v4266_v57, %v4268_v33  ;;  %7977 = vmatpush3.bf16.msra.mxu0 %v9226_v28  ;;  %v4270_v16 = vrot.slane %v11604_v50, 1  ;;  %v11624_v15 = vsel %vm2502_vm2, %v4602_v46, %v4604_v12  ;;  %v4606_v28 = vrot.slane %v11604_v50, 2 }
 0x52c   : > { %v4173_v44 = vpop.f32.mrb[4].mxu1  ;;  %v4299_v31 = vpack.c.bf16 %v4269_v53, %v4267_v8  ;;  %7978 = vmatprep.subr.bf16.mxu0 %v12623_v43  ;;  %v11631_v54 = vsel %vm2929_vm3, %v4986_v9, %v4988_v37  ;;  %v4990_v46 = vrot.slane %v11604_v50, 3  ;;  %v11637_v25 = vsel %vm5192_vm4, %v5200_v13, %v5202_v14  ;;  %v9228_v13 = vld [vmem:[%s12436_s3 + $0x28] sm:$0xff]  }
 0x52d   : > { %v8362_v10 = vadd.f32 %v4173_v44, %v10773_v35  ;;  %v7916_v42 = vpop.f32.mrb[5].mxu1  ;;  %v4271_v59 = vsel %vm1264_vm1, %v4268_v33, %v4270_v16  ;;  %12857 = vst [vmem:[#allocation27_spill] sm:$0xff] %v11637_v25  ;;  %v11640_v53 = vsel %vm2502_vm2, %v4604_v12, %v4606_v28  ;;  %v5204_v57 = vrot.slane %v11604_v50, 4 }
 0x52e   : > { %v4176_v8 = vpop.f32.mrb[6].mxu1  ;;  %7951 = vmatmul.mubr.bf16.gmra.mrb[140].mxu0 %v4299_v31  ;;  %v11646_v35 = vsel %vm5579_vm5, %v5585_v17, %v5587_v38  ;;  %v11659_v31 = vsel %vm2929_vm3, %v4988_v37, %v4990_v46  ;;  %v5589_v17 = vrot.slane %v11604_v50, 5 }
 0x52f   : > { %12858 = vst [vmem:[#allocation25_spill] sm:$0xff] %v11646_v35  ;;  %v11648_v42 = vmax.f32 %v8362_v10, 0.0  ;;  %v8363_v44 = vadd.f32 %v4176_v8, %v10779_v18  ;;  %v7917_v33 = vpop.f32.mrb[7].mxu1  ;;  %7954 = vmatprep.mubr.msk.bf16.mxu0 %vm9297_vm0, %v12623_v43  ;;  %7979 = vmatpush3.bf16.msra.mxu0 %v9227_v52  ;;  %v11665_v10 = vsel %vm5192_vm4, %v5202_v14, %v5204_v57 }
 0x530   : > { %7980 = vmatprep.subr.bf16.mxu0 %v12623_v43  ;;  %12859 = vst [vmem:[#allocation31_spill] sm:$0xff] %v11665_v10  ;;  %v11679_v14 = vsel %vm5579_vm5, %v5587_v38, %v5589_v17 }
 0x531   : > { %v11670_v8 = vmax.f32 %v8363_v44, 0.0  ;;  %v4272_v33 = vrot.slane %v11648_v42, 1  ;;  %v4608_v37 = vrot.slane %v11648_v42, 2  ;;  %v4992_v9 = vrot.slane %v11648_v42, 3  ;;  %12860 = vst [vmem:[#allocation29_spill] sm:$0xff] %v11679_v14 }
 0x532   : > { %v5206_v18 = vrot.slane %v11648_v42, 4  ;;  %v5591_v52 = vrot.slane %v11648_v42, 5 }
 0x533   : > { %v4273_v6 = vsel %vm1264_vm1, %v4270_v16, %v4272_v33  ;;  %7981 = vmatpush3.bf16.msra.mxu0 %v9228_v13  ;;  %v4274_v44 = vrot.slane %v11670_v8, 1  ;;  %v11690_v12 = vsel %vm2502_vm2, %v4606_v28, %v4608_v37  ;;  %v4610_v13 = vrot.slane %v11670_v8, 2 }
 0x534   : > { %v4181_v20 = vpop.f32.mrb[8].mxu1  ;;  %v4300_v38 = vpack.c.bf16 %v4273_v6, %v4271_v59  ;;  %7982 = vmatprep.subr.bf16.mxu0 %v12623_v43  ;;  %v11697_v48 = vsel %vm2929_vm3, %v4990_v46, %v4992_v9  ;;  %v4994_v28 = vrot.slane %v11670_v8, 3  ;;  %v11703_v51 = vsel %vm5192_vm4, %v5204_v57, %v5206_v18  ;;  %v9230_v57 = vld [vmem:[%s12436_s3 + $0x38] sm:$0xff]  }
 0x535   : > { %v8364_v1 = vadd.f32 %v4181_v20, %v10793_v23  ;;  %v7920_v11 = vpop.f32.mrb[9].mxu1  ;;  %v4275_v4 = vsel %vm1264_vm1, %v4272_v33, %v4274_v44  ;;  %12861 = vst [vmem:[#allocation35_spill] sm:$0xff] %v11703_v51  ;;  %v11706_v59 = vsel %vm2502_vm2, %v4608_v37, %v4610_v13  ;;  %v5208_v16 = vrot.slane %v11670_v8, 4 }
 0x536   : > { %v4184_v6 = vpop.f32.mrb[10].mxu1  ;;  %7955 = vmatmul.mubr.bf16.gmra.mrb[144].mxu0 %v4300_v38  ;;  %v11712_v23 = vsel %vm5579_vm5, %v5589_v17, %v5591_v52  ;;  %v11725_v38 = vsel %vm2929_vm3, %v4992_v9, %v4994_v28  ;;  %v5593_v17 = vrot.slane %v11670_v8, 5 }
 0x537   : > { %12862 = vst [vmem:[#allocation33_spill] sm:$0xff] %v11712_v23  ;;  %v11714_v20 = vmax.f32 %v8364_v1, 0.0  ;;  %v8365_v11 = vadd.f32 %v4184_v6, %v10796_v0  ;;  %v7921_v33 = vpop.f32.mrb[11].mxu1  ;;  %7958 = vmatprep.mubr.msk.bf16.mxu0 %vm9297_vm0, %v12623_v43  ;;  %7983 = vmatpush3.bf16.msra.mxu0 %v9229_v24  ;;  %v11731_v1 = vsel %vm5192_vm4, %v5206_v18, %v5208_v16 }
 0x538   : > { %7984 = vmatprep.subr.bf16.mxu0 %v12623_v43  ;;  %12863 = vst [vmem:[#allocation39_spill] sm:$0xff] %v11731_v1  ;;  %v11745_v18 = vsel %vm5579_vm5, %v5591_v52, %v5593_v17 }
 0x539   : > { %v11736_v6 = vmax.f32 %v8365_v11, 0.0  ;;  %v4276_v33 = vrot.slane %v11714_v20, 1  ;;  %v4612_v9 = vrot.slane %v11714_v20, 2  ;;  %v4996_v46 = vrot.slane %v11714_v20, 3  ;;  %12864 = vst [vmem:[#allocation37_spill] sm:$0xff] %v11745_v18 }
 0x53a   : > { %v5210_v0 = vrot.slane %v11714_v20, 4  ;;  %v5595_v24 = vrot.slane %v11714_v20, 5 }
 0x53b   : > { %v4277_v14 = vsel %vm1264_vm1, %v4274_v44, %v4276_v33  ;;  %v4278_v11 = vrot.slane %v11736_v6, 1  ;;  %7985 = vmatpush3.bf16.msra.mxu0 %v9230_v57  ;;  %v11753_v35 = vsel %vm2502_vm2, %v4610_v13, %v4612_v9  ;;  %v4614_v60 = vrot.slane %v11736_v6, 2 }
 0x53c   : > { %v4189_v41 = vpop.f32.mrb[12].mxu1  ;;  %v4301_v37 = vpack.c.bf16 %v4277_v14, %v4275_v4  ;;  %8014 = vmatprep.subr.bf16.mxu0 %v12623_v43  ;;  %v11760_v44 = vsel %vm2929_vm3, %v4994_v28, %v4996_v46  ;;  %v4998_v13 = vrot.slane %v11736_v6, 3  ;;  %v11766_v25 = vsel %vm5192_vm4, %v5208_v16, %v5210_v0 }
 0x53d   : > { %v8366_v57 = vadd.f32 %v4189_v41, %v10804_v55  ;;  %v7924_v51 = vpop.f32.mrb[13].mxu1  ;;  %v4279_v23 = vsel %vm1264_vm1, %v4276_v33, %v4278_v11  ;;  %12865 = vst [vmem:[#allocation43_spill] sm:$0xff] %v11766_v25  ;;  %v11769_v14 = vsel %vm2502_vm2, %v4612_v9, %v4614_v60  ;;  %v5212_v52 = vrot.slane %v11736_v6, 4 }
 0x53e   : > { %v4192_v4 = vpop.f32.mrb[14].mxu1  ;;  %7959 = vmatmul.mubr.bf16.gmra.mrb[148].mxu0 %v4301_v37  ;;  %v11775_v55 = vsel %vm5579_vm5, %v5593_v17, %v5595_v24  ;;  %v11784_v37 = vsel %vm2929_vm3, %v4996_v46, %v4998_v13  ;;  %v5794_v46 = vrot.slane %v11472_v26, 6 }
 0x53f   : > { %12866 = vst [vmem:[#allocation41_spill] sm:$0xff] %v11775_v55  ;;  %v11777_v41 = vmax.f32 %v8366_v57, 0.0  ;;  %v7925_v51 = vpop.f32.mrb[15].mxu1  ;;  %7962 = vmatprep.mubr.msk.bf16.mxu0 %vm9297_vm0, %v12623_v43  ;;  %v11791_v17 = vsel %vm5192_vm4, %v5210_v0, %v5212_v52  ;;  %v5597_v57 = vrot.slane %v11736_v6, 5  ;;  %v12868_v55 = vrot.slane %v11429_v49, 1 }
 0x541   : > { %v4280_v4 = vrot.slane %v11777_v41, 1  ;;  %v4616_v51 = vrot.slane %v11777_v41, 2  ;;  %v5000_v28 = vrot.slane %v11777_v41, 3  ;;  %v5214_v33 = vrot.slane %v11777_v41, 4 }
 0x542   : > { %v11802_v9 = vsel %vm5579_vm5, %v5595_v24, %v5597_v57  ;;  %v5599_v0 = vrot.slane %v11777_v41, 5 }
 0x543   : > { %12867 = vst [vmem:[#allocation46_spill] sm:$0xff] %v11802_v9  ;;  %v4281_v18 = vsel %vm1264_vm1, %v4278_v11, %v4280_v4  ;;  %v4296_v1 = vsel %vm1264_vm1, %v4280_v4, %v12868_v55  ;;  %v11810_v10 = vsel %vm2502_vm2, %v4614_v60, %v4616_v51  ;;  %v11815_v16 = vsel %vm2502_vm2, %v4616_v51, %v12869_v47 }
 0x544   : > { %v4302_v25 = vpack.c.bf16 %v4281_v18, %v4279_v23  ;;  %v4303_v3 = vpack.c.bf16 %v4296_v1, %v4296_v1  ;;  %v11823_v55 = vsel %vm2929_vm3, %v4998_v13, %v5000_v28  ;;  %v12870_v60 = vrot.slane %v11429_v49, 3 }
 0x545   : > { %v11831_v47 = vsel %vm5192_vm4, %v5212_v52, %v5214_v33  ;;  %v12871_v1 = vrot.slane %v11429_v49, 4  ;;  %v5797_v51 = vrot.slane %v11516_v32, 6  ;;  %v11850_v52 = vsel %vm5579_vm5, %v5597_v57, %v5599_v0 }
 0x546   : > { %v11828_v4 = vsel %vm2929_vm3, %v5000_v28, %v12870_v60  ;;  %7963 = vmatmul.mubr.bf16.gmra.mrb[152].mxu0 %v4302_v25  ;;  %7967 = vmatmul.mubr.bf16.vlgmr.msra.gmra.mrb[28].mxu1 %v4303_v3  ;;  %12872 = vst [vmem:[#allocation45_spill] sm:$0xff] %v11850_v52  ;;  %v12873_v28 = vrot.slane %v11429_v49, 5  ;;  %v11862_v13 = vsel %vm5793_vm6, %v5794_v46, %v5795_v19  ;;  %v5799_v3 = vrot.slane %v11541_v21, 6 }
 0x547   : > { %v11838_v18 = vsel %vm5192_vm4, %v5214_v33, %v12871_v1  ;;  %7986 = vmatprep.mubr.msk.bf16.mxu0 %vm9297_vm0, %v12623_v43  ;;  %12875 = vst [vmem:[#allocation5_spill] sm:$0xff] %v11862_v13  ;;  %v11865_v25 = vsel %vm5793_vm6, %v5795_v19, %v5797_v51  ;;  %v5805_v60 = vrot.slane %v11648_v42, 6  ;;  %v5807_v23 = vrot.slane %v11670_v8, 6  ;;  %v9231_v19 = vld [vmem:[%s12436_s3 + $0x80] sm:$0xff]  }
 0x548   : > { %v11855_v33 = vsel %vm5579_vm5, %v5599_v0, %v12873_v28  ;;  %12876 = vst [vmem:[#allocation4_spill] sm:$0xff] %v11865_v25  ;;  %v5801_v0 = vrot.slane %v11582_v5, 6  ;;  %v5803_v28 = vrot.slane %v11604_v50, 6  ;;  %v5809_v1 = vrot.slane %v11714_v20, 6 }
 0x549   : > { %12874 = vst [vmem:[#allocation23_spill] sm:$0xff] %v11855_v33  ;;  %v5811_v11 = vrot.slane %v11736_v6, 6  ;;  %v11880_v57 = vsel %vm5793_vm6, %v5797_v51, %v5799_v3  ;;  %v5813_v25 = vrot.slane %v11777_v41, 6  ;;  %v11895_v9 = vsel %vm5793_vm6, %v5805_v60, %v5807_v23 }
 0x54a   : > { %v11883_v24 = vsel %vm5793_vm6, %v5799_v3, %v5801_v0  ;;  %v11886_v13 = vsel %vm5793_vm6, %v5801_v0, %v5803_v28  ;;  %v11892_v29 = vsel %vm5793_vm6, %v5803_v28, %v5805_v60  ;;  %v11898_v51 = vsel %vm5793_vm6, %v5807_v23, %v5809_v1 }
 0x54b   : > { %v11905_v52 = vsel %vm5793_vm6, %v5809_v1, %v5811_v11  ;;  %v11908_v33 = vsel %vm5793_vm6, %v5811_v11, %v5813_v25  ;;  %v12877_v28 = vpack.c.bf16 %v11432_v62, %v11429_v49  ;;  %v12878_v60 = vrot.slane %v11429_v49, 6  ;;  %v9232_v11 = vld [vmem:[%s12436_s3 + $0x88] sm:$0xff]   ;;  %v9233_v49 = vld [vmem:[%s12436_s3 + $0x90] sm:$0xff]  }
 0x54c   : > { %v5838_v23 = vpack.c.bf16 %v11908_v33, %v11905_v52  ;;  %v12879_v0 = vrot.slane %v11432_v62, 6  ;;  %v12880_v62 = vpack.c.bf16 %v11482_v61, %v11472_v26  ;;  %v12881_v26 = vpack.c.bf16 %v11541_v21, %v11516_v32  ;;  %v9236_v61 = vld [vmem:[%s12436_s3 + $0xa8] sm:$0xff]   ;;  %v9238_v21 = vld [vmem:[%s12436_s3 + $0xb8] sm:$0xff]  }
 0x54d   : > { %v11918_v3 = vsel %vm5793_vm6, %v5813_v25, %v12878_v60  ;;  %v9235_v25 = vld [vmem:[%s12436_s3 + $0xa0] sm:$0xff]   ;;  %v12882_v32 = vpack.c.bf16 %v11604_v50, %v11582_v5  ;;  %v12884_v5 = vpack.c.bf16 %v11736_v6, %v11714_v20  ;;  %v4227_v50 = vpack.c.bf16 %v11777_v41, %v11777_v41  ;;  %v9240_v20 = vld [vmem:[%s12436_s3 + $0xc8] sm:$0xff]   ;;  %v9241_v6 = vld [vmem:[%s12436_s3 + $0xd0] sm:$0xff]  }
 0x54e   : > { %7987 = vmatmul.mubr.bf16.vlgmr.msra.gmra.mrb[132].mxu0 %v12877_v28  ;;  %v11923_v1 = vsel %vm5793_vm6, %v12879_v0, %v5794_v46  ;;  %v5839_v28 = vpack.c.bf16 %v11480_v7, %v11918_v3  ;;  %v9234_v46 = vld [vmem:[%s12436_s3 + $0x98] sm:$0xff]   ;;  %v12883_v0 = vpack.c.bf16 %v11670_v8, %v11648_v42  ;;  %v9239_v42 = vld [vmem:[%s12436_s3 + $0xc0] sm:$0xff]   ;;  %v12885_v8 = vpack.c.bf16 %v11497_v58, %v11455_v30 }
 0x54f   : > { %8015 = vmatpush3.bf16.msra.mxu0 %v9231_v19  ;;  %7990 = vmatprep.mubr.msk.bf16.mxu0 %vm9297_vm0, %v12623_v43  ;;  %v9237_v19 = vld [vmem:[%s12436_s3 + $0xb0] sm:$0xff]   ;;  %v12886_v41 = vpack.c.bf16 %v11558_v34, %v11512_v40  ;;  %v9242_v60 = vld [vmem:[%s12436_s3 + $0xd8] sm:$0xff]  }
 0x550   : > { %8016 = vmatprep.subr.bf16.mxu0 %v12623_v43 }
 0x553   : > { %8017 = vmatpush3.bf16.msra.mxu0 %v9232_v11  ;;  %v9243_v11 = vld [vmem:[%s12436_s3 + $0xe0] sm:$0xff]  }
 0x554   : > { %8018 = vmatprep.subr.bf16.mxu0 %v12623_v43 }
 0x556   : > { %7991 = vmatmul.mubr.bf16.gmra.mrb[136].mxu0 %v12880_v62  ;;  %v9244_v62 = vld [vmem:[%s12436_s3 + $0xe8] sm:$0xff]  }
 0x557   : > { %8019 = vmatpush3.bf16.msra.mxu0 %v9233_v49  ;;  %7994 = vmatprep.mubr.msk.bf16.mxu0 %vm9297_vm0, %v12623_v43  ;;  %v12887_v49 = vpack.c.bf16 %v11624_v15, %v11574_v36 }
 0x558   : > { %8020 = vmatprep.subr.bf16.mxu0 %v12623_v43 }
 0x55b   : > { %8021 = vmatpush3.bf16.msra.mxu0 %v9234_v46  ;;  %v9245_v46 = vld [vmem:[%s12436_s3 + $0xf0] sm:$0xff]  }
 0x55c   : > { %8022 = vmatprep.subr.bf16.mxu0 %v12623_v43 }
 0x55e   : > { %7995 = vmatmul.mubr.bf16.gmra.mrb[140].mxu0 %v12881_v26  ;;  %v9246_v26 = vld [vmem:[%s12436_s3 + $0xf8] sm:$0xff]  }
 0x55f   : > { %7998 = vmatprep.mubr.msk.bf16.mxu0 %vm9297_vm0, %v12623_v43  ;;  %8023 = vmatpush3.bf16.msra.mxu0 %v9235_v25  ;;  %v12888_v25 = vpack.c.bf16 %v11690_v12, %v11640_v53 }
 0x560   : > { %8024 = vmatprep.subr.bf16.mxu0 %v12623_v43 }
 0x563   : > { %8025 = vmatpush3.bf16.msra.mxu0 %v9236_v61  ;;  %v12889_v61 = vpack.c.bf16 %v11753_v35, %v11706_v59 }
 0x564   : > { %8026 = vmatprep.subr.bf16.mxu0 %v12623_v43 }
 0x566   : > { %7999 = vmatmul.mubr.bf16.gmra.mrb[144].mxu0 %v12882_v32  ;;  %v4639_v32 = vpack.c.bf16 %v11815_v16, %v11815_v16 }
 0x567   : > { %8002 = vmatprep.mubr.msk.bf16.mxu0 %vm9297_vm0, %v12623_v43  ;;  %8027 = vmatpush3.bf16.msra.mxu0 %v9237_v19  ;;  %v12890_v19 = vpack.c.bf16 %v11810_v10, %v11769_v14 }
 0x568   : > { %8028 = vmatprep.subr.bf16.mxu0 %v12623_v43 }
 0x56b   : > { %8029 = vmatpush3.bf16.msra.mxu0 %v9238_v21  ;;  %v9247_v21 = vld [vmem:[%s12436_s3 + $0x100] sm:$0xff]  }
 0x56c   : > { %8058 = vmatprep.subr.bf16.mxu0 %v12623_v43 }
 0x56e   : > { %8003 = vmatmul.mubr.bf16.gmra.mrb[148].mxu0 %v12883_v0  ;;  %v12891_v0 = vpack.c.bf16 %v11512_v40, %v11497_v58  ;;  %v12892_v58 = vpack.c.bf16 %v11574_v36, %v11558_v34  ;;  %v9250_v40 = vld [vmem:[%s12436_s3 + $0x118] sm:$0xff]   ;;  %v12893_v34 = vpack.c.bf16 %v11640_v53, %v11624_v15  ;;  %v9252_v36 = vld [vmem:[%s12436_s3 + $0x128] sm:$0xff]   ;;  %v12894_v15 = vpack.c.bf16 %v11706_v59, %v11690_v12 }
 0x56f   : > { %8006 = vmatprep.mubr.msk.bf16.mxu0 %vm9297_vm0, %v12623_v43  ;;  %v9254_v53 = vld [vmem:[%s12436_s3 + $0x138] sm:$0xff]   ;;  %v12896_v12 = vpack.c.bf16 %v11815_v16, %v11810_v10  ;;  %v4812_v59 = vpack.c.bf16 %v11455_v30, %v11455_v30  ;;  %v9256_v30 = vld [vmem:[%s12436_s3 + $0x148] sm:$0xff]   ;;  %v9257_v10 = vld [vmem:[%s12436_s3 + $0x150] sm:$0xff]  }
 0x570   : > { %v9259_v16 = vld [vmem:[%s12436_s3 + $0x160] sm:$0xff]  }
 0x576   : > { %8007 = vmatmul.mubr.bf16.gmra.mrb[152].mxu0 %v12884_v5  ;;  %v9248_v5 = vld [vmem:[%s12436_s3 + $0x108] sm:$0xff]  }
 0x577   : > { %8010 = vmatprep.mubr.msk.bf16.mxu0 %vm9297_vm0, %v12623_v43 }
 0x57e   : > { %8011 = vmatmul.mubr.bf16.gmra.mrb[156].mxu0 %v4227_v50  ;;  %v9249_v50 = vld [vmem:[%s12436_s3 + $0x110] sm:$0xff]  }
 0x57f   : > { %8030 = vmatprep.mubr.msk.bf16.mxu0 %vm9297_vm0, %v12623_v43 }
 0x586   : > { %8031 = vmatmul.mubr.bf16.vlgmr.msra.gmra.mrb[132].mxu0 %v12885_v8  ;;  %v9253_v8 = vld [vmem:[%s12436_s3 + $0x130] sm:$0xff]  }
 0x587   : > { %8059 = vmatpush3.bf16.msra.mxu0 %v9239_v42  ;;  %8034 = vmatprep.mubr.msk.bf16.mxu0 %vm9297_vm0, %v12623_v43  ;;  %v9251_v42 = vld [vmem:[%s12436_s3 + $0x120] sm:$0xff]  }
 0x588   : > { %8060 = vmatprep.subr.bf16.mxu0 %v12623_v43 }
 0x58b   : > { %8061 = vmatpush3.bf16.msra.mxu0 %v9240_v20  ;;  %v12895_v20 = vpack.c.bf16 %v11769_v14, %v11753_v35  ;;  %v9255_v35 = vld [vmem:[%s12436_s3 + $0x140] sm:$0xff]   ;;  %v12897_v14 = vpack.c.bf16 %v11527_v27, %v11503_v63  ;;  %v12898_v63 = vpack.c.bf16 %v11593_v45, %v11565_v2  ;;  %v9258_v27 = vld [vmem:[%s12436_s3 + $0x158] sm:$0xff]   ;;  %v12899_v2 = vpack.c.bf16 %v11659_v31, %v11631_v54  ;;  %v9260_v45 = vld [vmem:[%s12436_s3 + $0x168] sm:$0xff]  }
 0x58c   : > { %8062 = vmatprep.subr.bf16.mxu0 %v12623_v43  ;;  %v12900_v54 = vpack.c.bf16 %v11725_v38, %v11697_v48  ;;  %v9262_v31 = vld [vmem:[%s12436_s3 + $0x178] sm:$0xff]  }
 0x58e   : > { %8035 = vmatmul.mubr.bf16.gmra.mrb[136].mxu0 %v12886_v41  ;;  %v12901_v41 = vpack.c.bf16 %v11784_v37, %v11760_v44  ;;  %v9263_v44 = vld [vmem:[%s12436_s3 + $0x180] sm:$0xff]   ;;  %v12903_v37 = vld [vmem:[#allocation13_spill] sm:$0xff] }
 0x58f   : > { %8063 = vmatpush3.bf16.msra.mxu0 %v9241_v6  ;;  %8038 = vmatprep.mubr.msk.bf16.mxu0 %vm9297_vm0, %v12623_v43  ;;  %v9261_v6 = vld [vmem:[%s12436_s3 + $0x170] sm:$0xff]  }
 0x590   : > { %8064 = vmatprep.subr.bf16.mxu0 %v12623_v43 }
 0x593   : > { %8065 = vmatpush3.bf16.msra.mxu0 %v9242_v60 }
 0x594   : > { %8066 = vmatprep.subr.bf16.mxu0 %v12623_v43 }
 0x596   : > { %8039 = vmatmul.mubr.bf16.gmra.mrb[140].mxu0 %v12887_v49  ;;  %v12902_v49 = vpack.c.bf16 %v11828_v4, %v11823_v55  ;;  %v9265_v55 = vld [vmem:[%s12436_s3 + $0x190] sm:$0xff]   ;;  %v12905_v4 = vld [vmem:[#allocation19_spill] sm:$0xff] }
 0x597   : > { %8042 = vmatprep.mubr.msk.bf16.mxu0 %vm9297_vm0, %v12623_v43  ;;  %8067 = vmatpush3.bf16.msra.mxu0 %v9243_v11 }
 0x598   : > { %8068 = vmatprep.subr.bf16.mxu0 %v12623_v43 }
 0x59b   : > { %8069 = vmatpush3.bf16.msra.mxu0 %v9244_v62  ;;  %v5025_v62 = vpack.c.bf16 %v11460_v22, %v11460_v22  ;;  %v9264_v22 = vld [vmem:[%s12436_s3 + $0x188] sm:$0xff]  }
 0x59c   : > { %8070 = vmatprep.subr.bf16.mxu0 %v12623_v43 }
 0x59e   : > { %8043 = vmatmul.mubr.bf16.gmra.mrb[144].mxu0 %v12888_v25  ;;  %v12906_v25 = vld [vmem:[#allocation15_spill] sm:$0xff] }
 0x59f   : > { %8046 = vmatprep.mubr.msk.bf16.mxu0 %vm9297_vm0, %v12623_v43  ;;  %8071 = vmatpush3.bf16.msra.mxu0 %v9245_v46  ;;  %v12904_v46 = vpack.c.bf16 %v11533_v56, %v12903_v37 }
 0x5a0   : > { %8072 = vmatprep.subr.bf16.mxu0 %v12623_v43 }
 0x5a3   : > { %8073 = vmatpush3.bf16.msra.mxu0 %v9246_v26  ;;  %v12907_v26 = vpack.c.bf16 %v12905_v4, %v12906_v25 }
 0x5a4   : > { %8102 = vmatprep.subr.bf16.mxu0 %v12623_v43 }
 0x5a6   : > { %8047 = vmatmul.mubr.bf16.gmra.mrb[148].mxu0 %v12889_v61  ;;  %v9266_v61 = vld [vmem:[%s12436_s3 + $0x198] sm:$0xff]  }
 0x5a7   : > { %8050 = vmatprep.mubr.msk.bf16.mxu0 %vm9297_vm0, %v12623_v43 }
 0x5ae   : > { %8051 = vmatmul.mubr.bf16.gmra.mrb[152].mxu0 %v12890_v19  ;;  %v9267_v19 = vld [vmem:[%s12436_s3 + $0x1a0] sm:$0xff]  }
 0x5af   : > { %8054 = vmatprep.mubr.msk.bf16.mxu0 %vm9297_vm0, %v12623_v43 }
 0x5b6   : > { %8055 = vmatmul.mubr.bf16.gmra.mrb[156].mxu0 %v4639_v32  ;;  %v12908_v32 = vld [vmem:[#allocation31_spill] sm:$0xff] }
 0x5b7   : > { %8074 = vmatprep.mubr.msk.bf16.mxu0 %vm9297_vm0, %v12623_v43 }
 0x5be   : > { %8075 = vmatmul.mubr.bf16.vlgmr.msra.gmra.mrb[132].mxu0 %v12891_v0 }
 0x5bf   : > { %8103 = vmatpush3.bf16.msra.mxu0 %v9247_v21  ;;  %8078 = vmatprep.mubr.msk.bf16.mxu0 %vm9297_vm0, %v12623_v43  ;;  %v12909_v21 = vld [vmem:[#allocation27_spill] sm:$0xff] }
 0x5c0   : > { %8104 = vmatprep.subr.bf16.mxu0 %v12623_v43  ;;  %v12910_v0 = vpack.c.bf16 %v12908_v32, %v12909_v21 }
 0x5c3   : > { %8105 = vmatpush3.bf16.msra.mxu0 %v9248_v5  ;;  %v9268_v5 = vld [vmem:[%s12436_s3 + $0x1a8] sm:$0xff]  }
 0x5c4   : > { %8106 = vmatprep.subr.bf16.mxu0 %v12623_v43 }
 0x5c6   : > { %8079 = vmatmul.mubr.bf16.gmra.mrb[136].mxu0 %v12892_v58  ;;  %v12911_v58 = vld [vmem:[#allocation39_spill] sm:$0xff] }
 0x5c7   : > { %8107 = vmatpush3.bf16.msra.mxu0 %v9249_v50  ;;  %8082 = vmatprep.mubr.msk.bf16.mxu0 %vm9297_vm0, %v12623_v43  ;;  %v9269_v50 = vld [vmem:[%s12436_s3 + $0x1b0] sm:$0xff]  }
 0x5c8   : > { %8108 = vmatprep.subr.bf16.mxu0 %v12623_v43 }
 0x5cb   : > { %8109 = vmatpush3.bf16.msra.mxu0 %v9250_v40  ;;  %v12912_v40 = vld [vmem:[#allocation35_spill] sm:$0xff] }
 0x5cc   : > { %8110 = vmatprep.subr.bf16.mxu0 %v12623_v43 }
 0x5ce   : > { %8083 = vmatmul.mubr.bf16.gmra.mrb[140].mxu0 %v12893_v34  ;;  %v9270_v34 = vld [vmem:[%s12436_s3 + $0x1b8] sm:$0xff]  }
 0x5cf   : > { %8086 = vmatprep.mubr.msk.bf16.mxu0 %vm9297_vm0, %v12623_v43  ;;  %8111 = vmatpush3.bf16.msra.mxu0 %v9251_v42  ;;  %v12913_v42 = vpack.c.bf16 %v12911_v58, %v12912_v40 }
 0x5d0   : > { %8112 = vmatprep.subr.bf16.mxu0 %v12623_v43 }
 0x5d3   : > { %8113 = vmatpush3.bf16.msra.mxu0 %v9252_v36  ;;  %v12914_v36 = vld [vmem:[#allocation43_spill] sm:$0xff] }
 0x5d4   : > { %8114 = vmatprep.subr.bf16.mxu0 %v12623_v43 }
 0x5d6   : > { %8087 = vmatmul.mubr.bf16.gmra.mrb[144].mxu0 %v12894_v15  ;;  %v12916_v15 = vpack.c.bf16 %v11838_v18, %v11831_v47 }
 0x5d7   : > { %8090 = vmatprep.mubr.msk.bf16.mxu0 %vm9297_vm0, %v12623_v43  ;;  %8115 = vmatpush3.bf16.msra.mxu0 %v9253_v8  ;;  %v12915_v8 = vpack.c.bf16 %v11791_v17, %v12914_v36 }
 0x5d8   : > { %8116 = vmatprep.subr.bf16.mxu0 %v12623_v43 }
 0x5db   : > { %8117 = vmatpush3.bf16.msra.mxu0 %v9254_v53  ;;  %v5239_v53 = vpack.c.bf16 %v11465_v39, %v11465_v39 }
 0x5dc   : > { %8146 = vmatprep.subr.bf16.mxu0 %v12623_v43 }
 0x5de   : > { %8091 = vmatmul.mubr.bf16.gmra.mrb[148].mxu0 %v12895_v20  ;;  %v9271_v20 = vld [vmem:[%s12436_s3 + $0x1c0] sm:$0xff]  }
 0x5df   : > { %8094 = vmatprep.mubr.msk.bf16.mxu0 %vm9297_vm0, %v12623_v43 }
 0x5e6   : > { %8095 = vmatmul.mubr.bf16.gmra.mrb[152].mxu0 %v12896_v12  ;;  %v12917_v12 = vpack.c.bf16 %v12906_v25, %v11533_v56  ;;  %v12918_v56 = vpack.c.bf16 %v12909_v21, %v12905_v4  ;;  %v12932_v4 = vld [vmem:[#allocation41_spill] sm:$0xff] }
 0x5e7   : > { %8098 = vmatprep.mubr.msk.bf16.mxu0 %vm9297_vm0, %v12623_v43  ;;  %v12933_v25 = vld [vmem:[#allocation37_spill] sm:$0xff] }
 0x5ee   : > { %8099 = vmatmul.mubr.bf16.gmra.mrb[156].mxu0 %v4812_v59  ;;  %v9272_v59 = vld [vmem:[%s12436_s3 + $0x1c8] sm:$0xff]  }
 0x5ef   : > { %8118 = vmatprep.mubr.msk.bf16.mxu0 %vm9297_vm0, %v12623_v43 }
 0x5f6   : > { %8119 = vmatmul.mubr.bf16.vlgmr.msra.gmra.mrb[132].mxu0 %v12897_v14  ;;  %v9274_v14 = vld [vmem:[%s12436_s3 + $0x1d8] sm:$0xff]  }
 0x5f7   : > { %8147 = vmatpush3.bf16.msra.mxu0 %v9255_v35  ;;  %8122 = vmatprep.mubr.msk.bf16.mxu0 %vm9297_vm0, %v12623_v43  ;;  %v9273_v35 = vld [vmem:[%s12436_s3 + $0x1d0] sm:$0xff]  }
 0x5f8   : > { %8148 = vmatprep.subr.bf16.mxu0 %v12623_v43 }
 0x5fb   : > { %8149 = vmatpush3.bf16.msra.mxu0 %v9256_v30  ;;  %v9275_v30 = vld [vmem:[%s12436_s3 + $0x1e0] sm:$0xff]  }
 0x5fc   : > { %8150 = vmatprep.subr.bf16.mxu0 %v12623_v43 }
 0x5fe   : > { %8123 = vmatmul.mubr.bf16.gmra.mrb[136].mxu0 %v12898_v63  ;;  %v9276_v63 = vld [vmem:[%s12436_s3 + $0x1e8] sm:$0xff]  }
 0x5ff   : > { %8151 = vmatpush3.bf16.msra.mxu0 %v9257_v10  ;;  %8126 = vmatprep.mubr.msk.bf16.mxu0 %vm9297_vm0, %v12623_v43  ;;  %v12919_v10 = vpack.c.bf16 %v12912_v40, %v12908_v32  ;;  %v12936_v32 = vld [vmem:[#allocation46_spill] sm:$0xff] }
 0x600   : > { %8152 = vmatprep.subr.bf16.mxu0 %v12623_v43 }
 0x603   : > { %8153 = vmatpush3.bf16.msra.mxu0 %v9258_v27  ;;  %v9277_v27 = vld [vmem:[%s12436_s3 + $0x1f0] sm:$0xff]  }
 0x604   : > { %8154 = vmatprep.subr.bf16.mxu0 %v12623_v43 }
 0x606   : > { %8127 = vmatmul.mubr.bf16.gmra.mrb[140].mxu0 %v12899_v2  ;;  %v9278_v2 = vld [vmem:[%s12436_s3 + $0x1f8] sm:$0xff]  }
 0x607   : > { %8130 = vmatprep.mubr.msk.bf16.mxu0 %vm9297_vm0, %v12623_v43  ;;  %8155 = vmatpush3.bf16.msra.mxu0 %v9259_v16  ;;  %v12920_v16 = vpack.c.bf16 %v12914_v36, %v12911_v58  ;;  %v12941_v58 = vld [vmem:[#allocation17_spill] sm:$0xff] }
 0x608   : > { %8156 = vmatprep.subr.bf16.mxu0 %v12623_v43  ;;  %v5626_v40 = vpack.c.bf16 %v12941_v58, %v12941_v58 }
 0x60b   : > { %8157 = vmatpush3.bf16.msra.mxu0 %v9260_v45  ;;  %v12921_v45 = vpack.c.bf16 %v11831_v47, %v11791_v17  ;;  %v9279_v17 = vld [vmem:[%s12436_s3 + $0x200] sm:$0xff]   ;;  %v12923_v47 = vld [vmem:[#allocation20_spill] sm:$0xff] }
 0x60c   : > { %8158 = vmatprep.subr.bf16.mxu0 %v12623_v43 }
 0x60e   : > { %8131 = vmatmul.mubr.bf16.gmra.mrb[144].mxu0 %v12900_v54  ;;  %v5412_v54 = vpack.c.bf16 %v12903_v37, %v12903_v37  ;;  %v12930_v37 = vld [vmem:[#allocation29_spill] sm:$0xff] }
 0x60f   : > { %8134 = vmatprep.mubr.msk.bf16.mxu0 %vm9297_vm0, %v12623_v43  ;;  %8159 = vmatpush3.bf16.msra.mxu0 %v9261_v6  ;;  %v12922_v6 = vpack.c.bf16 %v11465_v39, %v11838_v18  ;;  %v9280_v39 = vld [vmem:[%s12436_s3 + $0x208] sm:$0xff]   ;;  %v9281_v18 = vld [vmem:[%s12436_s3 + $0x210] sm:$0xff]  }
 0x610   : > { %8160 = vmatprep.subr.bf16.mxu0 %v12623_v43 }
 0x613   : > { %8161 = vmatpush3.bf16.msra.mxu0 %v9262_v31  ;;  %v12924_v31 = vld [vmem:[#allocation11_spill] sm:$0xff] }
 0x614   : > { %8190 = vmatprep.subr.bf16.mxu0 %v12623_v43 }
 0x616   : > { %8135 = vmatmul.mubr.bf16.gmra.mrb[148].mxu0 %v12901_v41  ;;  %v12925_v41 = vpack.c.bf16 %v12923_v47, %v12924_v31 }
 0x617   : > { %8138 = vmatprep.mubr.msk.bf16.mxu0 %vm9297_vm0, %v12623_v43 }
 0x619   : > { %v12176_v48 = vpop.f32.mrb[28].mxu1 }
 0x61a   : > { %v7968_v38 = vpop.f32.mrb[29].mxu1 }
 0x61b   : > { %v4454_v60 = vpop.f32.mrb[30].mxu1  ;;  %v12926_v38 = vld [vmem:[#allocation25_spill] sm:$0xff] }
 0x61c   : > { %v7969_v11 = vpop.f32.mrb[31].mxu1  ;;  %v12927_v60 = vld [vmem:[#allocation2_spill] sm:$0xff] }
 0x61d   : > { %v12928_v11 = vpack.c.bf16 %v12926_v38, %v12927_v60 }
 0x61e   : > { %8139 = vmatmul.mubr.bf16.gmra.mrb[152].mxu0 %v12902_v49  ;;  %v9282_v49 = vld [vmem:[%s12436_s3 + $0x218] sm:$0xff]  }
 0x61f   : > { %8142 = vmatprep.mubr.msk.bf16.mxu0 %vm9297_vm0, %v12623_v43 }
 0x626   : > { %8143 = vmatmul.mubr.bf16.gmra.mrb[156].mxu0 %v5025_v62  ;;  %v9283_v62 = vld [vmem:[%s12436_s3 + $0x220] sm:$0xff]  }
 0x627   : > { %8162 = vmatprep.mubr.msk.bf16.mxu0 %vm9297_vm0, %v12623_v43 }
 0x62e   : > { %8163 = vmatmul.mubr.bf16.vlgmr.msra.gmra.mrb[132].mxu0 %v12904_v46 }
 0x62f   : > { %8191 = vmatpush3.bf16.msra.mxu0 %v9263_v44  ;;  %8166 = vmatprep.mubr.msk.bf16.mxu0 %vm9297_vm0, %v12623_v43  ;;  %v12929_v44 = vld [vmem:[#allocation33_spill] sm:$0xff] }
 0x630   : > { %8192 = vmatprep.subr.bf16.mxu0 %v12623_v43  ;;  %v12931_v46 = vpack.c.bf16 %v12929_v44, %v12930_v37 }
 0x633   : > { %8193 = vmatpush3.bf16.msra.mxu0 %v9264_v22  ;;  %v9284_v22 = vld [vmem:[%s12436_s3 + $0x228] sm:$0xff]  }
 0x634   : > { %8194 = vmatprep.subr.bf16.mxu0 %v12623_v43 }
 0x636   : > { %8167 = vmatmul.mubr.bf16.gmra.mrb[136].mxu0 %v12907_v26  ;;  %v12934_v26 = vpack.c.bf16 %v12932_v4, %v12933_v25 }
 0x637   : > { %8195 = vmatpush3.bf16.msra.mxu0 %v9265_v55  ;;  %8170 = vmatprep.mubr.msk.bf16.mxu0 %vm9297_vm0, %v12623_v43  ;;  %v9285_v55 = vld [vmem:[%s12436_s3 + $0x230] sm:$0xff]  }
 0x638   : > { %8196 = vmatprep.subr.bf16.mxu0 %v12623_v43 }
 0x63b   : > { %8197 = vmatpush3.bf16.msra.mxu0 %v9266_v61  ;;  %v9286_v61 = vld [vmem:[%s12436_s3 + $0x238] sm:$0xff]  }
 0x63c   : > { %8198 = vmatprep.subr.bf16.mxu0 %v12623_v43 }
 0x63e   : > { %8171 = vmatmul.mubr.bf16.gmra.mrb[140].mxu0 %v12910_v0  ;;  %v12938_v0 = vld [vmem:[#allocation8_spill] sm:$0xff] }
 0x63f   : > { %8174 = vmatprep.mubr.msk.bf16.mxu0 %vm9297_vm0, %v12623_v43  ;;  %8199 = vmatpush3.bf16.msra.mxu0 %v9267_v19  ;;  %v12935_v19 = vld [vmem:[#allocation45_spill] sm:$0xff] }
 0x640   : > { %8200 = vmatprep.subr.bf16.mxu0 %v12623_v43  ;;  %v12937_v21 = vpack.c.bf16 %v12935_v19, %v12936_v32 }
 0x643   : > { %8201 = vmatpush3.bf16.msra.mxu0 %v9268_v5  ;;  %v12939_v5 = vld [vmem:[#allocation23_spill] sm:$0xff] }
 0x644   : > { %8202 = vmatprep.subr.bf16.mxu0 %v12623_v43 }
 0x646   : > { %8175 = vmatmul.mubr.bf16.gmra.mrb[144].mxu0 %v12913_v42  ;;  %v12942_v42 = vld [vmem:[#allocation4_spill] sm:$0xff] }
 0x647   : > { %8178 = vmatprep.mubr.msk.bf16.mxu0 %vm9297_vm0, %v12623_v43  ;;  %8203 = vmatpush3.bf16.msra.mxu0 %v9269_v50  ;;  %v12940_v50 = vpack.c.bf16 %v12938_v0, %v12939_v5 }
 0x648   : > { %8204 = vmatprep.subr.bf16.mxu0 %v12623_v43 }
 0x64b   : > { %8205 = vmatpush3.bf16.msra.mxu0 %v9270_v34  ;;  %v12943_v34 = vld [vmem:[#allocation5_spill] sm:$0xff] }
 0x64c   : > { %8234 = vmatprep.subr.bf16.mxu0 %v12623_v43  ;;  %v12944_v36 = vpack.c.bf16 %v12942_v42, %v12943_v34 }
 0x64e   : > { %8179 = vmatmul.mubr.bf16.gmra.mrb[148].mxu0 %v12915_v8  ;;  %v12945_v8 = vpack.c.bf16 %v11883_v24, %v11880_v57 }
 0x64f   : > { %8182 = vmatprep.mubr.msk.bf16.mxu0 %vm9297_vm0, %v12623_v43 }
 0x656   : > { %8183 = vmatmul.mubr.bf16.gmra.mrb[152].mxu0 %v12916_v15  ;;  %v12946_v15 = vpack.c.bf16 %v11892_v29, %v11886_v13  ;;  %v5840_v29 = vpack.c.bf16 %v11923_v1, %v11923_v1 }
 0x657   : > { %8186 = vmatprep.mubr.msk.bf16.mxu0 %vm9297_vm0, %v12623_v43 }
 0x65e   : > { %8187 = vmatmul.mubr.bf16.gmra.mrb[156].mxu0 %v5239_v53  ;;  %v12947_v53 = vpack.c.bf16 %v11898_v51, %v11895_v9 }
 0x65f   : > { %8206 = vmatprep.mubr.msk.bf16.mxu0 %vm9297_vm0, %v12623_v43 }
 0x666   : > { %8207 = vmatmul.mubr.bf16.vlgmr.msra.gmra.mrb[132].mxu0 %v12917_v12 }
 0x667   : > { %8235 = vmatpush3.bf16.msra.mxu0 %v9271_v20  ;;  %8210 = vmatprep.mubr.msk.bf16.mxu0 %vm9297_vm0, %v12623_v43 }
 0x668   : > { %8236 = vmatprep.subr.bf16.mxu0 %v12623_v43 }
 0x66b   : > { %8237 = vmatpush3.bf16.msra.mxu0 %v9272_v59 }
 0x66c   : > { %8238 = vmatprep.subr.bf16.mxu0 %v12623_v43 }
 0x66e   : > { %8211 = vmatmul.mubr.bf16.gmra.mrb[136].mxu0 %v12918_v56 }
 0x66f   : > { %8239 = vmatpush3.bf16.msra.mxu0 %v9273_v35  ;;  %8214 = vmatprep.mubr.msk.bf16.mxu0 %vm9297_vm0, %v12623_v43 }
 0x670   : > { %8240 = vmatprep.subr.bf16.mxu0 %v12623_v43 }
 0x673   : > { %8241 = vmatpush3.bf16.msra.mxu0 %v9274_v14 }
 0x674   : > { %8242 = vmatprep.subr.bf16.mxu0 %v12623_v43 }
 0x676   : > { %8215 = vmatmul.mubr.bf16.gmra.mrb[140].mxu0 %v12919_v10 }
 0x677   : > { %8218 = vmatprep.mubr.msk.bf16.mxu0 %vm9297_vm0, %v12623_v43  ;;  %8243 = vmatpush3.bf16.msra.mxu0 %v9275_v30 }
 0x678   : > { %8244 = vmatprep.subr.bf16.mxu0 %v12623_v43 }
 0x67b   : > { %8245 = vmatpush3.bf16.msra.mxu0 %v9276_v63 }
 0x67c   : > { %8246 = vmatprep.subr.bf16.mxu0 %v12623_v43 }
 0x67e   : > { %8219 = vmatmul.mubr.bf16.gmra.mrb[144].mxu0 %v12920_v16 }
 0x67f   : > { %8222 = vmatprep.mubr.msk.bf16.mxu0 %vm9297_vm0, %v12623_v43  ;;  %8247 = vmatpush3.bf16.msra.mxu0 %v9277_v27 }
 0x680   : > { %8248 = vmatprep.subr.bf16.mxu0 %v12623_v43 }
 0x683   : > { %8249 = vmatpush3.bf16.msra.mxu0 %v9278_v2 }
 0x684   : > { %8278 = vmatprep.subr.bf16.mxu0 %v12623_v43 }
 0x686   : > { %8223 = vmatmul.mubr.bf16.gmra.mrb[148].mxu0 %v12921_v45 }
 0x687   : > { %8226 = vmatprep.mubr.msk.bf16.mxu0 %vm9297_vm0, %v12623_v43 }
 0x68e   : > { %8227 = vmatmul.mubr.bf16.gmra.mrb[152].mxu0 %v12922_v6 }
 0x68f   : > { %8230 = vmatprep.mubr.msk.bf16.mxu0 %vm9297_vm0, %v12623_v43 }
 0x696   : > { %8231 = vmatmul.mubr.bf16.gmra.mrb[156].mxu0 %v5412_v54 }
 0x697   : > { %8250 = vmatprep.mubr.msk.bf16.mxu0 %vm9297_vm0, %v12623_v43 }
 0x69e   : > { %8251 = vmatmul.mubr.bf16.vlgmr.msra.gmra.mrb[132].mxu0 %v12925_v41 }
 0x69f   : > { %8279 = vmatpush3.bf16.msra.mxu0 %v9279_v17  ;;  %8254 = vmatprep.mubr.msk.bf16.mxu0 %vm9297_vm0, %v12623_v43 }
 0x6a0   : > { %8280 = vmatprep.subr.bf16.mxu0 %v12623_v43 }
 0x6a3   : > { %8281 = vmatpush3.bf16.msra.mxu0 %v9280_v39 }
 0x6a4   : > { %8282 = vmatprep.subr.bf16.mxu0 %v12623_v43 }
 0x6a6   : > { %8255 = vmatmul.mubr.bf16.gmra.mrb[136].mxu0 %v12928_v11 }
 0x6a7   : > { %8283 = vmatpush3.bf16.msra.mxu0 %v9281_v18  ;;  %8258 = vmatprep.mubr.msk.bf16.mxu0 %vm9297_vm0, %v12623_v43 }
 0x6a8   : > { %8284 = vmatprep.subr.bf16.mxu0 %v12623_v43 }
 0x6ab   : > { %8285 = vmatpush3.bf16.msra.mxu0 %v9282_v49 }
 0x6ac   : > { %8286 = vmatprep.subr.bf16.mxu0 %v12623_v43 }
 0x6ae   : > { %8259 = vmatmul.mubr.bf16.gmra.mrb[140].mxu0 %v12931_v46 }
 0x6af   : > { %8262 = vmatprep.mubr.msk.bf16.mxu0 %vm9297_vm0, %v12623_v43  ;;  %8287 = vmatpush3.bf16.msra.mxu0 %v9283_v62 }
 0x6b0   : > { %8288 = vmatprep.subr.bf16.mxu0 %v12623_v43 }
 0x6b3   : > { %8289 = vmatpush3.bf16.msra.mxu0 %v9284_v22 }
 0x6b4   : > { %8290 = vmatprep.subr.bf16.mxu0 %v12623_v43 }
 0x6b6   : > { %8263 = vmatmul.mubr.bf16.gmra.mrb[144].mxu0 %v12934_v26 }
 0x6b7   : > { %8266 = vmatprep.mubr.msk.bf16.mxu0 %vm9297_vm0, %v12623_v43  ;;  %8291 = vmatpush3.bf16.msra.mxu0 %v9285_v55 }
 0x6b8   : > { %8292 = vmatprep.subr.bf16.mxu0 %v12623_v43 }
 0x6bb   : > { %8293 = vmatpush3.bf16.msra.mxu0 %v9286_v61 }
 0x6be   : > { %8267 = vmatmul.mubr.bf16.gmra.mrb[148].mxu0 %v12937_v21 }
 0x6bf   : > { %8270 = vmatprep.mubr.msk.bf16.mxu0 %vm9297_vm0, %v12623_v43 }
 0x6c6   : > { %8271 = vmatmul.mubr.bf16.gmra.mrb[152].mxu0 %v12940_v50 }
 0x6c7   : > { %8274 = vmatprep.mubr.msk.bf16.mxu0 %vm9297_vm0, %v12623_v43 }
 0x6ce   : > { %8275 = vmatmul.mubr.bf16.gmra.mrb[156].mxu0 %v5626_v40 }
 0x6cf   : > { %8294 = vmatprep.mubr.msk.bf16.mxu0 %vm9297_vm0, %v12623_v43 }
 0x6d6   : > { %8295 = vmatmul.mubr.bf16.vlgmr.msra.gmra.mrb[132].mxu0 %v12944_v36 }
 0x6d7   : > { %8298 = vmatprep.mubr.msk.bf16.mxu0 %vm9297_vm0, %v12623_v43 }
 0x6de   : > { %8299 = vmatmul.mubr.bf16.gmra.mrb[136].mxu0 %v12945_v8 }
 0x6df   : > { %8302 = vmatprep.mubr.msk.bf16.mxu0 %vm9297_vm0, %v12623_v43 }
 0x6e6   : > { %8303 = vmatmul.mubr.bf16.gmra.mrb[140].mxu0 %v12946_v15 }
 0x6e7   : > { %8306 = vmatprep.mubr.msk.bf16.mxu0 %vm9297_vm0, %v12623_v43 }
 0x6ee   : > { %8307 = vmatmul.mubr.bf16.gmra.mrb[144].mxu0 %v12947_v53 }
 0x6ef   : > { %8310 = vmatprep.mubr.msk.bf16.mxu0 %vm9297_vm0, %v12623_v43 }
 0x6f6   : > { %8311 = vmatmul.mubr.bf16.gmra.mrb[148].mxu0 %v5838_v23 }
 0x6f7   : > { %8314 = vmatprep.mubr.msk.bf16.mxu0 %vm9297_vm0, %v12623_v43 }
 0x6fe   : > { %8315 = vmatmul.mubr.bf16.gmra.mrb[152].mxu0 %v5839_v28 }
 0x6ff   : > { %8318 = vmatprep.mubr.msk.bf16.mxu0 %vm9297_vm0, %v12623_v43 }
 0x706   : > { %8319 = vmatmul.mubr.bf16.gmra.mrb[156].mxu0 %v5840_v29 }
 0x7a9   : > { %v5940_v9 = vpop.f32.mrb[132].mxu0 }
 0x7aa   : > { %v8296_v24 = vpop.f32.mrb[133].mxu0  ;;  %v6007_v52 = vmax.f32 %v5940_v9, 0.0 }
 0x7ab   : > { %v5943_v13 = vpop.f32.mrb[134].mxu0 }
 0x7ac   : > { %v6008_v33 = vmax.f32 %v5943_v13, 0.0  ;;  %v8297_v57 = vpop.f32.mrb[135].mxu0 }
 0x7ae   : > { %v6815_v7 = vpack.c.bf16 %v6008_v33, %v6007_v52 }
 0x7b0   : > { %6816 = vst [vmem:[%s12420_s25] sm:$0xff] %v6815_v7  }
 0x7b1   : > { %v5948_v43 = vpop.f32.mrb[136].mxu0 }
 0x7b2   : > { %v8300_v51 = vpop.f32.mrb[137].mxu0  ;;  %v6009_v23 = vmax.f32 %v5948_v43, 0.0 }
 0x7b3   : > { %v5951_v3 = vpop.f32.mrb[138].mxu0 }
 0x7b4   : > { %v6010_v1 = vmax.f32 %v5951_v3, 0.0  ;;  %v8301_v28 = vpop.f32.mrb[139].mxu0 }
 0x7b6   : > { %v6820_v20 = vpack.c.bf16 %v6010_v1, %v6009_v23 }
 0x7b8   : > { %6842 = vst [vmem:[%s12420_s25 + $0x8] sm:$0xff] %v6820_v20  }
 0x7b9   : > { %v5956_v12 = vpop.f32.mrb[140].mxu0 }
 0x7ba   : > { %v8304_v59 = vpop.f32.mrb[141].mxu0  ;;  %v6011_v56 = vmax.f32 %v5956_v12, 0.0 }
 0x7bb   : > { %v5959_v35 = vpop.f32.mrb[142].mxu0 }
 0x7bc   : > { %v6012_v14 = vmax.f32 %v5959_v35, 0.0  ;;  %v8305_v30 = vpop.f32.mrb[143].mxu0 }
 0x7be   : > { %v6825_v10 = vpack.c.bf16 %v6012_v14, %v6011_v56 }
 0x7c0   : > { %6843 = vst [vmem:[%s12420_s25 + $0x10] sm:$0xff] %v6825_v10  }
 0x7c1   : > { %v5964_v63 = vpop.f32.mrb[144].mxu0 }
 0x7c2   : > { %v8308_v27 = vpop.f32.mrb[145].mxu0  ;;  %v6013_v2 = vmax.f32 %v5964_v63, 0.0 }
 0x7c3   : > { %v5967_v16 = vpop.f32.mrb[146].mxu0 }
 0x7c4   : > { %v6014_v45 = vmax.f32 %v5967_v16, 0.0  ;;  %v8309_v6 = vpop.f32.mrb[147].mxu0 }
 0x7c6   : > { %v6830_v54 = vpack.c.bf16 %v6014_v45, %v6013_v2 }
 0x7c8   : > { %6844 = vst [vmem:[%s12420_s25 + $0x18] sm:$0xff] %v6830_v54  }
 0x7c9   : > { %v5972_v17 = vpop.f32.mrb[148].mxu0 }
 0x7ca   : > { %v8312_v47 = vpop.f32.mrb[149].mxu0  ;;  %v6015_v41 = vmax.f32 %v5972_v17, 0.0 }
 0x7cb   : > { %v5975_v31 = vpop.f32.mrb[150].mxu0 }
 0x7cc   : > { %v6016_v39 = vmax.f32 %v5975_v31, 0.0  ;;  %v8313_v18 = vpop.f32.mrb[151].mxu0 }
 0x7ce   : > { %v6835_v38 = vpack.c.bf16 %v6016_v39, %v6015_v41 }
 0x7d0   : > { %6845 = vst [vmem:[%s12420_s25 + $0x20] sm:$0xff] %v6835_v38  }
 0x7d1   : > { %v5980_v60 = vpop.f32.mrb[152].mxu0 }
 0x7d2   : > { %v8316_v11 = vpop.f32.mrb[153].mxu0  ;;  %v6017_v62 = vmax.f32 %v5980_v60, 0.0 }
 0x7d3   : > { %v5983_v49 = vpop.f32.mrb[154].mxu0 }
 0x7d4   : > { %v6018_v44 = vmax.f32 %v5983_v49, 0.0  ;;  %v8317_v37 = vpop.f32.mrb[155].mxu0 }
 0x7d6   : > { %v6840_v46 = vpack.c.bf16 %v6018_v44, %v6017_v62 }
 0x7d8   : > { %6846 = vst [vmem:[%s12420_s25 + $0x28] sm:$0xff] %v6840_v46  }
 0x7d9   : > { %v5988_v22 = vpop.f32.mrb[156].mxu0 }
 0x7da   : > { %v8367_v55 = vadd.f32 %v5988_v22, %v12176_v48  ;;  %v8320_v4 = vpop.f32.mrb[157].mxu0 }
 0x7db   : > { %v5991_v25 = vpop.f32.mrb[158].mxu0 }
 0x7dc   : > { %v6019_v26 = vmax.f32 %v8367_v55, 0.0  ;;  %v8321_v61 = vpop.f32.mrb[159].mxu0 }
 0x7de   : > { %v6811_v19 = vpack.c.bf16 %v6019_v26, %v6019_v26 }
 0x7e0   : > { %6085 = vst [vmem:[%s12420_s25 + $0x30] sm:$0xf] %v6811_v19 }
 0x7e1 PF: > { %s14_s15 = sadd.s32 1, %s9293_s15  }
 0x7e2   : > { %p11_p4 = scmp.ge.s32.totalorder %s14_s15, 4  }
 0x7e4   :  { %13 = sbr.rel (!%p11_p4) target bundleno = 1 (0x1), region = 89 }

// kernel: dqn_forward.3
= control target key start
LH: loop header
LB: loop body
LE: loop exit
PB: predicated region body
PF: predicated region fallthrough
CT: control target
= control target key end

     0   :  { %v812_v36 = vlaneseq  ;;  %v8581_v37 = vmov 1966171168   ;;  %s11223_s0 = inlined_call_operand.vmem [shape: bf16[2,3136], index: 0, kind: input, shape index: {}]   ;;  %s11224_s1 = inlined_call_operand.vmem [shape: bf16[3136,512], index: 1, kind: input, shape index: {}]   ;;  %s11225_s2 = inlined_call_operand.vmem [shape: f32[1,512], index: 2, kind: input, shape index: {}]   ;;  %s11226_s3 = inlined_call_operand.vmem [shape: bf16[512,128], index: 3, kind: input, shape index: {}]   ;;  %s11227_s4 = inlined_call_operand.vmem [shape: f32[1,128], index: 4, kind: input, shape index: {}]   ;;  %s11228_s5 = inlined_call_operand.hbm [shape: f32[2,128], index: 5, kind: output, shape index: {}]  }
   0x1   :  { %v7344_v0 = vld [vmem:[%s11224_s1 + $0x4] ss:$16 sps:$4 sm:$0xff]   ;;  %v7346_v1 = vld [vmem:[%s11224_s1 + $0xc] ss:$16 sps:$4 sm:$0xff]   ;;  %v7348_v2 = vld [vmem:[%s11224_s1] ss:$16 sps:$4 sm:$0xff]   ;;  %v838_v38 = vunpack.c.l.s4 %v8581_v37 }
   0x2   :  { %4945 = vmatprep.subr.bf16.mxu0 %v7344_v0  ;;  %v7349_v3 = vld [vmem:[%s11224_s1 + $0x8] ss:$16 sps:$4 sm:$0xff]   ;;  %5478 = vmatprep.subr.bf16.mxu1 %v7346_v1  ;;  %v7350_v4 = vld [vmem:[%s11224_s1 + $0x24] ss:$16 sps:$4 sm:$0xff]   ;;  %v7352_v5 = vld [vmem:[%s11224_s1 + $0x2c] ss:$16 sps:$4 sm:$0xff]  }
   0x3   :  { %4946 = vmatpush1.bf16.msra.mxu0 %v7348_v2  ;;  %5479 = vmatpush1.bf16.msra.mxu1 %v7349_v3  ;;  %v7354_v6 = vld [vmem:[%s11224_s1 + $0x20] ss:$16 sps:$4 sm:$0xff]   ;;  %v7355_v7 = vld [vmem:[%s11224_s1 + $0x28] ss:$16 sps:$4 sm:$0xff]   ;;  %v7356_v8 = vld [vmem:[%s11224_s1 + $0x44] ss:$16 sps:$4 sm:$0xff]   ;;  %v839_v43 = vunpack.c.0.s8 %v838_v38 }
   0x4   :  { %4947 = vmatprep.subr.bf16.mxu0 %v7350_v4  ;;  %5480 = vmatprep.subr.bf16.mxu1 %v7352_v5  ;;  %v7358_v9 = vld [vmem:[%s11224_s1 + $0x4c] ss:$16 sps:$4 sm:$0xff]   ;;  %v7360_v10 = vld [vmem:[%s11224_s1 + $0x40] ss:$16 sps:$4 sm:$0xff]   ;;  %v7361_v11 = vld [vmem:[%s11224_s1 + $0x48] ss:$16 sps:$4 sm:$0xff]  }
   0x5   :  { %v7362_v12 = vld [vmem:[%s11224_s1 + $0x64] ss:$16 sps:$4 sm:$0xff]   ;;  %v7364_v13 = vld [vmem:[%s11224_s1 + $0x6c] ss:$16 sps:$4 sm:$0xff]   ;;  %v7366_v14 = vld [vmem:[%s11224_s1 + $0x60] ss:$16 sps:$4 sm:$0xff]  }
   0x6   :  { %v7367_v15 = vld [vmem:[%s11224_s1 + $0x68] ss:$16 sps:$4 sm:$0xff]   ;;  %v7368_v16 = vld [vmem:[%s11224_s1 + $0x84] ss:$16 sps:$4 sm:$0xff]   ;;  %v7370_v17 = vld [vmem:[%s11224_s1 + $0x8c] ss:$16 sps:$4 sm:$0xff]  }
   0x7   :  { %4948 = vmatpush1.bf16.msra.mxu0 %v7354_v6  ;;  %5481 = vmatpush1.bf16.msra.mxu1 %v7355_v7  ;;  %v7372_v18 = vld [vmem:[%s11224_s1 + $0x80] ss:$16 sps:$4 sm:$0xff]   ;;  %v7373_v19 = vld [vmem:[%s11224_s1 + $0x88] ss:$16 sps:$4 sm:$0xff]   ;;  %v7374_v20 = vld [vmem:[%s11224_s1 + $0xa4] ss:$16 sps:$4 sm:$0xff]  }
   0x8   :  { %4949 = vmatprep.subr.bf16.mxu0 %v7356_v8  ;;  %5482 = vmatprep.subr.bf16.mxu1 %v7358_v9  ;;  %v7376_v21 = vld [vmem:[%s11224_s1 + $0xac] ss:$16 sps:$4 sm:$0xff]   ;;  %v7378_v22 = vld [vmem:[%s11224_s1 + $0xa0] ss:$16 sps:$4 sm:$0xff]   ;;  %v7379_v23 = vld [vmem:[%s11224_s1 + $0xa8] ss:$16 sps:$4 sm:$0xff]  }
   0x9   :  { %v7380_v24 = vld [vmem:[%s11224_s1 + $0xc4] ss:$16 sps:$4 sm:$0xff]   ;;  %v7382_v25 = vld [vmem:[%s11224_s1 + $0xcc] ss:$16 sps:$4 sm:$0xff]   ;;  %v7384_v26 = vld [vmem:[%s11224_s1 + $0xc0] ss:$16 sps:$4 sm:$0xff]  }
   0xa   :  { %v7385_v27 = vld [vmem:[%s11224_s1 + $0xc8] ss:$16 sps:$4 sm:$0xff]   ;;  %v7386_v28 = vld [vmem:[%s11224_s1 + $0xe4] ss:$16 sps:$4 sm:$0xff]   ;;  %v7388_v29 = vld [vmem:[%s11224_s1 + $0xec] ss:$16 sps:$4 sm:$0xff]  }
   0xb   :  { %4950 = vmatpush1.bf16.msra.mxu0 %v7360_v10  ;;  %5483 = vmatpush1.bf16.msra.mxu1 %v7361_v11  ;;  %v7390_v30 = vld [vmem:[%s11224_s1 + $0xe0] ss:$16 sps:$4 sm:$0xff]   ;;  %v7391_v31 = vld [vmem:[%s11224_s1 + $0xe8] ss:$16 sps:$4 sm:$0xff]   ;;  %v7392_v32 = vld [vmem:[%s11224_s1 + $0x104] ss:$16 sps:$4 sm:$0xff]  }
   0xc   :  { %4951 = vmatprep.subr.bf16.mxu0 %v7362_v12  ;;  %5484 = vmatprep.subr.bf16.mxu1 %v7364_v13  ;;  %v7394_v33 = vld [vmem:[%s11224_s1 + $0x10c] ss:$16 sps:$4 sm:$0xff]   ;;  %v7396_v34 = vld [vmem:[%s11224_s1 + $0x100] ss:$16 sps:$4 sm:$0xff]   ;;  %v7397_v35 = vld [vmem:[%s11224_s1 + $0x108] ss:$16 sps:$4 sm:$0xff]  }
   0xd   :  { %v7398_v39 = vld [vmem:[%s11224_s1 + $0x124] ss:$16 sps:$4 sm:$0xff]   ;;  %v7400_v40 = vld [vmem:[%s11224_s1 + $0x12c] ss:$16 sps:$4 sm:$0xff]   ;;  %v7402_v41 = vld [vmem:[%s11224_s1 + $0x120] ss:$16 sps:$4 sm:$0xff]  }
   0xe   :  { %v8731_v42 = vshrl.u32 %v812_v36, 7  ;;  %v7403_v44 = vld [vmem:[%s11224_s1 + $0x128] ss:$16 sps:$4 sm:$0xff]   ;;  %v7404_v45 = vld [vmem:[%s11224_s1 + $0x144] ss:$16 sps:$4 sm:$0xff]  }
   0xf   :  { %4952 = vmatpush1.bf16.msra.mxu0 %v7366_v14  ;;  %5485 = vmatpush1.bf16.msra.mxu1 %v7367_v15  ;;  %v7406_v46 = vld [vmem:[%s11224_s1 + $0x14c] ss:$16 sps:$4 sm:$0xff]   ;;  %v7408_v47 = vld [vmem:[%s11224_s1 + $0x140] ss:$16 sps:$4 sm:$0xff]   ;;  %v7409_v48 = vld [vmem:[%s11224_s1 + $0x148] ss:$16 sps:$4 sm:$0xff]  }
  0x10   :  { %4953 = vmatprep.subr.bf16.mxu0 %v7368_v16  ;;  %5486 = vmatprep.subr.bf16.mxu1 %v7370_v17  ;;  %v8749_v49 = vsub.s32 %v839_v43, %v8731_v42  ;;  %v7410_v50 = vld [vmem:[%s11224_s1 + $0x164] ss:$16 sps:$4 sm:$0xff]   ;;  %v7412_v51 = vld [vmem:[%s11224_s1 + $0x16c] ss:$16 sps:$4 sm:$0xff]   ;;  %v7414_v53 = vld [vmem:[%s11224_s1 + $0x160] ss:$16 sps:$4 sm:$0xff]  }
  0x11   :  { %v8760_v52 = vld [vmem:[%s11223_s0] sm:$0xff]  ;;  %v7415_v55 = vld [vmem:[%s11224_s1 + $0x168] ss:$16 sps:$4 sm:$0xff]   ;;  %v7418_v57 = vld [vmem:[%s11224_s1 + $0x18c] ss:$16 sps:$4 sm:$0xff]  }
  0x12   :  { %v843_v54 = vrot.slane %v8760_v52, %v8749_v49  ;;  %v7416_v56 = vld [vmem:[%s11224_s1 + $0x184] ss:$16 sps:$4 sm:$0xff]   ;;  %v7420_v59 = vld [vmem:[%s11224_s1 + $0x180] ss:$16 sps:$4 sm:$0xff]   ;;  %v7421_v61 = vld [vmem:[%s11224_s1 + $0x188] ss:$16 sps:$4 sm:$0xff]  }
  0x13   :  { %4954 = vmatpush1.bf16.msra.mxu0 %v7372_v18  ;;  %5487 = vmatpush1.bf16.msra.mxu1 %v7373_v19  ;;  %v7422_v62 = vld [vmem:[%s11224_s1 + $0x1a4] ss:$16 sps:$4 sm:$0xff]   ;;  %v7424_v63 = vld [vmem:[%s11224_s1 + $0x1ac] ss:$16 sps:$4 sm:$0xff]   ;;  %v7426_v0 = vld [vmem:[%s11224_s1 + $0x1a0] ss:$16 sps:$4 sm:$0xff]  }
  0x14   :  { %4955 = vmatprep.subr.bf16.mxu0 %v7374_v20  ;;  %5488 = vmatprep.subr.bf16.mxu1 %v7376_v21  ;;  %v851_v58 = vcombine.high %v843_v54, %v843_v54  ;;  %v7427_v1 = vld [vmem:[%s11224_s1 + $0x1a8] ss:$16 sps:$4 sm:$0xff]   ;;  %v7428_v2 = vld [vmem:[%s11224_s1 + $0x1c4] ss:$16 sps:$4 sm:$0xff]   ;;  %v7430_v3 = vld [vmem:[%s11224_s1 + $0x1cc] ss:$16 sps:$4 sm:$0xff]   ;;  %v8829_v13 = vrot.slane %v843_v54, %v8749_v49 }
  0x15   :  { %v7432_v4 = vld [vmem:[%s11224_s1 + $0x1c0] ss:$16 sps:$4 sm:$0xff]   ;;  %v7433_v5 = vld [vmem:[%s11224_s1 + $0x1c8] ss:$16 sps:$4 sm:$0xff]   ;;  %v7434_v6 = vld [vmem:[%s11224_s1 + $0x1e4] ss:$16 sps:$4 sm:$0xff]  }
  0x16   :  { %v873_v60 = vrot.slane %v851_v58, %v8749_v49  ;;  %v7436_v7 = vld [vmem:[%s11224_s1 + $0x1ec] ss:$16 sps:$4 sm:$0xff]   ;;  %v7438_v8 = vld [vmem:[%s11224_s1 + $0x1e0] ss:$16 sps:$4 sm:$0xff]   ;;  %v7439_v9 = vld [vmem:[%s11224_s1 + $0x1e8] ss:$16 sps:$4 sm:$0xff]  }
  0x17   :  { %4956 = vmatpush1.bf16.msra.mxu0 %v7378_v22  ;;  %5489 = vmatpush1.bf16.msra.mxu1 %v7379_v23  ;;  %v7442_v10 = vld [vmem:[%s11224_s1 + $0x204] ss:$16 sps:$4 sm:$0xff]   ;;  %v7445_v11 = vld [vmem:[%s11224_s1 + $0x20c] ss:$16 sps:$4 sm:$0xff]   ;;  %v7440_v12 = vld [vmem:[%s11224_s1 + $0x200] ss:$16 sps:$4 sm:$0xff]  }
  0x18   :  { %4957 = vmatprep.subr.bf16.mxu0 %v7380_v24  ;;  %5490 = vmatprep.subr.bf16.mxu1 %v7382_v25  ;;  %v7443_v14 = vld [vmem:[%s11224_s1 + $0x208] ss:$16 sps:$4 sm:$0xff]   ;;  %v7448_v15 = vld [vmem:[%s11224_s1 + $0x224] ss:$16 sps:$4 sm:$0xff]   ;;  %v7451_v16 = vld [vmem:[%s11224_s1 + $0x22c] ss:$16 sps:$4 sm:$0xff]   ;;  %v883_v17 = vcombine.high %v873_v60, %v873_v60 }
  0x19   :  { %4977 = vmatprep.mubr.bf16.mxu0 %v873_v60  ;;  %5510 = vmatprep.mubr.bf16.mxu1 %v873_v60  ;;  %v7446_v18 = vld [vmem:[%s11224_s1 + $0x220] ss:$16 sps:$4 sm:$0xff]   ;;  %v7449_v19 = vld [vmem:[%s11224_s1 + $0x228] ss:$16 sps:$4 sm:$0xff]   ;;  %v7454_v20 = vld [vmem:[%s11224_s1 + $0x244] ss:$16 sps:$4 sm:$0xff]  }
  0x1a   :  { %v7457_v21 = vld [vmem:[%s11224_s1 + $0x24c] ss:$16 sps:$4 sm:$0xff]   ;;  %v7452_v22 = vld [vmem:[%s11224_s1 + $0x240] ss:$16 sps:$4 sm:$0xff]   ;;  %v7455_v23 = vld [vmem:[%s11224_s1 + $0x248] ss:$16 sps:$4 sm:$0xff]  }
  0x1b   :  { %4958 = vmatpush1.bf16.msra.mxu0 %v7384_v26  ;;  %5491 = vmatpush1.bf16.msra.mxu1 %v7385_v27  ;;  %v7460_v24 = vld [vmem:[%s11224_s1 + $0x264] ss:$16 sps:$4 sm:$0xff]   ;;  %v7463_v25 = vld [vmem:[%s11224_s1 + $0x26c] ss:$16 sps:$4 sm:$0xff]   ;;  %v7458_v26 = vld [vmem:[%s11224_s1 + $0x260] ss:$16 sps:$4 sm:$0xff]  }
  0x1c   :  { %4959 = vmatprep.subr.bf16.mxu0 %v7386_v28  ;;  %5492 = vmatprep.subr.bf16.mxu1 %v7388_v29  ;;  %v7461_v27 = vld [vmem:[%s11224_s1 + $0x268] ss:$16 sps:$4 sm:$0xff]   ;;  %v7466_v28 = vld [vmem:[%s11224_s1 + $0x284] ss:$16 sps:$4 sm:$0xff]   ;;  %v7469_v29 = vld [vmem:[%s11224_s1 + $0x28c] ss:$16 sps:$4 sm:$0xff]  }
  0x1d   :  { %v7478_v36 = vld [vmem:[%s11224_s1 + $0x2c4] ss:$16 sps:$4 sm:$0xff]   ;;  %v7481_v37 = vld [vmem:[%s11224_s1 + $0x2cc] ss:$16 sps:$4 sm:$0xff]   ;;  %v7476_v38 = vld [vmem:[%s11224_s1 + $0x2c0] ss:$16 sps:$4 sm:$0xff]  }
  0x1e   :  { %v7482_v43 = vld [vmem:[%s11224_s1 + $0x2e0] ss:$16 sps:$4 sm:$0xff]   ;;  %v7497_v54 = vld [vmem:[%s11224_s1 + $0x328] ss:$16 sps:$4 sm:$0xff]   ;;  %v7511_v60 = vld [vmem:[%s11224_s1 + $0x36c] ss:$16 sps:$4 sm:$0xff]  }
  0x1f   :  { %4960 = vmatpush1.bf16.msra.mxu0 %v7390_v30  ;;  %5493 = vmatpush1.bf16.msra.mxu1 %v7391_v31  ;;  %v7464_v30 = vld [vmem:[%s11224_s1 + $0x280] ss:$16 sps:$4 sm:$0xff]   ;;  %v7467_v31 = vld [vmem:[%s11224_s1 + $0x288] ss:$16 sps:$4 sm:$0xff]  }
  0x20   :  { %4961 = vmatprep.subr.bf16.mxu0 %v7392_v32  ;;  %5494 = vmatprep.subr.bf16.mxu1 %v7394_v33  ;;  %v7472_v32 = vld [vmem:[%s11224_s1 + $0x2a4] ss:$16 sps:$4 sm:$0xff]   ;;  %v7475_v33 = vld [vmem:[%s11224_s1 + $0x2ac] ss:$16 sps:$4 sm:$0xff]   ;;  %v7503_v58 = vld [vmem:[%s11224_s1 + $0x348] ss:$16 sps:$4 sm:$0xff]  }
  0x23   :  { %4962 = vmatpush1.bf16.msra.mxu0 %v7396_v34  ;;  %5495 = vmatpush1.bf16.msra.mxu1 %v7397_v35  ;;  %v7470_v34 = vld [vmem:[%s11224_s1 + $0x2a0] ss:$16 sps:$4 sm:$0xff]   ;;  %v7473_v35 = vld [vmem:[%s11224_s1 + $0x2a8] ss:$16 sps:$4 sm:$0xff]  }
  0x24   :  { %4963 = vmatprep.subr.bf16.mxu0 %v7398_v39  ;;  %5496 = vmatprep.subr.bf16.mxu1 %v7400_v40  ;;  %v7479_v39 = vld [vmem:[%s11224_s1 + $0x2c8] ss:$16 sps:$4 sm:$0xff]   ;;  %v7484_v40 = vld [vmem:[%s11224_s1 + $0x2e4] ss:$16 sps:$4 sm:$0xff]  }
  0x27   :  { %4964 = vmatpush1.bf16.msra.mxu0 %v7402_v41  ;;  %5497 = vmatpush1.bf16.msra.mxu1 %v7403_v44  ;;  %v7487_v41 = vld [vmem:[%s11224_s1 + $0x2ec] ss:$16 sps:$4 sm:$0xff]   ;;  %v7485_v44 = vld [vmem:[%s11224_s1 + $0x2e8] ss:$16 sps:$4 sm:$0xff]  }
  0x28   :  { %4965 = vmatprep.subr.bf16.mxu0 %v7404_v45  ;;  %5498 = vmatprep.subr.bf16.mxu1 %v7406_v46  ;;  %v7490_v45 = vld [vmem:[%s11224_s1 + $0x304] ss:$16 sps:$4 sm:$0xff]   ;;  %v7493_v46 = vld [vmem:[%s11224_s1 + $0x30c] ss:$16 sps:$4 sm:$0xff]  }
  0x2b   :  { %4966 = vmatpush1.bf16.msra.mxu0 %v7408_v47  ;;  %5499 = vmatpush1.bf16.msra.mxu1 %v7409_v48  ;;  %v7488_v47 = vld [vmem:[%s11224_s1 + $0x300] ss:$16 sps:$4 sm:$0xff]   ;;  %v7491_v48 = vld [vmem:[%s11224_s1 + $0x308] ss:$16 sps:$4 sm:$0xff]  }
  0x2c   :  { %4967 = vmatprep.subr.bf16.mxu0 %v7410_v50  ;;  %5500 = vmatprep.subr.bf16.mxu1 %v7412_v51  ;;  %v7496_v50 = vld [vmem:[%s11224_s1 + $0x324] ss:$16 sps:$4 sm:$0xff]   ;;  %v7499_v51 = vld [vmem:[%s11224_s1 + $0x32c] ss:$16 sps:$4 sm:$0xff]  }
  0x2f   :  { %4968 = vmatpush1.bf16.msra.mxu0 %v7414_v53  ;;  %5501 = vmatpush1.bf16.msra.mxu1 %v7415_v55  ;;  %v7494_v53 = vld [vmem:[%s11224_s1 + $0x320] ss:$16 sps:$4 sm:$0xff]   ;;  %v7502_v55 = vld [vmem:[%s11224_s1 + $0x344] ss:$16 sps:$4 sm:$0xff]  }
  0x30   :  { %4969 = vmatprep.subr.bf16.mxu0 %v7416_v56  ;;  %5502 = vmatprep.subr.bf16.mxu1 %v7418_v57  ;;  %v7505_v56 = vld [vmem:[%s11224_s1 + $0x34c] ss:$16 sps:$4 sm:$0xff]   ;;  %v7500_v57 = vld [vmem:[%s11224_s1 + $0x340] ss:$16 sps:$4 sm:$0xff]  }
  0x33   :  { %4970 = vmatpush1.bf16.msra.mxu0 %v7420_v59  ;;  %5503 = vmatpush1.bf16.msra.mxu1 %v7421_v61  ;;  %v7508_v59 = vld [vmem:[%s11224_s1 + $0x364] ss:$16 sps:$4 sm:$0xff]   ;;  %v7506_v61 = vld [vmem:[%s11224_s1 + $0x360] ss:$16 sps:$4 sm:$0xff]  }
  0x34   :  { %4971 = vmatprep.subr.bf16.mxu0 %v7422_v62  ;;  %5504 = vmatprep.subr.bf16.mxu1 %v7424_v63  ;;  %v7509_v62 = vld [vmem:[%s11224_s1 + $0x368] ss:$16 sps:$4 sm:$0xff]   ;;  %v7514_v63 = vld [vmem:[%s11224_s1 + $0x384] ss:$16 sps:$4 sm:$0xff]  }
  0x37   :  { %4972 = vmatpush1.bf16.msra.mxu0 %v7426_v0  ;;  %5505 = vmatpush1.bf16.msra.mxu1 %v7427_v1  ;;  %v7517_v0 = vld [vmem:[%s11224_s1 + $0x38c] ss:$16 sps:$4 sm:$0xff]   ;;  %v7512_v1 = vld [vmem:[%s11224_s1 + $0x380] ss:$16 sps:$4 sm:$0xff]  }
  0x38   :  { %4973 = vmatprep.subr.bf16.mxu0 %v7428_v2  ;;  %5506 = vmatprep.subr.bf16.mxu1 %v7430_v3  ;;  %v7515_v2 = vld [vmem:[%s11224_s1 + $0x388] ss:$16 sps:$4 sm:$0xff]   ;;  %v7520_v3 = vld [vmem:[%s11224_s1 + $0x3a4] ss:$16 sps:$4 sm:$0xff]  }
  0x3b   :  { %4974 = vmatpush1.bf16.msra.mxu0 %v7432_v4  ;;  %5507 = vmatpush1.bf16.msra.mxu1 %v7433_v5  ;;  %v7523_v4 = vld [vmem:[%s11224_s1 + $0x3ac] ss:$16 sps:$4 sm:$0xff]   ;;  %v7518_v5 = vld [vmem:[%s11224_s1 + $0x3a0] ss:$16 sps:$4 sm:$0xff]  }
  0x3c   :  { %4975 = vmatprep.subr.bf16.mxu0 %v7434_v6  ;;  %5508 = vmatprep.subr.bf16.mxu1 %v7436_v7  ;;  %v7521_v6 = vld [vmem:[%s11224_s1 + $0x3a8] ss:$16 sps:$4 sm:$0xff]   ;;  %v7526_v7 = vld [vmem:[%s11224_s1 + $0x3c4] ss:$16 sps:$4 sm:$0xff]  }
  0x3f   :  { %4976 = vmatpush1.bf16.msra.mxu0 %v7438_v8  ;;  %5509 = vmatpush1.bf16.msra.mxu1 %v7439_v9  ;;  %v7529_v8 = vld [vmem:[%s11224_s1 + $0x3cc] ss:$16 sps:$4 sm:$0xff]   ;;  %v836_v9 = vcombine.high %v8760_v52, %v8760_v52 }
  0x40   :  { %4986 = vmatprep.subr.bf16.mxu0 %v7442_v10  ;;  %5519 = vmatprep.subr.bf16.mxu1 %v7445_v11  ;;  %v7524_v10 = vld [vmem:[%s11224_s1 + $0x3c0] ss:$16 sps:$4 sm:$0xff]   ;;  %v7527_v11 = vld [vmem:[%s11224_s1 + $0x3c8] ss:$16 sps:$4 sm:$0xff]   ;;  %v7535_v52 = vld [vmem:[%s11224_s1 + $0x3ec] ss:$16 sps:$4 sm:$0xff]  }
  0x42   :  { %4978 = vmatmul.mubr.bf16.vlgmr.msra.gmra.mrb[0].mxu0 %v8829_v13  ;;  %5511 = vmatmul.mubr.bf16.vlgmr.msra.gmra.mrb[0].mxu1 %v8829_v13 }
  0x43   :  { %4987 = vmatpush1.bf16.msra.mxu0 %v7440_v12  ;;  %5520 = vmatpush1.bf16.msra.mxu1 %v7443_v14  ;;  %v7532_v12 = vld [vmem:[%s11224_s1 + $0x3e4] ss:$16 sps:$4 sm:$0xff]   ;;  %v9013_v14 = vrot.slane %v836_v9, %v8749_v49  ;;  %v7611_v9 = vld [vmem:[%s11224_s1 + $0x588] ss:$16 sps:$4 sm:$0xff]  }
  0x44   :  { %4988 = vmatprep.subr.bf16.mxu0 %v7448_v15  ;;  %5521 = vmatprep.subr.bf16.mxu1 %v7451_v16  ;;  %v7530_v15 = vld [vmem:[%s11224_s1 + $0x3e0] ss:$16 sps:$4 sm:$0xff]   ;;  %v7533_v16 = vld [vmem:[%s11224_s1 + $0x3e8] ss:$16 sps:$4 sm:$0xff]  }
  0x45   :  { %5018 = vmatprep.mubr.bf16.mxu0 %v883_v17  ;;  %5551 = vmatprep.mubr.bf16.mxu1 %v883_v17  ;;  %v7538_v17 = vld [vmem:[%s11224_s1 + $0x404] ss:$16 sps:$4 sm:$0xff]  }
  0x47   :  { %4989 = vmatpush1.bf16.msra.mxu0 %v7446_v18  ;;  %5522 = vmatpush1.bf16.msra.mxu1 %v7449_v19  ;;  %v7541_v18 = vld [vmem:[%s11224_s1 + $0x40c] ss:$16 sps:$4 sm:$0xff]   ;;  %v852_v19 = vcombine.high %v9013_v14, %v9013_v14 }
  0x48   :  { %4990 = vmatprep.subr.bf16.mxu0 %v7454_v20  ;;  %5523 = vmatprep.subr.bf16.mxu1 %v7457_v21  ;;  %v7536_v20 = vld [vmem:[%s11224_s1 + $0x400] ss:$16 sps:$4 sm:$0xff]   ;;  %v881_v21 = vcombine.high %v8829_v13, %v8829_v13 }
  0x49   :  { %v7542_v13 = vld [vmem:[%s11224_s1 + $0x420] ss:$16 sps:$4 sm:$0xff]  }
  0x4b   :  { %4991 = vmatpush1.bf16.msra.mxu0 %v7452_v22  ;;  %5524 = vmatpush1.bf16.msra.mxu1 %v7455_v23  ;;  %v7539_v22 = vld [vmem:[%s11224_s1 + $0x408] ss:$16 sps:$4 sm:$0xff]   ;;  %v7544_v23 = vld [vmem:[%s11224_s1 + $0x424] ss:$16 sps:$4 sm:$0xff]  }
  0x4c   :  { %4992 = vmatprep.subr.bf16.mxu0 %v7460_v24  ;;  %5525 = vmatprep.subr.bf16.mxu1 %v7463_v25  ;;  %v7547_v24 = vld [vmem:[%s11224_s1 + $0x42c] ss:$16 sps:$4 sm:$0xff]   ;;  %v9044_v25 = vrot.slane %v852_v19, %v8749_v49  ;;  %v7628_v19 = vld [vmem:[%s11224_s1 + $0x5e4] ss:$16 sps:$4 sm:$0xff]  }
  0x4f   :  { %4993 = vmatpush1.bf16.msra.mxu0 %v7458_v26  ;;  %5526 = vmatpush1.bf16.msra.mxu1 %v7461_v27  ;;  %v7545_v26 = vld [vmem:[%s11224_s1 + $0x428] ss:$16 sps:$4 sm:$0xff]   ;;  %v7550_v27 = vld [vmem:[%s11224_s1 + $0x444] ss:$16 sps:$4 sm:$0xff]  }
  0x50   :  { %4994 = vmatprep.subr.bf16.mxu0 %v7466_v28  ;;  %5527 = vmatprep.subr.bf16.mxu1 %v7469_v29  ;;  %v7553_v28 = vld [vmem:[%s11224_s1 + $0x44c] ss:$16 sps:$4 sm:$0xff]   ;;  %v7548_v29 = vld [vmem:[%s11224_s1 + $0x440] ss:$16 sps:$4 sm:$0xff]  }
  0x53   :  { %4995 = vmatpush1.bf16.msra.mxu0 %v7464_v30  ;;  %5528 = vmatpush1.bf16.msra.mxu1 %v7467_v31  ;;  %v7551_v30 = vld [vmem:[%s11224_s1 + $0x448] ss:$16 sps:$4 sm:$0xff]   ;;  %v7556_v31 = vld [vmem:[%s11224_s1 + $0x464] ss:$16 sps:$4 sm:$0xff]  }
  0x54   :  { %4996 = vmatprep.subr.bf16.mxu0 %v7472_v32  ;;  %5529 = vmatprep.subr.bf16.mxu1 %v7475_v33  ;;  %v7559_v32 = vld [vmem:[%s11224_s1 + $0x46c] ss:$16 sps:$4 sm:$0xff]   ;;  %v7554_v33 = vld [vmem:[%s11224_s1 + $0x460] ss:$16 sps:$4 sm:$0xff]  }
  0x57   :  { %4997 = vmatpush1.bf16.msra.mxu0 %v7470_v34  ;;  %5530 = vmatpush1.bf16.msra.mxu1 %v7473_v35  ;;  %v7557_v34 = vld [vmem:[%s11224_s1 + $0x468] ss:$16 sps:$4 sm:$0xff]   ;;  %v7562_v35 = vld [vmem:[%s11224_s1 + $0x484] ss:$16 sps:$4 sm:$0xff]  }
  0x58   :  { %4998 = vmatprep.subr.bf16.mxu0 %v7478_v36  ;;  %5531 = vmatprep.subr.bf16.mxu1 %v7481_v37  ;;  %v7565_v36 = vld [vmem:[%s11224_s1 + $0x48c] ss:$16 sps:$4 sm:$0xff]   ;;  %v7560_v37 = vld [vmem:[%s11224_s1 + $0x480] ss:$16 sps:$4 sm:$0xff]  }
  0x5b   :  { %4999 = vmatpush1.bf16.msra.mxu0 %v7476_v38  ;;  %5532 = vmatpush1.bf16.msra.mxu1 %v7479_v39  ;;  %v7563_v38 = vld [vmem:[%s11224_s1 + $0x488] ss:$16 sps:$4 sm:$0xff]   ;;  %v7568_v39 = vld [vmem:[%s11224_s1 + $0x4a4] ss:$16 sps:$4 sm:$0xff]  }
  0x5c   :  { %5000 = vmatprep.subr.bf16.mxu0 %v7484_v40  ;;  %5533 = vmatprep.subr.bf16.mxu1 %v7487_v41  ;;  %v7571_v40 = vld [vmem:[%s11224_s1 + $0x4ac] ss:$16 sps:$4 sm:$0xff]   ;;  %v7566_v41 = vld [vmem:[%s11224_s1 + $0x4a0] ss:$16 sps:$4 sm:$0xff]  }
  0x5f   :  { %5001 = vmatpush1.bf16.msra.mxu0 %v7482_v43  ;;  %5534 = vmatpush1.bf16.msra.mxu1 %v7485_v44  ;;  %v7569_v43 = vld [vmem:[%s11224_s1 + $0x4a8] ss:$16 sps:$4 sm:$0xff]   ;;  %v7574_v44 = vld [vmem:[%s11224_s1 + $0x4c4] ss:$16 sps:$4 sm:$0xff]  }
  0x60   :  { %5002 = vmatprep.subr.bf16.mxu0 %v7490_v45  ;;  %5535 = vmatprep.subr.bf16.mxu1 %v7493_v46  ;;  %v7577_v45 = vld [vmem:[%s11224_s1 + $0x4cc] ss:$16 sps:$4 sm:$0xff]   ;;  %v7572_v46 = vld [vmem:[%s11224_s1 + $0x4c0] ss:$16 sps:$4 sm:$0xff]  }
  0x63   :  { %5003 = vmatpush1.bf16.msra.mxu0 %v7488_v47  ;;  %5536 = vmatpush1.bf16.msra.mxu1 %v7491_v48  ;;  %v7575_v47 = vld [vmem:[%s11224_s1 + $0x4c8] ss:$16 sps:$4 sm:$0xff]   ;;  %v7580_v48 = vld [vmem:[%s11224_s1 + $0x4e4] ss:$16 sps:$4 sm:$0xff]  }
  0x64   :  { %5004 = vmatprep.subr.bf16.mxu0 %v7496_v50  ;;  %5537 = vmatprep.subr.bf16.mxu1 %v7499_v51  ;;  %v7583_v50 = vld [vmem:[%s11224_s1 + $0x4ec] ss:$16 sps:$4 sm:$0xff]   ;;  %v7578_v51 = vld [vmem:[%s11224_s1 + $0x4e0] ss:$16 sps:$4 sm:$0xff]  }
  0x67   :  { %5005 = vmatpush1.bf16.msra.mxu0 %v7494_v53  ;;  %5538 = vmatpush1.bf16.msra.mxu1 %v7497_v54  ;;  %v7581_v53 = vld [vmem:[%s11224_s1 + $0x4e8] ss:$16 sps:$4 sm:$0xff]   ;;  %v7586_v54 = vld [vmem:[%s11224_s1 + $0x504] ss:$16 sps:$4 sm:$0xff]  }
  0x68   :  { %5006 = vmatprep.subr.bf16.mxu0 %v7502_v55  ;;  %5539 = vmatprep.subr.bf16.mxu1 %v7505_v56  ;;  %v7589_v55 = vld [vmem:[%s11224_s1 + $0x50c] ss:$16 sps:$4 sm:$0xff]   ;;  %v7584_v56 = vld [vmem:[%s11224_s1 + $0x500] ss:$16 sps:$4 sm:$0xff]  }
  0x6b   :  { %5007 = vmatpush1.bf16.msra.mxu0 %v7500_v57  ;;  %5540 = vmatpush1.bf16.msra.mxu1 %v7503_v58  ;;  %v7587_v57 = vld [vmem:[%s11224_s1 + $0x508] ss:$16 sps:$4 sm:$0xff]   ;;  %v7592_v58 = vld [vmem:[%s11224_s1 + $0x524] ss:$16 sps:$4 sm:$0xff]  }
  0x6c   :  { %5008 = vmatprep.subr.bf16.mxu0 %v7508_v59  ;;  %5541 = vmatprep.subr.bf16.mxu1 %v7511_v60  ;;  %v7595_v59 = vld [vmem:[%s11224_s1 + $0x52c] ss:$16 sps:$4 sm:$0xff]   ;;  %v7590_v60 = vld [vmem:[%s11224_s1 + $0x520] ss:$16 sps:$4 sm:$0xff]  }
  0x6f   :  { %5009 = vmatpush1.bf16.msra.mxu0 %v7506_v61  ;;  %5542 = vmatpush1.bf16.msra.mxu1 %v7509_v62  ;;  %v7593_v61 = vld [vmem:[%s11224_s1 + $0x528] ss:$16 sps:$4 sm:$0xff]   ;;  %v7598_v62 = vld [vmem:[%s11224_s1 + $0x544] ss:$16 sps:$4 sm:$0xff]  }
  0x70   :  { %5010 = vmatprep.subr.bf16.mxu0 %v7514_v63  ;;  %5543 = vmatprep.subr.bf16.mxu1 %v7517_v0  ;;  %v7601_v63 = vld [vmem:[%s11224_s1 + $0x54c] ss:$16 sps:$4 sm:$0xff]   ;;  %v7596_v0 = vld [vmem:[%s11224_s1 + $0x540] ss:$16 sps:$4 sm:$0xff]  }
  0x73   :  { %5011 = vmatpush1.bf16.msra.mxu0 %v7512_v1  ;;  %5544 = vmatpush1.bf16.msra.mxu1 %v7515_v2  ;;  %v7599_v1 = vld [vmem:[%s11224_s1 + $0x548] ss:$16 sps:$4 sm:$0xff]   ;;  %v7604_v2 = vld [vmem:[%s11224_s1 + $0x564] ss:$16 sps:$4 sm:$0xff]  }
  0x74   :  { %5012 = vmatprep.subr.bf16.mxu0 %v7520_v3  ;;  %5545 = vmatprep.subr.bf16.mxu1 %v7523_v4  ;;  %v7607_v3 = vld [vmem:[%s11224_s1 + $0x56c] ss:$16 sps:$4 sm:$0xff]   ;;  %v7602_v4 = vld [vmem:[%s11224_s1 + $0x560] ss:$16 sps:$4 sm:$0xff]  }
  0x77   :  { %5013 = vmatpush1.bf16.msra.mxu0 %v7518_v5  ;;  %5546 = vmatpush1.bf16.msra.mxu1 %v7521_v6  ;;  %v7605_v5 = vld [vmem:[%s11224_s1 + $0x568] ss:$16 sps:$4 sm:$0xff]   ;;  %v7610_v6 = vld [vmem:[%s11224_s1 + $0x584] ss:$16 sps:$4 sm:$0xff]  }
  0x78   :  { %5014 = vmatprep.subr.bf16.mxu0 %v7526_v7  ;;  %5547 = vmatprep.subr.bf16.mxu1 %v7529_v8  ;;  %v7613_v7 = vld [vmem:[%s11224_s1 + $0x58c] ss:$16 sps:$4 sm:$0xff]   ;;  %v7608_v8 = vld [vmem:[%s11224_s1 + $0x580] ss:$16 sps:$4 sm:$0xff]  }
  0x7b   :  { %5015 = vmatpush1.bf16.msra.mxu0 %v7524_v10  ;;  %5548 = vmatpush1.bf16.msra.mxu1 %v7527_v11  ;;  %v7616_v10 = vld [vmem:[%s11224_s1 + $0x5a4] ss:$16 sps:$4 sm:$0xff]   ;;  %v7619_v11 = vld [vmem:[%s11224_s1 + $0x5ac] ss:$16 sps:$4 sm:$0xff]  }
  0x7c   :  { %5016 = vmatprep.subr.bf16.mxu0 %v7532_v12  ;;  %5549 = vmatprep.subr.bf16.mxu1 %v7535_v52  ;;  %v7614_v12 = vld [vmem:[%s11224_s1 + $0x5a0] ss:$16 sps:$4 sm:$0xff]   ;;  %v7617_v52 = vld [vmem:[%s11224_s1 + $0x5a8] ss:$16 sps:$4 sm:$0xff]  }
  0x7f   :  { %5017 = vmatpush1.bf16.msra.mxu0 %v7530_v15  ;;  %5550 = vmatpush1.bf16.msra.mxu1 %v7533_v16  ;;  %v7622_v15 = vld [vmem:[%s11224_s1 + $0x5c4] ss:$16 sps:$4 sm:$0xff]   ;;  %v7625_v16 = vld [vmem:[%s11224_s1 + $0x5cc] ss:$16 sps:$4 sm:$0xff]  }
  0x80   :  { %5027 = vmatprep.subr.bf16.mxu0 %v7538_v17  ;;  %5560 = vmatprep.subr.bf16.mxu1 %v7541_v18  ;;  %v7620_v17 = vld [vmem:[%s11224_s1 + $0x5c0] ss:$16 sps:$4 sm:$0xff]   ;;  %v7623_v18 = vld [vmem:[%s11224_s1 + $0x5c8] ss:$16 sps:$4 sm:$0xff]  }
  0x82   :  { %5019 = vmatmul.mubr.bf16.vlgmr.msra.gmra.mrb[0].mxu0 %v881_v21  ;;  %5552 = vmatmul.mubr.bf16.vlgmr.msra.gmra.mrb[0].mxu1 %v881_v21  ;;  %v7626_v21 = vld [vmem:[%s11224_s1 + $0x5e0] ss:$16 sps:$4 sm:$0xff]  }
  0x83   :  { %5028 = vmatpush1.bf16.msra.mxu0 %v7536_v20  ;;  %5561 = vmatpush1.bf16.msra.mxu1 %v7539_v22  ;;  %v7631_v20 = vld [vmem:[%s11224_s1 + $0x5ec] ss:$16 sps:$4 sm:$0xff]   ;;  %v7629_v22 = vld [vmem:[%s11224_s1 + $0x5e8] ss:$16 sps:$4 sm:$0xff]  }
  0x84   :  { %5029 = vmatprep.subr.bf16.mxu0 %v7544_v23  ;;  %5562 = vmatprep.subr.bf16.mxu1 %v7547_v24  ;;  %v7635_v23 = vld [vmem:[%s11224_s1 + $0x604] ss:$16 sps:$4 sm:$0xff]   ;;  %v7638_v24 = vld [vmem:[%s11224_s1 + $0x60c] ss:$16 sps:$4 sm:$0xff]  }
  0x85   :  { %5059 = vmatprep.mubr.bf16.mxu0 %v9044_v25  ;;  %5592 = vmatprep.mubr.bf16.mxu1 %v9044_v25 }
  0x87   :  { %5030 = vmatpush1.bf16.msra.mxu0 %v7542_v13  ;;  %5563 = vmatpush1.bf16.msra.mxu1 %v7545_v26  ;;  %v7633_v13 = vld [vmem:[%s11224_s1 + $0x600] ss:$16 sps:$4 sm:$0xff]   ;;  %v9233_v26 = vrot.slane %v9013_v14, %v8749_v49  ;;  %v884_v14 = vcombine.high %v9044_v25, %v9044_v25  ;;  %v7647_v25 = vld [vmem:[%s11224_s1 + $0x644] ss:$16 sps:$4 sm:$0xff]  }
  0x88   :  { %5031 = vmatprep.subr.bf16.mxu0 %v7550_v27  ;;  %5564 = vmatprep.subr.bf16.mxu1 %v7553_v28  ;;  %v7636_v27 = vld [vmem:[%s11224_s1 + $0x608] ss:$16 sps:$4 sm:$0xff]   ;;  %v7641_v28 = vld [vmem:[%s11224_s1 + $0x624] ss:$16 sps:$4 sm:$0xff]  }
  0x8b   :  { %5032 = vmatpush1.bf16.msra.mxu0 %v7548_v29  ;;  %5565 = vmatpush1.bf16.msra.mxu1 %v7551_v30  ;;  %v7644_v29 = vld [vmem:[%s11224_s1 + $0x62c] ss:$16 sps:$4 sm:$0xff]   ;;  %v7639_v30 = vld [vmem:[%s11224_s1 + $0x620] ss:$16 sps:$4 sm:$0xff]  }
  0x8c   :  { %5033 = vmatprep.subr.bf16.mxu0 %v7556_v31  ;;  %5566 = vmatprep.subr.bf16.mxu1 %v7559_v32  ;;  %v7642_v31 = vld [vmem:[%s11224_s1 + $0x628] ss:$16 sps:$4 sm:$0xff]   ;;  %v7650_v32 = vld [vmem:[%s11224_s1 + $0x64c] ss:$16 sps:$4 sm:$0xff]  }
  0x8f   :  { %5034 = vmatpush1.bf16.msra.mxu0 %v7554_v33  ;;  %5567 = vmatpush1.bf16.msra.mxu1 %v7557_v34  ;;  %v7645_v33 = vld [vmem:[%s11224_s1 + $0x640] ss:$16 sps:$4 sm:$0xff]   ;;  %v7648_v34 = vld [vmem:[%s11224_s1 + $0x648] ss:$16 sps:$4 sm:$0xff]  }
  0x90   :  { %5035 = vmatprep.subr.bf16.mxu0 %v7562_v35  ;;  %5568 = vmatprep.subr.bf16.mxu1 %v7565_v36  ;;  %v7653_v35 = vld [vmem:[%s11224_s1 + $0x664] ss:$16 sps:$4 sm:$0xff]   ;;  %v7656_v36 = vld [vmem:[%s11224_s1 + $0x66c] ss:$16 sps:$4 sm:$0xff]  }
  0x93   :  { %5036 = vmatpush1.bf16.msra.mxu0 %v7560_v37  ;;  %5569 = vmatpush1.bf16.msra.mxu1 %v7563_v38  ;;  %v7651_v37 = vld [vmem:[%s11224_s1 + $0x660] ss:$16 sps:$4 sm:$0xff]   ;;  %v7654_v38 = vld [vmem:[%s11224_s1 + $0x668] ss:$16 sps:$4 sm:$0xff]  }
  0x94   :  { %5037 = vmatprep.subr.bf16.mxu0 %v7568_v39  ;;  %5570 = vmatprep.subr.bf16.mxu1 %v7571_v40  ;;  %v7659_v39 = vld [vmem:[%s11224_s1 + $0x684] ss:$16 sps:$4 sm:$0xff]   ;;  %v7662_v40 = vld [vmem:[%s11224_s1 + $0x68c] ss:$16 sps:$4 sm:$0xff]  }
  0x97   :  { %5038 = vmatpush1.bf16.msra.mxu0 %v7566_v41  ;;  %5571 = vmatpush1.bf16.msra.mxu1 %v7569_v43  ;;  %v7657_v41 = vld [vmem:[%s11224_s1 + $0x680] ss:$16 sps:$4 sm:$0xff]   ;;  %v7660_v43 = vld [vmem:[%s11224_s1 + $0x688] ss:$16 sps:$4 sm:$0xff]  }
  0x98   :  { %5039 = vmatprep.subr.bf16.mxu0 %v7574_v44  ;;  %5572 = vmatprep.subr.bf16.mxu1 %v7577_v45  ;;  %v7665_v44 = vld [vmem:[%s11224_s1 + $0x6a4] ss:$16 sps:$4 sm:$0xff]   ;;  %v7668_v45 = vld [vmem:[%s11224_s1 + $0x6ac] ss:$16 sps:$4 sm:$0xff]  }
  0x9b   :  { %5040 = vmatpush1.bf16.msra.mxu0 %v7572_v46  ;;  %5573 = vmatpush1.bf16.msra.mxu1 %v7575_v47  ;;  %v7663_v46 = vld [vmem:[%s11224_s1 + $0x6a0] ss:$16 sps:$4 sm:$0xff]   ;;  %v7666_v47 = vld [vmem:[%s11224_s1 + $0x6a8] ss:$16 sps:$4 sm:$0xff]  }
  0x9c   :  { %5041 = vmatprep.subr.bf16.mxu0 %v7580_v48  ;;  %5574 = vmatprep.subr.bf16.mxu1 %v7583_v50  ;;  %v7671_v48 = vld [vmem:[%s11224_s1 + $0x6c4] ss:$16 sps:$4 sm:$0xff]   ;;  %v7674_v50 = vld [vmem:[%s11224_s1 + $0x6cc] ss:$16 sps:$4 sm:$0xff]  }
  0x9f   :  { %5042 = vmatpush1.bf16.msra.mxu0 %v7578_v51  ;;  %5575 = vmatpush1.bf16.msra.mxu1 %v7581_v53  ;;  %v7669_v51 = vld [vmem:[%s11224_s1 + $0x6c0] ss:$16 sps:$4 sm:$0xff]   ;;  %v7672_v53 = vld [vmem:[%s11224_s1 + $0x6c8] ss:$16 sps:$4 sm:$0xff]  }
  0xa0   :  { %5043 = vmatprep.subr.bf16.mxu0 %v7586_v54  ;;  %5576 = vmatprep.subr.bf16.mxu1 %v7589_v55  ;;  %v7677_v54 = vld [vmem:[%s11224_s1 + $0x6e4] ss:$16 sps:$4 sm:$0xff]   ;;  %v7680_v55 = vld [vmem:[%s11224_s1 + $0x6ec] ss:$16 sps:$4 sm:$0xff]  }
  0xa3   :  { %5044 = vmatpush1.bf16.msra.mxu0 %v7584_v56  ;;  %5577 = vmatpush1.bf16.msra.mxu1 %v7587_v57  ;;  %v7675_v56 = vld [vmem:[%s11224_s1 + $0x6e0] ss:$16 sps:$4 sm:$0xff]   ;;  %v7678_v57 = vld [vmem:[%s11224_s1 + $0x6e8] ss:$16 sps:$4 sm:$0xff]  }
  0xa4   :  { %5045 = vmatprep.subr.bf16.mxu0 %v7592_v58  ;;  %5578 = vmatprep.subr.bf16.mxu1 %v7595_v59  ;;  %v7683_v58 = vld [vmem:[%s11224_s1 + $0x704] ss:$16 sps:$4 sm:$0xff]   ;;  %v7686_v59 = vld [vmem:[%s11224_s1 + $0x70c] ss:$16 sps:$4 sm:$0xff]  }
  0xa7   :  { %5046 = vmatpush1.bf16.msra.mxu0 %v7590_v60  ;;  %5579 = vmatpush1.bf16.msra.mxu1 %v7593_v61  ;;  %v7681_v60 = vld [vmem:[%s11224_s1 + $0x700] ss:$16 sps:$4 sm:$0xff]   ;;  %v7684_v61 = vld [vmem:[%s11224_s1 + $0x708] ss:$16 sps:$4 sm:$0xff]  }
  0xa8   :  { %5047 = vmatprep.subr.bf16.mxu0 %v7598_v62  ;;  %5580 = vmatprep.subr.bf16.mxu1 %v7601_v63  ;;  %v7689_v62 = vld [vmem:[%s11224_s1 + $0x724] ss:$16 sps:$4 sm:$0xff]   ;;  %v7692_v63 = vld [vmem:[%s11224_s1 + $0x72c] ss:$16 sps:$4 sm:$0xff]  }
  0xab   :  { %5048 = vmatpush1.bf16.msra.mxu0 %v7596_v0  ;;  %5581 = vmatpush1.bf16.msra.mxu1 %v7599_v1  ;;  %v7687_v0 = vld [vmem:[%s11224_s1 + $0x720] ss:$16 sps:$4 sm:$0xff]   ;;  %v7690_v1 = vld [vmem:[%s11224_s1 + $0x728] ss:$16 sps:$4 sm:$0xff]  }
  0xac   :  { %5049 = vmatprep.subr.bf16.mxu0 %v7604_v2  ;;  %5582 = vmatprep.subr.bf16.mxu1 %v7607_v3  ;;  %v7695_v2 = vld [vmem:[%s11224_s1 + $0x744] ss:$16 sps:$4 sm:$0xff]   ;;  %v7698_v3 = vld [vmem:[%s11224_s1 + $0x74c] ss:$16 sps:$4 sm:$0xff]  }
  0xaf   :  { %5050 = vmatpush1.bf16.msra.mxu0 %v7602_v4  ;;  %5583 = vmatpush1.bf16.msra.mxu1 %v7605_v5  ;;  %v7693_v4 = vld [vmem:[%s11224_s1 + $0x740] ss:$16 sps:$4 sm:$0xff]   ;;  %v7696_v5 = vld [vmem:[%s11224_s1 + $0x748] ss:$16 sps:$4 sm:$0xff]  }
  0xb0   :  { %5051 = vmatprep.subr.bf16.mxu0 %v7610_v6  ;;  %5584 = vmatprep.subr.bf16.mxu1 %v7613_v7  ;;  %v7701_v6 = vld [vmem:[%s11224_s1 + $0x764] ss:$16 sps:$4 sm:$0xff]   ;;  %v7704_v7 = vld [vmem:[%s11224_s1 + $0x76c] ss:$16 sps:$4 sm:$0xff]  }
  0xb3   :  { %5052 = vmatpush1.bf16.msra.mxu0 %v7608_v8  ;;  %5585 = vmatpush1.bf16.msra.mxu1 %v7611_v9  ;;  %v7699_v8 = vld [vmem:[%s11224_s1 + $0x760] ss:$16 sps:$4 sm:$0xff]   ;;  %v7702_v9 = vld [vmem:[%s11224_s1 + $0x768] ss:$16 sps:$4 sm:$0xff]  }
  0xb4   :  { %5053 = vmatprep.subr.bf16.mxu0 %v7616_v10  ;;  %5586 = vmatprep.subr.bf16.mxu1 %v7619_v11  ;;  %v7707_v10 = vld [vmem:[%s11224_s1 + $0x784] ss:$16 sps:$4 sm:$0xff]   ;;  %v7710_v11 = vld [vmem:[%s11224_s1 + $0x78c] ss:$16 sps:$4 sm:$0xff]  }
  0xb7   :  { %5054 = vmatpush1.bf16.msra.mxu0 %v7614_v12  ;;  %5587 = vmatpush1.bf16.msra.mxu1 %v7617_v52  ;;  %v7705_v12 = vld [vmem:[%s11224_s1 + $0x780] ss:$16 sps:$4 sm:$0xff]   ;;  %v7708_v52 = vld [vmem:[%s11224_s1 + $0x788] ss:$16 sps:$4 sm:$0xff]  }
  0xb8   :  { %5055 = vmatprep.subr.bf16.mxu0 %v7622_v15  ;;  %5588 = vmatprep.subr.bf16.mxu1 %v7625_v16  ;;  %v7713_v15 = vld [vmem:[%s11224_s1 + $0x7a4] ss:$16 sps:$4 sm:$0xff]   ;;  %v7716_v16 = vld [vmem:[%s11224_s1 + $0x7ac] ss:$16 sps:$4 sm:$0xff]  }
  0xbb   :  { %5056 = vmatpush1.bf16.msra.mxu0 %v7620_v17  ;;  %5589 = vmatpush1.bf16.msra.mxu1 %v7623_v18  ;;  %v7711_v17 = vld [vmem:[%s11224_s1 + $0x7a0] ss:$16 sps:$4 sm:$0xff]   ;;  %v7714_v18 = vld [vmem:[%s11224_s1 + $0x7a8] ss:$16 sps:$4 sm:$0xff]  }
  0xbc   :  { %5057 = vmatprep.subr.bf16.mxu0 %v7628_v19  ;;  %5590 = vmatprep.subr.bf16.mxu1 %v7631_v20  ;;  %v7719_v19 = vld [vmem:[%s11224_s1 + $0x7c4] ss:$16 sps:$4 sm:$0xff]   ;;  %v7722_v20 = vld [vmem:[%s11224_s1 + $0x7cc] ss:$16 sps:$4 sm:$0xff]  }
  0xbf   :  { %5058 = vmatpush1.bf16.msra.mxu0 %v7626_v21  ;;  %5591 = vmatpush1.bf16.msra.mxu1 %v7629_v22  ;;  %v9407_v21 = vld.sshfl [vmem:[%s11223_s0 + $0x8] sm:$0xff pattern:$0x75316420]  ;;  %v7717_v22 = vld [vmem:[%s11224_s1 + $0x7c0] ss:$16 sps:$4 sm:$0xff]  }
  0xc0   :  { %5068 = vmatprep.subr.bf16.mxu0 %v7635_v23  ;;  %5601 = vmatprep.subr.bf16.mxu1 %v7638_v24  ;;  %v7720_v23 = vld [vmem:[%s11224_s1 + $0x7c8] ss:$16 sps:$4 sm:$0xff]   ;;  %v7725_v24 = vld [vmem:[%s11224_s1 + $0x7e4] ss:$16 sps:$4 sm:$0xff]  }
  0xc2   :  { %5060 = vmatmul.mubr.bf16.vlgmr.msra.gmra.mrb[0].mxu0 %v9233_v26  ;;  %5593 = vmatmul.mubr.bf16.vlgmr.msra.gmra.mrb[0].mxu1 %v9233_v26 }
  0xc3   :  { %5069 = vmatpush1.bf16.msra.mxu0 %v7633_v13  ;;  %5602 = vmatpush1.bf16.msra.mxu1 %v7636_v27  ;;  %v7728_v13 = vld [vmem:[%s11224_s1 + $0x7ec] ss:$16 sps:$4 sm:$0xff]   ;;  %v7723_v27 = vld [vmem:[%s11224_s1 + $0x7e0] ss:$16 sps:$4 sm:$0xff]  }
  0xc4   :  { %5070 = vmatprep.subr.bf16.mxu0 %v7641_v28  ;;  %5603 = vmatprep.subr.bf16.mxu1 %v7644_v29  ;;  %v7726_v28 = vld [vmem:[%s11224_s1 + $0x7e8] ss:$16 sps:$4 sm:$0xff]   ;;  %v7731_v29 = vld [vmem:[%s11224_s1 + $0x804] ss:$16 sps:$4 sm:$0xff]  }
  0xc5   :  { %5100 = vmatprep.mubr.bf16.mxu0 %v884_v14  ;;  %5633 = vmatprep.mubr.bf16.mxu1 %v884_v14  ;;  %v7734_v14 = vld [vmem:[%s11224_s1 + $0x80c] ss:$16 sps:$4 sm:$0xff]  }
  0xc7   :  { %5071 = vmatpush1.bf16.msra.mxu0 %v7639_v30  ;;  %5604 = vmatpush1.bf16.msra.mxu1 %v7642_v31  ;;  %v900_v30 = vcombine.high %v9407_v21, %v9407_v21  ;;  %v882_v31 = vcombine.high %v9233_v26, %v9233_v26  ;;  %v7740_v26 = vld [vmem:[%s11224_s1 + $0x82c] ss:$16 sps:$4 sm:$0xff]  }
  0xc8   :  { %5072 = vmatprep.subr.bf16.mxu0 %v7647_v25  ;;  %5605 = vmatprep.subr.bf16.mxu1 %v7650_v32  ;;  %v7729_v25 = vld [vmem:[%s11224_s1 + $0x800] ss:$16 sps:$4 sm:$0xff]   ;;  %v7732_v32 = vld [vmem:[%s11224_s1 + $0x808] ss:$16 sps:$4 sm:$0xff]  }
  0xcb   :  { %5073 = vmatpush1.bf16.msra.mxu0 %v7645_v33  ;;  %5606 = vmatpush1.bf16.msra.mxu1 %v7648_v34  ;;  %v7737_v33 = vld [vmem:[%s11224_s1 + $0x824] ss:$16 sps:$4 sm:$0xff]   ;;  %v9450_v34 = vrot.slane %v900_v30, %v8749_v49 }
  0xcc   :  { %5074 = vmatprep.subr.bf16.mxu0 %v7653_v35  ;;  %5607 = vmatprep.subr.bf16.mxu1 %v7656_v36  ;;  %v7735_v35 = vld [vmem:[%s11224_s1 + $0x820] ss:$16 sps:$4 sm:$0xff]   ;;  %v7738_v36 = vld [vmem:[%s11224_s1 + $0x828] ss:$16 sps:$4 sm:$0xff]   ;;  %v7821_v30 = vld [vmem:[%s11224_s1 + $0x9e4] ss:$16 sps:$4 sm:$0xff]  }
  0xcf   :  { %5075 = vmatpush1.bf16.msra.mxu0 %v7651_v37  ;;  %5608 = vmatpush1.bf16.msra.mxu1 %v7654_v38  ;;  %v7743_v37 = vld [vmem:[%s11224_s1 + $0x844] ss:$16 sps:$4 sm:$0xff]   ;;  %v7746_v38 = vld [vmem:[%s11224_s1 + $0x84c] ss:$16 sps:$4 sm:$0xff]  }
  0xd0   :  { %5076 = vmatprep.subr.bf16.mxu0 %v7659_v39  ;;  %5609 = vmatprep.subr.bf16.mxu1 %v7662_v40  ;;  %v7741_v39 = vld [vmem:[%s11224_s1 + $0x840] ss:$16 sps:$4 sm:$0xff]   ;;  %v7744_v40 = vld [vmem:[%s11224_s1 + $0x848] ss:$16 sps:$4 sm:$0xff]  }
  0xd3   :  { %5077 = vmatpush1.bf16.msra.mxu0 %v7657_v41  ;;  %5610 = vmatpush1.bf16.msra.mxu1 %v7660_v43  ;;  %v7749_v41 = vld [vmem:[%s11224_s1 + $0x864] ss:$16 sps:$4 sm:$0xff]   ;;  %v7752_v43 = vld [vmem:[%s11224_s1 + $0x86c] ss:$16 sps:$4 sm:$0xff]  }
  0xd4   :  { %5078 = vmatprep.subr.bf16.mxu0 %v7665_v44  ;;  %5611 = vmatprep.subr.bf16.mxu1 %v7668_v45  ;;  %v7747_v44 = vld [vmem:[%s11224_s1 + $0x860] ss:$16 sps:$4 sm:$0xff]   ;;  %v7750_v45 = vld [vmem:[%s11224_s1 + $0x868] ss:$16 sps:$4 sm:$0xff]  }
  0xd7   :  { %5079 = vmatpush1.bf16.msra.mxu0 %v7663_v46  ;;  %5612 = vmatpush1.bf16.msra.mxu1 %v7666_v47  ;;  %v7755_v46 = vld [vmem:[%s11224_s1 + $0x884] ss:$16 sps:$4 sm:$0xff]   ;;  %v7758_v47 = vld [vmem:[%s11224_s1 + $0x88c] ss:$16 sps:$4 sm:$0xff]  }
  0xd8   :  { %5080 = vmatprep.subr.bf16.mxu0 %v7671_v48  ;;  %5613 = vmatprep.subr.bf16.mxu1 %v7674_v50  ;;  %v7753_v48 = vld [vmem:[%s11224_s1 + $0x880] ss:$16 sps:$4 sm:$0xff]   ;;  %v7756_v50 = vld [vmem:[%s11224_s1 + $0x888] ss:$16 sps:$4 sm:$0xff]  }
  0xdb   :  { %5081 = vmatpush1.bf16.msra.mxu0 %v7669_v51  ;;  %5614 = vmatpush1.bf16.msra.mxu1 %v7672_v53  ;;  %v7761_v51 = vld [vmem:[%s11224_s1 + $0x8a4] ss:$16 sps:$4 sm:$0xff]   ;;  %v7764_v53 = vld [vmem:[%s11224_s1 + $0x8ac] ss:$16 sps:$4 sm:$0xff]  }
  0xdc   :  { %5082 = vmatprep.subr.bf16.mxu0 %v7677_v54  ;;  %5615 = vmatprep.subr.bf16.mxu1 %v7680_v55  ;;  %v7759_v54 = vld [vmem:[%s11224_s1 + $0x8a0] ss:$16 sps:$4 sm:$0xff]   ;;  %v7762_v55 = vld [vmem:[%s11224_s1 + $0x8a8] ss:$16 sps:$4 sm:$0xff]  }
  0xdf   :  { %5083 = vmatpush1.bf16.msra.mxu0 %v7675_v56  ;;  %5616 = vmatpush1.bf16.msra.mxu1 %v7678_v57  ;;  %v7767_v56 = vld [vmem:[%s11224_s1 + $0x8c4] ss:$16 sps:$4 sm:$0xff]   ;;  %v7770_v57 = vld [vmem:[%s11224_s1 + $0x8cc] ss:$16 sps:$4 sm:$0xff]  }
  0xe0   :  { %5084 = vmatprep.subr.bf16.mxu0 %v7683_v58  ;;  %5617 = vmatprep.subr.bf16.mxu1 %v7686_v59  ;;  %v7765_v58 = vld [vmem:[%s11224_s1 + $0x8c0] ss:$16 sps:$4 sm:$0xff]   ;;  %v7768_v59 = vld [vmem:[%s11224_s1 + $0x8c8] ss:$16 sps:$4 sm:$0xff]  }
  0xe3   :  { %5085 = vmatpush1.bf16.msra.mxu0 %v7681_v60  ;;  %5618 = vmatpush1.bf16.msra.mxu1 %v7684_v61  ;;  %v7773_v60 = vld [vmem:[%s11224_s1 + $0x8e4] ss:$16 sps:$4 sm:$0xff]   ;;  %v7776_v61 = vld [vmem:[%s11224_s1 + $0x8ec] ss:$16 sps:$4 sm:$0xff]  }
  0xe4   :  { %5086 = vmatprep.subr.bf16.mxu0 %v7689_v62  ;;  %5619 = vmatprep.subr.bf16.mxu1 %v7692_v63  ;;  %v7771_v62 = vld [vmem:[%s11224_s1 + $0x8e0] ss:$16 sps:$4 sm:$0xff]   ;;  %v7774_v63 = vld [vmem:[%s11224_s1 + $0x8e8] ss:$16 sps:$4 sm:$0xff]  }
  0xe7   :  { %5087 = vmatpush1.bf16.msra.mxu0 %v7687_v0  ;;  %5620 = vmatpush1.bf16.msra.mxu1 %v7690_v1  ;;  %v7779_v0 = vld [vmem:[%s11224_s1 + $0x904] ss:$16 sps:$4 sm:$0xff]   ;;  %v7782_v1 = vld [vmem:[%s11224_s1 + $0x90c] ss:$16 sps:$4 sm:$0xff]  }
  0xe8   :  { %5088 = vmatprep.subr.bf16.mxu0 %v7695_v2  ;;  %5621 = vmatprep.subr.bf16.mxu1 %v7698_v3  ;;  %v7777_v2 = vld [vmem:[%s11224_s1 + $0x900] ss:$16 sps:$4 sm:$0xff]   ;;  %v7780_v3 = vld [vmem:[%s11224_s1 + $0x908] ss:$16 sps:$4 sm:$0xff]  }
  0xeb   :  { %5089 = vmatpush1.bf16.msra.mxu0 %v7693_v4  ;;  %5622 = vmatpush1.bf16.msra.mxu1 %v7696_v5  ;;  %v7785_v4 = vld [vmem:[%s11224_s1 + $0x924] ss:$16 sps:$4 sm:$0xff]   ;;  %v7788_v5 = vld [vmem:[%s11224_s1 + $0x92c] ss:$16 sps:$4 sm:$0xff]  }
  0xec   :  { %5090 = vmatprep.subr.bf16.mxu0 %v7701_v6  ;;  %5623 = vmatprep.subr.bf16.mxu1 %v7704_v7  ;;  %v7783_v6 = vld [vmem:[%s11224_s1 + $0x920] ss:$16 sps:$4 sm:$0xff]   ;;  %v7786_v7 = vld [vmem:[%s11224_s1 + $0x928] ss:$16 sps:$4 sm:$0xff]  }
  0xef   :  { %5091 = vmatpush1.bf16.msra.mxu0 %v7699_v8  ;;  %5624 = vmatpush1.bf16.msra.mxu1 %v7702_v9  ;;  %v7791_v8 = vld [vmem:[%s11224_s1 + $0x944] ss:$16 sps:$4 sm:$0xff]   ;;  %v7794_v9 = vld [vmem:[%s11224_s1 + $0x94c] ss:$16 sps:$4 sm:$0xff]  }
  0xf0   :  { %5092 = vmatprep.subr.bf16.mxu0 %v7707_v10  ;;  %5625 = vmatprep.subr.bf16.mxu1 %v7710_v11  ;;  %v7789_v10 = vld [vmem:[%s11224_s1 + $0x940] ss:$16 sps:$4 sm:$0xff]   ;;  %v7792_v11 = vld [vmem:[%s11224_s1 + $0x948] ss:$16 sps:$4 sm:$0xff]  }
  0xf3   :  { %5093 = vmatpush1.bf16.msra.mxu0 %v7705_v12  ;;  %5626 = vmatpush1.bf16.msra.mxu1 %v7708_v52  ;;  %v7797_v12 = vld [vmem:[%s11224_s1 + $0x964] ss:$16 sps:$4 sm:$0xff]   ;;  %v7800_v52 = vld [vmem:[%s11224_s1 + $0x96c] ss:$16 sps:$4 sm:$0xff]  }
  0xf4   :  { %5094 = vmatprep.subr.bf16.mxu0 %v7713_v15  ;;  %5627 = vmatprep.subr.bf16.mxu1 %v7716_v16  ;;  %v7795_v15 = vld [vmem:[%s11224_s1 + $0x960] ss:$16 sps:$4 sm:$0xff]   ;;  %v7798_v16 = vld [vmem:[%s11224_s1 + $0x968] ss:$16 sps:$4 sm:$0xff]  }
  0xf7   :  { %5095 = vmatpush1.bf16.msra.mxu0 %v7711_v17  ;;  %5628 = vmatpush1.bf16.msra.mxu1 %v7714_v18  ;;  %v7803_v17 = vld [vmem:[%s11224_s1 + $0x984] ss:$16 sps:$4 sm:$0xff]   ;;  %v7806_v18 = vld [vmem:[%s11224_s1 + $0x98c] ss:$16 sps:$4 sm:$0xff]  }
  0xf8   :  { %5096 = vmatprep.subr.bf16.mxu0 %v7719_v19  ;;  %5629 = vmatprep.subr.bf16.mxu1 %v7722_v20  ;;  %v7801_v19 = vld [vmem:[%s11224_s1 + $0x980] ss:$16 sps:$4 sm:$0xff]   ;;  %v7804_v20 = vld [vmem:[%s11224_s1 + $0x988] ss:$16 sps:$4 sm:$0xff]  }
  0xfb   :  { %5097 = vmatpush1.bf16.msra.mxu0 %v7717_v22  ;;  %5630 = vmatpush1.bf16.msra.mxu1 %v7720_v23  ;;  %v7809_v22 = vld [vmem:[%s11224_s1 + $0x9a4] ss:$16 sps:$4 sm:$0xff]   ;;  %v7812_v23 = vld [vmem:[%s11224_s1 + $0x9ac] ss:$16 sps:$4 sm:$0xff]  }
  0xfc   :  { %5098 = vmatprep.subr.bf16.mxu0 %v7725_v24  ;;  %5631 = vmatprep.subr.bf16.mxu1 %v7728_v13  ;;  %v7807_v24 = vld [vmem:[%s11224_s1 + $0x9a0] ss:$16 sps:$4 sm:$0xff]   ;;  %v7810_v13 = vld [vmem:[%s11224_s1 + $0x9a8] ss:$16 sps:$4 sm:$0xff]  }
  0xff   :  { %5099 = vmatpush1.bf16.msra.mxu0 %v7723_v27  ;;  %5632 = vmatpush1.bf16.msra.mxu1 %v7726_v28  ;;  %v7815_v27 = vld [vmem:[%s11224_s1 + $0x9c4] ss:$16 sps:$4 sm:$0xff]   ;;  %v7818_v28 = vld [vmem:[%s11224_s1 + $0x9cc] ss:$16 sps:$4 sm:$0xff]  }
 0x100   :  { %5109 = vmatprep.subr.bf16.mxu0 %v7731_v29  ;;  %5642 = vmatprep.subr.bf16.mxu1 %v7734_v14  ;;  %v7813_v29 = vld [vmem:[%s11224_s1 + $0x9c0] ss:$16 sps:$4 sm:$0xff]   ;;  %v7816_v14 = vld [vmem:[%s11224_s1 + $0x9c8] ss:$16 sps:$4 sm:$0xff]  }
 0x102   :  { %5101 = vmatmul.mubr.bf16.vlgmr.msra.gmra.mrb[0].mxu0 %v882_v31  ;;  %5634 = vmatmul.mubr.bf16.vlgmr.msra.gmra.mrb[0].mxu1 %v882_v31  ;;  %v7824_v31 = vld [vmem:[%s11224_s1 + $0x9ec] ss:$16 sps:$4 sm:$0xff]  }
 0x103   :  { %5110 = vmatpush1.bf16.msra.mxu0 %v7729_v25  ;;  %5643 = vmatpush1.bf16.msra.mxu1 %v7732_v32  ;;  %v7819_v25 = vld [vmem:[%s11224_s1 + $0x9e0] ss:$16 sps:$4 sm:$0xff]   ;;  %v7822_v32 = vld [vmem:[%s11224_s1 + $0x9e8] ss:$16 sps:$4 sm:$0xff]  }
 0x104   :  { %5111 = vmatprep.subr.bf16.mxu0 %v7737_v33  ;;  %5644 = vmatprep.subr.bf16.mxu1 %v7740_v26  ;;  %v7827_v33 = vld [vmem:[%s11224_s1 + $0xa04] ss:$16 sps:$4 sm:$0xff]   ;;  %v7830_v26 = vld [vmem:[%s11224_s1 + $0xa0c] ss:$16 sps:$4 sm:$0xff]  }
 0x105   :  { %5141 = vmatprep.mubr.bf16.mxu0 %v9450_v34  ;;  %5674 = vmatprep.mubr.bf16.mxu1 %v9450_v34 }
 0x107   :  { %5112 = vmatpush1.bf16.msra.mxu0 %v7735_v35  ;;  %5645 = vmatpush1.bf16.msra.mxu1 %v7738_v36  ;;  %v9636_v35 = vrot.slane %v9407_v21, %v8749_v49  ;;  %v7825_v36 = vld [vmem:[%s11224_s1 + $0xa00] ss:$16 sps:$4 sm:$0xff]   ;;  %v7836_v21 = vld [vmem:[%s11224_s1 + $0xa2c] ss:$16 sps:$4 sm:$0xff]  }
 0x108   :  { %5113 = vmatprep.subr.bf16.mxu0 %v7743_v37  ;;  %5646 = vmatprep.subr.bf16.mxu1 %v7746_v38  ;;  %v7828_v37 = vld [vmem:[%s11224_s1 + $0xa08] ss:$16 sps:$4 sm:$0xff]   ;;  %v7833_v38 = vld [vmem:[%s11224_s1 + $0xa24] ss:$16 sps:$4 sm:$0xff]  }
 0x10b   :  { %5114 = vmatpush1.bf16.msra.mxu0 %v7741_v39  ;;  %5647 = vmatpush1.bf16.msra.mxu1 %v7744_v40  ;;  %v932_v39 = vcombine.high %v9450_v34, %v9450_v34  ;;  %v7831_v40 = vld [vmem:[%s11224_s1 + $0xa20] ss:$16 sps:$4 sm:$0xff]   ;;  %v7839_v34 = vld [vmem:[%s11224_s1 + $0xa44] ss:$16 sps:$4 sm:$0xff]  }
 0x10c   :  { %5115 = vmatprep.subr.bf16.mxu0 %v7749_v41  ;;  %5648 = vmatprep.subr.bf16.mxu1 %v7752_v43  ;;  %v7834_v41 = vld [vmem:[%s11224_s1 + $0xa28] ss:$16 sps:$4 sm:$0xff]   ;;  %v7842_v43 = vld [vmem:[%s11224_s1 + $0xa4c] ss:$16 sps:$4 sm:$0xff]  }
 0x10f   :  { %5116 = vmatpush1.bf16.msra.mxu0 %v7747_v44  ;;  %5649 = vmatpush1.bf16.msra.mxu1 %v7750_v45  ;;  %v7837_v44 = vld [vmem:[%s11224_s1 + $0xa40] ss:$16 sps:$4 sm:$0xff]   ;;  %v7840_v45 = vld [vmem:[%s11224_s1 + $0xa48] ss:$16 sps:$4 sm:$0xff]  }
 0x110   :  { %5117 = vmatprep.subr.bf16.mxu0 %v7755_v46  ;;  %5650 = vmatprep.subr.bf16.mxu1 %v7758_v47  ;;  %v7845_v46 = vld [vmem:[%s11224_s1 + $0xa64] ss:$16 sps:$4 sm:$0xff]   ;;  %v7848_v47 = vld [vmem:[%s11224_s1 + $0xa6c] ss:$16 sps:$4 sm:$0xff]  }
 0x113   :  { %5118 = vmatpush1.bf16.msra.mxu0 %v7753_v48  ;;  %5651 = vmatpush1.bf16.msra.mxu1 %v7756_v50  ;;  %v7843_v48 = vld [vmem:[%s11224_s1 + $0xa60] ss:$16 sps:$4 sm:$0xff]   ;;  %v7846_v50 = vld [vmem:[%s11224_s1 + $0xa68] ss:$16 sps:$4 sm:$0xff]  }
 0x114   :  { %5119 = vmatprep.subr.bf16.mxu0 %v7761_v51  ;;  %5652 = vmatprep.subr.bf16.mxu1 %v7764_v53  ;;  %v7851_v51 = vld [vmem:[%s11224_s1 + $0xa84] ss:$16 sps:$4 sm:$0xff]   ;;  %v7854_v53 = vld [vmem:[%s11224_s1 + $0xa8c] ss:$16 sps:$4 sm:$0xff]  }
 0x117   :  { %5120 = vmatpush1.bf16.msra.mxu0 %v7759_v54  ;;  %5653 = vmatpush1.bf16.msra.mxu1 %v7762_v55  ;;  %v7849_v54 = vld [vmem:[%s11224_s1 + $0xa80] ss:$16 sps:$4 sm:$0xff]   ;;  %v7852_v55 = vld [vmem:[%s11224_s1 + $0xa88] ss:$16 sps:$4 sm:$0xff]  }
 0x118   :  { %5121 = vmatprep.subr.bf16.mxu0 %v7767_v56  ;;  %5654 = vmatprep.subr.bf16.mxu1 %v7770_v57  ;;  %v7857_v56 = vld [vmem:[%s11224_s1 + $0xaa4] ss:$16 sps:$4 sm:$0xff]   ;;  %v7860_v57 = vld [vmem:[%s11224_s1 + $0xaac] ss:$16 sps:$4 sm:$0xff]  }
 0x11b   :  { %5122 = vmatpush1.bf16.msra.mxu0 %v7765_v58  ;;  %5655 = vmatpush1.bf16.msra.mxu1 %v7768_v59  ;;  %v7855_v58 = vld [vmem:[%s11224_s1 + $0xaa0] ss:$16 sps:$4 sm:$0xff]   ;;  %v7858_v59 = vld [vmem:[%s11224_s1 + $0xaa8] ss:$16 sps:$4 sm:$0xff]  }
 0x11c   :  { %5123 = vmatprep.subr.bf16.mxu0 %v7773_v60  ;;  %5656 = vmatprep.subr.bf16.mxu1 %v7776_v61  ;;  %v7863_v60 = vld [vmem:[%s11224_s1 + $0xac4] ss:$16 sps:$4 sm:$0xff]   ;;  %v7866_v61 = vld [vmem:[%s11224_s1 + $0xacc] ss:$16 sps:$4 sm:$0xff]  }
 0x11f   :  { %5124 = vmatpush1.bf16.msra.mxu0 %v7771_v62  ;;  %5657 = vmatpush1.bf16.msra.mxu1 %v7774_v63  ;;  %v7861_v62 = vld [vmem:[%s11224_s1 + $0xac0] ss:$16 sps:$4 sm:$0xff]   ;;  %v7864_v63 = vld [vmem:[%s11224_s1 + $0xac8] ss:$16 sps:$4 sm:$0xff]  }
 0x120   :  { %5125 = vmatprep.subr.bf16.mxu0 %v7779_v0  ;;  %5658 = vmatprep.subr.bf16.mxu1 %v7782_v1  ;;  %v7869_v0 = vld [vmem:[%s11224_s1 + $0xae4] ss:$16 sps:$4 sm:$0xff]   ;;  %v7872_v1 = vld [vmem:[%s11224_s1 + $0xaec] ss:$16 sps:$4 sm:$0xff]  }
 0x123   :  { %5126 = vmatpush1.bf16.msra.mxu0 %v7777_v2  ;;  %5659 = vmatpush1.bf16.msra.mxu1 %v7780_v3  ;;  %v7867_v2 = vld [vmem:[%s11224_s1 + $0xae0] ss:$16 sps:$4 sm:$0xff]   ;;  %v7870_v3 = vld [vmem:[%s11224_s1 + $0xae8] ss:$16 sps:$4 sm:$0xff]  }
 0x124   :  { %5127 = vmatprep.subr.bf16.mxu0 %v7785_v4  ;;  %5660 = vmatprep.subr.bf16.mxu1 %v7788_v5  ;;  %v7875_v4 = vld [vmem:[%s11224_s1 + $0xb04] ss:$16 sps:$4 sm:$0xff]   ;;  %v7878_v5 = vld [vmem:[%s11224_s1 + $0xb0c] ss:$16 sps:$4 sm:$0xff]  }
 0x127   :  { %5128 = vmatpush1.bf16.msra.mxu0 %v7783_v6  ;;  %5661 = vmatpush1.bf16.msra.mxu1 %v7786_v7  ;;  %v7873_v6 = vld [vmem:[%s11224_s1 + $0xb00] ss:$16 sps:$4 sm:$0xff]   ;;  %v7876_v7 = vld [vmem:[%s11224_s1 + $0xb08] ss:$16 sps:$4 sm:$0xff]  }
 0x128   :  { %5129 = vmatprep.subr.bf16.mxu0 %v7791_v8  ;;  %5662 = vmatprep.subr.bf16.mxu1 %v7794_v9  ;;  %v7881_v8 = vld [vmem:[%s11224_s1 + $0xb24] ss:$16 sps:$4 sm:$0xff]   ;;  %v7884_v9 = vld [vmem:[%s11224_s1 + $0xb2c] ss:$16 sps:$4 sm:$0xff]  }
 0x12b   :  { %5130 = vmatpush1.bf16.msra.mxu0 %v7789_v10  ;;  %5663 = vmatpush1.bf16.msra.mxu1 %v7792_v11  ;;  %v7879_v10 = vld [vmem:[%s11224_s1 + $0xb20] ss:$16 sps:$4 sm:$0xff]   ;;  %v7882_v11 = vld [vmem:[%s11224_s1 + $0xb28] ss:$16 sps:$4 sm:$0xff]  }
 0x12c   :  { %5131 = vmatprep.subr.bf16.mxu0 %v7797_v12  ;;  %5664 = vmatprep.subr.bf16.mxu1 %v7800_v52  ;;  %v7887_v12 = vld [vmem:[%s11224_s1 + $0xb44] ss:$16 sps:$4 sm:$0xff]   ;;  %v7890_v52 = vld [vmem:[%s11224_s1 + $0xb4c] ss:$16 sps:$4 sm:$0xff]  }
 0x12f   :  { %5132 = vmatpush1.bf16.msra.mxu0 %v7795_v15  ;;  %5665 = vmatpush1.bf16.msra.mxu1 %v7798_v16  ;;  %v7885_v15 = vld [vmem:[%s11224_s1 + $0xb40] ss:$16 sps:$4 sm:$0xff]   ;;  %v7888_v16 = vld [vmem:[%s11224_s1 + $0xb48] ss:$16 sps:$4 sm:$0xff]  }
 0x130   :  { %5133 = vmatprep.subr.bf16.mxu0 %v7803_v17  ;;  %5666 = vmatprep.subr.bf16.mxu1 %v7806_v18  ;;  %v7893_v17 = vld [vmem:[%s11224_s1 + $0xb64] ss:$16 sps:$4 sm:$0xff]   ;;  %v7896_v18 = vld [vmem:[%s11224_s1 + $0xb6c] ss:$16 sps:$4 sm:$0xff]  }
 0x133   :  { %5134 = vmatpush1.bf16.msra.mxu0 %v7801_v19  ;;  %5667 = vmatpush1.bf16.msra.mxu1 %v7804_v20  ;;  %v7891_v19 = vld [vmem:[%s11224_s1 + $0xb60] ss:$16 sps:$4 sm:$0xff]   ;;  %v7894_v20 = vld [vmem:[%s11224_s1 + $0xb68] ss:$16 sps:$4 sm:$0xff]  }
 0x134   :  { %5135 = vmatprep.subr.bf16.mxu0 %v7809_v22  ;;  %5668 = vmatprep.subr.bf16.mxu1 %v7812_v23  ;;  %v7899_v22 = vld [vmem:[%s11224_s1 + $0xb84] ss:$16 sps:$4 sm:$0xff]   ;;  %v7902_v23 = vld [vmem:[%s11224_s1 + $0xb8c] ss:$16 sps:$4 sm:$0xff]  }
 0x137   :  { %5136 = vmatpush1.bf16.msra.mxu0 %v7807_v24  ;;  %5669 = vmatpush1.bf16.msra.mxu1 %v7810_v13  ;;  %v7897_v24 = vld [vmem:[%s11224_s1 + $0xb80] ss:$16 sps:$4 sm:$0xff]   ;;  %v7900_v13 = vld [vmem:[%s11224_s1 + $0xb88] ss:$16 sps:$4 sm:$0xff]  }
 0x138   :  { %5137 = vmatprep.subr.bf16.mxu0 %v7815_v27  ;;  %5670 = vmatprep.subr.bf16.mxu1 %v7818_v28  ;;  %v7905_v27 = vld [vmem:[%s11224_s1 + $0xba4] ss:$16 sps:$4 sm:$0xff]   ;;  %v7908_v28 = vld [vmem:[%s11224_s1 + $0xbac] ss:$16 sps:$4 sm:$0xff]  }
 0x13b   :  { %5138 = vmatpush1.bf16.msra.mxu0 %v7813_v29  ;;  %5671 = vmatpush1.bf16.msra.mxu1 %v7816_v14  ;;  %v7903_v29 = vld [vmem:[%s11224_s1 + $0xba0] ss:$16 sps:$4 sm:$0xff]   ;;  %v7906_v14 = vld [vmem:[%s11224_s1 + $0xba8] ss:$16 sps:$4 sm:$0xff]  }
 0x13c   :  { %5139 = vmatprep.subr.bf16.mxu0 %v7821_v30  ;;  %5672 = vmatprep.subr.bf16.mxu1 %v7824_v31  ;;  %v7911_v30 = vld [vmem:[%s11224_s1 + $0xbc4] ss:$16 sps:$4 sm:$0xff]   ;;  %v7914_v31 = vld [vmem:[%s11224_s1 + $0xbcc] ss:$16 sps:$4 sm:$0xff]  }
 0x13f   :  { %5140 = vmatpush1.bf16.msra.mxu0 %v7819_v25  ;;  %5673 = vmatpush1.bf16.msra.mxu1 %v7822_v32  ;;  %v8555_v25 = vld [vmem:[%s11223_s0 + $0x8] sm:$0xff] }
 0x140   :  { %5150 = vmatprep.subr.bf16.mxu0 %v7827_v33  ;;  %5683 = vmatprep.subr.bf16.mxu1 %v7830_v26  ;;  %v885_v32 = vcombine.high %v8555_v25, %v8555_v25  ;;  %v7909_v33 = vld [vmem:[%s11224_s1 + $0xbc0] ss:$16 sps:$4 sm:$0xff]   ;;  %v7912_v26 = vld [vmem:[%s11224_s1 + $0xbc8] ss:$16 sps:$4 sm:$0xff]  }
 0x141   :  { %v7993_v25 = vld [vmem:[%s11224_s1 + $0xd80] ss:$16 sps:$4 sm:$0xff]  }
 0x142   :  { %5142 = vmatmul.mubr.bf16.vlgmr.msra.gmra.mrb[0].mxu0 %v9636_v35  ;;  %5675 = vmatmul.mubr.bf16.vlgmr.msra.gmra.mrb[0].mxu1 %v9636_v35 }
 0x143   :  { %5151 = vmatpush1.bf16.msra.mxu0 %v7825_v36  ;;  %5684 = vmatpush1.bf16.msra.mxu1 %v7828_v37  ;;  %v7917_v36 = vld [vmem:[%s11224_s1 + $0xbe4] ss:$16 sps:$4 sm:$0xff]   ;;  %v7920_v37 = vld [vmem:[%s11224_s1 + $0xbec] ss:$16 sps:$4 sm:$0xff]  }
 0x144   :  { %5152 = vmatprep.subr.bf16.mxu0 %v7833_v38  ;;  %5685 = vmatprep.subr.bf16.mxu1 %v7836_v21  ;;  %v9826_v38 = vrot.slane %v885_v32, %v8749_v49  ;;  %v7915_v21 = vld [vmem:[%s11224_s1 + $0xbe0] ss:$16 sps:$4 sm:$0xff]   ;;  %v7996_v32 = vld [vmem:[%s11224_s1 + $0xd88] ss:$16 sps:$4 sm:$0xff]  }
 0x145   :  { %5182 = vmatprep.mubr.bf16.mxu0 %v932_v39  ;;  %5715 = vmatprep.mubr.bf16.mxu1 %v932_v39  ;;  %v7918_v39 = vld [vmem:[%s11224_s1 + $0xbe8] ss:$16 sps:$4 sm:$0xff]  }
 0x147   :  { %5153 = vmatpush1.bf16.msra.mxu0 %v7831_v40  ;;  %5686 = vmatpush1.bf16.msra.mxu1 %v7834_v41  ;;  %v7923_v40 = vld [vmem:[%s11224_s1 + $0xc04] ss:$16 sps:$4 sm:$0xff]   ;;  %v7926_v41 = vld [vmem:[%s11224_s1 + $0xc0c] ss:$16 sps:$4 sm:$0xff]  }
 0x148   :  { %5154 = vmatprep.subr.bf16.mxu0 %v7839_v34  ;;  %5687 = vmatprep.subr.bf16.mxu1 %v7842_v43  ;;  %v901_v34 = vcombine.high %v9826_v38, %v9826_v38  ;;  %v930_v43 = vcombine.high %v9636_v35, %v9636_v35  ;;  %v7932_v35 = vld [vmem:[%s11224_s1 + $0xc2c] ss:$16 sps:$4 sm:$0xff]  }
 0x14b   :  { %5155 = vmatpush1.bf16.msra.mxu0 %v7837_v44  ;;  %5688 = vmatpush1.bf16.msra.mxu1 %v7840_v45  ;;  %v7921_v44 = vld [vmem:[%s11224_s1 + $0xc00] ss:$16 sps:$4 sm:$0xff]   ;;  %v7924_v45 = vld [vmem:[%s11224_s1 + $0xc08] ss:$16 sps:$4 sm:$0xff]  }
 0x14c   :  { %5156 = vmatprep.subr.bf16.mxu0 %v7845_v46  ;;  %5689 = vmatprep.subr.bf16.mxu1 %v7848_v47  ;;  %v7929_v46 = vld [vmem:[%s11224_s1 + $0xc24] ss:$16 sps:$4 sm:$0xff]   ;;  %v9857_v47 = vrot.slane %v901_v34, %v8749_v49 }
 0x14d   :  { %v8013_v34 = vld [vmem:[%s11224_s1 + $0xde4] ss:$16 sps:$4 sm:$0xff]  }
 0x14f   :  { %5157 = vmatpush1.bf16.msra.mxu0 %v7843_v48  ;;  %5690 = vmatpush1.bf16.msra.mxu1 %v7846_v50  ;;  %v7927_v48 = vld [vmem:[%s11224_s1 + $0xc20] ss:$16 sps:$4 sm:$0xff]   ;;  %v7930_v50 = vld [vmem:[%s11224_s1 + $0xc28] ss:$16 sps:$4 sm:$0xff]  }
 0x150   :  { %5158 = vmatprep.subr.bf16.mxu0 %v7851_v51  ;;  %5691 = vmatprep.subr.bf16.mxu1 %v7854_v53  ;;  %v7935_v51 = vld [vmem:[%s11224_s1 + $0xc44] ss:$16 sps:$4 sm:$0xff]   ;;  %v7938_v53 = vld [vmem:[%s11224_s1 + $0xc4c] ss:$16 sps:$4 sm:$0xff]  }
 0x153   :  { %5159 = vmatpush1.bf16.msra.mxu0 %v7849_v54  ;;  %5692 = vmatpush1.bf16.msra.mxu1 %v7852_v55  ;;  %v7933_v54 = vld [vmem:[%s11224_s1 + $0xc40] ss:$16 sps:$4 sm:$0xff]   ;;  %v7936_v55 = vld [vmem:[%s11224_s1 + $0xc48] ss:$16 sps:$4 sm:$0xff]  }
 0x154   :  { %5160 = vmatprep.subr.bf16.mxu0 %v7857_v56  ;;  %5693 = vmatprep.subr.bf16.mxu1 %v7860_v57  ;;  %v7941_v56 = vld [vmem:[%s11224_s1 + $0xc64] ss:$16 sps:$4 sm:$0xff]   ;;  %v7944_v57 = vld [vmem:[%s11224_s1 + $0xc6c] ss:$16 sps:$4 sm:$0xff]  }
 0x157   :  { %5161 = vmatpush1.bf16.msra.mxu0 %v7855_v58  ;;  %5694 = vmatpush1.bf16.msra.mxu1 %v7858_v59  ;;  %v7939_v58 = vld [vmem:[%s11224_s1 + $0xc60] ss:$16 sps:$4 sm:$0xff]   ;;  %v7942_v59 = vld [vmem:[%s11224_s1 + $0xc68] ss:$16 sps:$4 sm:$0xff]  }
 0x158   :  { %5162 = vmatprep.subr.bf16.mxu0 %v7863_v60  ;;  %5695 = vmatprep.subr.bf16.mxu1 %v7866_v61  ;;  %v7947_v60 = vld [vmem:[%s11224_s1 + $0xc84] ss:$16 sps:$4 sm:$0xff]   ;;  %v7950_v61 = vld [vmem:[%s11224_s1 + $0xc8c] ss:$16 sps:$4 sm:$0xff]  }
 0x15b   :  { %5163 = vmatpush1.bf16.msra.mxu0 %v7861_v62  ;;  %5696 = vmatpush1.bf16.msra.mxu1 %v7864_v63  ;;  %v7945_v62 = vld [vmem:[%s11224_s1 + $0xc80] ss:$16 sps:$4 sm:$0xff]   ;;  %v7948_v63 = vld [vmem:[%s11224_s1 + $0xc88] ss:$16 sps:$4 sm:$0xff]  }
 0x15c   :  { %5164 = vmatprep.subr.bf16.mxu0 %v7869_v0  ;;  %5697 = vmatprep.subr.bf16.mxu1 %v7872_v1  ;;  %v7953_v0 = vld [vmem:[%s11224_s1 + $0xca4] ss:$16 sps:$4 sm:$0xff]   ;;  %v7956_v1 = vld [vmem:[%s11224_s1 + $0xcac] ss:$16 sps:$4 sm:$0xff]  }
 0x15f   :  { %5165 = vmatpush1.bf16.msra.mxu0 %v7867_v2  ;;  %5698 = vmatpush1.bf16.msra.mxu1 %v7870_v3  ;;  %v7951_v2 = vld [vmem:[%s11224_s1 + $0xca0] ss:$16 sps:$4 sm:$0xff]   ;;  %v7954_v3 = vld [vmem:[%s11224_s1 + $0xca8] ss:$16 sps:$4 sm:$0xff]  }
 0x160   :  { %5166 = vmatprep.subr.bf16.mxu0 %v7875_v4  ;;  %5699 = vmatprep.subr.bf16.mxu1 %v7878_v5  ;;  %v7959_v4 = vld [vmem:[%s11224_s1 + $0xcc4] ss:$16 sps:$4 sm:$0xff]   ;;  %v7962_v5 = vld [vmem:[%s11224_s1 + $0xccc] ss:$16 sps:$4 sm:$0xff]  }
 0x163   :  { %5167 = vmatpush1.bf16.msra.mxu0 %v7873_v6  ;;  %5700 = vmatpush1.bf16.msra.mxu1 %v7876_v7  ;;  %v7957_v6 = vld [vmem:[%s11224_s1 + $0xcc0] ss:$16 sps:$4 sm:$0xff]   ;;  %v7960_v7 = vld [vmem:[%s11224_s1 + $0xcc8] ss:$16 sps:$4 sm:$0xff]  }
 0x164   :  { %5168 = vmatprep.subr.bf16.mxu0 %v7881_v8  ;;  %5701 = vmatprep.subr.bf16.mxu1 %v7884_v9  ;;  %v7965_v8 = vld [vmem:[%s11224_s1 + $0xce4] ss:$16 sps:$4 sm:$0xff]   ;;  %v7968_v9 = vld [vmem:[%s11224_s1 + $0xcec] ss:$16 sps:$4 sm:$0xff]  }
 0x167   :  { %5169 = vmatpush1.bf16.msra.mxu0 %v7879_v10  ;;  %5702 = vmatpush1.bf16.msra.mxu1 %v7882_v11  ;;  %v7963_v10 = vld [vmem:[%s11224_s1 + $0xce0] ss:$16 sps:$4 sm:$0xff]   ;;  %v7966_v11 = vld [vmem:[%s11224_s1 + $0xce8] ss:$16 sps:$4 sm:$0xff]  }
 0x168   :  { %5170 = vmatprep.subr.bf16.mxu0 %v7887_v12  ;;  %5703 = vmatprep.subr.bf16.mxu1 %v7890_v52  ;;  %v7971_v12 = vld [vmem:[%s11224_s1 + $0xd04] ss:$16 sps:$4 sm:$0xff]   ;;  %v7974_v52 = vld [vmem:[%s11224_s1 + $0xd0c] ss:$16 sps:$4 sm:$0xff]  }
 0x16b   :  { %5171 = vmatpush1.bf16.msra.mxu0 %v7885_v15  ;;  %5704 = vmatpush1.bf16.msra.mxu1 %v7888_v16  ;;  %v7969_v15 = vld [vmem:[%s11224_s1 + $0xd00] ss:$16 sps:$4 sm:$0xff]   ;;  %v7972_v16 = vld [vmem:[%s11224_s1 + $0xd08] ss:$16 sps:$4 sm:$0xff]  }
 0x16c   :  { %5172 = vmatprep.subr.bf16.mxu0 %v7893_v17  ;;  %5705 = vmatprep.subr.bf16.mxu1 %v7896_v18  ;;  %v7977_v17 = vld [vmem:[%s11224_s1 + $0xd24] ss:$16 sps:$4 sm:$0xff]   ;;  %v7980_v18 = vld [vmem:[%s11224_s1 + $0xd2c] ss:$16 sps:$4 sm:$0xff]  }
 0x16f   :  { %5173 = vmatpush1.bf16.msra.mxu0 %v7891_v19  ;;  %5706 = vmatpush1.bf16.msra.mxu1 %v7894_v20  ;;  %v7975_v19 = vld [vmem:[%s11224_s1 + $0xd20] ss:$16 sps:$4 sm:$0xff]   ;;  %v7978_v20 = vld [vmem:[%s11224_s1 + $0xd28] ss:$16 sps:$4 sm:$0xff]  }
 0x170   :  { %5174 = vmatprep.subr.bf16.mxu0 %v7899_v22  ;;  %5707 = vmatprep.subr.bf16.mxu1 %v7902_v23  ;;  %v7983_v22 = vld [vmem:[%s11224_s1 + $0xd44] ss:$16 sps:$4 sm:$0xff]   ;;  %v7986_v23 = vld [vmem:[%s11224_s1 + $0xd4c] ss:$16 sps:$4 sm:$0xff]  }
 0x173   :  { %5175 = vmatpush1.bf16.msra.mxu0 %v7897_v24  ;;  %5708 = vmatpush1.bf16.msra.mxu1 %v7900_v13  ;;  %v7981_v24 = vld [vmem:[%s11224_s1 + $0xd40] ss:$16 sps:$4 sm:$0xff]   ;;  %v7984_v13 = vld [vmem:[%s11224_s1 + $0xd48] ss:$16 sps:$4 sm:$0xff]  }
 0x174   :  { %5176 = vmatprep.subr.bf16.mxu0 %v7905_v27  ;;  %5709 = vmatprep.subr.bf16.mxu1 %v7908_v28  ;;  %v7989_v27 = vld [vmem:[%s11224_s1 + $0xd64] ss:$16 sps:$4 sm:$0xff]   ;;  %v7992_v28 = vld [vmem:[%s11224_s1 + $0xd6c] ss:$16 sps:$4 sm:$0xff]  }
 0x177   :  { %5177 = vmatpush1.bf16.msra.mxu0 %v7903_v29  ;;  %5710 = vmatpush1.bf16.msra.mxu1 %v7906_v14  ;;  %v7987_v29 = vld [vmem:[%s11224_s1 + $0xd60] ss:$16 sps:$4 sm:$0xff]   ;;  %v7990_v14 = vld [vmem:[%s11224_s1 + $0xd68] ss:$16 sps:$4 sm:$0xff]  }
 0x178   :  { %5178 = vmatprep.subr.bf16.mxu0 %v7911_v30  ;;  %5711 = vmatprep.subr.bf16.mxu1 %v7914_v31  ;;  %v7995_v30 = vld [vmem:[%s11224_s1 + $0xd84] ss:$16 sps:$4 sm:$0xff]   ;;  %v7998_v31 = vld [vmem:[%s11224_s1 + $0xd8c] ss:$16 sps:$4 sm:$0xff]  }
 0x17b   :  { %5179 = vmatpush1.bf16.msra.mxu0 %v7909_v33  ;;  %5712 = vmatpush1.bf16.msra.mxu1 %v7912_v26  ;;  %v8001_v33 = vld [vmem:[%s11224_s1 + $0xda4] ss:$16 sps:$4 sm:$0xff]   ;;  %v8004_v26 = vld [vmem:[%s11224_s1 + $0xdac] ss:$16 sps:$4 sm:$0xff]  }
 0x17c   :  { %5180 = vmatprep.subr.bf16.mxu0 %v7917_v36  ;;  %5713 = vmatprep.subr.bf16.mxu1 %v7920_v37  ;;  %v7999_v36 = vld [vmem:[%s11224_s1 + $0xda0] ss:$16 sps:$4 sm:$0xff]   ;;  %v8002_v37 = vld [vmem:[%s11224_s1 + $0xda8] ss:$16 sps:$4 sm:$0xff]  }
 0x17f   :  { %5181 = vmatpush1.bf16.msra.mxu0 %v7915_v21  ;;  %5714 = vmatpush1.bf16.msra.mxu1 %v7918_v39  ;;  %v8007_v21 = vld [vmem:[%s11224_s1 + $0xdc4] ss:$16 sps:$4 sm:$0xff]   ;;  %v8010_v39 = vld [vmem:[%s11224_s1 + $0xdcc] ss:$16 sps:$4 sm:$0xff]  }
 0x180   :  { %5191 = vmatprep.subr.bf16.mxu0 %v7923_v40  ;;  %5724 = vmatprep.subr.bf16.mxu1 %v7926_v41  ;;  %v8005_v40 = vld [vmem:[%s11224_s1 + $0xdc0] ss:$16 sps:$4 sm:$0xff]   ;;  %v8008_v41 = vld [vmem:[%s11224_s1 + $0xdc8] ss:$16 sps:$4 sm:$0xff]  }
 0x182   :  { %5183 = vmatmul.mubr.bf16.vlgmr.msra.gmra.mrb[0].mxu0 %v930_v43  ;;  %5716 = vmatmul.mubr.bf16.vlgmr.msra.gmra.mrb[0].mxu1 %v930_v43  ;;  %v8016_v43 = vld [vmem:[%s11224_s1 + $0xdec] ss:$16 sps:$4 sm:$0xff]  }
 0x183   :  { %5192 = vmatpush1.bf16.msra.mxu0 %v7921_v44  ;;  %5725 = vmatpush1.bf16.msra.mxu1 %v7924_v45  ;;  %v8011_v44 = vld [vmem:[%s11224_s1 + $0xde0] ss:$16 sps:$4 sm:$0xff]   ;;  %v8014_v45 = vld [vmem:[%s11224_s1 + $0xde8] ss:$16 sps:$4 sm:$0xff]  }
 0x184   :  { %5193 = vmatprep.subr.bf16.mxu0 %v7929_v46  ;;  %5726 = vmatprep.subr.bf16.mxu1 %v7932_v35  ;;  %v8020_v46 = vld [vmem:[%s11224_s1 + $0xe04] ss:$16 sps:$4 sm:$0xff]   ;;  %v8023_v35 = vld [vmem:[%s11224_s1 + $0xe0c] ss:$16 sps:$4 sm:$0xff]  }
 0x185   :  { %5223 = vmatprep.mubr.bf16.mxu0 %v9857_v47  ;;  %5756 = vmatprep.mubr.bf16.mxu1 %v9857_v47 }
 0x187   :  { %5194 = vmatpush1.bf16.msra.mxu0 %v7927_v48  ;;  %5727 = vmatpush1.bf16.msra.mxu1 %v7930_v50  ;;  %v10043_v48 = vrot.slane %v9826_v38, %v8749_v49  ;;  %v8018_v50 = vld [vmem:[%s11224_s1 + $0xe00] ss:$16 sps:$4 sm:$0xff]   ;;  %v8029_v38 = vld [vmem:[%s11224_s1 + $0xe2c] ss:$16 sps:$4 sm:$0xff]  }
 0x188   :  { %5195 = vmatprep.subr.bf16.mxu0 %v7935_v51  ;;  %5728 = vmatprep.subr.bf16.mxu1 %v7938_v53  ;;  %v8021_v51 = vld [vmem:[%s11224_s1 + $0xe08] ss:$16 sps:$4 sm:$0xff]   ;;  %v8026_v53 = vld [vmem:[%s11224_s1 + $0xe24] ss:$16 sps:$4 sm:$0xff]  }
 0x18b   :  { %5196 = vmatpush1.bf16.msra.mxu0 %v7933_v54  ;;  %5729 = vmatpush1.bf16.msra.mxu1 %v7936_v55  ;;  %v933_v54 = vcombine.high %v9857_v47, %v9857_v47  ;;  %v8024_v55 = vld [vmem:[%s11224_s1 + $0xe20] ss:$16 sps:$4 sm:$0xff]   ;;  %v8032_v47 = vld [vmem:[%s11224_s1 + $0xe44] ss:$16 sps:$4 sm:$0xff]  }
 0x18c   :  { %5197 = vmatprep.subr.bf16.mxu0 %v7941_v56  ;;  %5730 = vmatprep.subr.bf16.mxu1 %v7944_v57  ;;  %v8027_v56 = vld [vmem:[%s11224_s1 + $0xe28] ss:$16 sps:$4 sm:$0xff]   ;;  %v8035_v57 = vld [vmem:[%s11224_s1 + $0xe4c] ss:$16 sps:$4 sm:$0xff]  }
 0x18f   :  { %5198 = vmatpush1.bf16.msra.mxu0 %v7939_v58  ;;  %5731 = vmatpush1.bf16.msra.mxu1 %v7942_v59  ;;  %v8030_v58 = vld [vmem:[%s11224_s1 + $0xe40] ss:$16 sps:$4 sm:$0xff]   ;;  %v8033_v59 = vld [vmem:[%s11224_s1 + $0xe48] ss:$16 sps:$4 sm:$0xff]  }
 0x190   :  { %5199 = vmatprep.subr.bf16.mxu0 %v7947_v60  ;;  %5732 = vmatprep.subr.bf16.mxu1 %v7950_v61  ;;  %v8038_v60 = vld [vmem:[%s11224_s1 + $0xe64] ss:$16 sps:$4 sm:$0xff]   ;;  %v8041_v61 = vld [vmem:[%s11224_s1 + $0xe6c] ss:$16 sps:$4 sm:$0xff]  }
 0x193   :  { %5200 = vmatpush1.bf16.msra.mxu0 %v7945_v62  ;;  %5733 = vmatpush1.bf16.msra.mxu1 %v7948_v63  ;;  %v8036_v62 = vld [vmem:[%s11224_s1 + $0xe60] ss:$16 sps:$4 sm:$0xff]   ;;  %v8039_v63 = vld [vmem:[%s11224_s1 + $0xe68] ss:$16 sps:$4 sm:$0xff]  }
 0x194   :  { %5201 = vmatprep.subr.bf16.mxu0 %v7953_v0  ;;  %5734 = vmatprep.subr.bf16.mxu1 %v7956_v1  ;;  %v8044_v0 = vld [vmem:[%s11224_s1 + $0xe84] ss:$16 sps:$4 sm:$0xff]   ;;  %v8047_v1 = vld [vmem:[%s11224_s1 + $0xe8c] ss:$16 sps:$4 sm:$0xff]  }
 0x197   :  { %5202 = vmatpush1.bf16.msra.mxu0 %v7951_v2  ;;  %5735 = vmatpush1.bf16.msra.mxu1 %v7954_v3  ;;  %v8042_v2 = vld [vmem:[%s11224_s1 + $0xe80] ss:$16 sps:$4 sm:$0xff]   ;;  %v8045_v3 = vld [vmem:[%s11224_s1 + $0xe88] ss:$16 sps:$4 sm:$0xff]  }
 0x198   :  { %5203 = vmatprep.subr.bf16.mxu0 %v7959_v4  ;;  %5736 = vmatprep.subr.bf16.mxu1 %v7962_v5  ;;  %v8050_v4 = vld [vmem:[%s11224_s1 + $0xea4] ss:$16 sps:$4 sm:$0xff]   ;;  %v8053_v5 = vld [vmem:[%s11224_s1 + $0xeac] ss:$16 sps:$4 sm:$0xff]  }
 0x19b   :  { %5204 = vmatpush1.bf16.msra.mxu0 %v7957_v6  ;;  %5737 = vmatpush1.bf16.msra.mxu1 %v7960_v7  ;;  %v8048_v6 = vld [vmem:[%s11224_s1 + $0xea0] ss:$16 sps:$4 sm:$0xff]   ;;  %v8051_v7 = vld [vmem:[%s11224_s1 + $0xea8] ss:$16 sps:$4 sm:$0xff]  }
 0x19c   :  { %5205 = vmatprep.subr.bf16.mxu0 %v7965_v8  ;;  %5738 = vmatprep.subr.bf16.mxu1 %v7968_v9  ;;  %v8056_v8 = vld [vmem:[%s11224_s1 + $0xec4] ss:$16 sps:$4 sm:$0xff]   ;;  %v8059_v9 = vld [vmem:[%s11224_s1 + $0xecc] ss:$16 sps:$4 sm:$0xff]  }
 0x19f   :  { %5206 = vmatpush1.bf16.msra.mxu0 %v7963_v10  ;;  %5739 = vmatpush1.bf16.msra.mxu1 %v7966_v11  ;;  %v8054_v10 = vld [vmem:[%s11224_s1 + $0xec0] ss:$16 sps:$4 sm:$0xff]   ;;  %v8057_v11 = vld [vmem:[%s11224_s1 + $0xec8] ss:$16 sps:$4 sm:$0xff]  }
 0x1a0   :  { %5207 = vmatprep.subr.bf16.mxu0 %v7971_v12  ;;  %5740 = vmatprep.subr.bf16.mxu1 %v7974_v52  ;;  %v8062_v12 = vld [vmem:[%s11224_s1 + $0xee4] ss:$16 sps:$4 sm:$0xff]   ;;  %v8065_v52 = vld [vmem:[%s11224_s1 + $0xeec] ss:$16 sps:$4 sm:$0xff]  }
 0x1a3   :  { %5208 = vmatpush1.bf16.msra.mxu0 %v7969_v15  ;;  %5741 = vmatpush1.bf16.msra.mxu1 %v7972_v16  ;;  %v8060_v15 = vld [vmem:[%s11224_s1 + $0xee0] ss:$16 sps:$4 sm:$0xff]   ;;  %v8063_v16 = vld [vmem:[%s11224_s1 + $0xee8] ss:$16 sps:$4 sm:$0xff]  }
 0x1a4   :  { %5209 = vmatprep.subr.bf16.mxu0 %v7977_v17  ;;  %5742 = vmatprep.subr.bf16.mxu1 %v7980_v18  ;;  %v8068_v17 = vld [vmem:[%s11224_s1 + $0xf04] ss:$16 sps:$4 sm:$0xff]   ;;  %v8071_v18 = vld [vmem:[%s11224_s1 + $0xf0c] ss:$16 sps:$4 sm:$0xff]  }
 0x1a7   :  { %5210 = vmatpush1.bf16.msra.mxu0 %v7975_v19  ;;  %5743 = vmatpush1.bf16.msra.mxu1 %v7978_v20  ;;  %v8066_v19 = vld [vmem:[%s11224_s1 + $0xf00] ss:$16 sps:$4 sm:$0xff]   ;;  %v8069_v20 = vld [vmem:[%s11224_s1 + $0xf08] ss:$16 sps:$4 sm:$0xff]  }
 0x1a8   :  { %5211 = vmatprep.subr.bf16.mxu0 %v7983_v22  ;;  %5744 = vmatprep.subr.bf16.mxu1 %v7986_v23  ;;  %v8074_v22 = vld [vmem:[%s11224_s1 + $0xf24] ss:$16 sps:$4 sm:$0xff]   ;;  %v8077_v23 = vld [vmem:[%s11224_s1 + $0xf2c] ss:$16 sps:$4 sm:$0xff]  }
 0x1ab   :  { %5212 = vmatpush1.bf16.msra.mxu0 %v7981_v24  ;;  %5745 = vmatpush1.bf16.msra.mxu1 %v7984_v13  ;;  %v8072_v24 = vld [vmem:[%s11224_s1 + $0xf20] ss:$16 sps:$4 sm:$0xff]   ;;  %v8075_v13 = vld [vmem:[%s11224_s1 + $0xf28] ss:$16 sps:$4 sm:$0xff]  }
 0x1ac   :  { %5213 = vmatprep.subr.bf16.mxu0 %v7989_v27  ;;  %5746 = vmatprep.subr.bf16.mxu1 %v7992_v28  ;;  %v8080_v27 = vld [vmem:[%s11224_s1 + $0xf44] ss:$16 sps:$4 sm:$0xff]   ;;  %v8083_v28 = vld [vmem:[%s11224_s1 + $0xf4c] ss:$16 sps:$4 sm:$0xff]  }
 0x1af   :  { %5214 = vmatpush1.bf16.msra.mxu0 %v7987_v29  ;;  %5747 = vmatpush1.bf16.msra.mxu1 %v7990_v14  ;;  %v8078_v29 = vld [vmem:[%s11224_s1 + $0xf40] ss:$16 sps:$4 sm:$0xff]   ;;  %v8081_v14 = vld [vmem:[%s11224_s1 + $0xf48] ss:$16 sps:$4 sm:$0xff]  }
 0x1b0   :  { %5215 = vmatprep.subr.bf16.mxu0 %v7995_v30  ;;  %5748 = vmatprep.subr.bf16.mxu1 %v7998_v31  ;;  %v8086_v30 = vld [vmem:[%s11224_s1 + $0xf64] ss:$16 sps:$4 sm:$0xff]   ;;  %v8089_v31 = vld [vmem:[%s11224_s1 + $0xf6c] ss:$16 sps:$4 sm:$0xff]  }
 0x1b3   :  { %5216 = vmatpush1.bf16.msra.mxu0 %v7993_v25  ;;  %5749 = vmatpush1.bf16.msra.mxu1 %v7996_v32 }
 0x1b4   :  { %5217 = vmatprep.subr.bf16.mxu0 %v8001_v33  ;;  %5750 = vmatprep.subr.bf16.mxu1 %v8004_v26 }
 0x1b7   :  { %5218 = vmatpush1.bf16.msra.mxu0 %v7999_v36  ;;  %5751 = vmatpush1.bf16.msra.mxu1 %v8002_v37 }
 0x1b8   :  { %5219 = vmatprep.subr.bf16.mxu0 %v8007_v21  ;;  %5752 = vmatprep.subr.bf16.mxu1 %v8010_v39 }
 0x1bb   :  { %5220 = vmatpush1.bf16.msra.mxu0 %v8005_v40  ;;  %5753 = vmatpush1.bf16.msra.mxu1 %v8008_v41 }
 0x1bc   :  { %5221 = vmatprep.subr.bf16.mxu0 %v8013_v34  ;;  %5754 = vmatprep.subr.bf16.mxu1 %v8016_v43 }
 0x1bf   :  { %5222 = vmatpush1.bf16.msra.mxu0 %v8011_v44  ;;  %5755 = vmatpush1.bf16.msra.mxu1 %v8014_v45 }
 0x1c0   :  { %5232 = vmatprep.subr.bf16.mxu0 %v8020_v46  ;;  %5765 = vmatprep.subr.bf16.mxu1 %v8023_v35 }
 0x1c2   :  { %5224 = vmatmul.mubr.bf16.vlgmr.msra.gmra.mrb[0].mxu0 %v10043_v48  ;;  %5757 = vmatmul.mubr.bf16.vlgmr.msra.gmra.mrb[0].mxu1 %v10043_v48 }
 0x1c3   :  { %5233 = vmatpush1.bf16.msra.mxu0 %v8018_v50  ;;  %5766 = vmatpush1.bf16.msra.mxu1 %v8021_v51 }
 0x1c4   :  { %5234 = vmatprep.subr.bf16.mxu0 %v8026_v53  ;;  %5767 = vmatprep.subr.bf16.mxu1 %v8029_v38 }
 0x1c5   :  { %5264 = vmatprep.mubr.bf16.mxu0 %v933_v54  ;;  %5797 = vmatprep.mubr.bf16.mxu1 %v933_v54 }
 0x1c7   :  { %5235 = vmatpush1.bf16.msra.mxu0 %v8024_v55  ;;  %5768 = vmatpush1.bf16.msra.mxu1 %v8027_v56 }
 0x1c8   :  { %5236 = vmatprep.subr.bf16.mxu0 %v8032_v47  ;;  %5769 = vmatprep.subr.bf16.mxu1 %v8035_v57 }
 0x1cb   :  { %5237 = vmatpush1.bf16.msra.mxu0 %v8030_v58  ;;  %5770 = vmatpush1.bf16.msra.mxu1 %v8033_v59 }
 0x1cc   :  { %5238 = vmatprep.subr.bf16.mxu0 %v8038_v60  ;;  %5771 = vmatprep.subr.bf16.mxu1 %v8041_v61 }
 0x1cf   :  { %5239 = vmatpush1.bf16.msra.mxu0 %v8036_v62  ;;  %5772 = vmatpush1.bf16.msra.mxu1 %v8039_v63 }
 0x1d0   :  { %5240 = vmatprep.subr.bf16.mxu0 %v8044_v0  ;;  %5773 = vmatprep.subr.bf16.mxu1 %v8047_v1 }
 0x1d3   :  { %5241 = vmatpush1.bf16.msra.mxu0 %v8042_v2  ;;  %5774 = vmatpush1.bf16.msra.mxu1 %v8045_v3 }
 0x1d4   :  { %5242 = vmatprep.subr.bf16.mxu0 %v8050_v4  ;;  %5775 = vmatprep.subr.bf16.mxu1 %v8053_v5 }
 0x1d7   :  { %5243 = vmatpush1.bf16.msra.mxu0 %v8048_v6  ;;  %5776 = vmatpush1.bf16.msra.mxu1 %v8051_v7 }
 0x1d8   :  { %5244 = vmatprep.subr.bf16.mxu0 %v8056_v8  ;;  %5777 = vmatprep.subr.bf16.mxu1 %v8059_v9 }
 0x1db   :  { %5245 = vmatpush1.bf16.msra.mxu0 %v8054_v10  ;;  %5778 = vmatpush1.bf16.msra.mxu1 %v8057_v11 }
 0x1dc   :  { %5246 = vmatprep.subr.bf16.mxu0 %v8062_v12  ;;  %5779 = vmatprep.subr.bf16.mxu1 %v8065_v52 }
 0x1df   :  { %5247 = vmatpush1.bf16.msra.mxu0 %v8060_v15  ;;  %5780 = vmatpush1.bf16.msra.mxu1 %v8063_v16 }
 0x1e0   :  { %5248 = vmatprep.subr.bf16.mxu0 %v8068_v17  ;;  %5781 = vmatprep.subr.bf16.mxu1 %v8071_v18 }
 0x1e3   :  { %5249 = vmatpush1.bf16.msra.mxu0 %v8066_v19  ;;  %5782 = vmatpush1.bf16.msra.mxu1 %v8069_v20 }
 0x1e4   :  { %5250 = vmatprep.subr.bf16.mxu0 %v8074_v22  ;;  %5783 = vmatprep.subr.bf16.mxu1 %v8077_v23 }
 0x1e7   :  { %5251 = vmatpush1.bf16.msra.mxu0 %v8072_v24  ;;  %5784 = vmatpush1.bf16.msra.mxu1 %v8075_v13 }
 0x1e8   :  { %5252 = vmatprep.subr.bf16.mxu0 %v8080_v27  ;;  %5785 = vmatprep.subr.bf16.mxu1 %v8083_v28 }
 0x1e9   :  { %10 = vsyncpa [#allocation3], 0  ;;  %v8084_v25 = vld [vmem:[%s11224_s1 + $0xf60] ss:$16 sps:$4 sm:$0xff]   ;;  %v8087_v32 = vld [vmem:[%s11224_s1 + $0xf68] ss:$16 sps:$4 sm:$0xff]   ;;  %v931_v47 = vcombine.high %v10043_v48, %v10043_v48 }
 0x1ea   :  { %v8092_v33 = vld [vmem:[%s11224_s1 + $0xf84] ss:$16 sps:$4 sm:$0xff]   ;;  %v8095_v26 = vld [vmem:[%s11224_s1 + $0xf8c] ss:$16 sps:$4 sm:$0xff]   ;;  %v8090_v36 = vld [vmem:[%s11224_s1 + $0xf80] ss:$16 sps:$4 sm:$0xff]  }
 0x1eb   :  { %5253 = vmatpush1.bf16.msra.mxu0 %v8078_v29  ;;  %5786 = vmatpush1.bf16.msra.mxu1 %v8081_v14  ;;  %v8093_v37 = vld [vmem:[%s11224_s1 + $0xf88] ss:$16 sps:$4 sm:$0xff]   ;;  %v8098_v21 = vld [vmem:[%s11224_s1 + $0xfa4] ss:$16 sps:$4 sm:$0xff]   ;;  %v8101_v39 = vld [vmem:[%s11224_s1 + $0xfac] ss:$16 sps:$4 sm:$0xff]  }
 0x1ec   :  { %5254 = vmatprep.subr.bf16.mxu0 %v8086_v30  ;;  %5787 = vmatprep.subr.bf16.mxu1 %v8089_v31  ;;  %v8096_v40 = vld [vmem:[%s11224_s1 + $0xfa0] ss:$16 sps:$4 sm:$0xff]   ;;  %v8099_v41 = vld [vmem:[%s11224_s1 + $0xfa8] ss:$16 sps:$4 sm:$0xff]   ;;  %v8104_v34 = vld [vmem:[%s11224_s1 + $0xfc4] ss:$16 sps:$4 sm:$0xff]  }
 0x1ed   :  { %v8107_v43 = vld [vmem:[%s11224_s1 + $0xfcc] ss:$16 sps:$4 sm:$0xff]   ;;  %v10220_v44 = vld [vmem:[%s11223_s0 + $0x10] sm:$0xff]  ;;  %v8105_v46 = vld [vmem:[%s11224_s1 + $0xfc8] ss:$16 sps:$4 sm:$0xff]   ;;  %vm4941_vm0 = vcmask 523264  }
 0x1ee   :  { %v8102_v45 = vld [vmem:[%s11224_s1 + $0xfc0] ss:$16 sps:$4 sm:$0xff]   ;;  %v8110_v35 = vld [vmem:[%s11224_s1 + $0xfe4] ss:$16 sps:$4 sm:$0xff]   ;;  %v8113_v50 = vld [vmem:[%s11224_s1 + $0xfec] ss:$16 sps:$4 sm:$0xff]   ;;  %v10236_v51 = vrot.slane %v10220_v44, %v8749_v49 }
 0x1ef   :  { %5255 = vmatpush1.bf16.msra.mxu0 %v8084_v25  ;;  %5788 = vmatpush1.bf16.msra.mxu1 %v8087_v32  ;;  %v8108_v53 = vld [vmem:[%s11224_s1 + $0xfe0] ss:$16 sps:$4 sm:$0xff]   ;;  %v8111_v38 = vld [vmem:[%s11224_s1 + $0xfe8] ss:$16 sps:$4 sm:$0xff]   ;;  %v8116_v54 = vld [vmem:[%s11224_s1 + $0x1004] ss:$16 sps:$4 sm:$0xff]  }
 0x1f0   :  { %5256 = vmatprep.subr.bf16.mxu0 %v8092_v33  ;;  %5789 = vmatprep.subr.bf16.mxu1 %v8095_v26  ;;  %v8119_v55 = vld [vmem:[%s11224_s1 + $0x100c] ss:$16 sps:$4 sm:$0xff]   ;;  %v949_v56 = vcombine.high %v10236_v51, %v10236_v51  ;;  %v8114_v57 = vld [vmem:[%s11224_s1 + $0x1000] ss:$16 sps:$4 sm:$0xff]   ;;  %v8117_v58 = vld [vmem:[%s11224_s1 + $0x1008] ss:$16 sps:$4 sm:$0xff]  }
 0x1f1   :  { %v8122_v59 = vld [vmem:[%s11224_s1 + $0x1024] ss:$16 sps:$4 sm:$0xff]   ;;  %v8125_v48 = vld [vmem:[%s11224_s1 + $0x102c] ss:$16 sps:$4 sm:$0xff]   ;;  %v8120_v61 = vld [vmem:[%s11224_s1 + $0x1020] ss:$16 sps:$4 sm:$0xff]  }
 0x1f2   :  { %v10267_v60 = vrot.slane %v949_v56, %v8749_v49  ;;  %v8123_v62 = vld [vmem:[%s11224_s1 + $0x1028] ss:$16 sps:$4 sm:$0xff]   ;;  %v8128_v63 = vld [vmem:[%s11224_s1 + $0x1044] ss:$16 sps:$4 sm:$0xff]   ;;  %v8131_v0 = vld [vmem:[%s11224_s1 + $0x104c] ss:$16 sps:$4 sm:$0xff]  }
 0x1f3   :  { %5257 = vmatpush1.bf16.msra.mxu0 %v8090_v36  ;;  %5790 = vmatpush1.bf16.msra.mxu1 %v8093_v37  ;;  %v8126_v1 = vld [vmem:[%s11224_s1 + $0x1040] ss:$16 sps:$4 sm:$0xff]   ;;  %v8129_v2 = vld [vmem:[%s11224_s1 + $0x1048] ss:$16 sps:$4 sm:$0xff]   ;;  %v8134_v3 = vld [vmem:[%s11224_s1 + $0x1064] ss:$16 sps:$4 sm:$0xff]  }
 0x1f4   :  { %5258 = vmatprep.subr.bf16.mxu0 %v8098_v21  ;;  %5791 = vmatprep.subr.bf16.mxu1 %v8101_v39  ;;  %v8137_v4 = vld [vmem:[%s11224_s1 + $0x106c] ss:$16 sps:$4 sm:$0xff]   ;;  %v8132_v5 = vld [vmem:[%s11224_s1 + $0x1060] ss:$16 sps:$4 sm:$0xff]   ;;  %v8135_v6 = vld [vmem:[%s11224_s1 + $0x1068] ss:$16 sps:$4 sm:$0xff]  }
 0x1f5   :  { %v8140_v7 = vld [vmem:[%s11224_s1 + $0x1084] ss:$16 sps:$4 sm:$0xff]   ;;  %v8143_v8 = vld [vmem:[%s11224_s1 + $0x108c] ss:$16 sps:$4 sm:$0xff]   ;;  %v8138_v9 = vld [vmem:[%s11224_s1 + $0x1080] ss:$16 sps:$4 sm:$0xff]  }
 0x1f6   :  { %v8141_v10 = vld [vmem:[%s11224_s1 + $0x1088] ss:$16 sps:$4 sm:$0xff]   ;;  %v8146_v11 = vld [vmem:[%s11224_s1 + $0x10a4] ss:$16 sps:$4 sm:$0xff]   ;;  %v8149_v12 = vld [vmem:[%s11224_s1 + $0x10ac] ss:$16 sps:$4 sm:$0xff]  }
 0x1f7   :  { %5259 = vmatpush1.bf16.msra.mxu0 %v8096_v40  ;;  %5792 = vmatpush1.bf16.msra.mxu1 %v8099_v41  ;;  %v8144_v52 = vld [vmem:[%s11224_s1 + $0x10a0] ss:$16 sps:$4 sm:$0xff]   ;;  %v8147_v15 = vld [vmem:[%s11224_s1 + $0x10a8] ss:$16 sps:$4 sm:$0xff]   ;;  %v8152_v16 = vld [vmem:[%s11224_s1 + $0x10c4] ss:$16 sps:$4 sm:$0xff]  }
 0x1f8   :  { %5260 = vmatprep.subr.bf16.mxu0 %v8104_v34  ;;  %5793 = vmatprep.subr.bf16.mxu1 %v8107_v43  ;;  %v8155_v17 = vld [vmem:[%s11224_s1 + $0x10cc] ss:$16 sps:$4 sm:$0xff]   ;;  %v8150_v18 = vld [vmem:[%s11224_s1 + $0x10c0] ss:$16 sps:$4 sm:$0xff]   ;;  %v8153_v19 = vld [vmem:[%s11224_s1 + $0x10c8] ss:$16 sps:$4 sm:$0xff]  }
 0x1f9   :  { %v8158_v20 = vld [vmem:[%s11224_s1 + $0x10e4] ss:$16 sps:$4 sm:$0xff]   ;;  %v8161_v22 = vld [vmem:[%s11224_s1 + $0x10ec] ss:$16 sps:$4 sm:$0xff]   ;;  %v8156_v23 = vld [vmem:[%s11224_s1 + $0x10e0] ss:$16 sps:$4 sm:$0xff]  }
 0x1fa   :  { %v8159_v24 = vld [vmem:[%s11224_s1 + $0x10e8] ss:$16 sps:$4 sm:$0xff]   ;;  %v8164_v13 = vld [vmem:[%s11224_s1 + $0x1104] ss:$16 sps:$4 sm:$0xff]   ;;  %v8167_v27 = vld [vmem:[%s11224_s1 + $0x110c] ss:$16 sps:$4 sm:$0xff]  }
 0x1fb   :  { %5261 = vmatpush1.bf16.msra.mxu0 %v8102_v45  ;;  %5794 = vmatpush1.bf16.msra.mxu1 %v8105_v46  ;;  %v8162_v28 = vld [vmem:[%s11224_s1 + $0x1100] ss:$16 sps:$4 sm:$0xff]   ;;  %v8165_v29 = vld [vmem:[%s11224_s1 + $0x1108] ss:$16 sps:$4 sm:$0xff]   ;;  %v8170_v14 = vld [vmem:[%s11224_s1 + $0x1124] ss:$16 sps:$4 sm:$0xff]  }
 0x1fc   :  { %5262 = vmatprep.subr.bf16.mxu0 %v8110_v35  ;;  %5795 = vmatprep.subr.bf16.mxu1 %v8113_v50  ;;  %v8173_v30 = vld [vmem:[%s11224_s1 + $0x112c] ss:$16 sps:$4 sm:$0xff]   ;;  %v8168_v31 = vld [vmem:[%s11224_s1 + $0x1120] ss:$16 sps:$4 sm:$0xff]   ;;  %v8171_v25 = vld [vmem:[%s11224_s1 + $0x1128] ss:$16 sps:$4 sm:$0xff]  }
 0x1fd   :  { %v8176_v32 = vld [vmem:[%s11224_s1 + $0x1144] ss:$16 sps:$4 sm:$0xff]   ;;  %v8179_v33 = vld [vmem:[%s11224_s1 + $0x114c] ss:$16 sps:$4 sm:$0xff]   ;;  %v8174_v26 = vld [vmem:[%s11224_s1 + $0x1140] ss:$16 sps:$4 sm:$0xff]  }
 0x1fe   :  { %v8177_v36 = vld [vmem:[%s11224_s1 + $0x1148] ss:$16 sps:$4 sm:$0xff]   ;;  %v8182_v37 = vld [vmem:[%s11224_s1 + $0x1164] ss:$16 sps:$4 sm:$0xff]   ;;  %v8185_v21 = vld [vmem:[%s11224_s1 + $0x116c] ss:$16 sps:$4 sm:$0xff]  }
 0x1ff   :  { %5263 = vmatpush1.bf16.msra.mxu0 %v8108_v53  ;;  %5796 = vmatpush1.bf16.msra.mxu1 %v8111_v38  ;;  %v8180_v39 = vld [vmem:[%s11224_s1 + $0x1160] ss:$16 sps:$4 sm:$0xff]   ;;  %v8183_v40 = vld [vmem:[%s11224_s1 + $0x1168] ss:$16 sps:$4 sm:$0xff]   ;;  %v8188_v41 = vld [vmem:[%s11224_s1 + $0x1184] ss:$16 sps:$4 sm:$0xff]  }
 0x200   :  { %5273 = vmatprep.subr.bf16.mxu0 %v8116_v54  ;;  %5806 = vmatprep.subr.bf16.mxu1 %v8119_v55  ;;  %v8191_v34 = vld [vmem:[%s11224_s1 + $0x118c] ss:$16 sps:$4 sm:$0xff]   ;;  %v8186_v43 = vld [vmem:[%s11224_s1 + $0x1180] ss:$16 sps:$4 sm:$0xff]   ;;  %v8189_v45 = vld [vmem:[%s11224_s1 + $0x1188] ss:$16 sps:$4 sm:$0xff]  }
 0x201   :  { %v8194_v46 = vld [vmem:[%s11224_s1 + $0x11a4] ss:$16 sps:$4 sm:$0xff]   ;;  %v8197_v35 = vld [vmem:[%s11224_s1 + $0x11ac] ss:$16 sps:$4 sm:$0xff]   ;;  %v8192_v50 = vld [vmem:[%s11224_s1 + $0x11a0] ss:$16 sps:$4 sm:$0xff]  }
 0x202   :  { %5265 = vmatmul.mubr.bf16.vlgmr.msra.gmra.mrb[0].mxu0 %v931_v47  ;;  %5798 = vmatmul.mubr.bf16.vlgmr.msra.gmra.mrb[0].mxu1 %v931_v47  ;;  %v8195_v53 = vld [vmem:[%s11224_s1 + $0x11a8] ss:$16 sps:$4 sm:$0xff]   ;;  %v8200_v38 = vld [vmem:[%s11224_s1 + $0x11c4] ss:$16 sps:$4 sm:$0xff]   ;;  %v8203_v54 = vld [vmem:[%s11224_s1 + $0x11cc] ss:$16 sps:$4 sm:$0xff]  }
 0x203   :  { %5274 = vmatpush1.bf16.msra.mxu0 %v8114_v57  ;;  %5807 = vmatpush1.bf16.msra.mxu1 %v8117_v58  ;;  %v8198_v55 = vld [vmem:[%s11224_s1 + $0x11c0] ss:$16 sps:$4 sm:$0xff]   ;;  %v8201_v56 = vld [vmem:[%s11224_s1 + $0x11c8] ss:$16 sps:$4 sm:$0xff]   ;;  %v8206_v47 = vld [vmem:[%s11224_s1 + $0x11e4] ss:$16 sps:$4 sm:$0xff]  }
 0x204   :  { %5275 = vmatprep.subr.bf16.mxu0 %v8122_v59  ;;  %5808 = vmatprep.subr.bf16.mxu1 %v8125_v48  ;;  %v8209_v57 = vld [vmem:[%s11224_s1 + $0x11ec] ss:$16 sps:$4 sm:$0xff]   ;;  %v8204_v58 = vld [vmem:[%s11224_s1 + $0x11e0] ss:$16 sps:$4 sm:$0xff]   ;;  %v8207_v59 = vld [vmem:[%s11224_s1 + $0x11e8] ss:$16 sps:$4 sm:$0xff]  }
 0x205   :  { %5305 = vmatprep.mubr.bf16.mxu0 %v10267_v60  ;;  %5838 = vmatprep.mubr.bf16.mxu1 %v10267_v60  ;;  %v8212_v48 = vld [vmem:[%s11224_s1 + $0x1204] ss:$16 sps:$4 sm:$0xff]   ;;  %s8583_s6 = smov [#allocation2]  }
 0x206   :  { %s6369_s7 = sshll.u32 %s8583_s6, 4  ;;  %s6370_s7 = int_to_ptr.vmem [resolvable:$true] %s6369_s7 }
 0x207   :  { %5276 = vmatpush1.bf16.msra.mxu0 %v8120_v61  ;;  %5809 = vmatpush1.bf16.msra.mxu1 %v8123_v62  ;;  %v8215_v61 = vld [vmem:[%s11224_s1 + $0x120c] ss:$16 sps:$4 sm:$0xff]   ;;  %v10453_v62 = vrot.slane %v10236_v51, %v8749_v49  ;;  %s8557_s8 = scalar_lea.vmem %s6370_s7, 32  ;;  %p8562_p1 = scmp.lt.s32.totalorder %s6370_s7, %s6370_s7 }
 0x208   :  { %5277 = vmatprep.subr.bf16.mxu0 %v8128_v63  ;;  %5810 = vmatprep.subr.bf16.mxu1 %v8131_v0  ;;  %v8210_v63 = vld [vmem:[%s11224_s1 + $0x1200] ss:$16 sps:$4 sm:$0xff]   ;;  %v8213_v0 = vld [vmem:[%s11224_s1 + $0x1208] ss:$16 sps:$4 sm:$0xff]   ;;  %v8221_v51 = vld [vmem:[%s11224_s1 + $0x122c] ss:$16 sps:$4 sm:$0xff]   ;;  %p8558_p0 = scmp.ne.s32.totalorder %s6370_s7, %s8557_s8  ;;  %p8563_p2 = scmp.lt.s32.totalorder %s8557_s8, %s8557_s8 }
 0x20a   :  { %p8564_p3 = por %p8563_p2, %p8562_p1 }
 0x20b   :  { %5278 = vmatpush1.bf16.msra.mxu0 %v8126_v1  ;;  %5811 = vmatpush1.bf16.msra.mxu1 %v8129_v2  ;;  %v8218_v1 = vld [vmem:[%s11224_s1 + $0x1224] ss:$16 sps:$4 sm:$0xff]   ;;  %v981_v2 = vcombine.high %v10267_v60, %v10267_v60 }
 0x20c   :  { %5279 = vmatprep.subr.bf16.mxu0 %v8134_v3  ;;  %5812 = vmatprep.subr.bf16.mxu1 %v8137_v4  ;;  %v8216_v3 = vld [vmem:[%s11224_s1 + $0x1220] ss:$16 sps:$4 sm:$0xff]   ;;  %v8219_v4 = vld [vmem:[%s11224_s1 + $0x1228] ss:$16 sps:$4 sm:$0xff]   ;;  %v8224_v60 = vld [vmem:[%s11224_s1 + $0x1244] ss:$16 sps:$4 sm:$0xff]   ;;  %p8565_p4 = pnand %p8564_p3, %p8558_p0 }
 0x20f   :  { %5280 = vmatpush1.bf16.msra.mxu0 %v8132_v5  ;;  %5813 = vmatpush1.bf16.msra.mxu1 %v8135_v6  ;;  %v8227_v5 = vld [vmem:[%s11224_s1 + $0x124c] ss:$16 sps:$4 sm:$0xff]   ;;  %v8222_v6 = vld [vmem:[%s11224_s1 + $0x1240] ss:$16 sps:$4 sm:$0xff]  }
 0x210   :  { %5281 = vmatprep.subr.bf16.mxu0 %v8140_v7  ;;  %5814 = vmatprep.subr.bf16.mxu1 %v8143_v8  ;;  %v8225_v7 = vld [vmem:[%s11224_s1 + $0x1248] ss:$16 sps:$4 sm:$0xff]   ;;  %v8230_v8 = vld [vmem:[%s11224_s1 + $0x1264] ss:$16 sps:$4 sm:$0xff]  }
 0x213   :  { %5282 = vmatpush1.bf16.msra.mxu0 %v8138_v9  ;;  %5815 = vmatpush1.bf16.msra.mxu1 %v8141_v10  ;;  %v8233_v9 = vld [vmem:[%s11224_s1 + $0x126c] ss:$16 sps:$4 sm:$0xff]   ;;  %v8228_v10 = vld [vmem:[%s11224_s1 + $0x1260] ss:$16 sps:$4 sm:$0xff]  }
 0x214   :  { %5283 = vmatprep.subr.bf16.mxu0 %v8146_v11  ;;  %5816 = vmatprep.subr.bf16.mxu1 %v8149_v12  ;;  %v8231_v11 = vld [vmem:[%s11224_s1 + $0x1268] ss:$16 sps:$4 sm:$0xff]   ;;  %v8236_v12 = vld [vmem:[%s11224_s1 + $0x1284] ss:$16 sps:$4 sm:$0xff]  }
 0x217   :  { %5284 = vmatpush1.bf16.msra.mxu0 %v8144_v52  ;;  %5817 = vmatpush1.bf16.msra.mxu1 %v8147_v15  ;;  %v8239_v52 = vld [vmem:[%s11224_s1 + $0x128c] ss:$16 sps:$4 sm:$0xff]   ;;  %v8234_v15 = vld [vmem:[%s11224_s1 + $0x1280] ss:$16 sps:$4 sm:$0xff]  }
 0x218   :  { %5285 = vmatprep.subr.bf16.mxu0 %v8152_v16  ;;  %5818 = vmatprep.subr.bf16.mxu1 %v8155_v17  ;;  %v8237_v16 = vld [vmem:[%s11224_s1 + $0x1288] ss:$16 sps:$4 sm:$0xff]   ;;  %v8242_v17 = vld [vmem:[%s11224_s1 + $0x12a4] ss:$16 sps:$4 sm:$0xff]  }
 0x21b   :  { %5286 = vmatpush1.bf16.msra.mxu0 %v8150_v18  ;;  %5819 = vmatpush1.bf16.msra.mxu1 %v8153_v19  ;;  %v8245_v18 = vld [vmem:[%s11224_s1 + $0x12ac] ss:$16 sps:$4 sm:$0xff]   ;;  %v8240_v19 = vld [vmem:[%s11224_s1 + $0x12a0] ss:$16 sps:$4 sm:$0xff]  }
 0x21c   :  { %5287 = vmatprep.subr.bf16.mxu0 %v8158_v20  ;;  %5820 = vmatprep.subr.bf16.mxu1 %v8161_v22  ;;  %v8243_v20 = vld [vmem:[%s11224_s1 + $0x12a8] ss:$16 sps:$4 sm:$0xff]   ;;  %v8248_v22 = vld [vmem:[%s11224_s1 + $0x12c4] ss:$16 sps:$4 sm:$0xff]  }
 0x21f   :  { %5288 = vmatpush1.bf16.msra.mxu0 %v8156_v23  ;;  %5821 = vmatpush1.bf16.msra.mxu1 %v8159_v24  ;;  %v8251_v23 = vld [vmem:[%s11224_s1 + $0x12cc] ss:$16 sps:$4 sm:$0xff]   ;;  %v8246_v24 = vld [vmem:[%s11224_s1 + $0x12c0] ss:$16 sps:$4 sm:$0xff]  }
 0x220   :  { %5289 = vmatprep.subr.bf16.mxu0 %v8164_v13  ;;  %5822 = vmatprep.subr.bf16.mxu1 %v8167_v27  ;;  %v8249_v13 = vld [vmem:[%s11224_s1 + $0x12c8] ss:$16 sps:$4 sm:$0xff]   ;;  %v8254_v27 = vld [vmem:[%s11224_s1 + $0x12e4] ss:$16 sps:$4 sm:$0xff]  }
 0x223   :  { %5290 = vmatpush1.bf16.msra.mxu0 %v8162_v28  ;;  %5823 = vmatpush1.bf16.msra.mxu1 %v8165_v29  ;;  %v8257_v28 = vld [vmem:[%s11224_s1 + $0x12ec] ss:$16 sps:$4 sm:$0xff]   ;;  %v8252_v29 = vld [vmem:[%s11224_s1 + $0x12e0] ss:$16 sps:$4 sm:$0xff]  }
 0x224   :  { %5291 = vmatprep.subr.bf16.mxu0 %v8170_v14  ;;  %5824 = vmatprep.subr.bf16.mxu1 %v8173_v30  ;;  %v8255_v14 = vld [vmem:[%s11224_s1 + $0x12e8] ss:$16 sps:$4 sm:$0xff]   ;;  %v8260_v30 = vld [vmem:[%s11224_s1 + $0x1304] ss:$16 sps:$4 sm:$0xff]  }
 0x227   :  { %5292 = vmatpush1.bf16.msra.mxu0 %v8168_v31  ;;  %5825 = vmatpush1.bf16.msra.mxu1 %v8171_v25  ;;  %v8263_v31 = vld [vmem:[%s11224_s1 + $0x130c] ss:$16 sps:$4 sm:$0xff]   ;;  %v8258_v25 = vld [vmem:[%s11224_s1 + $0x1300] ss:$16 sps:$4 sm:$0xff]  }
 0x228   :  { %5293 = vmatprep.subr.bf16.mxu0 %v8176_v32  ;;  %5826 = vmatprep.subr.bf16.mxu1 %v8179_v33  ;;  %v8261_v32 = vld [vmem:[%s11224_s1 + $0x1308] ss:$16 sps:$4 sm:$0xff]   ;;  %v8266_v33 = vld [vmem:[%s11224_s1 + $0x1324] ss:$16 sps:$4 sm:$0xff]  }
 0x22b   :  { %5294 = vmatpush1.bf16.msra.mxu0 %v8174_v26  ;;  %5827 = vmatpush1.bf16.msra.mxu1 %v8177_v36  ;;  %v8269_v26 = vld [vmem:[%s11224_s1 + $0x132c] ss:$16 sps:$4 sm:$0xff]   ;;  %v8264_v36 = vld [vmem:[%s11224_s1 + $0x1320] ss:$16 sps:$4 sm:$0xff]  }
 0x22c   :  { %5295 = vmatprep.subr.bf16.mxu0 %v8182_v37  ;;  %5828 = vmatprep.subr.bf16.mxu1 %v8185_v21  ;;  %v8267_v37 = vld [vmem:[%s11224_s1 + $0x1328] ss:$16 sps:$4 sm:$0xff]   ;;  %v8272_v21 = vld [vmem:[%s11224_s1 + $0x1344] ss:$16 sps:$4 sm:$0xff]  }
 0x22f   :  { %5296 = vmatpush1.bf16.msra.mxu0 %v8180_v39  ;;  %5829 = vmatpush1.bf16.msra.mxu1 %v8183_v40  ;;  %v8275_v39 = vld [vmem:[%s11224_s1 + $0x134c] ss:$16 sps:$4 sm:$0xff]   ;;  %v8270_v40 = vld [vmem:[%s11224_s1 + $0x1340] ss:$16 sps:$4 sm:$0xff]  }
 0x230   :  { %5297 = vmatprep.subr.bf16.mxu0 %v8188_v41  ;;  %5830 = vmatprep.subr.bf16.mxu1 %v8191_v34  ;;  %v8273_v41 = vld [vmem:[%s11224_s1 + $0x1348] ss:$16 sps:$4 sm:$0xff]   ;;  %v8278_v34 = vld [vmem:[%s11224_s1 + $0x1364] ss:$16 sps:$4 sm:$0xff]  }
 0x233   :  { %5298 = vmatpush1.bf16.msra.mxu0 %v8186_v43  ;;  %5831 = vmatpush1.bf16.msra.mxu1 %v8189_v45  ;;  %v8281_v43 = vld [vmem:[%s11224_s1 + $0x136c] ss:$16 sps:$4 sm:$0xff]   ;;  %v8276_v45 = vld [vmem:[%s11224_s1 + $0x1360] ss:$16 sps:$4 sm:$0xff]  }
 0x234   :  { %5299 = vmatprep.subr.bf16.mxu0 %v8194_v46  ;;  %5832 = vmatprep.subr.bf16.mxu1 %v8197_v35  ;;  %v8279_v46 = vld [vmem:[%s11224_s1 + $0x1368] ss:$16 sps:$4 sm:$0xff]   ;;  %v8284_v35 = vld [vmem:[%s11224_s1 + $0x1384] ss:$16 sps:$4 sm:$0xff]  }
 0x237   :  { %5300 = vmatpush1.bf16.msra.mxu0 %v8192_v50  ;;  %5833 = vmatpush1.bf16.msra.mxu1 %v8195_v53  ;;  %v8287_v50 = vld [vmem:[%s11224_s1 + $0x138c] ss:$16 sps:$4 sm:$0xff]   ;;  %v8282_v53 = vld [vmem:[%s11224_s1 + $0x1380] ss:$16 sps:$4 sm:$0xff]  }
 0x238   :  { %5301 = vmatprep.subr.bf16.mxu0 %v8200_v38  ;;  %5834 = vmatprep.subr.bf16.mxu1 %v8203_v54  ;;  %v8285_v38 = vld [vmem:[%s11224_s1 + $0x1388] ss:$16 sps:$4 sm:$0xff]   ;;  %v8290_v54 = vld [vmem:[%s11224_s1 + $0x13a4] ss:$16 sps:$4 sm:$0xff]  }
 0x23b   :  { %5302 = vmatpush1.bf16.msra.mxu0 %v8198_v55  ;;  %5835 = vmatpush1.bf16.msra.mxu1 %v8201_v56  ;;  %v8293_v55 = vld [vmem:[%s11224_s1 + $0x13ac] ss:$16 sps:$4 sm:$0xff]   ;;  %v8288_v56 = vld [vmem:[%s11224_s1 + $0x13a0] ss:$16 sps:$4 sm:$0xff]  }
 0x23c   :  { %5303 = vmatprep.subr.bf16.mxu0 %v8206_v47  ;;  %5836 = vmatprep.subr.bf16.mxu1 %v8209_v57  ;;  %v8291_v47 = vld [vmem:[%s11224_s1 + $0x13a8] ss:$16 sps:$4 sm:$0xff]   ;;  %v8296_v57 = vld [vmem:[%s11224_s1 + $0x13c4] ss:$16 sps:$4 sm:$0xff]  }
 0x23f   :  { %5304 = vmatpush1.bf16.msra.mxu0 %v8204_v58  ;;  %5837 = vmatpush1.bf16.msra.mxu1 %v8207_v59  ;;  %v8299_v58 = vld [vmem:[%s11224_s1 + $0x13cc] ss:$16 sps:$4 sm:$0xff]   ;;  %v934_v59 = vcombine.high %v10220_v44, %v10220_v44 }
 0x240   :  { %5314 = vmatprep.subr.bf16.mxu0 %v8212_v48  ;;  %5847 = vmatprep.subr.bf16.mxu1 %v8215_v61  ;;  %v8294_v48 = vld [vmem:[%s11224_s1 + $0x13c0] ss:$16 sps:$4 sm:$0xff]   ;;  %v8297_v61 = vld [vmem:[%s11224_s1 + $0x13c8] ss:$16 sps:$4 sm:$0xff]   ;;  %v8305_v44 = vld [vmem:[%s11224_s1 + $0x13ec] ss:$16 sps:$4 sm:$0xff]  }
 0x242   :  { %5306 = vmatmul.mubr.bf16.vlgmr.msra.gmra.mrb[0].mxu0 %v10453_v62  ;;  %5839 = vmatmul.mubr.bf16.vlgmr.msra.gmra.mrb[0].mxu1 %v10453_v62 }
 0x243   :  { %5315 = vmatpush1.bf16.msra.mxu0 %v8210_v63  ;;  %5848 = vmatpush1.bf16.msra.mxu1 %v8213_v0  ;;  %v8302_v63 = vld [vmem:[%s11224_s1 + $0x13e4] ss:$16 sps:$4 sm:$0xff]   ;;  %v10642_v0 = vrot.slane %v934_v59, %v8749_v49  ;;  %v8381_v59 = vld [vmem:[%s11224_s1 + $0x1588] ss:$16 sps:$4 sm:$0xff]  }
 0x244   :  { %5316 = vmatprep.subr.bf16.mxu0 %v8218_v1  ;;  %5849 = vmatprep.subr.bf16.mxu1 %v8221_v51  ;;  %v8300_v1 = vld [vmem:[%s11224_s1 + $0x13e0] ss:$16 sps:$4 sm:$0xff]   ;;  %v8303_v51 = vld [vmem:[%s11224_s1 + $0x13e8] ss:$16 sps:$4 sm:$0xff]  }
 0x245   :  { %5346 = vmatprep.mubr.bf16.mxu0 %v981_v2  ;;  %5879 = vmatprep.mubr.bf16.mxu1 %v981_v2  ;;  %v8308_v2 = vld [vmem:[%s11224_s1 + $0x1404] ss:$16 sps:$4 sm:$0xff]  }
 0x247   :  { %5317 = vmatpush1.bf16.msra.mxu0 %v8216_v3  ;;  %5850 = vmatpush1.bf16.msra.mxu1 %v8219_v4  ;;  %v8311_v3 = vld [vmem:[%s11224_s1 + $0x140c] ss:$16 sps:$4 sm:$0xff]   ;;  %v950_v4 = vcombine.high %v10642_v0, %v10642_v0 }
 0x248   :  { %5318 = vmatprep.subr.bf16.mxu0 %v8224_v60  ;;  %5851 = vmatprep.subr.bf16.mxu1 %v8227_v5  ;;  %v979_v60 = vcombine.high %v10453_v62, %v10453_v62  ;;  %v8306_v5 = vld [vmem:[%s11224_s1 + $0x1400] ss:$16 sps:$4 sm:$0xff]   ;;  %v8317_v62 = vld [vmem:[%s11224_s1 + $0x142c] ss:$16 sps:$4 sm:$0xff]  }
 0x24b   :  { %5319 = vmatpush1.bf16.msra.mxu0 %v8222_v6  ;;  %5852 = vmatpush1.bf16.msra.mxu1 %v8225_v7  ;;  %v8309_v6 = vld [vmem:[%s11224_s1 + $0x1408] ss:$16 sps:$4 sm:$0xff]   ;;  %v8314_v7 = vld [vmem:[%s11224_s1 + $0x1424] ss:$16 sps:$4 sm:$0xff]  }
 0x24c   :  { %5320 = vmatprep.subr.bf16.mxu0 %v8230_v8  ;;  %5853 = vmatprep.subr.bf16.mxu1 %v8233_v9  ;;  %v10673_v8 = vrot.slane %v950_v4, %v8749_v49  ;;  %v8312_v9 = vld [vmem:[%s11224_s1 + $0x1420] ss:$16 sps:$4 sm:$0xff]   ;;  %v8398_v4 = vld [vmem:[%s11224_s1 + $0x15e4] ss:$16 sps:$4 sm:$0xff]  }
 0x24f   :  { %5321 = vmatpush1.bf16.msra.mxu0 %v8228_v10  ;;  %5854 = vmatpush1.bf16.msra.mxu1 %v8231_v11  ;;  %v8315_v10 = vld [vmem:[%s11224_s1 + $0x1428] ss:$16 sps:$4 sm:$0xff]   ;;  %v8320_v11 = vld [vmem:[%s11224_s1 + $0x1444] ss:$16 sps:$4 sm:$0xff]  }
 0x250   :  { %5322 = vmatprep.subr.bf16.mxu0 %v8236_v12  ;;  %5855 = vmatprep.subr.bf16.mxu1 %v8239_v52  ;;  %v8323_v12 = vld [vmem:[%s11224_s1 + $0x144c] ss:$16 sps:$4 sm:$0xff]   ;;  %v8318_v52 = vld [vmem:[%s11224_s1 + $0x1440] ss:$16 sps:$4 sm:$0xff]  }
 0x253   :  { %5323 = vmatpush1.bf16.msra.mxu0 %v8234_v15  ;;  %5856 = vmatpush1.bf16.msra.mxu1 %v8237_v16  ;;  %v8321_v15 = vld [vmem:[%s11224_s1 + $0x1448] ss:$16 sps:$4 sm:$0xff]   ;;  %v8326_v16 = vld [vmem:[%s11224_s1 + $0x1464] ss:$16 sps:$4 sm:$0xff]  }
 0x254   :  { %5324 = vmatprep.subr.bf16.mxu0 %v8242_v17  ;;  %5857 = vmatprep.subr.bf16.mxu1 %v8245_v18  ;;  %v8329_v17 = vld [vmem:[%s11224_s1 + $0x146c] ss:$16 sps:$4 sm:$0xff]   ;;  %v8324_v18 = vld [vmem:[%s11224_s1 + $0x1460] ss:$16 sps:$4 sm:$0xff]  }
 0x257   :  { %5325 = vmatpush1.bf16.msra.mxu0 %v8240_v19  ;;  %5858 = vmatpush1.bf16.msra.mxu1 %v8243_v20  ;;  %v8327_v19 = vld [vmem:[%s11224_s1 + $0x1468] ss:$16 sps:$4 sm:$0xff]   ;;  %v8332_v20 = vld [vmem:[%s11224_s1 + $0x1484] ss:$16 sps:$4 sm:$0xff]  }
 0x258   :  { %5326 = vmatprep.subr.bf16.mxu0 %v8248_v22  ;;  %5859 = vmatprep.subr.bf16.mxu1 %v8251_v23  ;;  %v8335_v22 = vld [vmem:[%s11224_s1 + $0x148c] ss:$16 sps:$4 sm:$0xff]   ;;  %v8330_v23 = vld [vmem:[%s11224_s1 + $0x1480] ss:$16 sps:$4 sm:$0xff]  }
 0x25b   :  { %5327 = vmatpush1.bf16.msra.mxu0 %v8246_v24  ;;  %5860 = vmatpush1.bf16.msra.mxu1 %v8249_v13  ;;  %v8333_v24 = vld [vmem:[%s11224_s1 + $0x1488] ss:$16 sps:$4 sm:$0xff]   ;;  %v8338_v13 = vld [vmem:[%s11224_s1 + $0x14a4] ss:$16 sps:$4 sm:$0xff]  }
 0x25c   :  { %5328 = vmatprep.subr.bf16.mxu0 %v8254_v27  ;;  %5861 = vmatprep.subr.bf16.mxu1 %v8257_v28  ;;  %v8341_v27 = vld [vmem:[%s11224_s1 + $0x14ac] ss:$16 sps:$4 sm:$0xff]   ;;  %v8336_v28 = vld [vmem:[%s11224_s1 + $0x14a0] ss:$16 sps:$4 sm:$0xff]  }
 0x25f   :  { %5329 = vmatpush1.bf16.msra.mxu0 %v8252_v29  ;;  %5862 = vmatpush1.bf16.msra.mxu1 %v8255_v14  ;;  %v8339_v29 = vld [vmem:[%s11224_s1 + $0x14a8] ss:$16 sps:$4 sm:$0xff]   ;;  %v8344_v14 = vld [vmem:[%s11224_s1 + $0x14c4] ss:$16 sps:$4 sm:$0xff]  }
 0x260   :  { %5330 = vmatprep.subr.bf16.mxu0 %v8260_v30  ;;  %5863 = vmatprep.subr.bf16.mxu1 %v8263_v31  ;;  %v8347_v30 = vld [vmem:[%s11224_s1 + $0x14cc] ss:$16 sps:$4 sm:$0xff]   ;;  %v8342_v31 = vld [vmem:[%s11224_s1 + $0x14c0] ss:$16 sps:$4 sm:$0xff]  }
 0x263   :  { %5331 = vmatpush1.bf16.msra.mxu0 %v8258_v25  ;;  %5864 = vmatpush1.bf16.msra.mxu1 %v8261_v32  ;;  %v8345_v25 = vld [vmem:[%s11224_s1 + $0x14c8] ss:$16 sps:$4 sm:$0xff]   ;;  %v8350_v32 = vld [vmem:[%s11224_s1 + $0x14e4] ss:$16 sps:$4 sm:$0xff]  }
 0x264   :  { %5332 = vmatprep.subr.bf16.mxu0 %v8266_v33  ;;  %5865 = vmatprep.subr.bf16.mxu1 %v8269_v26  ;;  %v8353_v33 = vld [vmem:[%s11224_s1 + $0x14ec] ss:$16 sps:$4 sm:$0xff]   ;;  %v8348_v26 = vld [vmem:[%s11224_s1 + $0x14e0] ss:$16 sps:$4 sm:$0xff]  }
 0x267   :  { %5333 = vmatpush1.bf16.msra.mxu0 %v8264_v36  ;;  %5866 = vmatpush1.bf16.msra.mxu1 %v8267_v37  ;;  %v8351_v36 = vld [vmem:[%s11224_s1 + $0x14e8] ss:$16 sps:$4 sm:$0xff]   ;;  %v8356_v37 = vld [vmem:[%s11224_s1 + $0x1504] ss:$16 sps:$4 sm:$0xff]  }
 0x268   :  { %5334 = vmatprep.subr.bf16.mxu0 %v8272_v21  ;;  %5867 = vmatprep.subr.bf16.mxu1 %v8275_v39  ;;  %v8359_v21 = vld [vmem:[%s11224_s1 + $0x150c] ss:$16 sps:$4 sm:$0xff]   ;;  %v8354_v39 = vld [vmem:[%s11224_s1 + $0x1500] ss:$16 sps:$4 sm:$0xff]  }
 0x26b   :  { %5335 = vmatpush1.bf16.msra.mxu0 %v8270_v40  ;;  %5868 = vmatpush1.bf16.msra.mxu1 %v8273_v41  ;;  %v8357_v40 = vld [vmem:[%s11224_s1 + $0x1508] ss:$16 sps:$4 sm:$0xff]   ;;  %v8362_v41 = vld [vmem:[%s11224_s1 + $0x1524] ss:$16 sps:$4 sm:$0xff]  }
 0x26c   :  { %5336 = vmatprep.subr.bf16.mxu0 %v8278_v34  ;;  %5869 = vmatprep.subr.bf16.mxu1 %v8281_v43  ;;  %v8365_v34 = vld [vmem:[%s11224_s1 + $0x152c] ss:$16 sps:$4 sm:$0xff]   ;;  %v8360_v43 = vld [vmem:[%s11224_s1 + $0x1520] ss:$16 sps:$4 sm:$0xff]  }
 0x26f   :  { %5337 = vmatpush1.bf16.msra.mxu0 %v8276_v45  ;;  %5870 = vmatpush1.bf16.msra.mxu1 %v8279_v46  ;;  %v8363_v45 = vld [vmem:[%s11224_s1 + $0x1528] ss:$16 sps:$4 sm:$0xff]   ;;  %v8368_v46 = vld [vmem:[%s11224_s1 + $0x1544] ss:$16 sps:$4 sm:$0xff]  }
 0x270   :  { %5338 = vmatprep.subr.bf16.mxu0 %v8284_v35  ;;  %5871 = vmatprep.subr.bf16.mxu1 %v8287_v50  ;;  %v8371_v35 = vld [vmem:[%s11224_s1 + $0x154c] ss:$16 sps:$4 sm:$0xff]   ;;  %v8366_v50 = vld [vmem:[%s11224_s1 + $0x1540] ss:$16 sps:$4 sm:$0xff]  }
 0x273   :  { %5339 = vmatpush1.bf16.msra.mxu0 %v8282_v53  ;;  %5872 = vmatpush1.bf16.msra.mxu1 %v8285_v38  ;;  %v8369_v53 = vld [vmem:[%s11224_s1 + $0x1548] ss:$16 sps:$4 sm:$0xff]   ;;  %v8374_v38 = vld [vmem:[%s11224_s1 + $0x1564] ss:$16 sps:$4 sm:$0xff]  }
 0x274   :  { %5340 = vmatprep.subr.bf16.mxu0 %v8290_v54  ;;  %5873 = vmatprep.subr.bf16.mxu1 %v8293_v55  ;;  %v8377_v54 = vld [vmem:[%s11224_s1 + $0x156c] ss:$16 sps:$4 sm:$0xff]   ;;  %v8372_v55 = vld [vmem:[%s11224_s1 + $0x1560] ss:$16 sps:$4 sm:$0xff]  }
 0x277   :  { %5341 = vmatpush1.bf16.msra.mxu0 %v8288_v56  ;;  %5874 = vmatpush1.bf16.msra.mxu1 %v8291_v47  ;;  %v8375_v56 = vld [vmem:[%s11224_s1 + $0x1568] ss:$16 sps:$4 sm:$0xff]   ;;  %v8380_v47 = vld [vmem:[%s11224_s1 + $0x1584] ss:$16 sps:$4 sm:$0xff]  }
 0x278   :  { %5342 = vmatprep.subr.bf16.mxu0 %v8296_v57  ;;  %5875 = vmatprep.subr.bf16.mxu1 %v8299_v58  ;;  %v8383_v57 = vld [vmem:[%s11224_s1 + $0x158c] ss:$16 sps:$4 sm:$0xff]   ;;  %v8378_v58 = vld [vmem:[%s11224_s1 + $0x1580] ss:$16 sps:$4 sm:$0xff]  }
 0x27b   :  { %5343 = vmatpush1.bf16.msra.mxu0 %v8294_v48  ;;  %5876 = vmatpush1.bf16.msra.mxu1 %v8297_v61  ;;  %v8386_v48 = vld [vmem:[%s11224_s1 + $0x15a4] ss:$16 sps:$4 sm:$0xff]   ;;  %v8389_v61 = vld [vmem:[%s11224_s1 + $0x15ac] ss:$16 sps:$4 sm:$0xff]  }
 0x27c   :  { %5344 = vmatprep.subr.bf16.mxu0 %v8302_v63  ;;  %5877 = vmatprep.subr.bf16.mxu1 %v8305_v44  ;;  %v8384_v63 = vld [vmem:[%s11224_s1 + $0x15a0] ss:$16 sps:$4 sm:$0xff]   ;;  %v8387_v44 = vld [vmem:[%s11224_s1 + $0x15a8] ss:$16 sps:$4 sm:$0xff]  }
 0x27f   :  { %5345 = vmatpush1.bf16.msra.mxu0 %v8300_v1  ;;  %5878 = vmatpush1.bf16.msra.mxu1 %v8303_v51  ;;  %v8392_v1 = vld [vmem:[%s11224_s1 + $0x15c4] ss:$16 sps:$4 sm:$0xff]   ;;  %v8395_v51 = vld [vmem:[%s11224_s1 + $0x15cc] ss:$16 sps:$4 sm:$0xff]  }
 0x280   :  { %5355 = vmatprep.subr.bf16.mxu0 %v8308_v2  ;;  %5888 = vmatprep.subr.bf16.mxu1 %v8311_v3  ;;  %v8390_v2 = vld [vmem:[%s11224_s1 + $0x15c0] ss:$16 sps:$4 sm:$0xff]   ;;  %v8393_v3 = vld [vmem:[%s11224_s1 + $0x15c8] ss:$16 sps:$4 sm:$0xff]  }
 0x282   :  { %5347 = vmatmul.mubr.bf16.vlgmr.msra.gmra.mrb[0].mxu0 %v979_v60  ;;  %5880 = vmatmul.mubr.bf16.vlgmr.msra.gmra.mrb[0].mxu1 %v979_v60  ;;  %v8401_v60 = vld [vmem:[%s11224_s1 + $0x15ec] ss:$16 sps:$4 sm:$0xff]  }
 0x283   :  { %5356 = vmatpush1.bf16.msra.mxu0 %v8306_v5  ;;  %5889 = vmatpush1.bf16.msra.mxu1 %v8309_v6  ;;  %v8396_v5 = vld [vmem:[%s11224_s1 + $0x15e0] ss:$16 sps:$4 sm:$0xff]   ;;  %v8399_v6 = vld [vmem:[%s11224_s1 + $0x15e8] ss:$16 sps:$4 sm:$0xff]  }
 0x284   :  { %5357 = vmatprep.subr.bf16.mxu0 %v8314_v7  ;;  %5890 = vmatprep.subr.bf16.mxu1 %v8317_v62  ;;  %v8405_v7 = vld [vmem:[%s11224_s1 + $0x1604] ss:$16 sps:$4 sm:$0xff]   ;;  %v8408_v62 = vld [vmem:[%s11224_s1 + $0x160c] ss:$16 sps:$4 sm:$0xff]  }
 0x285   :  { %5387 = vmatprep.mubr.bf16.mxu0 %v10673_v8  ;;  %5920 = vmatprep.mubr.bf16.mxu1 %v10673_v8 }
 0x287   :  { %5358 = vmatpush1.bf16.msra.mxu0 %v8312_v9  ;;  %5891 = vmatpush1.bf16.msra.mxu1 %v8315_v10  ;;  %v10859_v9 = vrot.slane %v10642_v0, %v8749_v49  ;;  %v8403_v10 = vld [vmem:[%s11224_s1 + $0x1600] ss:$16 sps:$4 sm:$0xff]   ;;  %v8414_v0 = vld [vmem:[%s11224_s1 + $0x162c] ss:$16 sps:$4 sm:$0xff]  }
 0x288   :  { %5359 = vmatprep.subr.bf16.mxu0 %v8320_v11  ;;  %5892 = vmatprep.subr.bf16.mxu1 %v8323_v12  ;;  %v8406_v11 = vld [vmem:[%s11224_s1 + $0x1608] ss:$16 sps:$4 sm:$0xff]   ;;  %v8411_v12 = vld [vmem:[%s11224_s1 + $0x1624] ss:$16 sps:$4 sm:$0xff]  }
 0x28b   :  { %5360 = vmatpush1.bf16.msra.mxu0 %v8318_v52  ;;  %5893 = vmatpush1.bf16.msra.mxu1 %v8321_v15  ;;  %v982_v52 = vcombine.high %v10673_v8, %v10673_v8  ;;  %v8409_v15 = vld [vmem:[%s11224_s1 + $0x1620] ss:$16 sps:$4 sm:$0xff]   ;;  %v8417_v8 = vld [vmem:[%s11224_s1 + $0x1644] ss:$16 sps:$4 sm:$0xff]  }
 0x28c   :  { %5361 = vmatprep.subr.bf16.mxu0 %v8326_v16  ;;  %5894 = vmatprep.subr.bf16.mxu1 %v8329_v17  ;;  %v8412_v16 = vld [vmem:[%s11224_s1 + $0x1628] ss:$16 sps:$4 sm:$0xff]   ;;  %v8420_v17 = vld [vmem:[%s11224_s1 + $0x164c] ss:$16 sps:$4 sm:$0xff]  }
 0x28f   :  { %5362 = vmatpush1.bf16.msra.mxu0 %v8324_v18  ;;  %5895 = vmatpush1.bf16.msra.mxu1 %v8327_v19  ;;  %v8415_v18 = vld [vmem:[%s11224_s1 + $0x1640] ss:$16 sps:$4 sm:$0xff]   ;;  %v8418_v19 = vld [vmem:[%s11224_s1 + $0x1648] ss:$16 sps:$4 sm:$0xff]  }
 0x290   :  { %5363 = vmatprep.subr.bf16.mxu0 %v8332_v20  ;;  %5896 = vmatprep.subr.bf16.mxu1 %v8335_v22  ;;  %v8423_v20 = vld [vmem:[%s11224_s1 + $0x1664] ss:$16 sps:$4 sm:$0xff]   ;;  %v8426_v22 = vld [vmem:[%s11224_s1 + $0x166c] ss:$16 sps:$4 sm:$0xff]  }
 0x293   :  { %5364 = vmatpush1.bf16.msra.mxu0 %v8330_v23  ;;  %5897 = vmatpush1.bf16.msra.mxu1 %v8333_v24  ;;  %v8421_v23 = vld [vmem:[%s11224_s1 + $0x1660] ss:$16 sps:$4 sm:$0xff]   ;;  %v8424_v24 = vld [vmem:[%s11224_s1 + $0x1668] ss:$16 sps:$4 sm:$0xff]  }
 0x294   :  { %5365 = vmatprep.subr.bf16.mxu0 %v8338_v13  ;;  %5898 = vmatprep.subr.bf16.mxu1 %v8341_v27  ;;  %v8429_v13 = vld [vmem:[%s11224_s1 + $0x1684] ss:$16 sps:$4 sm:$0xff]   ;;  %v8432_v27 = vld [vmem:[%s11224_s1 + $0x168c] ss:$16 sps:$4 sm:$0xff]  }
 0x297   :  { %5366 = vmatpush1.bf16.msra.mxu0 %v8336_v28  ;;  %5899 = vmatpush1.bf16.msra.mxu1 %v8339_v29  ;;  %v8427_v28 = vld [vmem:[%s11224_s1 + $0x1680] ss:$16 sps:$4 sm:$0xff]   ;;  %v8430_v29 = vld [vmem:[%s11224_s1 + $0x1688] ss:$16 sps:$4 sm:$0xff]  }
 0x298   :  { %5367 = vmatprep.subr.bf16.mxu0 %v8344_v14  ;;  %5900 = vmatprep.subr.bf16.mxu1 %v8347_v30  ;;  %v8435_v14 = vld [vmem:[%s11224_s1 + $0x16a4] ss:$16 sps:$4 sm:$0xff]   ;;  %v8438_v30 = vld [vmem:[%s11224_s1 + $0x16ac] ss:$16 sps:$4 sm:$0xff]  }
 0x29b   :  { %5368 = vmatpush1.bf16.msra.mxu0 %v8342_v31  ;;  %5901 = vmatpush1.bf16.msra.mxu1 %v8345_v25  ;;  %v8433_v31 = vld [vmem:[%s11224_s1 + $0x16a0] ss:$16 sps:$4 sm:$0xff]   ;;  %v8436_v25 = vld [vmem:[%s11224_s1 + $0x16a8] ss:$16 sps:$4 sm:$0xff]  }
 0x29c   :  { %5369 = vmatprep.subr.bf16.mxu0 %v8350_v32  ;;  %5902 = vmatprep.subr.bf16.mxu1 %v8353_v33  ;;  %v8441_v32 = vld [vmem:[%s11224_s1 + $0x16c4] ss:$16 sps:$4 sm:$0xff]   ;;  %v8444_v33 = vld [vmem:[%s11224_s1 + $0x16cc] ss:$16 sps:$4 sm:$0xff]  }
 0x29f   :  { %5370 = vmatpush1.bf16.msra.mxu0 %v8348_v26  ;;  %5903 = vmatpush1.bf16.msra.mxu1 %v8351_v36  ;;  %v8439_v26 = vld [vmem:[%s11224_s1 + $0x16c0] ss:$16 sps:$4 sm:$0xff]   ;;  %v8442_v36 = vld [vmem:[%s11224_s1 + $0x16c8] ss:$16 sps:$4 sm:$0xff]  }
 0x2a0   :  { %5371 = vmatprep.subr.bf16.mxu0 %v8356_v37  ;;  %5904 = vmatprep.subr.bf16.mxu1 %v8359_v21  ;;  %v8447_v37 = vld [vmem:[%s11224_s1 + $0x16e4] ss:$16 sps:$4 sm:$0xff]   ;;  %v8450_v21 = vld [vmem:[%s11224_s1 + $0x16ec] ss:$16 sps:$4 sm:$0xff]  }
 0x2a3   :  { %5372 = vmatpush1.bf16.msra.mxu0 %v8354_v39  ;;  %5905 = vmatpush1.bf16.msra.mxu1 %v8357_v40  ;;  %v8445_v39 = vld [vmem:[%s11224_s1 + $0x16e0] ss:$16 sps:$4 sm:$0xff]   ;;  %v8448_v40 = vld [vmem:[%s11224_s1 + $0x16e8] ss:$16 sps:$4 sm:$0xff]  }
 0x2a4   :  { %5373 = vmatprep.subr.bf16.mxu0 %v8362_v41  ;;  %5906 = vmatprep.subr.bf16.mxu1 %v8365_v34  ;;  %v8453_v41 = vld [vmem:[%s11224_s1 + $0x1704] ss:$16 sps:$4 sm:$0xff]   ;;  %v8456_v34 = vld [vmem:[%s11224_s1 + $0x170c] ss:$16 sps:$4 sm:$0xff]  }
 0x2a7   :  { %5374 = vmatpush1.bf16.msra.mxu0 %v8360_v43  ;;  %5907 = vmatpush1.bf16.msra.mxu1 %v8363_v45  ;;  %v8451_v43 = vld [vmem:[%s11224_s1 + $0x1700] ss:$16 sps:$4 sm:$0xff]   ;;  %v8454_v45 = vld [vmem:[%s11224_s1 + $0x1708] ss:$16 sps:$4 sm:$0xff]  }
 0x2a8   :  { %5375 = vmatprep.subr.bf16.mxu0 %v8368_v46  ;;  %5908 = vmatprep.subr.bf16.mxu1 %v8371_v35  ;;  %v8459_v46 = vld [vmem:[%s11224_s1 + $0x1724] ss:$16 sps:$4 sm:$0xff]   ;;  %v8462_v35 = vld [vmem:[%s11224_s1 + $0x172c] ss:$16 sps:$4 sm:$0xff]  }
 0x2ab   :  { %5376 = vmatpush1.bf16.msra.mxu0 %v8366_v50  ;;  %5909 = vmatpush1.bf16.msra.mxu1 %v8369_v53  ;;  %v8457_v50 = vld [vmem:[%s11224_s1 + $0x1720] ss:$16 sps:$4 sm:$0xff]   ;;  %v8460_v53 = vld [vmem:[%s11224_s1 + $0x1728] ss:$16 sps:$4 sm:$0xff]  }
 0x2ac   :  { %5377 = vmatprep.subr.bf16.mxu0 %v8374_v38  ;;  %5910 = vmatprep.subr.bf16.mxu1 %v8377_v54  ;;  %v8465_v38 = vld [vmem:[%s11224_s1 + $0x1744] ss:$16 sps:$4 sm:$0xff]   ;;  %v8468_v54 = vld [vmem:[%s11224_s1 + $0x174c] ss:$16 sps:$4 sm:$0xff]  }
 0x2af   :  { %5378 = vmatpush1.bf16.msra.mxu0 %v8372_v55  ;;  %5911 = vmatpush1.bf16.msra.mxu1 %v8375_v56  ;;  %v8463_v55 = vld [vmem:[%s11224_s1 + $0x1740] ss:$16 sps:$4 sm:$0xff]   ;;  %v8466_v56 = vld [vmem:[%s11224_s1 + $0x1748] ss:$16 sps:$4 sm:$0xff]  }
 0x2b0   :  { %5379 = vmatprep.subr.bf16.mxu0 %v8380_v47  ;;  %5912 = vmatprep.subr.bf16.mxu1 %v8383_v57  ;;  %v8471_v47 = vld [vmem:[%s11224_s1 + $0x1764] ss:$16 sps:$4 sm:$0xff]   ;;  %v8474_v57 = vld [vmem:[%s11224_s1 + $0x176c] ss:$16 sps:$4 sm:$0xff]  }
 0x2b3   :  { %5380 = vmatpush1.bf16.msra.mxu0 %v8378_v58  ;;  %5913 = vmatpush1.bf16.msra.mxu1 %v8381_v59  ;;  %v8469_v58 = vld [vmem:[%s11224_s1 + $0x1760] ss:$16 sps:$4 sm:$0xff]   ;;  %v8472_v59 = vld [vmem:[%s11224_s1 + $0x1768] ss:$16 sps:$4 sm:$0xff]  }
 0x2b4   :  { %5381 = vmatprep.subr.bf16.mxu0 %v8386_v48  ;;  %5914 = vmatprep.subr.bf16.mxu1 %v8389_v61  ;;  %v8477_v48 = vld [vmem:[%s11224_s1 + $0x1784] ss:$16 sps:$4 sm:$0xff]   ;;  %v8480_v61 = vld [vmem:[%s11224_s1 + $0x178c] ss:$16 sps:$4 sm:$0xff]  }
 0x2b7   :  { %5382 = vmatpush1.bf16.msra.mxu0 %v8384_v63  ;;  %5915 = vmatpush1.bf16.msra.mxu1 %v8387_v44  ;;  %v8475_v63 = vld [vmem:[%s11224_s1 + $0x1780] ss:$16 sps:$4 sm:$0xff]   ;;  %v8478_v44 = vld [vmem:[%s11224_s1 + $0x1788] ss:$16 sps:$4 sm:$0xff]  }
 0x2b8   :  { %5383 = vmatprep.subr.bf16.mxu0 %v8392_v1  ;;  %5916 = vmatprep.subr.bf16.mxu1 %v8395_v51  ;;  %v8483_v1 = vld [vmem:[%s11224_s1 + $0x17a4] ss:$16 sps:$4 sm:$0xff]   ;;  %v8486_v51 = vld [vmem:[%s11224_s1 + $0x17ac] ss:$16 sps:$4 sm:$0xff]  }
 0x2bb   :  { %5384 = vmatpush1.bf16.msra.mxu0 %v8390_v2  ;;  %5917 = vmatpush1.bf16.msra.mxu1 %v8393_v3  ;;  %v8481_v2 = vld [vmem:[%s11224_s1 + $0x17a0] ss:$16 sps:$4 sm:$0xff]   ;;  %v8484_v3 = vld [vmem:[%s11224_s1 + $0x17a8] ss:$16 sps:$4 sm:$0xff]  }
 0x2bc   :  { %5385 = vmatprep.subr.bf16.mxu0 %v8398_v4  ;;  %5918 = vmatprep.subr.bf16.mxu1 %v8401_v60  ;;  %v8489_v4 = vld [vmem:[%s11224_s1 + $0x17c4] ss:$16 sps:$4 sm:$0xff]   ;;  %v8492_v60 = vld [vmem:[%s11224_s1 + $0x17cc] ss:$16 sps:$4 sm:$0xff]  }
 0x2bf   :  { %5386 = vmatpush1.bf16.msra.mxu0 %v8396_v5  ;;  %5919 = vmatpush1.bf16.msra.mxu1 %v8399_v6  ;;  %v8487_v5 = vld [vmem:[%s11224_s1 + $0x17c0] ss:$16 sps:$4 sm:$0xff]   ;;  %v8490_v6 = vld [vmem:[%s11224_s1 + $0x17c8] ss:$16 sps:$4 sm:$0xff]  }
 0x2c0   :  { %5396 = vmatprep.subr.bf16.mxu0 %v8405_v7  ;;  %5929 = vmatprep.subr.bf16.mxu1 %v8408_v62  ;;  %v8495_v7 = vld [vmem:[%s11224_s1 + $0x17e4] ss:$16 sps:$4 sm:$0xff]   ;;  %v8498_v62 = vld [vmem:[%s11224_s1 + $0x17ec] ss:$16 sps:$4 sm:$0xff]  }
 0x2c2   :  { %5388 = vmatmul.mubr.bf16.vlgmr.msra.gmra.mrb[0].mxu0 %v10859_v9  ;;  %5921 = vmatmul.mubr.bf16.vlgmr.msra.gmra.mrb[0].mxu1 %v10859_v9 }
 0x2c3   :  { %5397 = vmatpush1.bf16.msra.mxu0 %v8403_v10  ;;  %5930 = vmatpush1.bf16.msra.mxu1 %v8406_v11  ;;  %v8493_v10 = vld [vmem:[%s11224_s1 + $0x17e0] ss:$16 sps:$4 sm:$0xff]   ;;  %v8496_v11 = vld [vmem:[%s11224_s1 + $0x17e8] ss:$16 sps:$4 sm:$0xff]  }
 0x2c4   :  { %5398 = vmatprep.subr.bf16.mxu0 %v8411_v12  ;;  %5931 = vmatprep.subr.bf16.mxu1 %v8414_v0  ;;  %v8501_v12 = vld [vmem:[%s11224_s1 + $0x1804] ss:$16 sps:$4 sm:$0xff]   ;;  %v8504_v0 = vld [vmem:[%s11224_s1 + $0x180c] ss:$16 sps:$4 sm:$0xff]  }
 0x2c5   :  { %5428 = vmatprep.mubr.bf16.mxu0 %v982_v52  ;;  %5961 = vmatprep.mubr.bf16.mxu1 %v982_v52  ;;  %v980_v52 = vcombine.high %v10859_v9, %v10859_v9  ;;  %v8510_v9 = vld [vmem:[%s11224_s1 + $0x182c] ss:$16 sps:$4 sm:$0xff]  }
 0x2c7   :  { %5399 = vmatpush1.bf16.msra.mxu0 %v8409_v15  ;;  %5932 = vmatpush1.bf16.msra.mxu1 %v8412_v16  ;;  %v8499_v15 = vld [vmem:[%s11224_s1 + $0x1800] ss:$16 sps:$4 sm:$0xff]   ;;  %v8502_v16 = vld [vmem:[%s11224_s1 + $0x1808] ss:$16 sps:$4 sm:$0xff]  }
 0x2c8   :  { %5400 = vmatprep.subr.bf16.mxu0 %v8417_v8  ;;  %5933 = vmatprep.subr.bf16.mxu1 %v8420_v17  ;;  %v8507_v8 = vld [vmem:[%s11224_s1 + $0x1824] ss:$16 sps:$4 sm:$0xff]   ;;  %v8505_v17 = vld [vmem:[%s11224_s1 + $0x1820] ss:$16 sps:$4 sm:$0xff]  }
 0x2cb   :  { %5401 = vmatpush1.bf16.msra.mxu0 %v8415_v18  ;;  %5934 = vmatpush1.bf16.msra.mxu1 %v8418_v19  ;;  %v8508_v18 = vld [vmem:[%s11224_s1 + $0x1828] ss:$16 sps:$4 sm:$0xff]   ;;  %v8513_v19 = vld [vmem:[%s11224_s1 + $0x1844] ss:$16 sps:$4 sm:$0xff]  }
 0x2cc   :  { %5402 = vmatprep.subr.bf16.mxu0 %v8423_v20  ;;  %5935 = vmatprep.subr.bf16.mxu1 %v8426_v22  ;;  %v8516_v20 = vld [vmem:[%s11224_s1 + $0x184c] ss:$16 sps:$4 sm:$0xff]   ;;  %v8582_v22 = vmov 0  }
 0x2cf   :  { %5403 = vmatpush1.bf16.msra.mxu0 %v8421_v23  ;;  %5936 = vmatpush1.bf16.msra.mxu1 %v8424_v24  ;;  %v8511_v23 = vld [vmem:[%s11224_s1 + $0x1840] ss:$16 sps:$4 sm:$0xff]   ;;  %v8514_v24 = vld [vmem:[%s11224_s1 + $0x1848] ss:$16 sps:$4 sm:$0xff]  }
 0x2d0   :  { %5404 = vmatprep.subr.bf16.mxu0 %v8429_v13  ;;  %5937 = vmatprep.subr.bf16.mxu1 %v8432_v27  ;;  %v8519_v13 = vld [vmem:[%s11224_s1 + $0x1864] ss:$16 sps:$4 sm:$0xff]   ;;  %v8522_v27 = vld [vmem:[%s11224_s1 + $0x186c] ss:$16 sps:$4 sm:$0xff]  }
 0x2d3   :  { %5405 = vmatpush1.bf16.msra.mxu0 %v8427_v28  ;;  %5938 = vmatpush1.bf16.msra.mxu1 %v8430_v29  ;;  %v8517_v28 = vld [vmem:[%s11224_s1 + $0x1860] ss:$16 sps:$4 sm:$0xff]   ;;  %v8520_v29 = vld [vmem:[%s11224_s1 + $0x1868] ss:$16 sps:$4 sm:$0xff]  }
 0x2d4   :  { %5406 = vmatprep.subr.bf16.mxu0 %v8435_v14  ;;  %5939 = vmatprep.subr.bf16.mxu1 %v8438_v30  ;;  %v6377_v14 = vld.sshfl [vmem:[%s11223_s0 + $0x18] sm:$0x1 pattern:$0x75316420]  ;;  %v8523_v30 = vld [vmem:[%s11226_s3 + $0x40] sm:$0xff]  }
 0x2d7   :  { %5407 = vmatpush1.bf16.msra.mxu0 %v8433_v31  ;;  %5940 = vmatpush1.bf16.msra.mxu1 %v8436_v25  ;;  %v8524_v31 = vld [vmem:[%s11226_s3 + $0xc0] sm:$0xff]   ;;  %v996_v25 = vrot.slane %v6377_v14, %v8749_v49  ;;  %v8528_v49 = vld [vmem:[%s11226_s3 + $0xc8] sm:$0xff]  }
 0x2d8   :  { %5408 = vmatprep.subr.bf16.mxu0 %v8441_v32  ;;  %5941 = vmatprep.subr.bf16.mxu1 %v8444_v33  ;;  %v8525_v32 = vld [vmem:[%s11226_s3] sm:$0xff]  }
 0x2d9   :  { %v8526_v33 = vld [vmem:[%s11226_s3 + $0x80] sm:$0xff]  }
 0x2db   :  { %5409 = vmatpush1.bf16.msra.mxu0 %v8439_v26  ;;  %5942 = vmatpush1.bf16.msra.mxu1 %v8442_v36  ;;  %v8527_v26 = vld [vmem:[%s11226_s3 + $0x48] sm:$0xff]  }
 0x2dc   :  { %5410 = vmatprep.subr.bf16.mxu0 %v8447_v37  ;;  %5943 = vmatprep.subr.bf16.mxu1 %v8450_v21  ;;  %v8529_v36 = vld [vmem:[%s11226_s3 + $0x8] sm:$0xff]   ;;  %v8531_v21 = vld [vmem:[%s11226_s3 + $0x50] sm:$0xff]  }
 0x2dd   :  { %v8530_v37 = vld [vmem:[%s11226_s3 + $0x88] sm:$0xff]  }
 0x2df   :  { %5411 = vmatpush1.bf16.msra.mxu0 %v8445_v39  ;;  %5944 = vmatpush1.bf16.msra.mxu1 %v8448_v40  ;;  %v8532_v39 = vld [vmem:[%s11226_s3 + $0xd0] sm:$0xff]  }
 0x2e0   :  { %5412 = vmatprep.subr.bf16.mxu0 %v8453_v41  ;;  %5945 = vmatprep.subr.bf16.mxu1 %v8456_v34  ;;  %v8533_v40 = vld [vmem:[%s11226_s3 + $0x10] sm:$0xff]   ;;  %v8535_v34 = vld [vmem:[%s11226_s3 + $0x58] sm:$0xff]  }
 0x2e1   :  { %v8534_v41 = vld [vmem:[%s11226_s3 + $0x90] sm:$0xff]  }
 0x2e3   :  { %5413 = vmatpush1.bf16.msra.mxu0 %v8451_v43  ;;  %5946 = vmatpush1.bf16.msra.mxu1 %v8454_v45  ;;  %v8536_v43 = vld [vmem:[%s11226_s3 + $0xd8] sm:$0xff]  }
 0x2e4   :  { %5414 = vmatprep.subr.bf16.mxu0 %v8459_v46  ;;  %5947 = vmatprep.subr.bf16.mxu1 %v8462_v35  ;;  %v8537_v45 = vld [vmem:[%s11226_s3 + $0x18] sm:$0xff]   ;;  %v8539_v35 = vld [vmem:[%s11226_s3 + $0x60] sm:$0xff]  }
 0x2e5   :  { %v8538_v46 = vld [vmem:[%s11226_s3 + $0x98] sm:$0xff]  }
 0x2e7   :  { %5415 = vmatpush1.bf16.msra.mxu0 %v8457_v50  ;;  %5948 = vmatpush1.bf16.msra.mxu1 %v8460_v53  ;;  %v8540_v50 = vld [vmem:[%s11226_s3 + $0xe0] sm:$0xff]  }
 0x2e8   :  { %5416 = vmatprep.subr.bf16.mxu0 %v8465_v38  ;;  %5949 = vmatprep.subr.bf16.mxu1 %v8468_v54  ;;  %v8541_v53 = vld [vmem:[%s11226_s3 + $0x20] sm:$0xff]   ;;  %v8543_v54 = vld [vmem:[%s11226_s3 + $0x68] sm:$0xff]  }
 0x2e9   :  { %v8542_v38 = vld [vmem:[%s11226_s3 + $0xa0] sm:$0xff]  }
 0x2eb   :  { %5417 = vmatpush1.bf16.msra.mxu0 %v8463_v55  ;;  %5950 = vmatpush1.bf16.msra.mxu1 %v8466_v56  ;;  %v8544_v55 = vld [vmem:[%s11226_s3 + $0xe8] sm:$0xff]  }
 0x2ec   :  { %5418 = vmatprep.subr.bf16.mxu0 %v8471_v47  ;;  %5951 = vmatprep.subr.bf16.mxu1 %v8474_v57  ;;  %v8545_v56 = vld [vmem:[%s11226_s3 + $0x28] sm:$0xff]   ;;  %v8547_v57 = vld [vmem:[%s11226_s3 + $0x70] sm:$0xff]  }
 0x2ed   :  { %v8546_v47 = vld [vmem:[%s11226_s3 + $0xa8] sm:$0xff]  }
 0x2ef   :  { %5419 = vmatpush1.bf16.msra.mxu0 %v8469_v58  ;;  %5952 = vmatpush1.bf16.msra.mxu1 %v8472_v59  ;;  %v8548_v58 = vld [vmem:[%s11226_s3 + $0xf0] sm:$0xff]  }
 0x2f0   :  { %5420 = vmatprep.subr.bf16.mxu0 %v8477_v48  ;;  %5953 = vmatprep.subr.bf16.mxu1 %v8480_v61  ;;  %v8549_v59 = vld [vmem:[%s11226_s3 + $0x30] sm:$0xff]   ;;  %v8551_v61 = vld [vmem:[%s11226_s3 + $0x78] sm:$0xff]  }
 0x2f1   :  { %v8550_v48 = vld [vmem:[%s11226_s3 + $0xb0] sm:$0xff]  }
 0x2f3   :  { %5421 = vmatpush1.bf16.msra.mxu0 %v8475_v63  ;;  %5954 = vmatpush1.bf16.msra.mxu1 %v8478_v44  ;;  %v8552_v63 = vld [vmem:[%s11226_s3 + $0xf8] sm:$0xff]  }
 0x2f4   :  { %5422 = vmatprep.subr.bf16.mxu0 %v8483_v1  ;;  %5955 = vmatprep.subr.bf16.mxu1 %v8486_v51  ;;  %v8553_v44 = vld [vmem:[%s11226_s3 + $0x38] sm:$0xff]   ;;  %v814_v51 = vsub.s32 0, %v8731_v42 }
 0x2f5   :  { %v8554_v1 = vld [vmem:[%s11226_s3 + $0xb8] sm:$0xff]  }
 0x2f7   :  { %5423 = vmatpush1.bf16.msra.mxu0 %v8481_v2  ;;  %5956 = vmatpush1.bf16.msra.mxu1 %v8484_v3  ;;  %v822_v2 = vsub.s32 2, %v8731_v42  ;;  %v810_v3 = vld [vmem:[%s11225_s2] sm:$0xf] }
 0x2f8   :  { %5424 = vmatprep.subr.bf16.mxu0 %v8489_v4  ;;  %5957 = vmatprep.subr.bf16.mxu1 %v8492_v60  ;;  %v818_v4 = vsub.s32 1, %v8731_v42  ;;  %v826_v60 = vsub.s32 3, %v8731_v42 }
 0x2fb   :  { %5425 = vmatpush1.bf16.msra.mxu0 %v8487_v5  ;;  %5958 = vmatpush1.bf16.msra.mxu1 %v8490_v6  ;;  %v815_v5 = vrot.slane %v810_v3, %v814_v51  ;;  %v823_v6 = vrot.slane %v810_v3, %v822_v2 }
 0x2fc   :  { %5426 = vmatprep.subr.bf16.mxu0 %v8495_v7  ;;  %5959 = vmatprep.subr.bf16.mxu1 %v8498_v62  ;;  %v819_v7 = vrot.slane %v810_v3, %v818_v4  ;;  %v827_v62 = vrot.slane %v810_v3, %v826_v60 }
 0x2ff   :  { %5427 = vmatpush1.bf16.msra.mxu0 %v8493_v10  ;;  %5960 = vmatpush1.bf16.msra.mxu1 %v8496_v11 }
 0x300   :  { %5437 = vmatprep.subr.bf16.mxu0 %v8501_v12  ;;  %5970 = vmatprep.subr.bf16.mxu1 %v8504_v0 }
 0x302   :  { %5429 = vmatmul.mubr.bf16.vlgmr.msra.gmra.mrb[0].mxu0 %v980_v52  ;;  %5962 = vmatmul.mubr.bf16.vlgmr.msra.gmra.mrb[0].mxu1 %v980_v52 }
 0x303   :  { %5438 = vmatpush1.bf16.msra.mxu0 %v8499_v15  ;;  %5971 = vmatpush1.bf16.msra.mxu1 %v8502_v16 }
 0x304   :  { %5439 = vmatprep.subr.bf16.mxu0 %v8507_v8  ;;  %5972 = vmatprep.subr.bf16.mxu1 %v8510_v9 }
 0x305   :  { %5469 = vmatprep.mubr.bf16.mxu0 %v8582_v22  ;;  %6002 = vmatprep.mubr.bf16.mxu1 %v8582_v22 }
 0x307   :  { %5440 = vmatpush1.bf16.msra.mxu0 %v8505_v17  ;;  %5973 = vmatpush1.bf16.msra.mxu1 %v8508_v18 }
 0x308   :  { %5441 = vmatprep.subr.bf16.mxu0 %v8513_v19  ;;  %5974 = vmatprep.subr.bf16.mxu1 %v8516_v20 }
 0x30b   :  { %5442 = vmatpush1.bf16.msra.mxu0 %v8511_v23  ;;  %5975 = vmatpush1.bf16.msra.mxu1 %v8514_v24 }
 0x30c   :  { %5443 = vmatprep.subr.bf16.mxu0 %v8519_v13  ;;  %5976 = vmatprep.subr.bf16.mxu1 %v8522_v27 }
 0x30f   :  { %5444 = vmatpush1.bf16.msra.mxu0 %v8517_v28  ;;  %5977 = vmatpush1.bf16.msra.mxu1 %v8520_v29 }
 0x310   :  { %7197 = vmatprep.subr.bf16.mxu0 %v8523_v30  ;;  %7219 = vmatprep.subr.bf16.mxu1 %v8524_v31  ;;  %v7164_v30 = vld [vmem:[%s11227_s4] ss:$0 sm:$0xff] }
 0x312   :  { %7162 = vmatmul.mubr.msk.bf16.vlgmr.msra.gmra.mrb[0].mxu0 %vm4941_vm0, %v996_v25  ;;  %7163 = vmatmul.mubr.msk.bf16.vlgmr.msra.gmra.mrb[0].mxu1 %vm4941_vm0, %v996_v25 }
 0x313   :  { %7198 = vmatpush3.bf16.msra.mxu0 %v8525_v32  ;;  %7220 = vmatpush3.bf16.msra.mxu1 %v8526_v33 }
 0x314   :  { %7199 = vmatprep.subr.bf16.mxu0 %v8527_v26  ;;  %7221 = vmatprep.subr.bf16.mxu1 %v8528_v49 }
 0x317   :  { %7200 = vmatpush3.bf16.msra.mxu0 %v8529_v36  ;;  %7222 = vmatpush3.bf16.msra.mxu1 %v8530_v37 }
 0x318   :  { %7201 = vmatprep.subr.bf16.mxu0 %v8531_v21  ;;  %7223 = vmatprep.subr.bf16.mxu1 %v8532_v39 }
 0x31b   :  { %7202 = vmatpush3.bf16.msra.mxu0 %v8533_v40  ;;  %7224 = vmatpush3.bf16.msra.mxu1 %v8534_v41 }
 0x31c   :  { %7203 = vmatprep.subr.bf16.mxu0 %v8535_v34  ;;  %7225 = vmatprep.subr.bf16.mxu1 %v8536_v43 }
 0x31f   :  { %7204 = vmatpush3.bf16.msra.mxu0 %v8537_v45  ;;  %7226 = vmatpush3.bf16.msra.mxu1 %v8538_v46 }
 0x320   :  { %7205 = vmatprep.subr.bf16.mxu0 %v8539_v35  ;;  %7227 = vmatprep.subr.bf16.mxu1 %v8540_v50 }
 0x323   :  { %7206 = vmatpush3.bf16.msra.mxu0 %v8541_v53  ;;  %7228 = vmatpush3.bf16.msra.mxu1 %v8542_v38 }
 0x324   :  { %7207 = vmatprep.subr.bf16.mxu0 %v8543_v54  ;;  %7229 = vmatprep.subr.bf16.mxu1 %v8544_v55 }
 0x327   :  { %7208 = vmatpush3.bf16.msra.mxu0 %v8545_v56  ;;  %7230 = vmatpush3.bf16.msra.mxu1 %v8546_v47 }
 0x328   :  { %7209 = vmatprep.subr.bf16.mxu0 %v8547_v57  ;;  %7231 = vmatprep.subr.bf16.mxu1 %v8548_v58 }
 0x32b   :  { %7210 = vmatpush3.bf16.msra.mxu0 %v8549_v59  ;;  %7232 = vmatpush3.bf16.msra.mxu1 %v8550_v48 }
 0x32c   :  { %7211 = vmatprep.subr.bf16.mxu0 %v8551_v61  ;;  %7233 = vmatprep.subr.bf16.mxu1 %v8552_v63 }
 0x32f   :  { %7212 = vmatpush3.bf16.msra.mxu0 %v8553_v44  ;;  %7234 = vmatpush3.bf16.msra.mxu1 %v8554_v1 }
 0x3e5   :  { %v5471_v10 = vpop.f32.mrb[0].mxu0  ;;  %v6004_v11 = vpop.f32.mrb[0].mxu1 }
 0x3e6   :  { %v7241_v12 = vadd.f32 %v5471_v10, %v815_v5  ;;  %v7243_v0 = vadd.f32 %v6004_v11, %v823_v6  ;;  %v5473_v52 = vpop.f32.mrb[1].mxu0  ;;  %v6006_v15 = vpop.f32.mrb[1].mxu1 }
 0x3e7   :  { %v7242_v16 = vadd.f32 %v5473_v52, %v819_v7  ;;  %v7244_v8 = vadd.f32 %v6006_v15, %v827_v62  ;;  %v5475_v9 = vpop.f32.mrb[2].mxu0  ;;  %v6008_v17 = vpop.f32.mrb[2].mxu1 }
 0x3e8   :  { %v6011_v18 = vmax.f32 %v7241_v12, 0.0  ;;  %v6013_v19 = vmax.f32 %v7243_v0, 0.0  ;;  %v5476_v20 = vpop.f32.mrb[3].mxu0  ;;  %v6009_v22 = vpop.f32.mrb[3].mxu1 }
 0x3e9   :  { %v6012_v23 = vmax.f32 %v7242_v16, 0.0  ;;  %v6014_v42 = vmax.f32 %v7244_v8, 0.0 }
 0x3ea   :  { %v6015_v27 = vpack.c.bf16 %v6011_v18, %v6011_v18  ;;  %v6017_v28 = vpack.c.bf16 %v6013_v19, %v6013_v19 }
 0x3eb   :  { %v6016_v24 = vpack.c.bf16 %v6012_v23, %v6012_v23  ;;  %v6018_v13 = vpack.c.bf16 %v6014_v42, %v6014_v42 }
 0x3ed   :  { %6314 = vmatprep.mubr.bf16.mxu0 %v6016_v24  ;;  %6354 = vmatprep.mubr.bf16.mxu1 %v6018_v13 }
 0x3ee   :  { %6315 = vmatmul.mubr.bf16.vlgmr.msra.gmra.mrb[4].mxu0 %v6015_v27  ;;  %6355 = vmatmul.mubr.bf16.vlgmr.msra.gmra.mrb[4].mxu1 %v6017_v28 }
 0x4c1   :  { %v7213_v29 = vpop.f32.mrb[4].mxu0  ;;  %v7235_v14 = vpop.f32.mrb[4].mxu1 }
 0x4c2   :  { %v7214_v31 = vpop.f32.mrb[5].mxu0  ;;  %v7236_v25 = vpop.f32.mrb[5].mxu1 }
 0x4c3   :  { %v7215_v32 = vadd.f32 %v7214_v31, %v7213_v29  ;;  %v7237_v33 = vadd.f32 %v7236_v25, %v7235_v14  ;;  %v7216_v26 = vpop.f32.mrb[6].mxu0  ;;  %v7238_v49 = vpop.f32.mrb[6].mxu1 }
 0x4c4   :  { %v7217_v36 = vpop.f32.mrb[7].mxu0  ;;  %v7239_v37 = vpop.f32.mrb[7].mxu1 }
 0x4c5   :  { %v6317_v21 = vadd.f32 %v7215_v32, %v7164_v30 }
 0x4c7   :  { %v6357_v39 = vadd.f32 %v7237_v33, %v6317_v21 }
 0x4c9   :  { %6362 = vst [vmem:[#allocation2] sm:$0x3] %v6357_v39 }
 0x4ca   :  { %8568 = shalt.err (!%p8565_p4)
}
 0x4cb   :  { %s8569_s10 = scalar_lea.hbm %s11228_s5, 32 }
 0x4cc   :  { %p8570_p5 = scmp.ne.s32.totalorder %s11228_s5, %s8569_s10  ;;  %p8573_p6 = scmp.lt.u32.totalorder %s8569_s10, %s11228_s5 }
 0x4ce   :  { %p8575_p7 = pnand %p8573_p6, %p8570_p5 }
 0x4d0   :  { %8578 = shalt.err (!%p8575_p7)
}
 0x4d1   :  { %6372 = dma.vmem_to_hbm [thread:$0]  %s6370_s7, 32, %s11228_s5, [#allocation3]  }
 0x4d2   :  { %8579 = dma.done.wait [#allocation3], 32  }
 0x4d3   :  { %8580 = vsyncadd [#allocation3], 4294967264 }
 0x4d4   :  { %6376 = vsyncpa [#allocation3], 1 }

</bundles_post_ra>
